<compile_context>
chip_gen: v7x
topology: tpu7x:2x2x1
jax: 0.10.0
libtpu: 0.0.40
codegen_flags: <defaults>
</compile_context>

<pallas_src>
import jax
import jax.numpy as jnp
from jax.experimental import pallas as pl
from jax.experimental.pallas import tpu as pltpu


# ----------------------------- kernel helpers ------------------------------

def _pool2x2_rows(src_ref, S, emit):
    """2x2 / stride-2 max pool of an (S*S, C) activation held in VMEM.

    Row index of src is h*S + w.  For each output row-block hh (S//2 output
    columns), read the four strided row sets and emit the (S//2, C) max.
    """
    half = S // 2
    for hh in range(half):
        r0 = 2 * hh * S
        r1 = r0 + S
        a = src_ref[pl.ds(r0, half, 2), :]
        b = src_ref[pl.ds(r0 + 1, half, 2), :]
        c = src_ref[pl.ds(r1, half, 2), :]
        d = src_ref[pl.ds(r1 + 1, half, 2), :]
        emit(hh, jnp.maximum(jnp.maximum(a, b), jnp.maximum(c, d)))


def _conv3x3_from_padded(ap_ref, w_ref, S, cout):
    """3x3 / stride-1 / pad-1 conv as 9 shift-and-accumulate MXU matmuls.

    ap_ref is an (S*S + 2*(S+1), Cin) bf16 scratch holding the activation in
    flat (h*S + w) order at offset S+1, with zero rows above/below (handles
    the h boundary).  The w boundary is handled with 0/1 lane masks.
    """
    pad = S + 1
    ridx = jax.lax.broadcasted_iota(jnp.int32, (S * S, 1), 0)
    wcol = ridx % S
    m_left = (wcol >= 1).astype(jnp.bfloat16)        # valid when w-1 >= 0
    m_right = (wcol <= S - 2).astype(jnp.bfloat16)   # valid when w+1 <  S
    acc = jnp.zeros((S * S, cout), jnp.float32)
    for di in (-1, 0, 1):
        for dj in (-1, 0, 1):
            tap = (di + 1) * 3 + (dj + 1)
            shifted = ap_ref[pl.ds(pad + di * S + dj, S * S), :]
            if dj == -1:
                shifted = shifted * m_left
            elif dj == 1:
                shifted = shifted * m_right
            acc = acc + jnp.dot(shifted, w_ref[tap],
                                preferred_element_type=jnp.float32)
    return acc


# ------------------------------ fused kernels -------------------------------

def _conv_stack_kernel(p1_ref, w1_ref, s1_ref, w2_ref, s2_ref, w3_ref, s3_ref,
                       o_ref, t1, ap1, t2, ap2, t3):
    bf16 = jnp.bfloat16

    # conv1 (Cin=1): one MXU matmul on the 3x3 patches; BN folded -> add+ReLU.
    y1 = jnp.dot(p1_ref[0], w1_ref[...], preferred_element_type=jnp.float32)
    t1[...] = jnp.maximum(y1 + s1_ref[...], 0.0)                # (1024, 32)

    # maxpool1: 32x32 -> 16x16, written bf16 into the zero-padded flat scratch.
    ap1[...] = jnp.zeros(ap1.shape, ap1.dtype)
    def emit1(hh, m):
        ap1[pl.ds(17 + hh * 16, 16), :] = m.astype(bf16)
    _pool2x2_rows(t1, 32, emit1)

    # conv2 + BN + ReLU (9 taps, K=32, in VMEM).
    y2 = _conv3x3_from_padded(ap1, w2_ref, 16, 64)              # (256, 64)
    t2[...] = jnp.maximum(y2 + s2_ref[...], 0.0)

    # maxpool2: 16x16 -> 8x8.
    ap2[...] = jnp.zeros(ap2.shape, ap2.dtype)
    def emit2(hh, m):
        ap2[pl.ds(9 + hh * 8, 8), :] = m.astype(bf16)
    _pool2x2_rows(t2, 16, emit2)

    # conv3 + BN + ReLU (9 taps, K=64).
    y3 = _conv3x3_from_padded(ap2, w3_ref, 8, 128)              # (64, 128)
    t3[...] = jnp.maximum(y3 + s3_ref[...], 0.0)

    # maxpool3: 8x8 -> 4x4; write lane-dense NHWC feature rows (h*4+w, c).
    def emit3(hh, m):
        o_ref[0, pl.ds(hh * 4, 4), :] = m.astype(o_ref.dtype)
    _pool2x2_rows(t3, 8, emit3)


def _mlp_kernel(x_ref, w1_ref, b1_ref, w2_ref, b2_ref, o_ref):
    h = jnp.dot(x_ref[...], w1_ref[...], preferred_element_type=jnp.float32)
    h = jnp.maximum(h + b1_ref[...], 0.0)
    # Dropout(0.5) is identity at inference.
    o_ref[...] = jnp.dot(h.astype(jnp.bfloat16), w2_ref[...],
                         preferred_element_type=jnp.float32) + b2_ref[...]


# ------------------------------ JAX glue code --------------------------------

def _im2col_3x3_c1(x_nhw):
    """(N, 32, 32) single-channel input -> (N, 1024, 9) 3x3/pad-1 patches."""
    N, H, W = x_nhw.shape
    xp = jnp.pad(x_nhw, ((0, 0), (1, 1), (1, 1)))
    cols = [xp[:, i:i + H, j:j + W] for i in range(3) for j in range(3)]
    return jnp.stack(cols, axis=-1).reshape(N, H * W, 9)


def cnn_forward(kp, x_nchw):
    N = x_nchw.shape[0]
    x = jnp.squeeze(x_nchw, axis=1)                              # (N, 32, 32)
    patches = _im2col_3x3_c1(x).astype(jnp.bfloat16)             # (N, 1024, 9)

    w1, s1 = kp["conv1"]
    w2, s2 = kp["conv2"]
    w3, s3 = kp["conv3"]

    feats = pl.pallas_call(
        _conv_stack_kernel,
        out_shape=jax.ShapeDtypeStruct((N, 16, 128), jnp.bfloat16),
        grid=(N,),
        in_specs=[
            pl.BlockSpec((1, 1024, 9), lambda i: (i, 0, 0)),
            pl.BlockSpec((9, 32), lambda i: (0, 0)),
            pl.BlockSpec((1, 32), lambda i: (0, 0)),
            pl.BlockSpec((9, 32, 64), lambda i: (0, 0, 0)),
            pl.BlockSpec((1, 64), lambda i: (0, 0)),
            pl.BlockSpec((9, 64, 128), lambda i: (0, 0, 0)),
            pl.BlockSpec((1, 128), lambda i: (0, 0)),
        ],
        out_specs=pl.BlockSpec((1, 16, 128), lambda i: (i, 0, 0)),
        scratch_shapes=[
            pltpu.VMEM((1024, 32), jnp.float32),    # conv1 act (pre-pool)
            pltpu.VMEM((290, 32), jnp.bfloat16),    # padded pooled act 16x16
            pltpu.VMEM((256, 64), jnp.float32),     # conv2 act (pre-pool)
            pltpu.VMEM((82, 64), jnp.bfloat16),     # padded pooled act 8x8
            pltpu.VMEM((64, 128), jnp.float32),     # conv3 act (pre-pool)
        ],
        compiler_params=pltpu.CompilerParams(
            dimension_semantics=("parallel",)),
    )(patches, w1, s1, w2, s2, w3, s3)

    flat = feats.reshape(N, 2048)                                 # row-major, free
    wf1, bf1 = kp["fc1"]
    wf2, bf2 = kp["fc2"]
    ncls = wf2.shape[1]
    out = pl.pallas_call(
        _mlp_kernel,
        out_shape=jax.ShapeDtypeStruct((N, ncls), jnp.float32),
        grid=(1,),
        in_specs=[
            pl.BlockSpec((N, 2048), lambda i: (0, 0)),
            pl.BlockSpec((2048, 512), lambda i: (0, 0)),
            pl.BlockSpec((1, 512), lambda i: (0, 0)),
            pl.BlockSpec((512, ncls), lambda i: (0, 0)),
            pl.BlockSpec((1, ncls), lambda i: (0, 0)),
        ],
        out_specs=pl.BlockSpec((N, ncls), lambda i: (0, 0)),
    )(flat, wf1, bf1, wf2, bf2)
    return out


# -------------------- PyTorch-convention params + folding --------------------

def _fold_bn(w_oihw, b, gamma, beta, mean, var, eps=1e-5):
    # Conv bias + BatchNorm (eval stats) folded into weight scale + shift.
    s = gamma * jax.lax.rsqrt(var + eps)
    shift = (b - mean) * s + beta
    cin = w_oihw.shape[1]
    wmat = jnp.transpose(w_oihw, (2, 3, 1, 0)).reshape(9, cin, -1) * s
    return wmat, shift


def prepare_params(params):
    """One-time transform from PyTorch-convention params to kernel layout."""
    bf16 = jnp.bfloat16
    w1, s1 = _fold_bn(*params["conv1"])
    w2, s2 = _fold_bn(*params["conv2"])
    w3, s3 = _fold_bn(*params["conv3"])
    # fc1: fold the NCHW flatten (c*16 + h*4 + w) -> NHWC ((h*4+w)*128 + c)
    # permutation into the weight rows so the kernel needs no transpose.
    fw1, fb1 = params["fc1"]                     # (512, 2048), (512,)
    fw1 = fw1.T.reshape(128, 4, 4, 512).transpose(1, 2, 0, 3).reshape(2048, 512)
    fw2, fb2 = params["fc2"]                     # (10, 512), (10,)
    return {
        "conv1": (w1.reshape(9, -1).astype(bf16), s1.reshape(1, -1)),
        "conv2": (w2.astype(bf16), s2.reshape(1, -1)),
        "conv3": (w3.astype(bf16), s3.reshape(1, -1)),
        "fc1": (fw1.astype(bf16), fb1.reshape(1, -1)),
        "fc2": (fw2.T.astype(bf16), fb2.reshape(1, -1)),
    }


def init_params(key, num_classes=10):
    ks = jax.random.split(key, 5)

    def conv_block(k, cin, cout):
        kw, kb, kg, kbt, km, kv = jax.random.split(k, 6)
        w = 0.1 * jax.random.normal(kw, (cout, cin, 3, 3), jnp.float32)
        b = 0.1 * jax.random.normal(kb, (cout,), jnp.float32)
        gamma = 1.0 + 0.1 * jax.random.normal(kg, (cout,), jnp.float32)
        beta = 0.1 * jax.random.normal(kbt, (cout,), jnp.float32)
        mean = 0.1 * jax.random.normal(km, (cout,), jnp.float32)
        var = 1.0 + 0.1 * jnp.abs(jax.random.normal(kv, (cout,), jnp.float32))
        return (w, b, gamma, beta, mean, var)

    def linear(k, fan_in, fan_out):
        kw, kb = jax.random.split(k)
        w = 0.05 * jax.random.normal(kw, (fan_out, fan_in), jnp.float32)
        b = 0.05 * jax.random.normal(kb, (fan_out,), jnp.float32)
        return (w, b)

    return {
        "conv1": conv_block(ks[0], 1, 32),
        "conv2": conv_block(ks[1], 32, 64),
        "conv3": conv_block(ks[2], 64, 128),
        "fc1": linear(ks[3], 128 * 4 * 4, 512),
        "fc2": linear(ks[4], 512, num_classes),
    }


# ---------------------------------- main -------------------------------------

if __name__ == "__main__":
    key = jax.random.PRNGKey(0)
    pkey, xkey = jax.random.split(key)
    params = init_params(pkey, num_classes=10)
    kparams = prepare_params(params)            # one-time weight folding
    # Forward implies 32x32 single-channel input (32 -> 16 -> 8 -> 4, 128*4*4).
    x = jax.random.normal(xkey, (2, 1, 32, 32), jnp.float32)

    out = jax.jit(cnn_forward)(kparams, x)
    out = jax.block_until_ready(out)
    assert out.shape == (2, 10) and out.dtype == jnp.float32
    print("KERNEL_OK")
</pallas_src>

<mosaic_0001>
module attributes {stable_mosaic.version = 11 : i64} {
  func.func @_mlp_kernel(%arg0: i32, %arg1: memref<2x2048xbf16, #tpu.memory_space<vmem>>, %arg2: memref<2048x512xbf16, #tpu.memory_space<vmem>>, %arg3: memref<1x512xf32, #tpu.memory_space<vmem>>, %arg4: memref<512x10xbf16, #tpu.memory_space<vmem>>, %arg5: memref<1x10xf32, #tpu.memory_space<vmem>>, %arg6: memref<2x10xf32, #tpu.memory_space<vmem>>) attributes {dimension_semantics = [#tpu.dimension_semantics<arbitrary>], iteration_bounds = array<i64: 1>, scalar_prefetch = 0 : i64, scratch_operands = 0 : i64, tpu.core_type = #tpu.core_type<tc>, window_params = [{pipeline_mode = #tpu.pipeline_mode<synchronous>, transform_indices = @transform_0, window_bounds = array<i64: 2, 2048>}, {pipeline_mode = #tpu.pipeline_mode<synchronous>, transform_indices = @transform_1, window_bounds = array<i64: 2048, 512>}, {pipeline_mode = #tpu.pipeline_mode<synchronous>, transform_indices = @transform_2, window_bounds = array<i64: 1, 512>}, {pipeline_mode = #tpu.pipeline_mode<synchronous>, transform_indices = @transform_3, window_bounds = array<i64: 512, 10>}, {pipeline_mode = #tpu.pipeline_mode<synchronous>, transform_indices = @transform_4, window_bounds = array<i64: 1, 10>}, {pipeline_mode = #tpu.pipeline_mode<synchronous>, transform_indices = @transform_5, window_bounds = array<i64: 2, 10>}]} {
    %c0 = arith.constant 0 : index
    %c0_0 = arith.constant 0 : index
    %0 = vector.load %arg1[%c0, %c0_0] : memref<2x2048xbf16, #tpu.memory_space<vmem>>, vector<2x2048xbf16>
    %c0_1 = arith.constant 0 : index
    %c0_2 = arith.constant 0 : index
    %1 = vector.load %arg2[%c0_1, %c0_2] : memref<2048x512xbf16, #tpu.memory_space<vmem>>, vector<2048x512xbf16>
    %cst = arith.constant dense<0.000000e+00> : vector<2x512xf32>
    %2 = tpu.matmul %0, %1, %cst {dimension_numbers = #tpu.dot_dimension_numbers<[1], [0], [0], [1], [0, 0, 1, 1], [], []>} : vector<2x2048xbf16>, vector<2048x512xbf16>, vector<2x512xf32> -> vector<2x512xf32>
    %c0_3 = arith.constant 0 : index
    %c0_4 = arith.constant 0 : index
    %3 = vector.load %arg3[%c0_3, %c0_4] : memref<1x512xf32, #tpu.memory_space<vmem>>, vector<1x512xf32>
    %4 = vector.broadcast %3 : vector<1x512xf32> to vector<2x512xf32>
    %5 = arith.addf %2, %4 : vector<2x512xf32>
    %cst_5 = arith.constant 0.000000e+00 : f32
    %6 = vector.broadcast %cst_5 : f32 to vector<2x512xf32>
    %7 = arith.maximumf %5, %6 : vector<2x512xf32>
    %8 = arith.truncf %7 : vector<2x512xf32> to vector<2x512xbf16>
    %c0_6 = arith.constant 0 : index
    %c0_7 = arith.constant 0 : index
    %9 = vector.load %arg4[%c0_6, %c0_7] : memref<512x10xbf16, #tpu.memory_space<vmem>>, vector<512x10xbf16>
    %cst_8 = arith.constant dense<0.000000e+00> : vector<2x10xf32>
    %10 = tpu.matmul %8, %9, %cst_8 {dimension_numbers = #tpu.dot_dimension_numbers<[1], [0], [0], [1], [0, 0, 1, 1], [], []>} : vector<2x512xbf16>, vector<512x10xbf16>, vector<2x10xf32> -> vector<2x10xf32>
    %c0_9 = arith.constant 0 : index
    %c0_10 = arith.constant 0 : index
    %11 = vector.load %arg5[%c0_9, %c0_10] : memref<1x10xf32, #tpu.memory_space<vmem>>, vector<1x10xf32>
    %12 = vector.broadcast %11 : vector<1x10xf32> to vector<2x10xf32>
    %13 = arith.addf %10, %12 : vector<2x10xf32>
    %c0_11 = arith.constant 0 : index
    %c0_12 = arith.constant 0 : index
    %14 = vector.load %arg6[%c0_11, %c0_12] : memref<2x10xf32, #tpu.memory_space<vmem>>, vector<2x10xf32>
    tpu.vector_store %arg6[%c0_11, %c0_12], %13 {strides = array<i32>} : memref<2x10xf32, #tpu.memory_space<vmem>>, vector<2x10xf32>,
    return
  }
  func.func @transform_0(%arg0: i32) -> (i32, i32) {
    %c0_i32 = arith.constant 0 : i32
    %c0_i32_0 = arith.constant 0 : i32
    %c0_i32_1 = arith.constant 0 : i32
    return %c0_i32, %c0_i32_0 : i32, i32
  }
  func.func @transform_1(%arg0: i32) -> (i32, i32) {
    %c0_i32 = arith.constant 0 : i32
    %c0_i32_0 = arith.constant 0 : i32
    %c0_i32_1 = arith.constant 0 : i32
    return %c0_i32, %c0_i32_0 : i32, i32
  }
  func.func @transform_2(%arg0: i32) -> (i32, i32) {
    %c0_i32 = arith.constant 0 : i32
    %c0_i32_0 = arith.constant 0 : i32
    %c0_i32_1 = arith.constant 0 : i32
    return %c0_i32, %c0_i32_0 : i32, i32
  }
  func.func @transform_3(%arg0: i32) -> (i32, i32) {
    %c0_i32 = arith.constant 0 : i32
    %c0_i32_0 = arith.constant 0 : i32
    %c0_i32_1 = arith.constant 0 : i32
    return %c0_i32, %c0_i32_0 : i32, i32
  }
  func.func @transform_4(%arg0: i32) -> (i32, i32) {
    %c0_i32 = arith.constant 0 : i32
    %c0_i32_0 = arith.constant 0 : i32
    %c0_i32_1 = arith.constant 0 : i32
    return %c0_i32, %c0_i32_0 : i32, i32
  }
  func.func @transform_5(%arg0: i32) -> (i32, i32) {
    %c0_i32 = arith.constant 0 : i32
    %c0_i32_0 = arith.constant 0 : i32
    %c0_i32_1 = arith.constant 0 : i32
    return %c0_i32, %c0_i32_0 : i32, i32
  }
}

module attributes {stable_mosaic.version = 11 : i64} {
  func.func @_conv_stack_kernel(%arg0: i32, %arg1: memref<1x1024x9xbf16, #tpu.memory_space<vmem>>, %arg2: memref<9x32xbf16, #tpu.memory_space<vmem>>, %arg3: memref<1x32xf32, #tpu.memory_space<vmem>>, %arg4: memref<9x32x64xbf16, #tpu.memory_space<vmem>>, %arg5: memref<1x64xf32, #tpu.memory_space<vmem>>, %arg6: memref<9x64x128xbf16, #tpu.memory_space<vmem>>, %arg7: memref<1x128xf32, #tpu.memory_space<vmem>>, %arg8: memref<1x16x128xbf16, #tpu.memory_space<vmem>>, %arg9: memref<1024x32xf32, #tpu.memory_space<vmem>>, %arg10: memref<290x32xbf16, #tpu.memory_space<vmem>>, %arg11: memref<256x64xf32, #tpu.memory_space<vmem>>, %arg12: memref<82x64xbf16, #tpu.memory_space<vmem>>, %arg13: memref<64x128xf32, #tpu.memory_space<vmem>>) attributes {dimension_semantics = [#tpu.dimension_semantics<parallel>], iteration_bounds = array<i64: 2>, scalar_prefetch = 0 : i64, scratch_operands = 5 : i64, tpu.core_type = #tpu.core_type<tc>, window_params = [{transform_indices = @transform_0, window_bounds = array<i64: 1, 1024, 9>}, {pipeline_mode = #tpu.pipeline_mode<synchronous>, transform_indices = @transform_1, window_bounds = array<i64: 9, 32>}, {pipeline_mode = #tpu.pipeline_mode<synchronous>, transform_indices = @transform_2, window_bounds = array<i64: 1, 32>}, {pipeline_mode = #tpu.pipeline_mode<synchronous>, transform_indices = @transform_3, window_bounds = array<i64: 9, 32, 64>}, {pipeline_mode = #tpu.pipeline_mode<synchronous>, transform_indices = @transform_4, window_bounds = array<i64: 1, 64>}, {pipeline_mode = #tpu.pipeline_mode<synchronous>, transform_indices = @transform_5, window_bounds = array<i64: 9, 64, 128>}, {pipeline_mode = #tpu.pipeline_mode<synchronous>, transform_indices = @transform_6, window_bounds = array<i64: 1, 128>}, {transform_indices = @transform_7, window_bounds = array<i64: 1, 16, 128>}]} {
    %c0 = arith.constant 0 : index
    %c0_0 = arith.constant 0 : index
    %c0_1 = arith.constant 0 : index
    %0 = vector.load %arg1[%c0, %c0_0, %c0_1] : memref<1x1024x9xbf16, #tpu.memory_space<vmem>>, vector<1x1024x9xbf16>
    %1 = vector.shape_cast %0 : vector<1x1024x9xbf16> to vector<1024x9xbf16>
    %c0_2 = arith.constant 0 : index
    %c0_3 = arith.constant 0 : index
    %2 = vector.load %arg2[%c0_2, %c0_3] : memref<9x32xbf16, #tpu.memory_space<vmem>>, vector<9x32xbf16>
    %cst = arith.constant dense<0.000000e+00> : vector<1024x32xf32>
    %3 = tpu.matmul %1, %2, %cst {dimension_numbers = #tpu.dot_dimension_numbers<[1], [0], [0], [1], [0, 0, 1, 1], [], []>} : vector<1024x9xbf16>, vector<9x32xbf16>, vector<1024x32xf32> -> vector<1024x32xf32>
    %c0_4 = arith.constant 0 : index
    %c0_5 = arith.constant 0 : index
    %4 = vector.load %arg3[%c0_4, %c0_5] : memref<1x32xf32, #tpu.memory_space<vmem>>, vector<1x32xf32>
    %5 = vector.broadcast %4 : vector<1x32xf32> to vector<1024x32xf32>
    %6 = arith.addf %3, %5 : vector<1024x32xf32>
    %cst_6 = arith.constant 0.000000e+00 : f32
    %7 = vector.broadcast %cst_6 : f32 to vector<1024x32xf32>
    %8 = arith.maximumf %6, %7 : vector<1024x32xf32>
    %c0_7 = arith.constant 0 : index
    %c0_8 = arith.constant 0 : index
    %9 = vector.load %arg9[%c0_7, %c0_8] : memref<1024x32xf32, #tpu.memory_space<vmem>>, vector<1024x32xf32>
    tpu.vector_store %arg9[%c0_7, %c0_8], %8 {strides = array<i32>} : memref<1024x32xf32, #tpu.memory_space<vmem>>, vector<1024x32xf32>,
    %cst_9 = arith.constant 0.000000e+00 : bf16
    %10 = vector.broadcast %cst_9 : bf16 to vector<290x32xbf16>
    %c0_10 = arith.constant 0 : index
    %c0_11 = arith.constant 0 : index
    %11 = vector.load %arg10[%c0_10, %c0_11] : memref<290x32xbf16, #tpu.memory_space<vmem>>, vector<290x32xbf16>
    tpu.vector_store %arg10[%c0_10, %c0_11], %10 {strides = array<i32>} : memref<290x32xbf16, #tpu.memory_space<vmem>>, vector<290x32xbf16>,
    %c0_12 = arith.constant 0 : index
    %c0_13 = arith.constant 0 : index
    %12 = tpu.strided_load %arg9[%c0_12, %c0_13] {strides = array<i32: 2, 1>} : memref<1024x32xf32, #tpu.memory_space<vmem>>, vector<16x32xf32>
    %c1 = arith.constant 1 : index
    %c0_14 = arith.constant 0 : index
    %13 = tpu.strided_load %arg9[%c1, %c0_14] {strides = array<i32: 2, 1>} : memref<1024x32xf32, #tpu.memory_space<vmem>>, vector<16x32xf32>
    %c32 = arith.constant 32 : index
    %c0_15 = arith.constant 0 : index
    %14 = tpu.strided_load %arg9[%c32, %c0_15] {strides = array<i32: 2, 1>} : memref<1024x32xf32, #tpu.memory_space<vmem>>, vector<16x32xf32>
    %c33 = arith.constant 33 : index
    %c0_16 = arith.constant 0 : index
    %15 = tpu.strided_load %arg9[%c33, %c0_16] {strides = array<i32: 2, 1>} : memref<1024x32xf32, #tpu.memory_space<vmem>>, vector<16x32xf32>
    %16 = arith.maximumf %12, %13 : vector<16x32xf32>
    %17 = arith.maximumf %14, %15 : vector<16x32xf32>
    %18 = arith.maximumf %16, %17 : vector<16x32xf32>
    %19 = arith.truncf %18 : vector<16x32xf32> to vector<16x32xbf16>
    %c17 = arith.constant 17 : index
    %c0_17 = arith.constant 0 : index
    %20 = vector.load %arg10[%c17, %c0_17] : memref<290x32xbf16, #tpu.memory_space<vmem>>, vector<16x32xbf16>
    tpu.vector_store %arg10[%c17, %c0_17], %19 {strides = array<i32>} : memref<290x32xbf16, #tpu.memory_space<vmem>>, vector<16x32xbf16>,
    %c64 = arith.constant 64 : index
    %c0_18 = arith.constant 0 : index
    %21 = tpu.strided_load %arg9[%c64, %c0_18] {strides = array<i32: 2, 1>} : memref<1024x32xf32, #tpu.memory_space<vmem>>, vector<16x32xf32>
    %c65 = arith.constant 65 : index
    %c0_19 = arith.constant 0 : index
    %22 = tpu.strided_load %arg9[%c65, %c0_19] {strides = array<i32: 2, 1>} : memref<1024x32xf32, #tpu.memory_space<vmem>>, vector<16x32xf32>
    %c96 = arith.constant 96 : index
    %c0_20 = arith.constant 0 : index
    %23 = tpu.strided_load %arg9[%c96, %c0_20] {strides = array<i32: 2, 1>} : memref<1024x32xf32, #tpu.memory_space<vmem>>, vector<16x32xf32>
    %c97 = arith.constant 97 : index
    %c0_21 = arith.constant 0 : index
    %24 = tpu.strided_load %arg9[%c97, %c0_21] {strides = array<i32: 2, 1>} : memref<1024x32xf32, #tpu.memory_space<vmem>>, vector<16x32xf32>
    %25 = arith.maximumf %21, %22 : vector<16x32xf32>
    %26 = arith.maximumf %23, %24 : vector<16x32xf32>
    %27 = arith.maximumf %25, %26 : vector<16x32xf32>
    %28 = arith.truncf %27 : vector<16x32xf32> to vector<16x32xbf16>
    %c33_22 = arith.constant 33 : index
    %c0_23 = arith.constant 0 : index
    %29 = vector.load %arg10[%c33_22, %c0_23] : memref<290x32xbf16, #tpu.memory_space<vmem>>, vector<16x32xbf16>
    tpu.vector_store %arg10[%c33_22, %c0_23], %28 {strides = array<i32>} : memref<290x32xbf16, #tpu.memory_space<vmem>>, vector<16x32xbf16>,
    %c128 = arith.constant 128 : index
    %c0_24 = arith.constant 0 : index
    %30 = tpu.strided_load %arg9[%c128, %c0_24] {strides = array<i32: 2, 1>} : memref<1024x32xf32, #tpu.memory_space<vmem>>, vector<16x32xf32>
    %c129 = arith.constant 129 : index
    %c0_25 = arith.constant 0 : index
    %31 = tpu.strided_load %arg9[%c129, %c0_25] {strides = array<i32: 2, 1>} : memref<1024x32xf32, #tpu.memory_space<vmem>>, vector<16x32xf32>
    %c160 = arith.constant 160 : index
    %c0_26 = arith.constant 0 : index
    %32 = tpu.strided_load %arg9[%c160, %c0_26] {strides = array<i32: 2, 1>} : memref<1024x32xf32, #tpu.memory_space<vmem>>, vector<16x32xf32>
    %c161 = arith.constant 161 : index
    %c0_27 = arith.constant 0 : index
    %33 = tpu.strided_load %arg9[%c161, %c0_27] {strides = array<i32: 2, 1>} : memref<1024x32xf32, #tpu.memory_space<vmem>>, vector<16x32xf32>
    %34 = arith.maximumf %30, %31 : vector<16x32xf32>
    %35 = arith.maximumf %32, %33 : vector<16x32xf32>
    %36 = arith.maximumf %34, %35 : vector<16x32xf32>
    %37 = arith.truncf %36 : vector<16x32xf32> to vector<16x32xbf16>
    %c49 = arith.constant 49 : index
    %c0_28 = arith.constant 0 : index
    %38 = vector.load %arg10[%c49, %c0_28] : memref<290x32xbf16, #tpu.memory_space<vmem>>, vector<16x32xbf16>
    tpu.vector_store %arg10[%c49, %c0_28], %37 {strides = array<i32>} : memref<290x32xbf16, #tpu.memory_space<vmem>>, vector<16x32xbf16>,
    %c192 = arith.constant 192 : index
    %c0_29 = arith.constant 0 : index
    %39 = tpu.strided_load %arg9[%c192, %c0_29] {strides = array<i32: 2, 1>} : memref<1024x32xf32, #tpu.memory_space<vmem>>, vector<16x32xf32>
    %c193 = arith.constant 193 : index
    %c0_30 = arith.constant 0 : index
    %40 = tpu.strided_load %arg9[%c193, %c0_30] {strides = array<i32: 2, 1>} : memref<1024x32xf32, #tpu.memory_space<vmem>>, vector<16x32xf32>
    %c224 = arith.constant 224 : index
    %c0_31 = arith.constant 0 : index
    %41 = tpu.strided_load %arg9[%c224, %c0_31] {strides = array<i32: 2, 1>} : memref<1024x32xf32, #tpu.memory_space<vmem>>, vector<16x32xf32>
    %c225 = arith.constant 225 : index
    %c0_32 = arith.constant 0 : index
    %42 = tpu.strided_load %arg9[%c225, %c0_32] {strides = array<i32: 2, 1>} : memref<1024x32xf32, #tpu.memory_space<vmem>>, vector<16x32xf32>
    %43 = arith.maximumf %39, %40 : vector<16x32xf32>
    %44 = arith.maximumf %41, %42 : vector<16x32xf32>
    %45 = arith.maximumf %43, %44 : vector<16x32xf32>
    %46 = arith.truncf %45 : vector<16x32xf32> to vector<16x32xbf16>
    %c65_33 = arith.constant 65 : index
    %c0_34 = arith.constant 0 : index
    %47 = vector.load %arg10[%c65_33, %c0_34] : memref<290x32xbf16, #tpu.memory_space<vmem>>, vector<16x32xbf16>
    tpu.vector_store %arg10[%c65_33, %c0_34], %46 {strides = array<i32>} : memref<290x32xbf16, #tpu.memory_space<vmem>>, vector<16x32xbf16>,
    %c256 = arith.constant 256 : index
    %c0_35 = arith.constant 0 : index
    %48 = tpu.strided_load %arg9[%c256, %c0_35] {strides = array<i32: 2, 1>} : memref<1024x32xf32, #tpu.memory_space<vmem>>, vector<16x32xf32>
    %c257 = arith.constant 257 : index
    %c0_36 = arith.constant 0 : index
    %49 = tpu.strided_load %arg9[%c257, %c0_36] {strides = array<i32: 2, 1>} : memref<1024x32xf32, #tpu.memory_space<vmem>>, vector<16x32xf32>
    %c288 = arith.constant 288 : index
    %c0_37 = arith.constant 0 : index
    %50 = tpu.strided_load %arg9[%c288, %c0_37] {strides = array<i32: 2, 1>} : memref<1024x32xf32, #tpu.memory_space<vmem>>, vector<16x32xf32>
    %c289 = arith.constant 289 : index
    %c0_38 = arith.constant 0 : index
    %51 = tpu.strided_load %arg9[%c289, %c0_38] {strides = array<i32: 2, 1>} : memref<1024x32xf32, #tpu.memory_space<vmem>>, vector<16x32xf32>
    %52 = arith.maximumf %48, %49 : vector<16x32xf32>
    %53 = arith.maximumf %50, %51 : vector<16x32xf32>
    %54 = arith.maximumf %52, %53 : vector<16x32xf32>
    %55 = arith.truncf %54 : vector<16x32xf32> to vector<16x32xbf16>
    %c81 = arith.constant 81 : index
    %c0_39 = arith.constant 0 : index
    %56 = vector.load %arg10[%c81, %c0_39] : memref<290x32xbf16, #tpu.memory_space<vmem>>, vector<16x32xbf16>
    tpu.vector_store %arg10[%c81, %c0_39], %55 {strides = array<i32>} : memref<290x32xbf16, #tpu.memory_space<vmem>>, vector<16x32xbf16>,
    %c320 = arith.constant 320 : index
    %c0_40 = arith.constant 0 : index
    %57 = tpu.strided_load %arg9[%c320, %c0_40] {strides = array<i32: 2, 1>} : memref<1024x32xf32, #tpu.memory_space<vmem>>, vector<16x32xf32>
    %c321 = arith.constant 321 : index
    %c0_41 = arith.constant 0 : index
    %58 = tpu.strided_load %arg9[%c321, %c0_41] {strides = array<i32: 2, 1>} : memref<1024x32xf32, #tpu.memory_space<vmem>>, vector<16x32xf32>
    %c352 = arith.constant 352 : index
    %c0_42 = arith.constant 0 : index
    %59 = tpu.strided_load %arg9[%c352, %c0_42] {strides = array<i32: 2, 1>} : memref<1024x32xf32, #tpu.memory_space<vmem>>, vector<16x32xf32>
    %c353 = arith.constant 353 : index
    %c0_43 = arith.constant 0 : index
    %60 = tpu.strided_load %arg9[%c353, %c0_43] {strides = array<i32: 2, 1>} : memref<1024x32xf32, #tpu.memory_space<vmem>>, vector<16x32xf32>
    %61 = arith.maximumf %57, %58 : vector<16x32xf32>
    %62 = arith.maximumf %59, %60 : vector<16x32xf32>
    %63 = arith.maximumf %61, %62 : vector<16x32xf32>
    %64 = arith.truncf %63 : vector<16x32xf32> to vector<16x32xbf16>
    %c97_44 = arith.constant 97 : index
    %c0_45 = arith.constant 0 : index
    %65 = vector.load %arg10[%c97_44, %c0_45] : memref<290x32xbf16, #tpu.memory_space<vmem>>, vector<16x32xbf16>
    tpu.vector_store %arg10[%c97_44, %c0_45], %64 {strides = array<i32>} : memref<290x32xbf16, #tpu.memory_space<vmem>>, vector<16x32xbf16>,
    %c384 = arith.constant 384 : index
    %c0_46 = arith.constant 0 : index
    %66 = tpu.strided_load %arg9[%c384, %c0_46] {strides = array<i32: 2, 1>} : memref<1024x32xf32, #tpu.memory_space<vmem>>, vector<16x32xf32>
    %c385 = arith.constant 385 : index
    %c0_47 = arith.constant 0 : index
    %67 = tpu.strided_load %arg9[%c385, %c0_47] {strides = array<i32: 2, 1>} : memref<1024x32xf32, #tpu.memory_space<vmem>>, vector<16x32xf32>
    %c416 = arith.constant 416 : index
    %c0_48 = arith.constant 0 : index
    %68 = tpu.strided_load %arg9[%c416, %c0_48] {strides = array<i32: 2, 1>} : memref<1024x32xf32, #tpu.memory_space<vmem>>, vector<16x32xf32>
    %c417 = arith.constant 417 : index
    %c0_49 = arith.constant 0 : index
    %69 = tpu.strided_load %arg9[%c417, %c0_49] {strides = array<i32: 2, 1>} : memref<1024x32xf32, #tpu.memory_space<vmem>>, vector<16x32xf32>
    %70 = arith.maximumf %66, %67 : vector<16x32xf32>
    %71 = arith.maximumf %68, %69 : vector<16x32xf32>
    %72 = arith.maximumf %70, %71 : vector<16x32xf32>
    %73 = arith.truncf %72 : vector<16x32xf32> to vector<16x32xbf16>
    %c113 = arith.constant 113 : index
    %c0_50 = arith.constant 0 : index
    %74 = vector.load %arg10[%c113, %c0_50] : memref<290x32xbf16, #tpu.memory_space<vmem>>, vector<16x32xbf16>
    tpu.vector_store %arg10[%c113, %c0_50], %73 {strides = array<i32>} : memref<290x32xbf16, #tpu.memory_space<vmem>>, vector<16x32xbf16>,
    %c448 = arith.constant 448 : index
    %c0_51 = arith.constant 0 : index
    %75 = tpu.strided_load %arg9[%c448, %c0_51] {strides = array<i32: 2, 1>} : memref<1024x32xf32, #tpu.memory_space<vmem>>, vector<16x32xf32>
    %c449 = arith.constant 449 : index
    %c0_52 = arith.constant 0 : index
    %76 = tpu.strided_load %arg9[%c449, %c0_52] {strides = array<i32: 2, 1>} : memref<1024x32xf32, #tpu.memory_space<vmem>>, vector<16x32xf32>
    %c480 = arith.constant 480 : index
    %c0_53 = arith.constant 0 : index
    %77 = tpu.strided_load %arg9[%c480, %c0_53] {strides = array<i32: 2, 1>} : memref<1024x32xf32, #tpu.memory_space<vmem>>, vector<16x32xf32>
    %c481 = arith.constant 481 : index
    %c0_54 = arith.constant 0 : index
    %78 = tpu.strided_load %arg9[%c481, %c0_54] {strides = array<i32: 2, 1>} : memref<1024x32xf32, #tpu.memory_space<vmem>>, vector<16x32xf32>
    %79 = arith.maximumf %75, %76 : vector<16x32xf32>
    %80 = arith.maximumf %77, %78 : vector<16x32xf32>
    %81 = arith.maximumf %79, %80 : vector<16x32xf32>
    %82 = arith.truncf %81 : vector<16x32xf32> to vector<16x32xbf16>
    %c129_55 = arith.constant 129 : index
    %c0_56 = arith.constant 0 : index
    %83 = vector.load %arg10[%c129_55, %c0_56] : memref<290x32xbf16, #tpu.memory_space<vmem>>, vector<16x32xbf16>
    tpu.vector_store %arg10[%c129_55, %c0_56], %82 {strides = array<i32>} : memref<290x32xbf16, #tpu.memory_space<vmem>>, vector<16x32xbf16>,
    %c512 = arith.constant 512 : index
    %c0_57 = arith.constant 0 : index
    %84 = tpu.strided_load %arg9[%c512, %c0_57] {strides = array<i32: 2, 1>} : memref<1024x32xf32, #tpu.memory_space<vmem>>, vector<16x32xf32>
    %c513 = arith.constant 513 : index
    %c0_58 = arith.constant 0 : index
    %85 = tpu.strided_load %arg9[%c513, %c0_58] {strides = array<i32: 2, 1>} : memref<1024x32xf32, #tpu.memory_space<vmem>>, vector<16x32xf32>
    %c544 = arith.constant 544 : index
    %c0_59 = arith.constant 0 : index
    %86 = tpu.strided_load %arg9[%c544, %c0_59] {strides = array<i32: 2, 1>} : memref<1024x32xf32, #tpu.memory_space<vmem>>, vector<16x32xf32>
    %c545 = arith.constant 545 : index
    %c0_60 = arith.constant 0 : index
    %87 = tpu.strided_load %arg9[%c545, %c0_60] {strides = array<i32: 2, 1>} : memref<1024x32xf32, #tpu.memory_space<vmem>>, vector<16x32xf32>
    %88 = arith.maximumf %84, %85 : vector<16x32xf32>
    %89 = arith.maximumf %86, %87 : vector<16x32xf32>
    %90 = arith.maximumf %88, %89 : vector<16x32xf32>
    %91 = arith.truncf %90 : vector<16x32xf32> to vector<16x32xbf16>
    %c145 = arith.constant 145 : index
    %c0_61 = arith.constant 0 : index
    %92 = vector.load %arg10[%c145, %c0_61] : memref<290x32xbf16, #tpu.memory_space<vmem>>, vector<16x32xbf16>
    tpu.vector_store %arg10[%c145, %c0_61], %91 {strides = array<i32>} : memref<290x32xbf16, #tpu.memory_space<vmem>>, vector<16x32xbf16>,
    %c576 = arith.constant 576 : index
    %c0_62 = arith.constant 0 : index
    %93 = tpu.strided_load %arg9[%c576, %c0_62] {strides = array<i32: 2, 1>} : memref<1024x32xf32, #tpu.memory_space<vmem>>, vector<16x32xf32>
    %c577 = arith.constant 577 : index
    %c0_63 = arith.constant 0 : index
    %94 = tpu.strided_load %arg9[%c577, %c0_63] {strides = array<i32: 2, 1>} : memref<1024x32xf32, #tpu.memory_space<vmem>>, vector<16x32xf32>
    %c608 = arith.constant 608 : index
    %c0_64 = arith.constant 0 : index
    %95 = tpu.strided_load %arg9[%c608, %c0_64] {strides = array<i32: 2, 1>} : memref<1024x32xf32, #tpu.memory_space<vmem>>, vector<16x32xf32>
    %c609 = arith.constant 609 : index
    %c0_65 = arith.constant 0 : index
    %96 = tpu.strided_load %arg9[%c609, %c0_65] {strides = array<i32: 2, 1>} : memref<1024x32xf32, #tpu.memory_space<vmem>>, vector<16x32xf32>
    %97 = arith.maximumf %93, %94 : vector<16x32xf32>
    %98 = arith.maximumf %95, %96 : vector<16x32xf32>
    %99 = arith.maximumf %97, %98 : vector<16x32xf32>
    %100 = arith.truncf %99 : vector<16x32xf32> to vector<16x32xbf16>
    %c161_66 = arith.constant 161 : index
    %c0_67 = arith.constant 0 : index
    %101 = vector.load %arg10[%c161_66, %c0_67] : memref<290x32xbf16, #tpu.memory_space<vmem>>, vector<16x32xbf16>
    tpu.vector_store %arg10[%c161_66, %c0_67], %100 {strides = array<i32>} : memref<290x32xbf16, #tpu.memory_space<vmem>>, vector<16x32xbf16>,
    %c640 = arith.constant 640 : index
    %c0_68 = arith.constant 0 : index
    %102 = tpu.strided_load %arg9[%c640, %c0_68] {strides = array<i32: 2, 1>} : memref<1024x32xf32, #tpu.memory_space<vmem>>, vector<16x32xf32>
    %c641 = arith.constant 641 : index
    %c0_69 = arith.constant 0 : index
    %103 = tpu.strided_load %arg9[%c641, %c0_69] {strides = array<i32: 2, 1>} : memref<1024x32xf32, #tpu.memory_space<vmem>>, vector<16x32xf32>
    %c672 = arith.constant 672 : index
    %c0_70 = arith.constant 0 : index
    %104 = tpu.strided_load %arg9[%c672, %c0_70] {strides = array<i32: 2, 1>} : memref<1024x32xf32, #tpu.memory_space<vmem>>, vector<16x32xf32>
    %c673 = arith.constant 673 : index
    %c0_71 = arith.constant 0 : index
    %105 = tpu.strided_load %arg9[%c673, %c0_71] {strides = array<i32: 2, 1>} : memref<1024x32xf32, #tpu.memory_space<vmem>>, vector<16x32xf32>
    %106 = arith.maximumf %102, %103 : vector<16x32xf32>
    %107 = arith.maximumf %104, %105 : vector<16x32xf32>
    %108 = arith.maximumf %106, %107 : vector<16x32xf32>
    %109 = arith.truncf %108 : vector<16x32xf32> to vector<16x32xbf16>
    %c177 = arith.constant 177 : index
    %c0_72 = arith.constant 0 : index
    %110 = vector.load %arg10[%c177, %c0_72] : memref<290x32xbf16, #tpu.memory_space<vmem>>, vector<16x32xbf16>
    tpu.vector_store %arg10[%c177, %c0_72], %109 {strides = array<i32>} : memref<290x32xbf16, #tpu.memory_space<vmem>>, vector<16x32xbf16>,
    %c704 = arith.constant 704 : index
    %c0_73 = arith.constant 0 : index
    %111 = tpu.strided_load %arg9[%c704, %c0_73] {strides = array<i32: 2, 1>} : memref<1024x32xf32, #tpu.memory_space<vmem>>, vector<16x32xf32>
    %c705 = arith.constant 705 : index
    %c0_74 = arith.constant 0 : index
    %112 = tpu.strided_load %arg9[%c705, %c0_74] {strides = array<i32: 2, 1>} : memref<1024x32xf32, #tpu.memory_space<vmem>>, vector<16x32xf32>
    %c736 = arith.constant 736 : index
    %c0_75 = arith.constant 0 : index
    %113 = tpu.strided_load %arg9[%c736, %c0_75] {strides = array<i32: 2, 1>} : memref<1024x32xf32, #tpu.memory_space<vmem>>, vector<16x32xf32>
    %c737 = arith.constant 737 : index
    %c0_76 = arith.constant 0 : index
    %114 = tpu.strided_load %arg9[%c737, %c0_76] {strides = array<i32: 2, 1>} : memref<1024x32xf32, #tpu.memory_space<vmem>>, vector<16x32xf32>
    %115 = arith.maximumf %111, %112 : vector<16x32xf32>
    %116 = arith.maximumf %113, %114 : vector<16x32xf32>
    %117 = arith.maximumf %115, %116 : vector<16x32xf32>
    %118 = arith.truncf %117 : vector<16x32xf32> to vector<16x32xbf16>
    %c193_77 = arith.constant 193 : index
    %c0_78 = arith.constant 0 : index
    %119 = vector.load %arg10[%c193_77, %c0_78] : memref<290x32xbf16, #tpu.memory_space<vmem>>, vector<16x32xbf16>
    tpu.vector_store %arg10[%c193_77, %c0_78], %118 {strides = array<i32>} : memref<290x32xbf16, #tpu.memory_space<vmem>>, vector<16x32xbf16>,
    %c768 = arith.constant 768 : index
    %c0_79 = arith.constant 0 : index
    %120 = tpu.strided_load %arg9[%c768, %c0_79] {strides = array<i32: 2, 1>} : memref<1024x32xf32, #tpu.memory_space<vmem>>, vector<16x32xf32>
    %c769 = arith.constant 769 : index
    %c0_80 = arith.constant 0 : index
    %121 = tpu.strided_load %arg9[%c769, %c0_80] {strides = array<i32: 2, 1>} : memref<1024x32xf32, #tpu.memory_space<vmem>>, vector<16x32xf32>
    %c800 = arith.constant 800 : index
    %c0_81 = arith.constant 0 : index
    %122 = tpu.strided_load %arg9[%c800, %c0_81] {strides = array<i32: 2, 1>} : memref<1024x32xf32, #tpu.memory_space<vmem>>, vector<16x32xf32>
    %c801 = arith.constant 801 : index
    %c0_82 = arith.constant 0 : index
    %123 = tpu.strided_load %arg9[%c801, %c0_82] {strides = array<i32: 2, 1>} : memref<1024x32xf32, #tpu.memory_space<vmem>>, vector<16x32xf32>
    %124 = arith.maximumf %120, %121 : vector<16x32xf32>
    %125 = arith.maximumf %122, %123 : vector<16x32xf32>
    %126 = arith.maximumf %124, %125 : vector<16x32xf32>
    %127 = arith.truncf %126 : vector<16x32xf32> to vector<16x32xbf16>
    %c209 = arith.constant 209 : index
    %c0_83 = arith.constant 0 : index
    %128 = vector.load %arg10[%c209, %c0_83] : memref<290x32xbf16, #tpu.memory_space<vmem>>, vector<16x32xbf16>
    tpu.vector_store %arg10[%c209, %c0_83], %127 {strides = array<i32>} : memref<290x32xbf16, #tpu.memory_space<vmem>>, vector<16x32xbf16>,
    %c832 = arith.constant 832 : index
    %c0_84 = arith.constant 0 : index
    %129 = tpu.strided_load %arg9[%c832, %c0_84] {strides = array<i32: 2, 1>} : memref<1024x32xf32, #tpu.memory_space<vmem>>, vector<16x32xf32>
    %c833 = arith.constant 833 : index
    %c0_85 = arith.constant 0 : index
    %130 = tpu.strided_load %arg9[%c833, %c0_85] {strides = array<i32: 2, 1>} : memref<1024x32xf32, #tpu.memory_space<vmem>>, vector<16x32xf32>
    %c864 = arith.constant 864 : index
    %c0_86 = arith.constant 0 : index
    %131 = tpu.strided_load %arg9[%c864, %c0_86] {strides = array<i32: 2, 1>} : memref<1024x32xf32, #tpu.memory_space<vmem>>, vector<16x32xf32>
    %c865 = arith.constant 865 : index
    %c0_87 = arith.constant 0 : index
    %132 = tpu.strided_load %arg9[%c865, %c0_87] {strides = array<i32: 2, 1>} : memref<1024x32xf32, #tpu.memory_space<vmem>>, vector<16x32xf32>
    %133 = arith.maximumf %129, %130 : vector<16x32xf32>
    %134 = arith.maximumf %131, %132 : vector<16x32xf32>
    %135 = arith.maximumf %133, %134 : vector<16x32xf32>
    %136 = arith.truncf %135 : vector<16x32xf32> to vector<16x32xbf16>
    %c225_88 = arith.constant 225 : index
    %c0_89 = arith.constant 0 : index
    %137 = vector.load %arg10[%c225_88, %c0_89] : memref<290x32xbf16, #tpu.memory_space<vmem>>, vector<16x32xbf16>
    tpu.vector_store %arg10[%c225_88, %c0_89], %136 {strides = array<i32>} : memref<290x32xbf16, #tpu.memory_space<vmem>>, vector<16x32xbf16>,
    %c896 = arith.constant 896 : index
    %c0_90 = arith.constant 0 : index
    %138 = tpu.strided_load %arg9[%c896, %c0_90] {strides = array<i32: 2, 1>} : memref<1024x32xf32, #tpu.memory_space<vmem>>, vector<16x32xf32>
    %c897 = arith.constant 897 : index
    %c0_91 = arith.constant 0 : index
    %139 = tpu.strided_load %arg9[%c897, %c0_91] {strides = array<i32: 2, 1>} : memref<1024x32xf32, #tpu.memory_space<vmem>>, vector<16x32xf32>
    %c928 = arith.constant 928 : index
    %c0_92 = arith.constant 0 : index
    %140 = tpu.strided_load %arg9[%c928, %c0_92] {strides = array<i32: 2, 1>} : memref<1024x32xf32, #tpu.memory_space<vmem>>, vector<16x32xf32>
    %c929 = arith.constant 929 : index
    %c0_93 = arith.constant 0 : index
    %141 = tpu.strided_load %arg9[%c929, %c0_93] {strides = array<i32: 2, 1>} : memref<1024x32xf32, #tpu.memory_space<vmem>>, vector<16x32xf32>
    %142 = arith.maximumf %138, %139 : vector<16x32xf32>
    %143 = arith.maximumf %140, %141 : vector<16x32xf32>
    %144 = arith.maximumf %142, %143 : vector<16x32xf32>
    %145 = arith.truncf %144 : vector<16x32xf32> to vector<16x32xbf16>
    %c241 = arith.constant 241 : index
    %c0_94 = arith.constant 0 : index
    %146 = vector.load %arg10[%c241, %c0_94] : memref<290x32xbf16, #tpu.memory_space<vmem>>, vector<16x32xbf16>
    tpu.vector_store %arg10[%c241, %c0_94], %145 {strides = array<i32>} : memref<290x32xbf16, #tpu.memory_space<vmem>>, vector<16x32xbf16>,
    %c960 = arith.constant 960 : index
    %c0_95 = arith.constant 0 : index
    %147 = tpu.strided_load %arg9[%c960, %c0_95] {strides = array<i32: 2, 1>} : memref<1024x32xf32, #tpu.memory_space<vmem>>, vector<16x32xf32>
    %c961 = arith.constant 961 : index
    %c0_96 = arith.constant 0 : index
    %148 = tpu.strided_load %arg9[%c961, %c0_96] {strides = array<i32: 2, 1>} : memref<1024x32xf32, #tpu.memory_space<vmem>>, vector<16x32xf32>
    %c992 = arith.constant 992 : index
    %c0_97 = arith.constant 0 : index
    %149 = tpu.strided_load %arg9[%c992, %c0_97] {strides = array<i32: 2, 1>} : memref<1024x32xf32, #tpu.memory_space<vmem>>, vector<16x32xf32>
    %c993 = arith.constant 993 : index
    %c0_98 = arith.constant 0 : index
    %150 = tpu.strided_load %arg9[%c993, %c0_98] {strides = array<i32: 2, 1>} : memref<1024x32xf32, #tpu.memory_space<vmem>>, vector<16x32xf32>
    %151 = arith.maximumf %147, %148 : vector<16x32xf32>
    %152 = arith.maximumf %149, %150 : vector<16x32xf32>
    %153 = arith.maximumf %151, %152 : vector<16x32xf32>
    %154 = arith.truncf %153 : vector<16x32xf32> to vector<16x32xbf16>
    %c257_99 = arith.constant 257 : index
    %c0_100 = arith.constant 0 : index
    %155 = vector.load %arg10[%c257_99, %c0_100] : memref<290x32xbf16, #tpu.memory_space<vmem>>, vector<16x32xbf16>
    tpu.vector_store %arg10[%c257_99, %c0_100], %154 {strides = array<i32>} : memref<290x32xbf16, #tpu.memory_space<vmem>>, vector<16x32xbf16>,
    %156 = tpu.iota {dimensions = array<i32: 0>} : vector<256x1xi32>
    %c16_i32 = arith.constant 16 : i32
    %c0_i32 = arith.constant 0 : i32
    %157 = arith.cmpi eq, %c16_i32, %c0_i32 : i32
    %c1_i32 = arith.constant 1 : i32
    %158 = arith.select %157, %c1_i32, %c16_i32 : i32
    %159 = vector.broadcast %158 : i32 to vector<256x1xi32>
    %160 = arith.remsi %156, %159 : vector<256x1xi32>
    %c0_i32_101 = arith.constant 0 : i32
    %161 = vector.broadcast %c0_i32_101 : i32 to vector<256x1xi32>
    %162 = arith.cmpi ne, %160, %161 : vector<256x1xi32>
    %c0_i32_102 = arith.constant 0 : i32
    %163 = vector.broadcast %c0_i32_102 : i32 to vector<256x1xi32>
    %164 = arith.cmpi slt, %160, %163 : vector<256x1xi32>
    %c0_i32_103 = arith.constant 0 : i32
    %165 = arith.cmpi slt, %158, %c0_i32_103 : i32
    %166 = vector.broadcast %165 : i1 to vector<256x1xi1>
    %167 = vector.broadcast %166 : vector<256x1xi1> to vector<256x1xi1>
    %168 = arith.xori %164, %167 : vector<256x1xi1>
    %169 = arith.andi %168, %162 : vector<256x1xi1>
    %170 = vector.broadcast %158 : i32 to vector<256x1xi32>
    %171 = arith.addi %160, %170 : vector<256x1xi32>
    %172 = arith.select %169, %171, %160 : vector<256x1xi1>, vector<256x1xi32>
    %c1_i32_104 = arith.constant 1 : i32
    %173 = vector.broadcast %c1_i32_104 : i32 to vector<256x1xi32>
    %174 = arith.cmpi sge, %172, %173 : vector<256x1xi32>
    %175 = arith.extui %174 : vector<256x1xi1> to vector<256x1xi32>
    %176 = arith.sitofp %175 : vector<256x1xi32> to vector<256x1xf32>
    %177 = arith.truncf %176 : vector<256x1xf32> to vector<256x1xbf16>
    %c14_i32 = arith.constant 14 : i32
    %178 = vector.broadcast %c14_i32 : i32 to vector<256x1xi32>
    %179 = arith.cmpi sle, %172, %178 : vector<256x1xi32>
    %180 = arith.extui %179 : vector<256x1xi1> to vector<256x1xi32>
    %181 = arith.sitofp %180 : vector<256x1xi32> to vector<256x1xf32>
    %182 = arith.truncf %181 : vector<256x1xf32> to vector<256x1xbf16>
    %cst_105 = arith.constant 0.000000e+00 : f32
    %183 = vector.broadcast %cst_105 : f32 to vector<256x64xf32>
    %c0_106 = arith.constant 0 : index
    %c0_107 = arith.constant 0 : index
    %184 = vector.load %arg10[%c0_106, %c0_107] : memref<290x32xbf16, #tpu.memory_space<vmem>>, vector<256x32xbf16>
    %185 = vector.broadcast %177 : vector<256x1xbf16> to vector<256x32xbf16>
    %186 = arith.mulf %184, %185 : vector<256x32xbf16>
    %c0_108 = arith.constant 0 : index
    %c0_109 = arith.constant 0 : index
    %c0_110 = arith.constant 0 : index
    %187 = vector.load %arg4[%c0_108, %c0_109, %c0_110] : memref<9x32x64xbf16, #tpu.memory_space<vmem>>, vector<1x32x64xbf16>
    %188 = vector.shape_cast %187 : vector<1x32x64xbf16> to vector<32x64xbf16>
    %cst_111 = arith.constant dense<0.000000e+00> : vector<256x64xf32>
    %189 = tpu.matmul %186, %188, %cst_111 {dimension_numbers = #tpu.dot_dimension_numbers<[1], [0], [0], [1], [0, 0, 1, 1], [], []>} : vector<256x32xbf16>, vector<32x64xbf16>, vector<256x64xf32> -> vector<256x64xf32>
    %190 = arith.addf %183, %189 : vector<256x64xf32>
    %c1_112 = arith.constant 1 : index
    %c0_113 = arith.constant 0 : index
    %191 = vector.load %arg10[%c1_112, %c0_113] : memref<290x32xbf16, #tpu.memory_space<vmem>>, vector<256x32xbf16>
    %c1_114 = arith.constant 1 : index
    %c0_115 = arith.constant 0 : index
    %c0_116 = arith.constant 0 : index
    %192 = vector.load %arg4[%c1_114, %c0_115, %c0_116] : memref<9x32x64xbf16, #tpu.memory_space<vmem>>, vector<1x32x64xbf16>
    %193 = vector.shape_cast %192 : vector<1x32x64xbf16> to vector<32x64xbf16>
    %cst_117 = arith.constant dense<0.000000e+00> : vector<256x64xf32>
    %194 = tpu.matmul %191, %193, %cst_117 {dimension_numbers = #tpu.dot_dimension_numbers<[1], [0], [0], [1], [0, 0, 1, 1], [], []>} : vector<256x32xbf16>, vector<32x64xbf16>, vector<256x64xf32> -> vector<256x64xf32>
    %195 = arith.addf %190, %194 : vector<256x64xf32>
    %c2 = arith.constant 2 : index
    %c0_118 = arith.constant 0 : index
    %196 = vector.load %arg10[%c2, %c0_118] : memref<290x32xbf16, #tpu.memory_space<vmem>>, vector<256x32xbf16>
    %197 = vector.broadcast %182 : vector<256x1xbf16> to vector<256x32xbf16>
    %198 = arith.mulf %196, %197 : vector<256x32xbf16>
    %c2_119 = arith.constant 2 : index
    %c0_120 = arith.constant 0 : index
    %c0_121 = arith.constant 0 : index
    %199 = vector.load %arg4[%c2_119, %c0_120, %c0_121] : memref<9x32x64xbf16, #tpu.memory_space<vmem>>, vector<1x32x64xbf16>
    %200 = vector.shape_cast %199 : vector<1x32x64xbf16> to vector<32x64xbf16>
    %cst_122 = arith.constant dense<0.000000e+00> : vector<256x64xf32>
    %201 = tpu.matmul %198, %200, %cst_122 {dimension_numbers = #tpu.dot_dimension_numbers<[1], [0], [0], [1], [0, 0, 1, 1], [], []>} : vector<256x32xbf16>, vector<32x64xbf16>, vector<256x64xf32> -> vector<256x64xf32>
    %202 = arith.addf %195, %201 : vector<256x64xf32>
    %c16 = arith.constant 16 : index
    %c0_123 = arith.constant 0 : index
    %203 = vector.load %arg10[%c16, %c0_123] : memref<290x32xbf16, #tpu.memory_space<vmem>>, vector<256x32xbf16>
    %204 = vector.broadcast %177 : vector<256x1xbf16> to vector<256x32xbf16>
    %205 = arith.mulf %203, %204 : vector<256x32xbf16>
    %c3 = arith.constant 3 : index
    %c0_124 = arith.constant 0 : index
    %c0_125 = arith.constant 0 : index
    %206 = vector.load %arg4[%c3, %c0_124, %c0_125] : memref<9x32x64xbf16, #tpu.memory_space<vmem>>, vector<1x32x64xbf16>
    %207 = vector.shape_cast %206 : vector<1x32x64xbf16> to vector<32x64xbf16>
    %cst_126 = arith.constant dense<0.000000e+00> : vector<256x64xf32>
    %208 = tpu.matmul %205, %207, %cst_126 {dimension_numbers = #tpu.dot_dimension_numbers<[1], [0], [0], [1], [0, 0, 1, 1], [], []>} : vector<256x32xbf16>, vector<32x64xbf16>, vector<256x64xf32> -> vector<256x64xf32>
    %209 = arith.addf %202, %208 : vector<256x64xf32>
    %c17_127 = arith.constant 17 : index
    %c0_128 = arith.constant 0 : index
    %210 = vector.load %arg10[%c17_127, %c0_128] : memref<290x32xbf16, #tpu.memory_space<vmem>>, vector<256x32xbf16>
    %c4 = arith.constant 4 : index
    %c0_129 = arith.constant 0 : index
    %c0_130 = arith.constant 0 : index
    %211 = vector.load %arg4[%c4, %c0_129, %c0_130] : memref<9x32x64xbf16, #tpu.memory_space<vmem>>, vector<1x32x64xbf16>
    %212 = vector.shape_cast %211 : vector<1x32x64xbf16> to vector<32x64xbf16>
    %cst_131 = arith.constant dense<0.000000e+00> : vector<256x64xf32>
    %213 = tpu.matmul %210, %212, %cst_131 {dimension_numbers = #tpu.dot_dimension_numbers<[1], [0], [0], [1], [0, 0, 1, 1], [], []>} : vector<256x32xbf16>, vector<32x64xbf16>, vector<256x64xf32> -> vector<256x64xf32>
    %214 = arith.addf %209, %213 : vector<256x64xf32>
    %c18 = arith.constant 18 : index
    %c0_132 = arith.constant 0 : index
    %215 = vector.load %arg10[%c18, %c0_132] : memref<290x32xbf16, #tpu.memory_space<vmem>>, vector<256x32xbf16>
    %216 = vector.broadcast %182 : vector<256x1xbf16> to vector<256x32xbf16>
    %217 = arith.mulf %215, %216 : vector<256x32xbf16>
    %c5 = arith.constant 5 : index
    %c0_133 = arith.constant 0 : index
    %c0_134 = arith.constant 0 : index
    %218 = vector.load %arg4[%c5, %c0_133, %c0_134] : memref<9x32x64xbf16, #tpu.memory_space<vmem>>, vector<1x32x64xbf16>
    %219 = vector.shape_cast %218 : vector<1x32x64xbf16> to vector<32x64xbf16>
    %cst_135 = arith.constant dense<0.000000e+00> : vector<256x64xf32>
    %220 = tpu.matmul %217, %219, %cst_135 {dimension_numbers = #tpu.dot_dimension_numbers<[1], [0], [0], [1], [0, 0, 1, 1], [], []>} : vector<256x32xbf16>, vector<32x64xbf16>, vector<256x64xf32> -> vector<256x64xf32>
    %221 = arith.addf %214, %220 : vector<256x64xf32>
    %c32_136 = arith.constant 32 : index
    %c0_137 = arith.constant 0 : index
    %222 = vector.load %arg10[%c32_136, %c0_137] : memref<290x32xbf16, #tpu.memory_space<vmem>>, vector<256x32xbf16>
    %223 = vector.broadcast %177 : vector<256x1xbf16> to vector<256x32xbf16>
    %224 = arith.mulf %222, %223 : vector<256x32xbf16>
    %c6 = arith.constant 6 : index
    %c0_138 = arith.constant 0 : index
    %c0_139 = arith.constant 0 : index
    %225 = vector.load %arg4[%c6, %c0_138, %c0_139] : memref<9x32x64xbf16, #tpu.memory_space<vmem>>, vector<1x32x64xbf16>
    %226 = vector.shape_cast %225 : vector<1x32x64xbf16> to vector<32x64xbf16>
    %cst_140 = arith.constant dense<0.000000e+00> : vector<256x64xf32>
    %227 = tpu.matmul %224, %226, %cst_140 {dimension_numbers = #tpu.dot_dimension_numbers<[1], [0], [0], [1], [0, 0, 1, 1], [], []>} : vector<256x32xbf16>, vector<32x64xbf16>, vector<256x64xf32> -> vector<256x64xf32>
    %228 = arith.addf %221, %227 : vector<256x64xf32>
    %c33_141 = arith.constant 33 : index
    %c0_142 = arith.constant 0 : index
    %229 = vector.load %arg10[%c33_141, %c0_142] : memref<290x32xbf16, #tpu.memory_space<vmem>>, vector<256x32xbf16>
    %c7 = arith.constant 7 : index
    %c0_143 = arith.constant 0 : index
    %c0_144 = arith.constant 0 : index
    %230 = vector.load %arg4[%c7, %c0_143, %c0_144] : memref<9x32x64xbf16, #tpu.memory_space<vmem>>, vector<1x32x64xbf16>
    %231 = vector.shape_cast %230 : vector<1x32x64xbf16> to vector<32x64xbf16>
    %cst_145 = arith.constant dense<0.000000e+00> : vector<256x64xf32>
    %232 = tpu.matmul %229, %231, %cst_145 {dimension_numbers = #tpu.dot_dimension_numbers<[1], [0], [0], [1], [0, 0, 1, 1], [], []>} : vector<256x32xbf16>, vector<32x64xbf16>, vector<256x64xf32> -> vector<256x64xf32>
    %233 = arith.addf %228, %232 : vector<256x64xf32>
    %c34 = arith.constant 34 : index
    %c0_146 = arith.constant 0 : index
    %234 = vector.load %arg10[%c34, %c0_146] : memref<290x32xbf16, #tpu.memory_space<vmem>>, vector<256x32xbf16>
    %235 = vector.broadcast %182 : vector<256x1xbf16> to vector<256x32xbf16>
    %236 = arith.mulf %234, %235 : vector<256x32xbf16>
    %c8 = arith.constant 8 : index
    %c0_147 = arith.constant 0 : index
    %c0_148 = arith.constant 0 : index
    %237 = vector.load %arg4[%c8, %c0_147, %c0_148] : memref<9x32x64xbf16, #tpu.memory_space<vmem>>, vector<1x32x64xbf16>
    %238 = vector.shape_cast %237 : vector<1x32x64xbf16> to vector<32x64xbf16>
    %cst_149 = arith.constant dense<0.000000e+00> : vector<256x64xf32>
    %239 = tpu.matmul %236, %238, %cst_149 {dimension_numbers = #tpu.dot_dimension_numbers<[1], [0], [0], [1], [0, 0, 1, 1], [], []>} : vector<256x32xbf16>, vector<32x64xbf16>, vector<256x64xf32> -> vector<256x64xf32>
    %240 = arith.addf %233, %239 : vector<256x64xf32>
    %c0_150 = arith.constant 0 : index
    %c0_151 = arith.constant 0 : index
    %241 = vector.load %arg5[%c0_150, %c0_151] : memref<1x64xf32, #tpu.memory_space<vmem>>, vector<1x64xf32>
    %242 = vector.broadcast %241 : vector<1x64xf32> to vector<256x64xf32>
    %243 = arith.addf %240, %242 : vector<256x64xf32>
    %cst_152 = arith.constant 0.000000e+00 : f32
    %244 = vector.broadcast %cst_152 : f32 to vector<256x64xf32>
    %245 = arith.maximumf %243, %244 : vector<256x64xf32>
    %c0_153 = arith.constant 0 : index
    %c0_154 = arith.constant 0 : index
    %246 = vector.load %arg11[%c0_153, %c0_154] : memref<256x64xf32, #tpu.memory_space<vmem>>, vector<256x64xf32>
    tpu.vector_store %arg11[%c0_153, %c0_154], %245 {strides = array<i32>} : memref<256x64xf32, #tpu.memory_space<vmem>>, vector<256x64xf32>,
    %cst_155 = arith.constant 0.000000e+00 : bf16
    %247 = vector.broadcast %cst_155 : bf16 to vector<82x64xbf16>
    %c0_156 = arith.constant 0 : index
    %c0_157 = arith.constant 0 : index
    %248 = vector.load %arg12[%c0_156, %c0_157] : memref<82x64xbf16, #tpu.memory_space<vmem>>, vector<82x64xbf16>
    tpu.vector_store %arg12[%c0_156, %c0_157], %247 {strides = array<i32>} : memref<82x64xbf16, #tpu.memory_space<vmem>>, vector<82x64xbf16>,
    %c0_158 = arith.constant 0 : index
    %c0_159 = arith.constant 0 : index
    %249 = tpu.strided_load %arg11[%c0_158, %c0_159] {strides = array<i32: 2, 1>} : memref<256x64xf32, #tpu.memory_space<vmem>>, vector<8x64xf32>
    %c1_160 = arith.constant 1 : index
    %c0_161 = arith.constant 0 : index
    %250 = tpu.strided_load %arg11[%c1_160, %c0_161] {strides = array<i32: 2, 1>} : memref<256x64xf32, #tpu.memory_space<vmem>>, vector<8x64xf32>
    %c16_162 = arith.constant 16 : index
    %c0_163 = arith.constant 0 : index
    %251 = tpu.strided_load %arg11[%c16_162, %c0_163] {strides = array<i32: 2, 1>} : memref<256x64xf32, #tpu.memory_space<vmem>>, vector<8x64xf32>
    %c17_164 = arith.constant 17 : index
    %c0_165 = arith.constant 0 : index
    %252 = tpu.strided_load %arg11[%c17_164, %c0_165] {strides = array<i32: 2, 1>} : memref<256x64xf32, #tpu.memory_space<vmem>>, vector<8x64xf32>
    %253 = arith.maximumf %249, %250 : vector<8x64xf32>
    %254 = arith.maximumf %251, %252 : vector<8x64xf32>
    %255 = arith.maximumf %253, %254 : vector<8x64xf32>
    %256 = arith.truncf %255 : vector<8x64xf32> to vector<8x64xbf16>
    %c9 = arith.constant 9 : index
    %c0_166 = arith.constant 0 : index
    %257 = vector.load %arg12[%c9, %c0_166] : memref<82x64xbf16, #tpu.memory_space<vmem>>, vector<8x64xbf16>
    tpu.vector_store %arg12[%c9, %c0_166], %256 {strides = array<i32>} : memref<82x64xbf16, #tpu.memory_space<vmem>>, vector<8x64xbf16>,
    %c32_167 = arith.constant 32 : index
    %c0_168 = arith.constant 0 : index
    %258 = tpu.strided_load %arg11[%c32_167, %c0_168] {strides = array<i32: 2, 1>} : memref<256x64xf32, #tpu.memory_space<vmem>>, vector<8x64xf32>
    %c33_169 = arith.constant 33 : index
    %c0_170 = arith.constant 0 : index
    %259 = tpu.strided_load %arg11[%c33_169, %c0_170] {strides = array<i32: 2, 1>} : memref<256x64xf32, #tpu.memory_space<vmem>>, vector<8x64xf32>
    %c48 = arith.constant 48 : index
    %c0_171 = arith.constant 0 : index
    %260 = tpu.strided_load %arg11[%c48, %c0_171] {strides = array<i32: 2, 1>} : memref<256x64xf32, #tpu.memory_space<vmem>>, vector<8x64xf32>
    %c49_172 = arith.constant 49 : index
    %c0_173 = arith.constant 0 : index
    %261 = tpu.strided_load %arg11[%c49_172, %c0_173] {strides = array<i32: 2, 1>} : memref<256x64xf32, #tpu.memory_space<vmem>>, vector<8x64xf32>
    %262 = arith.maximumf %258, %259 : vector<8x64xf32>
    %263 = arith.maximumf %260, %261 : vector<8x64xf32>
    %264 = arith.maximumf %262, %263 : vector<8x64xf32>
    %265 = arith.truncf %264 : vector<8x64xf32> to vector<8x64xbf16>
    %c17_174 = arith.constant 17 : index
    %c0_175 = arith.constant 0 : index
    %266 = vector.load %arg12[%c17_174, %c0_175] : memref<82x64xbf16, #tpu.memory_space<vmem>>, vector<8x64xbf16>
    tpu.vector_store %arg12[%c17_174, %c0_175], %265 {strides = array<i32>} : memref<82x64xbf16, #tpu.memory_space<vmem>>, vector<8x64xbf16>,
    %c64_176 = arith.constant 64 : index
    %c0_177 = arith.constant 0 : index
    %267 = tpu.strided_load %arg11[%c64_176, %c0_177] {strides = array<i32: 2, 1>} : memref<256x64xf32, #tpu.memory_space<vmem>>, vector<8x64xf32>
    %c65_178 = arith.constant 65 : index
    %c0_179 = arith.constant 0 : index
    %268 = tpu.strided_load %arg11[%c65_178, %c0_179] {strides = array<i32: 2, 1>} : memref<256x64xf32, #tpu.memory_space<vmem>>, vector<8x64xf32>
    %c80 = arith.constant 80 : index
    %c0_180 = arith.constant 0 : index
    %269 = tpu.strided_load %arg11[%c80, %c0_180] {strides = array<i32: 2, 1>} : memref<256x64xf32, #tpu.memory_space<vmem>>, vector<8x64xf32>
    %c81_181 = arith.constant 81 : index
    %c0_182 = arith.constant 0 : index
    %270 = tpu.strided_load %arg11[%c81_181, %c0_182] {strides = array<i32: 2, 1>} : memref<256x64xf32, #tpu.memory_space<vmem>>, vector<8x64xf32>
    %271 = arith.maximumf %267, %268 : vector<8x64xf32>
    %272 = arith.maximumf %269, %270 : vector<8x64xf32>
    %273 = arith.maximumf %271, %272 : vector<8x64xf32>
    %274 = arith.truncf %273 : vector<8x64xf32> to vector<8x64xbf16>
    %c25 = arith.constant 25 : index
    %c0_183 = arith.constant 0 : index
    %275 = vector.load %arg12[%c25, %c0_183] : memref<82x64xbf16, #tpu.memory_space<vmem>>, vector<8x64xbf16>
    tpu.vector_store %arg12[%c25, %c0_183], %274 {strides = array<i32>} : memref<82x64xbf16, #tpu.memory_space<vmem>>, vector<8x64xbf16>,
    %c96_184 = arith.constant 96 : index
    %c0_185 = arith.constant 0 : index
    %276 = tpu.strided_load %arg11[%c96_184, %c0_185] {strides = array<i32: 2, 1>} : memref<256x64xf32, #tpu.memory_space<vmem>>, vector<8x64xf32>
    %c97_186 = arith.constant 97 : index
    %c0_187 = arith.constant 0 : index
    %277 = tpu.strided_load %arg11[%c97_186, %c0_187] {strides = array<i32: 2, 1>} : memref<256x64xf32, #tpu.memory_space<vmem>>, vector<8x64xf32>
    %c112 = arith.constant 112 : index
    %c0_188 = arith.constant 0 : index
    %278 = tpu.strided_load %arg11[%c112, %c0_188] {strides = array<i32: 2, 1>} : memref<256x64xf32, #tpu.memory_space<vmem>>, vector<8x64xf32>
    %c113_189 = arith.constant 113 : index
    %c0_190 = arith.constant 0 : index
    %279 = tpu.strided_load %arg11[%c113_189, %c0_190] {strides = array<i32: 2, 1>} : memref<256x64xf32, #tpu.memory_space<vmem>>, vector<8x64xf32>
    %280 = arith.maximumf %276, %277 : vector<8x64xf32>
    %281 = arith.maximumf %278, %279 : vector<8x64xf32>
    %282 = arith.maximumf %280, %281 : vector<8x64xf32>
    %283 = arith.truncf %282 : vector<8x64xf32> to vector<8x64xbf16>
    %c33_191 = arith.constant 33 : index
    %c0_192 = arith.constant 0 : index
    %284 = vector.load %arg12[%c33_191, %c0_192] : memref<82x64xbf16, #tpu.memory_space<vmem>>, vector<8x64xbf16>
    tpu.vector_store %arg12[%c33_191, %c0_192], %283 {strides = array<i32>} : memref<82x64xbf16, #tpu.memory_space<vmem>>, vector<8x64xbf16>,
    %c128_193 = arith.constant 128 : index
    %c0_194 = arith.constant 0 : index
    %285 = tpu.strided_load %arg11[%c128_193, %c0_194] {strides = array<i32: 2, 1>} : memref<256x64xf32, #tpu.memory_space<vmem>>, vector<8x64xf32>
    %c129_195 = arith.constant 129 : index
    %c0_196 = arith.constant 0 : index
    %286 = tpu.strided_load %arg11[%c129_195, %c0_196] {strides = array<i32: 2, 1>} : memref<256x64xf32, #tpu.memory_space<vmem>>, vector<8x64xf32>
    %c144 = arith.constant 144 : index
    %c0_197 = arith.constant 0 : index
    %287 = tpu.strided_load %arg11[%c144, %c0_197] {strides = array<i32: 2, 1>} : memref<256x64xf32, #tpu.memory_space<vmem>>, vector<8x64xf32>
    %c145_198 = arith.constant 145 : index
    %c0_199 = arith.constant 0 : index
    %288 = tpu.strided_load %arg11[%c145_198, %c0_199] {strides = array<i32: 2, 1>} : memref<256x64xf32, #tpu.memory_space<vmem>>, vector<8x64xf32>
    %289 = arith.maximumf %285, %286 : vector<8x64xf32>
    %290 = arith.maximumf %287, %288 : vector<8x64xf32>
    %291 = arith.maximumf %289, %290 : vector<8x64xf32>
    %292 = arith.truncf %291 : vector<8x64xf32> to vector<8x64xbf16>
    %c41 = arith.constant 41 : index
    %c0_200 = arith.constant 0 : index
    %293 = vector.load %arg12[%c41, %c0_200] : memref<82x64xbf16, #tpu.memory_space<vmem>>, vector<8x64xbf16>
    tpu.vector_store %arg12[%c41, %c0_200], %292 {strides = array<i32>} : memref<82x64xbf16, #tpu.memory_space<vmem>>, vector<8x64xbf16>,
    %c160_201 = arith.constant 160 : index
    %c0_202 = arith.constant 0 : index
    %294 = tpu.strided_load %arg11[%c160_201, %c0_202] {strides = array<i32: 2, 1>} : memref<256x64xf32, #tpu.memory_space<vmem>>, vector<8x64xf32>
    %c161_203 = arith.constant 161 : index
    %c0_204 = arith.constant 0 : index
    %295 = tpu.strided_load %arg11[%c161_203, %c0_204] {strides = array<i32: 2, 1>} : memref<256x64xf32, #tpu.memory_space<vmem>>, vector<8x64xf32>
    %c176 = arith.constant 176 : index
    %c0_205 = arith.constant 0 : index
    %296 = tpu.strided_load %arg11[%c176, %c0_205] {strides = array<i32: 2, 1>} : memref<256x64xf32, #tpu.memory_space<vmem>>, vector<8x64xf32>
    %c177_206 = arith.constant 177 : index
    %c0_207 = arith.constant 0 : index
    %297 = tpu.strided_load %arg11[%c177_206, %c0_207] {strides = array<i32: 2, 1>} : memref<256x64xf32, #tpu.memory_space<vmem>>, vector<8x64xf32>
    %298 = arith.maximumf %294, %295 : vector<8x64xf32>
    %299 = arith.maximumf %296, %297 : vector<8x64xf32>
    %300 = arith.maximumf %298, %299 : vector<8x64xf32>
    %301 = arith.truncf %300 : vector<8x64xf32> to vector<8x64xbf16>
    %c49_208 = arith.constant 49 : index
    %c0_209 = arith.constant 0 : index
    %302 = vector.load %arg12[%c49_208, %c0_209] : memref<82x64xbf16, #tpu.memory_space<vmem>>, vector<8x64xbf16>
    tpu.vector_store %arg12[%c49_208, %c0_209], %301 {strides = array<i32>} : memref<82x64xbf16, #tpu.memory_space<vmem>>, vector<8x64xbf16>,
    %c192_210 = arith.constant 192 : index
    %c0_211 = arith.constant 0 : index
    %303 = tpu.strided_load %arg11[%c192_210, %c0_211] {strides = array<i32: 2, 1>} : memref<256x64xf32, #tpu.memory_space<vmem>>, vector<8x64xf32>
    %c193_212 = arith.constant 193 : index
    %c0_213 = arith.constant 0 : index
    %304 = tpu.strided_load %arg11[%c193_212, %c0_213] {strides = array<i32: 2, 1>} : memref<256x64xf32, #tpu.memory_space<vmem>>, vector<8x64xf32>
    %c208 = arith.constant 208 : index
    %c0_214 = arith.constant 0 : index
    %305 = tpu.strided_load %arg11[%c208, %c0_214] {strides = array<i32: 2, 1>} : memref<256x64xf32, #tpu.memory_space<vmem>>, vector<8x64xf32>
    %c209_215 = arith.constant 209 : index
    %c0_216 = arith.constant 0 : index
    %306 = tpu.strided_load %arg11[%c209_215, %c0_216] {strides = array<i32: 2, 1>} : memref<256x64xf32, #tpu.memory_space<vmem>>, vector<8x64xf32>
    %307 = arith.maximumf %303, %304 : vector<8x64xf32>
    %308 = arith.maximumf %305, %306 : vector<8x64xf32>
    %309 = arith.maximumf %307, %308 : vector<8x64xf32>
    %310 = arith.truncf %309 : vector<8x64xf32> to vector<8x64xbf16>
    %c57 = arith.constant 57 : index
    %c0_217 = arith.constant 0 : index
    %311 = vector.load %arg12[%c57, %c0_217] : memref<82x64xbf16, #tpu.memory_space<vmem>>, vector<8x64xbf16>
    tpu.vector_store %arg12[%c57, %c0_217], %310 {strides = array<i32>} : memref<82x64xbf16, #tpu.memory_space<vmem>>, vector<8x64xbf16>,
    %c224_218 = arith.constant 224 : index
    %c0_219 = arith.constant 0 : index
    %312 = tpu.strided_load %arg11[%c224_218, %c0_219] {strides = array<i32: 2, 1>} : memref<256x64xf32, #tpu.memory_space<vmem>>, vector<8x64xf32>
    %c225_220 = arith.constant 225 : index
    %c0_221 = arith.constant 0 : index
    %313 = tpu.strided_load %arg11[%c225_220, %c0_221] {strides = array<i32: 2, 1>} : memref<256x64xf32, #tpu.memory_space<vmem>>, vector<8x64xf32>
    %c240 = arith.constant 240 : index
    %c0_222 = arith.constant 0 : index
    %314 = tpu.strided_load %arg11[%c240, %c0_222] {strides = array<i32: 2, 1>} : memref<256x64xf32, #tpu.memory_space<vmem>>, vector<8x64xf32>
    %c241_223 = arith.constant 241 : index
    %c0_224 = arith.constant 0 : index
    %315 = tpu.strided_load %arg11[%c241_223, %c0_224] {strides = array<i32: 2, 1>} : memref<256x64xf32, #tpu.memory_space<vmem>>, vector<8x64xf32>
    %316 = arith.maximumf %312, %313 : vector<8x64xf32>
    %317 = arith.maximumf %314, %315 : vector<8x64xf32>
    %318 = arith.maximumf %316, %317 : vector<8x64xf32>
    %319 = arith.truncf %318 : vector<8x64xf32> to vector<8x64xbf16>
    %c65_225 = arith.constant 65 : index
    %c0_226 = arith.constant 0 : index
    %320 = vector.load %arg12[%c65_225, %c0_226] : memref<82x64xbf16, #tpu.memory_space<vmem>>, vector<8x64xbf16>
    tpu.vector_store %arg12[%c65_225, %c0_226], %319 {strides = array<i32>} : memref<82x64xbf16, #tpu.memory_space<vmem>>, vector<8x64xbf16>,
    %321 = tpu.iota {dimensions = array<i32: 0>} : vector<64x1xi32>
    %c8_i32 = arith.constant 8 : i32
    %c0_i32_227 = arith.constant 0 : i32
    %322 = arith.cmpi eq, %c8_i32, %c0_i32_227 : i32
    %c1_i32_228 = arith.constant 1 : i32
    %323 = arith.select %322, %c1_i32_228, %c8_i32 : i32
    %324 = vector.broadcast %323 : i32 to vector<64x1xi32>
    %325 = arith.remsi %321, %324 : vector<64x1xi32>
    %c0_i32_229 = arith.constant 0 : i32
    %326 = vector.broadcast %c0_i32_229 : i32 to vector<64x1xi32>
    %327 = arith.cmpi ne, %325, %326 : vector<64x1xi32>
    %c0_i32_230 = arith.constant 0 : i32
    %328 = vector.broadcast %c0_i32_230 : i32 to vector<64x1xi32>
    %329 = arith.cmpi slt, %325, %328 : vector<64x1xi32>
    %c0_i32_231 = arith.constant 0 : i32
    %330 = arith.cmpi slt, %323, %c0_i32_231 : i32
    %331 = vector.broadcast %330 : i1 to vector<64x1xi1>
    %332 = vector.broadcast %331 : vector<64x1xi1> to vector<64x1xi1>
    %333 = arith.xori %329, %332 : vector<64x1xi1>
    %334 = arith.andi %333, %327 : vector<64x1xi1>
    %335 = vector.broadcast %323 : i32 to vector<64x1xi32>
    %336 = arith.addi %325, %335 : vector<64x1xi32>
    %337 = arith.select %334, %336, %325 : vector<64x1xi1>, vector<64x1xi32>
    %c1_i32_232 = arith.constant 1 : i32
    %338 = vector.broadcast %c1_i32_232 : i32 to vector<64x1xi32>
    %339 = arith.cmpi sge, %337, %338 : vector<64x1xi32>
    %340 = arith.extui %339 : vector<64x1xi1> to vector<64x1xi32>
    %341 = arith.sitofp %340 : vector<64x1xi32> to vector<64x1xf32>
    %342 = arith.truncf %341 : vector<64x1xf32> to vector<64x1xbf16>
    %c6_i32 = arith.constant 6 : i32
    %343 = vector.broadcast %c6_i32 : i32 to vector<64x1xi32>
    %344 = arith.cmpi sle, %337, %343 : vector<64x1xi32>
    %345 = arith.extui %344 : vector<64x1xi1> to vector<64x1xi32>
    %346 = arith.sitofp %345 : vector<64x1xi32> to vector<64x1xf32>
    %347 = arith.truncf %346 : vector<64x1xf32> to vector<64x1xbf16>
    %cst_233 = arith.constant 0.000000e+00 : f32
    %348 = vector.broadcast %cst_233 : f32 to vector<64x128xf32>
    %c0_234 = arith.constant 0 : index
    %c0_235 = arith.constant 0 : index
    %349 = vector.load %arg12[%c0_234, %c0_235] : memref<82x64xbf16, #tpu.memory_space<vmem>>, vector<64x64xbf16>
    %350 = vector.broadcast %342 : vector<64x1xbf16> to vector<64x64xbf16>
    %351 = arith.mulf %349, %350 : vector<64x64xbf16>
    %c0_236 = arith.constant 0 : index
    %c0_237 = arith.constant 0 : index
    %c0_238 = arith.constant 0 : index
    %352 = vector.load %arg6[%c0_236, %c0_237, %c0_238] : memref<9x64x128xbf16, #tpu.memory_space<vmem>>, vector<1x64x128xbf16>
    %353 = vector.shape_cast %352 : vector<1x64x128xbf16> to vector<64x128xbf16>
    %cst_239 = arith.constant dense<0.000000e+00> : vector<64x128xf32>
    %354 = tpu.matmul %351, %353, %cst_239 {dimension_numbers = #tpu.dot_dimension_numbers<[1], [0], [0], [1], [0, 0, 1, 1], [], []>} : vector<64x64xbf16>, vector<64x128xbf16>, vector<64x128xf32> -> vector<64x128xf32>
    %355 = arith.addf %348, %354 : vector<64x128xf32>
    %c1_240 = arith.constant 1 : index
    %c0_241 = arith.constant 0 : index
    %356 = vector.load %arg12[%c1_240, %c0_241] : memref<82x64xbf16, #tpu.memory_space<vmem>>, vector<64x64xbf16>
    %c1_242 = arith.constant 1 : index
    %c0_243 = arith.constant 0 : index
    %c0_244 = arith.constant 0 : index
    %357 = vector.load %arg6[%c1_242, %c0_243, %c0_244] : memref<9x64x128xbf16, #tpu.memory_space<vmem>>, vector<1x64x128xbf16>
    %358 = vector.shape_cast %357 : vector<1x64x128xbf16> to vector<64x128xbf16>
    %cst_245 = arith.constant dense<0.000000e+00> : vector<64x128xf32>
    %359 = tpu.matmul %356, %358, %cst_245 {dimension_numbers = #tpu.dot_dimension_numbers<[1], [0], [0], [1], [0, 0, 1, 1], [], []>} : vector<64x64xbf16>, vector<64x128xbf16>, vector<64x128xf32> -> vector<64x128xf32>
    %360 = arith.addf %355, %359 : vector<64x128xf32>
    %c2_246 = arith.constant 2 : index
    %c0_247 = arith.constant 0 : index
    %361 = vector.load %arg12[%c2_246, %c0_247] : memref<82x64xbf16, #tpu.memory_space<vmem>>, vector<64x64xbf16>
    %362 = vector.broadcast %347 : vector<64x1xbf16> to vector<64x64xbf16>
    %363 = arith.mulf %361, %362 : vector<64x64xbf16>
    %c2_248 = arith.constant 2 : index
    %c0_249 = arith.constant 0 : index
    %c0_250 = arith.constant 0 : index
    %364 = vector.load %arg6[%c2_248, %c0_249, %c0_250] : memref<9x64x128xbf16, #tpu.memory_space<vmem>>, vector<1x64x128xbf16>
    %365 = vector.shape_cast %364 : vector<1x64x128xbf16> to vector<64x128xbf16>
    %cst_251 = arith.constant dense<0.000000e+00> : vector<64x128xf32>
    %366 = tpu.matmul %363, %365, %cst_251 {dimension_numbers = #tpu.dot_dimension_numbers<[1], [0], [0], [1], [0, 0, 1, 1], [], []>} : vector<64x64xbf16>, vector<64x128xbf16>, vector<64x128xf32> -> vector<64x128xf32>
    %367 = arith.addf %360, %366 : vector<64x128xf32>
    %c8_252 = arith.constant 8 : index
    %c0_253 = arith.constant 0 : index
    %368 = vector.load %arg12[%c8_252, %c0_253] : memref<82x64xbf16, #tpu.memory_space<vmem>>, vector<64x64xbf16>
    %369 = vector.broadcast %342 : vector<64x1xbf16> to vector<64x64xbf16>
    %370 = arith.mulf %368, %369 : vector<64x64xbf16>
    %c3_254 = arith.constant 3 : index
    %c0_255 = arith.constant 0 : index
    %c0_256 = arith.constant 0 : index
    %371 = vector.load %arg6[%c3_254, %c0_255, %c0_256] : memref<9x64x128xbf16, #tpu.memory_space<vmem>>, vector<1x64x128xbf16>
    %372 = vector.shape_cast %371 : vector<1x64x128xbf16> to vector<64x128xbf16>
    %cst_257 = arith.constant dense<0.000000e+00> : vector<64x128xf32>
    %373 = tpu.matmul %370, %372, %cst_257 {dimension_numbers = #tpu.dot_dimension_numbers<[1], [0], [0], [1], [0, 0, 1, 1], [], []>} : vector<64x64xbf16>, vector<64x128xbf16>, vector<64x128xf32> -> vector<64x128xf32>
    %374 = arith.addf %367, %373 : vector<64x128xf32>
    %c9_258 = arith.constant 9 : index
    %c0_259 = arith.constant 0 : index
    %375 = vector.load %arg12[%c9_258, %c0_259] : memref<82x64xbf16, #tpu.memory_space<vmem>>, vector<64x64xbf16>
    %c4_260 = arith.constant 4 : index
    %c0_261 = arith.constant 0 : index
    %c0_262 = arith.constant 0 : index
    %376 = vector.load %arg6[%c4_260, %c0_261, %c0_262] : memref<9x64x128xbf16, #tpu.memory_space<vmem>>, vector<1x64x128xbf16>
    %377 = vector.shape_cast %376 : vector<1x64x128xbf16> to vector<64x128xbf16>
    %cst_263 = arith.constant dense<0.000000e+00> : vector<64x128xf32>
    %378 = tpu.matmul %375, %377, %cst_263 {dimension_numbers = #tpu.dot_dimension_numbers<[1], [0], [0], [1], [0, 0, 1, 1], [], []>} : vector<64x64xbf16>, vector<64x128xbf16>, vector<64x128xf32> -> vector<64x128xf32>
    %379 = arith.addf %374, %378 : vector<64x128xf32>
    %c10 = arith.constant 10 : index
    %c0_264 = arith.constant 0 : index
    %380 = vector.load %arg12[%c10, %c0_264] : memref<82x64xbf16, #tpu.memory_space<vmem>>, vector<64x64xbf16>
    %381 = vector.broadcast %347 : vector<64x1xbf16> to vector<64x64xbf16>
    %382 = arith.mulf %380, %381 : vector<64x64xbf16>
    %c5_265 = arith.constant 5 : index
    %c0_266 = arith.constant 0 : index
    %c0_267 = arith.constant 0 : index
    %383 = vector.load %arg6[%c5_265, %c0_266, %c0_267] : memref<9x64x128xbf16, #tpu.memory_space<vmem>>, vector<1x64x128xbf16>
    %384 = vector.shape_cast %383 : vector<1x64x128xbf16> to vector<64x128xbf16>
    %cst_268 = arith.constant dense<0.000000e+00> : vector<64x128xf32>
    %385 = tpu.matmul %382, %384, %cst_268 {dimension_numbers = #tpu.dot_dimension_numbers<[1], [0], [0], [1], [0, 0, 1, 1], [], []>} : vector<64x64xbf16>, vector<64x128xbf16>, vector<64x128xf32> -> vector<64x128xf32>
    %386 = arith.addf %379, %385 : vector<64x128xf32>
    %c16_269 = arith.constant 16 : index
    %c0_270 = arith.constant 0 : index
    %387 = vector.load %arg12[%c16_269, %c0_270] : memref<82x64xbf16, #tpu.memory_space<vmem>>, vector<64x64xbf16>
    %388 = vector.broadcast %342 : vector<64x1xbf16> to vector<64x64xbf16>
    %389 = arith.mulf %387, %388 : vector<64x64xbf16>
    %c6_271 = arith.constant 6 : index
    %c0_272 = arith.constant 0 : index
    %c0_273 = arith.constant 0 : index
    %390 = vector.load %arg6[%c6_271, %c0_272, %c0_273] : memref<9x64x128xbf16, #tpu.memory_space<vmem>>, vector<1x64x128xbf16>
    %391 = vector.shape_cast %390 : vector<1x64x128xbf16> to vector<64x128xbf16>
    %cst_274 = arith.constant dense<0.000000e+00> : vector<64x128xf32>
    %392 = tpu.matmul %389, %391, %cst_274 {dimension_numbers = #tpu.dot_dimension_numbers<[1], [0], [0], [1], [0, 0, 1, 1], [], []>} : vector<64x64xbf16>, vector<64x128xbf16>, vector<64x128xf32> -> vector<64x128xf32>
    %393 = arith.addf %386, %392 : vector<64x128xf32>
    %c17_275 = arith.constant 17 : index
    %c0_276 = arith.constant 0 : index
    %394 = vector.load %arg12[%c17_275, %c0_276] : memref<82x64xbf16, #tpu.memory_space<vmem>>, vector<64x64xbf16>
    %c7_277 = arith.constant 7 : index
    %c0_278 = arith.constant 0 : index
    %c0_279 = arith.constant 0 : index
    %395 = vector.load %arg6[%c7_277, %c0_278, %c0_279] : memref<9x64x128xbf16, #tpu.memory_space<vmem>>, vector<1x64x128xbf16>
    %396 = vector.shape_cast %395 : vector<1x64x128xbf16> to vector<64x128xbf16>
    %cst_280 = arith.constant dense<0.000000e+00> : vector<64x128xf32>
    %397 = tpu.matmul %394, %396, %cst_280 {dimension_numbers = #tpu.dot_dimension_numbers<[1], [0], [0], [1], [0, 0, 1, 1], [], []>} : vector<64x64xbf16>, vector<64x128xbf16>, vector<64x128xf32> -> vector<64x128xf32>
    %398 = arith.addf %393, %397 : vector<64x128xf32>
    %c18_281 = arith.constant 18 : index
    %c0_282 = arith.constant 0 : index
    %399 = vector.load %arg12[%c18_281, %c0_282] : memref<82x64xbf16, #tpu.memory_space<vmem>>, vector<64x64xbf16>
    %400 = vector.broadcast %347 : vector<64x1xbf16> to vector<64x64xbf16>
    %401 = arith.mulf %399, %400 : vector<64x64xbf16>
    %c8_283 = arith.constant 8 : index
    %c0_284 = arith.constant 0 : index
    %c0_285 = arith.constant 0 : index
    %402 = vector.load %arg6[%c8_283, %c0_284, %c0_285] : memref<9x64x128xbf16, #tpu.memory_space<vmem>>, vector<1x64x128xbf16>
    %403 = vector.shape_cast %402 : vector<1x64x128xbf16> to vector<64x128xbf16>
    %cst_286 = arith.constant dense<0.000000e+00> : vector<64x128xf32>
    %404 = tpu.matmul %401, %403, %cst_286 {dimension_numbers = #tpu.dot_dimension_numbers<[1], [0], [0], [1], [0, 0, 1, 1], [], []>} : vector<64x64xbf16>, vector<64x128xbf16>, vector<64x128xf32> -> vector<64x128xf32>
    %405 = arith.addf %398, %404 : vector<64x128xf32>
    %c0_287 = arith.constant 0 : index
    %c0_288 = arith.constant 0 : index
    %406 = vector.load %arg7[%c0_287, %c0_288] : memref<1x128xf32, #tpu.memory_space<vmem>>, vector<1x128xf32>
    %407 = vector.broadcast %406 : vector<1x128xf32> to vector<64x128xf32>
    %408 = arith.addf %405, %407 : vector<64x128xf32>
    %cst_289 = arith.constant 0.000000e+00 : f32
    %409 = vector.broadcast %cst_289 : f32 to vector<64x128xf32>
    %410 = arith.maximumf %408, %409 : vector<64x128xf32>
    %c0_290 = arith.constant 0 : index
    %c0_291 = arith.constant 0 : index
    %411 = vector.load %arg13[%c0_290, %c0_291] : memref<64x128xf32, #tpu.memory_space<vmem>>, vector<64x128xf32>
    tpu.vector_store %arg13[%c0_290, %c0_291], %410 {strides = array<i32>} : memref<64x128xf32, #tpu.memory_space<vmem>>, vector<64x128xf32>,
    %c0_292 = arith.constant 0 : index
    %c0_293 = arith.constant 0 : index
    %412 = tpu.strided_load %arg13[%c0_292, %c0_293] {strides = array<i32: 2, 1>} : memref<64x128xf32, #tpu.memory_space<vmem>>, vector<4x128xf32>
    %c1_294 = arith.constant 1 : index
    %c0_295 = arith.constant 0 : index
    %413 = tpu.strided_load %arg13[%c1_294, %c0_295] {strides = array<i32: 2, 1>} : memref<64x128xf32, #tpu.memory_space<vmem>>, vector<4x128xf32>
    %c8_296 = arith.constant 8 : index
    %c0_297 = arith.constant 0 : index
    %414 = tpu.strided_load %arg13[%c8_296, %c0_297] {strides = array<i32: 2, 1>} : memref<64x128xf32, #tpu.memory_space<vmem>>, vector<4x128xf32>
    %c9_298 = arith.constant 9 : index
    %c0_299 = arith.constant 0 : index
    %415 = tpu.strided_load %arg13[%c9_298, %c0_299] {strides = array<i32: 2, 1>} : memref<64x128xf32, #tpu.memory_space<vmem>>, vector<4x128xf32>
    %416 = arith.maximumf %412, %413 : vector<4x128xf32>
    %417 = arith.maximumf %414, %415 : vector<4x128xf32>
    %418 = arith.maximumf %416, %417 : vector<4x128xf32>
    %419 = arith.truncf %418 : vector<4x128xf32> to vector<4x128xbf16>
    %c0_300 = arith.constant 0 : index
    %c0_301 = arith.constant 0 : index
    %c0_302 = arith.constant 0 : index
    %420 = vector.load %arg8[%c0_300, %c0_301, %c0_302] : memref<1x16x128xbf16, #tpu.memory_space<vmem>>, vector<1x4x128xbf16>
    %421 = vector.shape_cast %420 : vector<1x4x128xbf16> to vector<4x128xbf16>
    %422 = vector.shape_cast %419 : vector<4x128xbf16> to vector<1x4x128xbf16>
    tpu.vector_store %arg8[%c0_300, %c0_301, %c0_302], %422 {strides = array<i32>} : memref<1x16x128xbf16, #tpu.memory_space<vmem>>, vector<1x4x128xbf16>,
    %c16_303 = arith.constant 16 : index
    %c0_304 = arith.constant 0 : index
    %423 = tpu.strided_load %arg13[%c16_303, %c0_304] {strides = array<i32: 2, 1>} : memref<64x128xf32, #tpu.memory_space<vmem>>, vector<4x128xf32>
    %c17_305 = arith.constant 17 : index
    %c0_306 = arith.constant 0 : index
    %424 = tpu.strided_load %arg13[%c17_305, %c0_306] {strides = array<i32: 2, 1>} : memref<64x128xf32, #tpu.memory_space<vmem>>, vector<4x128xf32>
    %c24 = arith.constant 24 : index
    %c0_307 = arith.constant 0 : index
    %425 = tpu.strided_load %arg13[%c24, %c0_307] {strides = array<i32: 2, 1>} : memref<64x128xf32, #tpu.memory_space<vmem>>, vector<4x128xf32>
    %c25_308 = arith.constant 25 : index
    %c0_309 = arith.constant 0 : index
    %426 = tpu.strided_load %arg13[%c25_308, %c0_309] {strides = array<i32: 2, 1>} : memref<64x128xf32, #tpu.memory_space<vmem>>, vector<4x128xf32>
    %427 = arith.maximumf %423, %424 : vector<4x128xf32>
    %428 = arith.maximumf %425, %426 : vector<4x128xf32>
    %429 = arith.maximumf %427, %428 : vector<4x128xf32>
    %430 = arith.truncf %429 : vector<4x128xf32> to vector<4x128xbf16>
    %c0_310 = arith.constant 0 : index
    %c4_311 = arith.constant 4 : index
    %c0_312 = arith.constant 0 : index
    %431 = vector.load %arg8[%c0_310, %c4_311, %c0_312] : memref<1x16x128xbf16, #tpu.memory_space<vmem>>, vector<1x4x128xbf16>
    %432 = vector.shape_cast %431 : vector<1x4x128xbf16> to vector<4x128xbf16>
    %433 = vector.shape_cast %430 : vector<4x128xbf16> to vector<1x4x128xbf16>
    tpu.vector_store %arg8[%c0_310, %c4_311, %c0_312], %433 {strides = array<i32>} : memref<1x16x128xbf16, #tpu.memory_space<vmem>>, vector<1x4x128xbf16>,
    %c32_313 = arith.constant 32 : index
    %c0_314 = arith.constant 0 : index
    %434 = tpu.strided_load %arg13[%c32_313, %c0_314] {strides = array<i32: 2, 1>} : memref<64x128xf32, #tpu.memory_space<vmem>>, vector<4x128xf32>
    %c33_315 = arith.constant 33 : index
    %c0_316 = arith.constant 0 : index
    %435 = tpu.strided_load %arg13[%c33_315, %c0_316] {strides = array<i32: 2, 1>} : memref<64x128xf32, #tpu.memory_space<vmem>>, vector<4x128xf32>
    %c40 = arith.constant 40 : index
    %c0_317 = arith.constant 0 : index
    %436 = tpu.strided_load %arg13[%c40, %c0_317] {strides = array<i32: 2, 1>} : memref<64x128xf32, #tpu.memory_space<vmem>>, vector<4x128xf32>
    %c41_318 = arith.constant 41 : index
    %c0_319 = arith.constant 0 : index
    %437 = tpu.strided_load %arg13[%c41_318, %c0_319] {strides = array<i32: 2, 1>} : memref<64x128xf32, #tpu.memory_space<vmem>>, vector<4x128xf32>
    %438 = arith.maximumf %434, %435 : vector<4x128xf32>
    %439 = arith.maximumf %436, %437 : vector<4x128xf32>
    %440 = arith.maximumf %438, %439 : vector<4x128xf32>
    %441 = arith.truncf %440 : vector<4x128xf32> to vector<4x128xbf16>
    %c0_320 = arith.constant 0 : index
    %c8_321 = arith.constant 8 : index
    %c0_322 = arith.constant 0 : index
    %442 = vector.load %arg8[%c0_320, %c8_321, %c0_322] : memref<1x16x128xbf16, #tpu.memory_space<vmem>>, vector<1x4x128xbf16>
    %443 = vector.shape_cast %442 : vector<1x4x128xbf16> to vector<4x128xbf16>
    %444 = vector.shape_cast %441 : vector<4x128xbf16> to vector<1x4x128xbf16>
    tpu.vector_store %arg8[%c0_320, %c8_321, %c0_322], %444 {strides = array<i32>} : memref<1x16x128xbf16, #tpu.memory_space<vmem>>, vector<1x4x128xbf16>,
    %c48_323 = arith.constant 48 : index
    %c0_324 = arith.constant 0 : index
    %445 = tpu.strided_load %arg13[%c48_323, %c0_324] {strides = array<i32: 2, 1>} : memref<64x128xf32, #tpu.memory_space<vmem>>, vector<4x128xf32>
    %c49_325 = arith.constant 49 : index
    %c0_326 = arith.constant 0 : index
    %446 = tpu.strided_load %arg13[%c49_325, %c0_326] {strides = array<i32: 2, 1>} : memref<64x128xf32, #tpu.memory_space<vmem>>, vector<4x128xf32>
    %c56 = arith.constant 56 : index
    %c0_327 = arith.constant 0 : index
    %447 = tpu.strided_load %arg13[%c56, %c0_327] {strides = array<i32: 2, 1>} : memref<64x128xf32, #tpu.memory_space<vmem>>, vector<4x128xf32>
    %c57_328 = arith.constant 57 : index
    %c0_329 = arith.constant 0 : index
    %448 = tpu.strided_load %arg13[%c57_328, %c0_329] {strides = array<i32: 2, 1>} : memref<64x128xf32, #tpu.memory_space<vmem>>, vector<4x128xf32>
    %449 = arith.maximumf %445, %446 : vector<4x128xf32>
    %450 = arith.maximumf %447, %448 : vector<4x128xf32>
    %451 = arith.maximumf %449, %450 : vector<4x128xf32>
    %452 = arith.truncf %451 : vector<4x128xf32> to vector<4x128xbf16>
    %c0_330 = arith.constant 0 : index
    %c12 = arith.constant 12 : index
    %c0_331 = arith.constant 0 : index
    %453 = vector.load %arg8[%c0_330, %c12, %c0_331] : memref<1x16x128xbf16, #tpu.memory_space<vmem>>, vector<1x4x128xbf16>
    %454 = vector.shape_cast %453 : vector<1x4x128xbf16> to vector<4x128xbf16>
    %455 = vector.shape_cast %452 : vector<4x128xbf16> to vector<1x4x128xbf16>
    tpu.vector_store %arg8[%c0_330, %c12, %c0_331], %455 {strides = array<i32>} : memref<1x16x128xbf16, #tpu.memory_space<vmem>>, vector<1x4x128xbf16>,
    return
  }
  func.func @transform_0(%arg0: i32) -> (i32, i32, i32) {
    %c0_i32 = arith.constant 0 : i32
    %c0_i32_0 = arith.constant 0 : i32
    %c0_i32_1 = arith.constant 0 : i32
    return %arg0, %c0_i32, %c0_i32_0 : i32, i32, i32
  }
  func.func @transform_1(%arg0: i32) -> (i32, i32) {
    %c0_i32 = arith.constant 0 : i32
    %c0_i32_0 = arith.constant 0 : i32
    %c0_i32_1 = arith.constant 0 : i32
    return %c0_i32, %c0_i32_0 : i32, i32
  }
  func.func @transform_2(%arg0: i32) -> (i32, i32) {
    %c0_i32 = arith.constant 0 : i32
    %c0_i32_0 = arith.constant 0 : i32
    %c0_i32_1 = arith.constant 0 : i32
    return %c0_i32, %c0_i32_0 : i32, i32
  }
  func.func @transform_3(%arg0: i32) -> (i32, i32, i32) {
    %c0_i32 = arith.constant 0 : i32
    %c0_i32_0 = arith.constant 0 : i32
    %c0_i32_1 = arith.constant 0 : i32
    %c0_i32_2 = arith.constant 0 : i32
    return %c0_i32, %c0_i32_0, %c0_i32_1 : i32, i32, i32
  }
  func.func @transform_4(%arg0: i32) -> (i32, i32) {
    %c0_i32 = arith.constant 0 : i32
    %c0_i32_0 = arith.constant 0 : i32
    %c0_i32_1 = arith.constant 0 : i32
    return %c0_i32, %c0_i32_0 : i32, i32
  }
  func.func @transform_5(%arg0: i32) -> (i32, i32, i32) {
    %c0_i32 = arith.constant 0 : i32
    %c0_i32_0 = arith.constant 0 : i32
    %c0_i32_1 = arith.constant 0 : i32
    %c0_i32_2 = arith.constant 0 : i32
    return %c0_i32, %c0_i32_0, %c0_i32_1 : i32, i32, i32
  }
  func.func @transform_6(%arg0: i32) -> (i32, i32) {
    %c0_i32 = arith.constant 0 : i32
    %c0_i32_0 = arith.constant 0 : i32
    %c0_i32_1 = arith.constant 0 : i32
    return %c0_i32, %c0_i32_0 : i32, i32
  }
  func.func @transform_7(%arg0: i32) -> (i32, i32, i32) {
    %c0_i32 = arith.constant 0 : i32
    %c0_i32_0 = arith.constant 0 : i32
    %c0_i32_1 = arith.constant 0 : i32
    return %arg0, %c0_i32, %c0_i32_0 : i32, i32, i32
  }
}

</mosaic_0001>

<bundles_post_ra>
// kernel: cnn_forward.3
= control target key start
LH: loop header
LB: loop body
LE: loop exit
PB: predicated region body
PF: predicated region fallthrough
CT: control target
= control target key end

     0   :  { %v538_v36 = vlaneseq  ;;  %v5734_v37 = vmov 1966171168   ;;  %s7510_s0 = inlined_call_operand.vmem [shape: bf16[2,2048], index: 0, kind: input, shape index: {}]   ;;  %s7511_s1 = inlined_call_operand.vmem [shape: bf16[2048,512], index: 1, kind: input, shape index: {}]   ;;  %s7512_s2 = inlined_call_operand.vmem [shape: f32[1,512], index: 2, kind: input, shape index: {}]   ;;  %s7513_s3 = inlined_call_operand.vmem [shape: bf16[512,10], index: 3, kind: input, shape index: {}]   ;;  %s7514_s4 = inlined_call_operand.vmem [shape: f32[1,10], index: 4, kind: input, shape index: {}]   ;;  %s7515_s5 = inlined_call_operand.hbm [shape: f32[2,10], index: 5, kind: output, shape index: {}]  }
   0x1   :  { %v4908_v0 = vld [vmem:[%s7511_s1 + $0x4] ss:$16 sps:$4 sm:$0xff]   ;;  %v4910_v1 = vld [vmem:[%s7511_s1 + $0xc] ss:$16 sps:$4 sm:$0xff]   ;;  %v4912_v2 = vld [vmem:[%s7511_s1] ss:$16 sps:$4 sm:$0xff]   ;;  %v562_v38 = vunpack.c.l.s4 %v5734_v37 }
   0x2   :  { %3234 = vmatprep.subr.bf16.mxu0 %v4908_v0  ;;  %v4913_v3 = vld [vmem:[%s7511_s1 + $0x8] ss:$16 sps:$4 sm:$0xff]   ;;  %3562 = vmatprep.subr.bf16.mxu1 %v4910_v1  ;;  %v4914_v4 = vld [vmem:[%s7511_s1 + $0x24] ss:$16 sps:$4 sm:$0xff]   ;;  %v4916_v5 = vld [vmem:[%s7511_s1 + $0x2c] ss:$16 sps:$4 sm:$0xff]  }
   0x3   :  { %3235 = vmatpush1.bf16.msra.mxu0 %v4912_v2  ;;  %3563 = vmatpush1.bf16.msra.mxu1 %v4913_v3  ;;  %v4918_v6 = vld [vmem:[%s7511_s1 + $0x20] ss:$16 sps:$4 sm:$0xff]   ;;  %v4919_v7 = vld [vmem:[%s7511_s1 + $0x28] ss:$16 sps:$4 sm:$0xff]   ;;  %v4920_v8 = vld [vmem:[%s7511_s1 + $0x44] ss:$16 sps:$4 sm:$0xff]   ;;  %v563_v43 = vunpack.c.0.s8 %v562_v38 }
   0x4   :  { %3236 = vmatprep.subr.bf16.mxu0 %v4914_v4  ;;  %3564 = vmatprep.subr.bf16.mxu1 %v4916_v5  ;;  %v4922_v9 = vld [vmem:[%s7511_s1 + $0x4c] ss:$16 sps:$4 sm:$0xff]   ;;  %v4924_v10 = vld [vmem:[%s7511_s1 + $0x40] ss:$16 sps:$4 sm:$0xff]   ;;  %v4925_v11 = vld [vmem:[%s7511_s1 + $0x48] ss:$16 sps:$4 sm:$0xff]  }
   0x5   :  { %v4926_v12 = vld [vmem:[%s7511_s1 + $0x64] ss:$16 sps:$4 sm:$0xff]   ;;  %v4928_v13 = vld [vmem:[%s7511_s1 + $0x6c] ss:$16 sps:$4 sm:$0xff]   ;;  %v4930_v14 = vld [vmem:[%s7511_s1 + $0x60] ss:$16 sps:$4 sm:$0xff]  }
   0x6   :  { %v4931_v15 = vld [vmem:[%s7511_s1 + $0x68] ss:$16 sps:$4 sm:$0xff]   ;;  %v4932_v16 = vld [vmem:[%s7511_s1 + $0x84] ss:$16 sps:$4 sm:$0xff]   ;;  %v4934_v17 = vld [vmem:[%s7511_s1 + $0x8c] ss:$16 sps:$4 sm:$0xff]  }
   0x7   :  { %3237 = vmatpush1.bf16.msra.mxu0 %v4918_v6  ;;  %3565 = vmatpush1.bf16.msra.mxu1 %v4919_v7  ;;  %v4936_v18 = vld [vmem:[%s7511_s1 + $0x80] ss:$16 sps:$4 sm:$0xff]   ;;  %v4937_v19 = vld [vmem:[%s7511_s1 + $0x88] ss:$16 sps:$4 sm:$0xff]   ;;  %v4938_v20 = vld [vmem:[%s7511_s1 + $0xa4] ss:$16 sps:$4 sm:$0xff]  }
   0x8   :  { %3238 = vmatprep.subr.bf16.mxu0 %v4920_v8  ;;  %3566 = vmatprep.subr.bf16.mxu1 %v4922_v9  ;;  %v4940_v21 = vld [vmem:[%s7511_s1 + $0xac] ss:$16 sps:$4 sm:$0xff]   ;;  %v4942_v22 = vld [vmem:[%s7511_s1 + $0xa0] ss:$16 sps:$4 sm:$0xff]   ;;  %v4943_v23 = vld [vmem:[%s7511_s1 + $0xa8] ss:$16 sps:$4 sm:$0xff]  }
   0x9   :  { %v4944_v24 = vld [vmem:[%s7511_s1 + $0xc4] ss:$16 sps:$4 sm:$0xff]   ;;  %v4946_v25 = vld [vmem:[%s7511_s1 + $0xcc] ss:$16 sps:$4 sm:$0xff]   ;;  %v4948_v26 = vld [vmem:[%s7511_s1 + $0xc0] ss:$16 sps:$4 sm:$0xff]  }
   0xa   :  { %v4949_v27 = vld [vmem:[%s7511_s1 + $0xc8] ss:$16 sps:$4 sm:$0xff]   ;;  %v4950_v28 = vld [vmem:[%s7511_s1 + $0xe4] ss:$16 sps:$4 sm:$0xff]   ;;  %v4952_v29 = vld [vmem:[%s7511_s1 + $0xec] ss:$16 sps:$4 sm:$0xff]  }
   0xb   :  { %3239 = vmatpush1.bf16.msra.mxu0 %v4924_v10  ;;  %3567 = vmatpush1.bf16.msra.mxu1 %v4925_v11  ;;  %v4954_v30 = vld [vmem:[%s7511_s1 + $0xe0] ss:$16 sps:$4 sm:$0xff]   ;;  %v4955_v31 = vld [vmem:[%s7511_s1 + $0xe8] ss:$16 sps:$4 sm:$0xff]   ;;  %v4956_v32 = vld [vmem:[%s7511_s1 + $0x104] ss:$16 sps:$4 sm:$0xff]  }
   0xc   :  { %3240 = vmatprep.subr.bf16.mxu0 %v4926_v12  ;;  %3568 = vmatprep.subr.bf16.mxu1 %v4928_v13  ;;  %v4958_v33 = vld [vmem:[%s7511_s1 + $0x10c] ss:$16 sps:$4 sm:$0xff]   ;;  %v4960_v34 = vld [vmem:[%s7511_s1 + $0x100] ss:$16 sps:$4 sm:$0xff]   ;;  %v4961_v35 = vld [vmem:[%s7511_s1 + $0x108] ss:$16 sps:$4 sm:$0xff]  }
   0xd   :  { %v4962_v39 = vld [vmem:[%s7511_s1 + $0x124] ss:$16 sps:$4 sm:$0xff]   ;;  %v4964_v40 = vld [vmem:[%s7511_s1 + $0x12c] ss:$16 sps:$4 sm:$0xff]   ;;  %v4966_v41 = vld [vmem:[%s7511_s1 + $0x120] ss:$16 sps:$4 sm:$0xff]  }
   0xe   :  { %v5883_v42 = vshrl.u32 %v538_v36, 7  ;;  %v4967_v44 = vld [vmem:[%s7511_s1 + $0x128] ss:$16 sps:$4 sm:$0xff]   ;;  %v4968_v45 = vld [vmem:[%s7511_s1 + $0x144] ss:$16 sps:$4 sm:$0xff]  }
   0xf   :  { %3241 = vmatpush1.bf16.msra.mxu0 %v4930_v14  ;;  %3569 = vmatpush1.bf16.msra.mxu1 %v4931_v15  ;;  %v4970_v46 = vld [vmem:[%s7511_s1 + $0x14c] ss:$16 sps:$4 sm:$0xff]   ;;  %v4972_v47 = vld [vmem:[%s7511_s1 + $0x140] ss:$16 sps:$4 sm:$0xff]   ;;  %v4973_v48 = vld [vmem:[%s7511_s1 + $0x148] ss:$16 sps:$4 sm:$0xff]  }
  0x10   :  { %3242 = vmatprep.subr.bf16.mxu0 %v4932_v16  ;;  %3570 = vmatprep.subr.bf16.mxu1 %v4934_v17  ;;  %v5901_v49 = vsub.s32 %v563_v43, %v5883_v42  ;;  %v4974_v50 = vld [vmem:[%s7511_s1 + $0x164] ss:$16 sps:$4 sm:$0xff]   ;;  %v4976_v51 = vld [vmem:[%s7511_s1 + $0x16c] ss:$16 sps:$4 sm:$0xff]   ;;  %v4978_v53 = vld [vmem:[%s7511_s1 + $0x160] ss:$16 sps:$4 sm:$0xff]  }
  0x11   :  { %v5912_v52 = vld [vmem:[%s7510_s0] sm:$0xff]  ;;  %v4979_v55 = vld [vmem:[%s7511_s1 + $0x168] ss:$16 sps:$4 sm:$0xff]   ;;  %v4982_v57 = vld [vmem:[%s7511_s1 + $0x18c] ss:$16 sps:$4 sm:$0xff]  }
  0x12   :  { %v567_v54 = vrot.slane %v5912_v52, %v5901_v49  ;;  %v4980_v56 = vld [vmem:[%s7511_s1 + $0x184] ss:$16 sps:$4 sm:$0xff]   ;;  %v4984_v59 = vld [vmem:[%s7511_s1 + $0x180] ss:$16 sps:$4 sm:$0xff]   ;;  %v4985_v61 = vld [vmem:[%s7511_s1 + $0x188] ss:$16 sps:$4 sm:$0xff]  }
  0x13   :  { %3243 = vmatpush1.bf16.msra.mxu0 %v4936_v18  ;;  %3571 = vmatpush1.bf16.msra.mxu1 %v4937_v19  ;;  %v4986_v62 = vld [vmem:[%s7511_s1 + $0x1a4] ss:$16 sps:$4 sm:$0xff]   ;;  %v4988_v63 = vld [vmem:[%s7511_s1 + $0x1ac] ss:$16 sps:$4 sm:$0xff]   ;;  %v4990_v0 = vld [vmem:[%s7511_s1 + $0x1a0] ss:$16 sps:$4 sm:$0xff]  }
  0x14   :  { %3244 = vmatprep.subr.bf16.mxu0 %v4938_v20  ;;  %3572 = vmatprep.subr.bf16.mxu1 %v4940_v21  ;;  %v575_v58 = vcombine.high %v567_v54, %v567_v54  ;;  %v4991_v1 = vld [vmem:[%s7511_s1 + $0x1a8] ss:$16 sps:$4 sm:$0xff]   ;;  %v4992_v2 = vld [vmem:[%s7511_s1 + $0x1c4] ss:$16 sps:$4 sm:$0xff]   ;;  %v4994_v3 = vld [vmem:[%s7511_s1 + $0x1cc] ss:$16 sps:$4 sm:$0xff]   ;;  %v5981_v13 = vrot.slane %v567_v54, %v5901_v49 }
  0x15   :  { %v4996_v4 = vld [vmem:[%s7511_s1 + $0x1c0] ss:$16 sps:$4 sm:$0xff]   ;;  %v4997_v5 = vld [vmem:[%s7511_s1 + $0x1c8] ss:$16 sps:$4 sm:$0xff]   ;;  %v4998_v6 = vld [vmem:[%s7511_s1 + $0x1e4] ss:$16 sps:$4 sm:$0xff]  }
  0x16   :  { %v597_v60 = vrot.slane %v575_v58, %v5901_v49  ;;  %v5000_v7 = vld [vmem:[%s7511_s1 + $0x1ec] ss:$16 sps:$4 sm:$0xff]   ;;  %v5002_v8 = vld [vmem:[%s7511_s1 + $0x1e0] ss:$16 sps:$4 sm:$0xff]   ;;  %v5003_v9 = vld [vmem:[%s7511_s1 + $0x1e8] ss:$16 sps:$4 sm:$0xff]  }
  0x17   :  { %3245 = vmatpush1.bf16.msra.mxu0 %v4942_v22  ;;  %3573 = vmatpush1.bf16.msra.mxu1 %v4943_v23  ;;  %v5006_v10 = vld [vmem:[%s7511_s1 + $0x204] ss:$16 sps:$4 sm:$0xff]   ;;  %v5009_v11 = vld [vmem:[%s7511_s1 + $0x20c] ss:$16 sps:$4 sm:$0xff]   ;;  %v5004_v12 = vld [vmem:[%s7511_s1 + $0x200] ss:$16 sps:$4 sm:$0xff]  }
  0x18   :  { %3246 = vmatprep.subr.bf16.mxu0 %v4944_v24  ;;  %3574 = vmatprep.subr.bf16.mxu1 %v4946_v25  ;;  %v5007_v14 = vld [vmem:[%s7511_s1 + $0x208] ss:$16 sps:$4 sm:$0xff]   ;;  %v5012_v15 = vld [vmem:[%s7511_s1 + $0x224] ss:$16 sps:$4 sm:$0xff]   ;;  %v5015_v16 = vld [vmem:[%s7511_s1 + $0x22c] ss:$16 sps:$4 sm:$0xff]   ;;  %v607_v17 = vcombine.high %v597_v60, %v597_v60 }
  0x19   :  { %3266 = vmatprep.mubr.bf16.mxu0 %v597_v60  ;;  %3594 = vmatprep.mubr.bf16.mxu1 %v597_v60  ;;  %v5010_v18 = vld [vmem:[%s7511_s1 + $0x220] ss:$16 sps:$4 sm:$0xff]   ;;  %v5013_v19 = vld [vmem:[%s7511_s1 + $0x228] ss:$16 sps:$4 sm:$0xff]   ;;  %v5018_v20 = vld [vmem:[%s7511_s1 + $0x244] ss:$16 sps:$4 sm:$0xff]  }
  0x1a   :  { %v5021_v21 = vld [vmem:[%s7511_s1 + $0x24c] ss:$16 sps:$4 sm:$0xff]   ;;  %v5016_v22 = vld [vmem:[%s7511_s1 + $0x240] ss:$16 sps:$4 sm:$0xff]   ;;  %v5019_v23 = vld [vmem:[%s7511_s1 + $0x248] ss:$16 sps:$4 sm:$0xff]  }
  0x1b   :  { %3247 = vmatpush1.bf16.msra.mxu0 %v4948_v26  ;;  %3575 = vmatpush1.bf16.msra.mxu1 %v4949_v27  ;;  %v5024_v24 = vld [vmem:[%s7511_s1 + $0x264] ss:$16 sps:$4 sm:$0xff]   ;;  %v5027_v25 = vld [vmem:[%s7511_s1 + $0x26c] ss:$16 sps:$4 sm:$0xff]   ;;  %v5022_v26 = vld [vmem:[%s7511_s1 + $0x260] ss:$16 sps:$4 sm:$0xff]  }
  0x1c   :  { %3248 = vmatprep.subr.bf16.mxu0 %v4950_v28  ;;  %3576 = vmatprep.subr.bf16.mxu1 %v4952_v29  ;;  %v5025_v27 = vld [vmem:[%s7511_s1 + $0x268] ss:$16 sps:$4 sm:$0xff]   ;;  %v5030_v28 = vld [vmem:[%s7511_s1 + $0x284] ss:$16 sps:$4 sm:$0xff]   ;;  %v5033_v29 = vld [vmem:[%s7511_s1 + $0x28c] ss:$16 sps:$4 sm:$0xff]  }
  0x1d   :  { %v5042_v36 = vld [vmem:[%s7511_s1 + $0x2c4] ss:$16 sps:$4 sm:$0xff]   ;;  %v5045_v37 = vld [vmem:[%s7511_s1 + $0x2cc] ss:$16 sps:$4 sm:$0xff]   ;;  %v5040_v38 = vld [vmem:[%s7511_s1 + $0x2c0] ss:$16 sps:$4 sm:$0xff]  }
  0x1e   :  { %v5046_v43 = vld [vmem:[%s7511_s1 + $0x2e0] ss:$16 sps:$4 sm:$0xff]   ;;  %v5061_v54 = vld [vmem:[%s7511_s1 + $0x328] ss:$16 sps:$4 sm:$0xff]   ;;  %v5075_v60 = vld [vmem:[%s7511_s1 + $0x36c] ss:$16 sps:$4 sm:$0xff]  }
  0x1f   :  { %3249 = vmatpush1.bf16.msra.mxu0 %v4954_v30  ;;  %3577 = vmatpush1.bf16.msra.mxu1 %v4955_v31  ;;  %v5028_v30 = vld [vmem:[%s7511_s1 + $0x280] ss:$16 sps:$4 sm:$0xff]   ;;  %v5031_v31 = vld [vmem:[%s7511_s1 + $0x288] ss:$16 sps:$4 sm:$0xff]  }
  0x20   :  { %3250 = vmatprep.subr.bf16.mxu0 %v4956_v32  ;;  %3578 = vmatprep.subr.bf16.mxu1 %v4958_v33  ;;  %v5036_v32 = vld [vmem:[%s7511_s1 + $0x2a4] ss:$16 sps:$4 sm:$0xff]   ;;  %v5039_v33 = vld [vmem:[%s7511_s1 + $0x2ac] ss:$16 sps:$4 sm:$0xff]   ;;  %v5067_v58 = vld [vmem:[%s7511_s1 + $0x348] ss:$16 sps:$4 sm:$0xff]  }
  0x23   :  { %3251 = vmatpush1.bf16.msra.mxu0 %v4960_v34  ;;  %3579 = vmatpush1.bf16.msra.mxu1 %v4961_v35  ;;  %v5034_v34 = vld [vmem:[%s7511_s1 + $0x2a0] ss:$16 sps:$4 sm:$0xff]   ;;  %v5037_v35 = vld [vmem:[%s7511_s1 + $0x2a8] ss:$16 sps:$4 sm:$0xff]  }
  0x24   :  { %3252 = vmatprep.subr.bf16.mxu0 %v4962_v39  ;;  %3580 = vmatprep.subr.bf16.mxu1 %v4964_v40  ;;  %v5043_v39 = vld [vmem:[%s7511_s1 + $0x2c8] ss:$16 sps:$4 sm:$0xff]   ;;  %v5048_v40 = vld [vmem:[%s7511_s1 + $0x2e4] ss:$16 sps:$4 sm:$0xff]  }
  0x27   :  { %3253 = vmatpush1.bf16.msra.mxu0 %v4966_v41  ;;  %3581 = vmatpush1.bf16.msra.mxu1 %v4967_v44  ;;  %v5051_v41 = vld [vmem:[%s7511_s1 + $0x2ec] ss:$16 sps:$4 sm:$0xff]   ;;  %v5049_v44 = vld [vmem:[%s7511_s1 + $0x2e8] ss:$16 sps:$4 sm:$0xff]  }
  0x28   :  { %3254 = vmatprep.subr.bf16.mxu0 %v4968_v45  ;;  %3582 = vmatprep.subr.bf16.mxu1 %v4970_v46  ;;  %v5054_v45 = vld [vmem:[%s7511_s1 + $0x304] ss:$16 sps:$4 sm:$0xff]   ;;  %v5057_v46 = vld [vmem:[%s7511_s1 + $0x30c] ss:$16 sps:$4 sm:$0xff]  }
  0x2b   :  { %3255 = vmatpush1.bf16.msra.mxu0 %v4972_v47  ;;  %3583 = vmatpush1.bf16.msra.mxu1 %v4973_v48  ;;  %v5052_v47 = vld [vmem:[%s7511_s1 + $0x300] ss:$16 sps:$4 sm:$0xff]   ;;  %v5055_v48 = vld [vmem:[%s7511_s1 + $0x308] ss:$16 sps:$4 sm:$0xff]  }
  0x2c   :  { %3256 = vmatprep.subr.bf16.mxu0 %v4974_v50  ;;  %3584 = vmatprep.subr.bf16.mxu1 %v4976_v51  ;;  %v5060_v50 = vld [vmem:[%s7511_s1 + $0x324] ss:$16 sps:$4 sm:$0xff]   ;;  %v5063_v51 = vld [vmem:[%s7511_s1 + $0x32c] ss:$16 sps:$4 sm:$0xff]  }
  0x2f   :  { %3257 = vmatpush1.bf16.msra.mxu0 %v4978_v53  ;;  %3585 = vmatpush1.bf16.msra.mxu1 %v4979_v55  ;;  %v5058_v53 = vld [vmem:[%s7511_s1 + $0x320] ss:$16 sps:$4 sm:$0xff]   ;;  %v5066_v55 = vld [vmem:[%s7511_s1 + $0x344] ss:$16 sps:$4 sm:$0xff]  }
  0x30   :  { %3258 = vmatprep.subr.bf16.mxu0 %v4980_v56  ;;  %3586 = vmatprep.subr.bf16.mxu1 %v4982_v57  ;;  %v5069_v56 = vld [vmem:[%s7511_s1 + $0x34c] ss:$16 sps:$4 sm:$0xff]   ;;  %v5064_v57 = vld [vmem:[%s7511_s1 + $0x340] ss:$16 sps:$4 sm:$0xff]  }
  0x33   :  { %3259 = vmatpush1.bf16.msra.mxu0 %v4984_v59  ;;  %3587 = vmatpush1.bf16.msra.mxu1 %v4985_v61  ;;  %v5072_v59 = vld [vmem:[%s7511_s1 + $0x364] ss:$16 sps:$4 sm:$0xff]   ;;  %v5070_v61 = vld [vmem:[%s7511_s1 + $0x360] ss:$16 sps:$4 sm:$0xff]  }
  0x34   :  { %3260 = vmatprep.subr.bf16.mxu0 %v4986_v62  ;;  %3588 = vmatprep.subr.bf16.mxu1 %v4988_v63  ;;  %v5073_v62 = vld [vmem:[%s7511_s1 + $0x368] ss:$16 sps:$4 sm:$0xff]   ;;  %v5078_v63 = vld [vmem:[%s7511_s1 + $0x384] ss:$16 sps:$4 sm:$0xff]  }
  0x37   :  { %3261 = vmatpush1.bf16.msra.mxu0 %v4990_v0  ;;  %3589 = vmatpush1.bf16.msra.mxu1 %v4991_v1  ;;  %v5081_v0 = vld [vmem:[%s7511_s1 + $0x38c] ss:$16 sps:$4 sm:$0xff]   ;;  %v5076_v1 = vld [vmem:[%s7511_s1 + $0x380] ss:$16 sps:$4 sm:$0xff]  }
  0x38   :  { %3262 = vmatprep.subr.bf16.mxu0 %v4992_v2  ;;  %3590 = vmatprep.subr.bf16.mxu1 %v4994_v3  ;;  %v5079_v2 = vld [vmem:[%s7511_s1 + $0x388] ss:$16 sps:$4 sm:$0xff]   ;;  %v5084_v3 = vld [vmem:[%s7511_s1 + $0x3a4] ss:$16 sps:$4 sm:$0xff]  }
  0x3b   :  { %3263 = vmatpush1.bf16.msra.mxu0 %v4996_v4  ;;  %3591 = vmatpush1.bf16.msra.mxu1 %v4997_v5  ;;  %v5087_v4 = vld [vmem:[%s7511_s1 + $0x3ac] ss:$16 sps:$4 sm:$0xff]   ;;  %v5082_v5 = vld [vmem:[%s7511_s1 + $0x3a0] ss:$16 sps:$4 sm:$0xff]  }
  0x3c   :  { %3264 = vmatprep.subr.bf16.mxu0 %v4998_v6  ;;  %3592 = vmatprep.subr.bf16.mxu1 %v5000_v7  ;;  %v5085_v6 = vld [vmem:[%s7511_s1 + $0x3a8] ss:$16 sps:$4 sm:$0xff]   ;;  %v5090_v7 = vld [vmem:[%s7511_s1 + $0x3c4] ss:$16 sps:$4 sm:$0xff]  }
  0x3f   :  { %3265 = vmatpush1.bf16.msra.mxu0 %v5002_v8  ;;  %3593 = vmatpush1.bf16.msra.mxu1 %v5003_v9  ;;  %v5093_v8 = vld [vmem:[%s7511_s1 + $0x3cc] ss:$16 sps:$4 sm:$0xff]   ;;  %v560_v9 = vcombine.high %v5912_v52, %v5912_v52 }
  0x40   :  { %3275 = vmatprep.subr.bf16.mxu0 %v5006_v10  ;;  %3603 = vmatprep.subr.bf16.mxu1 %v5009_v11  ;;  %v5088_v10 = vld [vmem:[%s7511_s1 + $0x3c0] ss:$16 sps:$4 sm:$0xff]   ;;  %v5091_v11 = vld [vmem:[%s7511_s1 + $0x3c8] ss:$16 sps:$4 sm:$0xff]   ;;  %v5099_v52 = vld [vmem:[%s7511_s1 + $0x3ec] ss:$16 sps:$4 sm:$0xff]  }
  0x42   :  { %3267 = vmatmul.mubr.bf16.vlgmr.msra.gmra.mrb[0].mxu0 %v5981_v13  ;;  %3595 = vmatmul.mubr.bf16.vlgmr.msra.gmra.mrb[0].mxu1 %v5981_v13 }
  0x43   :  { %3276 = vmatpush1.bf16.msra.mxu0 %v5004_v12  ;;  %3604 = vmatpush1.bf16.msra.mxu1 %v5007_v14  ;;  %v5096_v12 = vld [vmem:[%s7511_s1 + $0x3e4] ss:$16 sps:$4 sm:$0xff]   ;;  %v6165_v14 = vrot.slane %v560_v9, %v5901_v49  ;;  %v5175_v9 = vld [vmem:[%s7511_s1 + $0x588] ss:$16 sps:$4 sm:$0xff]  }
  0x44   :  { %3277 = vmatprep.subr.bf16.mxu0 %v5012_v15  ;;  %3605 = vmatprep.subr.bf16.mxu1 %v5015_v16  ;;  %v5094_v15 = vld [vmem:[%s7511_s1 + $0x3e0] ss:$16 sps:$4 sm:$0xff]   ;;  %v5097_v16 = vld [vmem:[%s7511_s1 + $0x3e8] ss:$16 sps:$4 sm:$0xff]  }
  0x45   :  { %3307 = vmatprep.mubr.bf16.mxu0 %v607_v17  ;;  %3635 = vmatprep.mubr.bf16.mxu1 %v607_v17  ;;  %v5102_v17 = vld [vmem:[%s7511_s1 + $0x404] ss:$16 sps:$4 sm:$0xff]  }
  0x47   :  { %3278 = vmatpush1.bf16.msra.mxu0 %v5010_v18  ;;  %3606 = vmatpush1.bf16.msra.mxu1 %v5013_v19  ;;  %v5105_v18 = vld [vmem:[%s7511_s1 + $0x40c] ss:$16 sps:$4 sm:$0xff]   ;;  %v576_v19 = vcombine.high %v6165_v14, %v6165_v14 }
  0x48   :  { %3279 = vmatprep.subr.bf16.mxu0 %v5018_v20  ;;  %3607 = vmatprep.subr.bf16.mxu1 %v5021_v21  ;;  %v5100_v20 = vld [vmem:[%s7511_s1 + $0x400] ss:$16 sps:$4 sm:$0xff]   ;;  %v605_v21 = vcombine.high %v5981_v13, %v5981_v13 }
  0x49   :  { %v5106_v13 = vld [vmem:[%s7511_s1 + $0x420] ss:$16 sps:$4 sm:$0xff]  }
  0x4b   :  { %3280 = vmatpush1.bf16.msra.mxu0 %v5016_v22  ;;  %3608 = vmatpush1.bf16.msra.mxu1 %v5019_v23  ;;  %v5103_v22 = vld [vmem:[%s7511_s1 + $0x408] ss:$16 sps:$4 sm:$0xff]   ;;  %v5108_v23 = vld [vmem:[%s7511_s1 + $0x424] ss:$16 sps:$4 sm:$0xff]  }
  0x4c   :  { %3281 = vmatprep.subr.bf16.mxu0 %v5024_v24  ;;  %3609 = vmatprep.subr.bf16.mxu1 %v5027_v25  ;;  %v5111_v24 = vld [vmem:[%s7511_s1 + $0x42c] ss:$16 sps:$4 sm:$0xff]   ;;  %v6196_v25 = vrot.slane %v576_v19, %v5901_v49  ;;  %v5192_v19 = vld [vmem:[%s7511_s1 + $0x5e4] ss:$16 sps:$4 sm:$0xff]  }
  0x4f   :  { %3282 = vmatpush1.bf16.msra.mxu0 %v5022_v26  ;;  %3610 = vmatpush1.bf16.msra.mxu1 %v5025_v27  ;;  %v5109_v26 = vld [vmem:[%s7511_s1 + $0x428] ss:$16 sps:$4 sm:$0xff]   ;;  %v5114_v27 = vld [vmem:[%s7511_s1 + $0x444] ss:$16 sps:$4 sm:$0xff]  }
  0x50   :  { %3283 = vmatprep.subr.bf16.mxu0 %v5030_v28  ;;  %3611 = vmatprep.subr.bf16.mxu1 %v5033_v29  ;;  %v5117_v28 = vld [vmem:[%s7511_s1 + $0x44c] ss:$16 sps:$4 sm:$0xff]   ;;  %v5112_v29 = vld [vmem:[%s7511_s1 + $0x440] ss:$16 sps:$4 sm:$0xff]  }
  0x53   :  { %3284 = vmatpush1.bf16.msra.mxu0 %v5028_v30  ;;  %3612 = vmatpush1.bf16.msra.mxu1 %v5031_v31  ;;  %v5115_v30 = vld [vmem:[%s7511_s1 + $0x448] ss:$16 sps:$4 sm:$0xff]   ;;  %v5120_v31 = vld [vmem:[%s7511_s1 + $0x464] ss:$16 sps:$4 sm:$0xff]  }
  0x54   :  { %3285 = vmatprep.subr.bf16.mxu0 %v5036_v32  ;;  %3613 = vmatprep.subr.bf16.mxu1 %v5039_v33  ;;  %v5123_v32 = vld [vmem:[%s7511_s1 + $0x46c] ss:$16 sps:$4 sm:$0xff]   ;;  %v5118_v33 = vld [vmem:[%s7511_s1 + $0x460] ss:$16 sps:$4 sm:$0xff]  }
  0x57   :  { %3286 = vmatpush1.bf16.msra.mxu0 %v5034_v34  ;;  %3614 = vmatpush1.bf16.msra.mxu1 %v5037_v35  ;;  %v5121_v34 = vld [vmem:[%s7511_s1 + $0x468] ss:$16 sps:$4 sm:$0xff]   ;;  %v5126_v35 = vld [vmem:[%s7511_s1 + $0x484] ss:$16 sps:$4 sm:$0xff]  }
  0x58   :  { %3287 = vmatprep.subr.bf16.mxu0 %v5042_v36  ;;  %3615 = vmatprep.subr.bf16.mxu1 %v5045_v37  ;;  %v5129_v36 = vld [vmem:[%s7511_s1 + $0x48c] ss:$16 sps:$4 sm:$0xff]   ;;  %v5124_v37 = vld [vmem:[%s7511_s1 + $0x480] ss:$16 sps:$4 sm:$0xff]  }
  0x5b   :  { %3288 = vmatpush1.bf16.msra.mxu0 %v5040_v38  ;;  %3616 = vmatpush1.bf16.msra.mxu1 %v5043_v39  ;;  %v5127_v38 = vld [vmem:[%s7511_s1 + $0x488] ss:$16 sps:$4 sm:$0xff]   ;;  %v5132_v39 = vld [vmem:[%s7511_s1 + $0x4a4] ss:$16 sps:$4 sm:$0xff]  }
  0x5c   :  { %3289 = vmatprep.subr.bf16.mxu0 %v5048_v40  ;;  %3617 = vmatprep.subr.bf16.mxu1 %v5051_v41  ;;  %v5135_v40 = vld [vmem:[%s7511_s1 + $0x4ac] ss:$16 sps:$4 sm:$0xff]   ;;  %v5130_v41 = vld [vmem:[%s7511_s1 + $0x4a0] ss:$16 sps:$4 sm:$0xff]  }
  0x5f   :  { %3290 = vmatpush1.bf16.msra.mxu0 %v5046_v43  ;;  %3618 = vmatpush1.bf16.msra.mxu1 %v5049_v44  ;;  %v5133_v43 = vld [vmem:[%s7511_s1 + $0x4a8] ss:$16 sps:$4 sm:$0xff]   ;;  %v5138_v44 = vld [vmem:[%s7511_s1 + $0x4c4] ss:$16 sps:$4 sm:$0xff]  }
  0x60   :  { %3291 = vmatprep.subr.bf16.mxu0 %v5054_v45  ;;  %3619 = vmatprep.subr.bf16.mxu1 %v5057_v46  ;;  %v5141_v45 = vld [vmem:[%s7511_s1 + $0x4cc] ss:$16 sps:$4 sm:$0xff]   ;;  %v5136_v46 = vld [vmem:[%s7511_s1 + $0x4c0] ss:$16 sps:$4 sm:$0xff]  }
  0x63   :  { %3292 = vmatpush1.bf16.msra.mxu0 %v5052_v47  ;;  %3620 = vmatpush1.bf16.msra.mxu1 %v5055_v48  ;;  %v5139_v47 = vld [vmem:[%s7511_s1 + $0x4c8] ss:$16 sps:$4 sm:$0xff]   ;;  %v5144_v48 = vld [vmem:[%s7511_s1 + $0x4e4] ss:$16 sps:$4 sm:$0xff]  }
  0x64   :  { %3293 = vmatprep.subr.bf16.mxu0 %v5060_v50  ;;  %3621 = vmatprep.subr.bf16.mxu1 %v5063_v51  ;;  %v5147_v50 = vld [vmem:[%s7511_s1 + $0x4ec] ss:$16 sps:$4 sm:$0xff]   ;;  %v5142_v51 = vld [vmem:[%s7511_s1 + $0x4e0] ss:$16 sps:$4 sm:$0xff]  }
  0x67   :  { %3294 = vmatpush1.bf16.msra.mxu0 %v5058_v53  ;;  %3622 = vmatpush1.bf16.msra.mxu1 %v5061_v54  ;;  %v5145_v53 = vld [vmem:[%s7511_s1 + $0x4e8] ss:$16 sps:$4 sm:$0xff]   ;;  %v5150_v54 = vld [vmem:[%s7511_s1 + $0x504] ss:$16 sps:$4 sm:$0xff]  }
  0x68   :  { %3295 = vmatprep.subr.bf16.mxu0 %v5066_v55  ;;  %3623 = vmatprep.subr.bf16.mxu1 %v5069_v56  ;;  %v5153_v55 = vld [vmem:[%s7511_s1 + $0x50c] ss:$16 sps:$4 sm:$0xff]   ;;  %v5148_v56 = vld [vmem:[%s7511_s1 + $0x500] ss:$16 sps:$4 sm:$0xff]  }
  0x6b   :  { %3296 = vmatpush1.bf16.msra.mxu0 %v5064_v57  ;;  %3624 = vmatpush1.bf16.msra.mxu1 %v5067_v58  ;;  %v5151_v57 = vld [vmem:[%s7511_s1 + $0x508] ss:$16 sps:$4 sm:$0xff]   ;;  %v5156_v58 = vld [vmem:[%s7511_s1 + $0x524] ss:$16 sps:$4 sm:$0xff]  }
  0x6c   :  { %3297 = vmatprep.subr.bf16.mxu0 %v5072_v59  ;;  %3625 = vmatprep.subr.bf16.mxu1 %v5075_v60  ;;  %v5159_v59 = vld [vmem:[%s7511_s1 + $0x52c] ss:$16 sps:$4 sm:$0xff]   ;;  %v5154_v60 = vld [vmem:[%s7511_s1 + $0x520] ss:$16 sps:$4 sm:$0xff]  }
  0x6f   :  { %3298 = vmatpush1.bf16.msra.mxu0 %v5070_v61  ;;  %3626 = vmatpush1.bf16.msra.mxu1 %v5073_v62  ;;  %v5157_v61 = vld [vmem:[%s7511_s1 + $0x528] ss:$16 sps:$4 sm:$0xff]   ;;  %v5162_v62 = vld [vmem:[%s7511_s1 + $0x544] ss:$16 sps:$4 sm:$0xff]  }
  0x70   :  { %3299 = vmatprep.subr.bf16.mxu0 %v5078_v63  ;;  %3627 = vmatprep.subr.bf16.mxu1 %v5081_v0  ;;  %v5165_v63 = vld [vmem:[%s7511_s1 + $0x54c] ss:$16 sps:$4 sm:$0xff]   ;;  %v5160_v0 = vld [vmem:[%s7511_s1 + $0x540] ss:$16 sps:$4 sm:$0xff]  }
  0x73   :  { %3300 = vmatpush1.bf16.msra.mxu0 %v5076_v1  ;;  %3628 = vmatpush1.bf16.msra.mxu1 %v5079_v2  ;;  %v5163_v1 = vld [vmem:[%s7511_s1 + $0x548] ss:$16 sps:$4 sm:$0xff]   ;;  %v5168_v2 = vld [vmem:[%s7511_s1 + $0x564] ss:$16 sps:$4 sm:$0xff]  }
  0x74   :  { %3301 = vmatprep.subr.bf16.mxu0 %v5084_v3  ;;  %3629 = vmatprep.subr.bf16.mxu1 %v5087_v4  ;;  %v5171_v3 = vld [vmem:[%s7511_s1 + $0x56c] ss:$16 sps:$4 sm:$0xff]   ;;  %v5166_v4 = vld [vmem:[%s7511_s1 + $0x560] ss:$16 sps:$4 sm:$0xff]  }
  0x77   :  { %3302 = vmatpush1.bf16.msra.mxu0 %v5082_v5  ;;  %3630 = vmatpush1.bf16.msra.mxu1 %v5085_v6  ;;  %v5169_v5 = vld [vmem:[%s7511_s1 + $0x568] ss:$16 sps:$4 sm:$0xff]   ;;  %v5174_v6 = vld [vmem:[%s7511_s1 + $0x584] ss:$16 sps:$4 sm:$0xff]  }
  0x78   :  { %3303 = vmatprep.subr.bf16.mxu0 %v5090_v7  ;;  %3631 = vmatprep.subr.bf16.mxu1 %v5093_v8  ;;  %v5177_v7 = vld [vmem:[%s7511_s1 + $0x58c] ss:$16 sps:$4 sm:$0xff]   ;;  %v5172_v8 = vld [vmem:[%s7511_s1 + $0x580] ss:$16 sps:$4 sm:$0xff]  }
  0x7b   :  { %3304 = vmatpush1.bf16.msra.mxu0 %v5088_v10  ;;  %3632 = vmatpush1.bf16.msra.mxu1 %v5091_v11  ;;  %v5180_v10 = vld [vmem:[%s7511_s1 + $0x5a4] ss:$16 sps:$4 sm:$0xff]   ;;  %v5183_v11 = vld [vmem:[%s7511_s1 + $0x5ac] ss:$16 sps:$4 sm:$0xff]  }
  0x7c   :  { %3305 = vmatprep.subr.bf16.mxu0 %v5096_v12  ;;  %3633 = vmatprep.subr.bf16.mxu1 %v5099_v52  ;;  %v5178_v12 = vld [vmem:[%s7511_s1 + $0x5a0] ss:$16 sps:$4 sm:$0xff]   ;;  %v5181_v52 = vld [vmem:[%s7511_s1 + $0x5a8] ss:$16 sps:$4 sm:$0xff]  }
  0x7f   :  { %3306 = vmatpush1.bf16.msra.mxu0 %v5094_v15  ;;  %3634 = vmatpush1.bf16.msra.mxu1 %v5097_v16  ;;  %v5186_v15 = vld [vmem:[%s7511_s1 + $0x5c4] ss:$16 sps:$4 sm:$0xff]   ;;  %v5189_v16 = vld [vmem:[%s7511_s1 + $0x5cc] ss:$16 sps:$4 sm:$0xff]  }
  0x80   :  { %3316 = vmatprep.subr.bf16.mxu0 %v5102_v17  ;;  %3644 = vmatprep.subr.bf16.mxu1 %v5105_v18  ;;  %v5184_v17 = vld [vmem:[%s7511_s1 + $0x5c0] ss:$16 sps:$4 sm:$0xff]   ;;  %v5187_v18 = vld [vmem:[%s7511_s1 + $0x5c8] ss:$16 sps:$4 sm:$0xff]  }
  0x82   :  { %3308 = vmatmul.mubr.bf16.vlgmr.msra.gmra.mrb[0].mxu0 %v605_v21  ;;  %3636 = vmatmul.mubr.bf16.vlgmr.msra.gmra.mrb[0].mxu1 %v605_v21  ;;  %v5190_v21 = vld [vmem:[%s7511_s1 + $0x5e0] ss:$16 sps:$4 sm:$0xff]  }
  0x83   :  { %3317 = vmatpush1.bf16.msra.mxu0 %v5100_v20  ;;  %3645 = vmatpush1.bf16.msra.mxu1 %v5103_v22  ;;  %v5195_v20 = vld [vmem:[%s7511_s1 + $0x5ec] ss:$16 sps:$4 sm:$0xff]   ;;  %v5193_v22 = vld [vmem:[%s7511_s1 + $0x5e8] ss:$16 sps:$4 sm:$0xff]  }
  0x84   :  { %3318 = vmatprep.subr.bf16.mxu0 %v5108_v23  ;;  %3646 = vmatprep.subr.bf16.mxu1 %v5111_v24  ;;  %v5199_v23 = vld [vmem:[%s7511_s1 + $0x604] ss:$16 sps:$4 sm:$0xff]   ;;  %v5202_v24 = vld [vmem:[%s7511_s1 + $0x60c] ss:$16 sps:$4 sm:$0xff]  }
  0x85   :  { %3348 = vmatprep.mubr.bf16.mxu0 %v6196_v25  ;;  %3676 = vmatprep.mubr.bf16.mxu1 %v6196_v25 }
  0x87   :  { %3319 = vmatpush1.bf16.msra.mxu0 %v5106_v13  ;;  %3647 = vmatpush1.bf16.msra.mxu1 %v5109_v26  ;;  %v5197_v13 = vld [vmem:[%s7511_s1 + $0x600] ss:$16 sps:$4 sm:$0xff]   ;;  %v6385_v26 = vrot.slane %v6165_v14, %v5901_v49  ;;  %v608_v14 = vcombine.high %v6196_v25, %v6196_v25  ;;  %v5211_v25 = vld [vmem:[%s7511_s1 + $0x644] ss:$16 sps:$4 sm:$0xff]  }
  0x88   :  { %3320 = vmatprep.subr.bf16.mxu0 %v5114_v27  ;;  %3648 = vmatprep.subr.bf16.mxu1 %v5117_v28  ;;  %v5200_v27 = vld [vmem:[%s7511_s1 + $0x608] ss:$16 sps:$4 sm:$0xff]   ;;  %v5205_v28 = vld [vmem:[%s7511_s1 + $0x624] ss:$16 sps:$4 sm:$0xff]  }
  0x8b   :  { %3321 = vmatpush1.bf16.msra.mxu0 %v5112_v29  ;;  %3649 = vmatpush1.bf16.msra.mxu1 %v5115_v30  ;;  %v5208_v29 = vld [vmem:[%s7511_s1 + $0x62c] ss:$16 sps:$4 sm:$0xff]   ;;  %v5203_v30 = vld [vmem:[%s7511_s1 + $0x620] ss:$16 sps:$4 sm:$0xff]  }
  0x8c   :  { %3322 = vmatprep.subr.bf16.mxu0 %v5120_v31  ;;  %3650 = vmatprep.subr.bf16.mxu1 %v5123_v32  ;;  %v5206_v31 = vld [vmem:[%s7511_s1 + $0x628] ss:$16 sps:$4 sm:$0xff]   ;;  %v5214_v32 = vld [vmem:[%s7511_s1 + $0x64c] ss:$16 sps:$4 sm:$0xff]  }
  0x8f   :  { %3323 = vmatpush1.bf16.msra.mxu0 %v5118_v33  ;;  %3651 = vmatpush1.bf16.msra.mxu1 %v5121_v34  ;;  %v5209_v33 = vld [vmem:[%s7511_s1 + $0x640] ss:$16 sps:$4 sm:$0xff]   ;;  %v5212_v34 = vld [vmem:[%s7511_s1 + $0x648] ss:$16 sps:$4 sm:$0xff]  }
  0x90   :  { %3324 = vmatprep.subr.bf16.mxu0 %v5126_v35  ;;  %3652 = vmatprep.subr.bf16.mxu1 %v5129_v36  ;;  %v5217_v35 = vld [vmem:[%s7511_s1 + $0x664] ss:$16 sps:$4 sm:$0xff]   ;;  %v5220_v36 = vld [vmem:[%s7511_s1 + $0x66c] ss:$16 sps:$4 sm:$0xff]  }
  0x93   :  { %3325 = vmatpush1.bf16.msra.mxu0 %v5124_v37  ;;  %3653 = vmatpush1.bf16.msra.mxu1 %v5127_v38  ;;  %v5215_v37 = vld [vmem:[%s7511_s1 + $0x660] ss:$16 sps:$4 sm:$0xff]   ;;  %v5218_v38 = vld [vmem:[%s7511_s1 + $0x668] ss:$16 sps:$4 sm:$0xff]  }
  0x94   :  { %3326 = vmatprep.subr.bf16.mxu0 %v5132_v39  ;;  %3654 = vmatprep.subr.bf16.mxu1 %v5135_v40  ;;  %v5223_v39 = vld [vmem:[%s7511_s1 + $0x684] ss:$16 sps:$4 sm:$0xff]   ;;  %v5226_v40 = vld [vmem:[%s7511_s1 + $0x68c] ss:$16 sps:$4 sm:$0xff]  }
  0x97   :  { %3327 = vmatpush1.bf16.msra.mxu0 %v5130_v41  ;;  %3655 = vmatpush1.bf16.msra.mxu1 %v5133_v43  ;;  %v5221_v41 = vld [vmem:[%s7511_s1 + $0x680] ss:$16 sps:$4 sm:$0xff]   ;;  %v5224_v43 = vld [vmem:[%s7511_s1 + $0x688] ss:$16 sps:$4 sm:$0xff]  }
  0x98   :  { %3328 = vmatprep.subr.bf16.mxu0 %v5138_v44  ;;  %3656 = vmatprep.subr.bf16.mxu1 %v5141_v45  ;;  %v5229_v44 = vld [vmem:[%s7511_s1 + $0x6a4] ss:$16 sps:$4 sm:$0xff]   ;;  %v5232_v45 = vld [vmem:[%s7511_s1 + $0x6ac] ss:$16 sps:$4 sm:$0xff]  }
  0x9b   :  { %3329 = vmatpush1.bf16.msra.mxu0 %v5136_v46  ;;  %3657 = vmatpush1.bf16.msra.mxu1 %v5139_v47  ;;  %v5227_v46 = vld [vmem:[%s7511_s1 + $0x6a0] ss:$16 sps:$4 sm:$0xff]   ;;  %v5230_v47 = vld [vmem:[%s7511_s1 + $0x6a8] ss:$16 sps:$4 sm:$0xff]  }
  0x9c   :  { %3330 = vmatprep.subr.bf16.mxu0 %v5144_v48  ;;  %3658 = vmatprep.subr.bf16.mxu1 %v5147_v50  ;;  %v5235_v48 = vld [vmem:[%s7511_s1 + $0x6c4] ss:$16 sps:$4 sm:$0xff]   ;;  %v5238_v50 = vld [vmem:[%s7511_s1 + $0x6cc] ss:$16 sps:$4 sm:$0xff]  }
  0x9f   :  { %3331 = vmatpush1.bf16.msra.mxu0 %v5142_v51  ;;  %3659 = vmatpush1.bf16.msra.mxu1 %v5145_v53  ;;  %v5233_v51 = vld [vmem:[%s7511_s1 + $0x6c0] ss:$16 sps:$4 sm:$0xff]   ;;  %v5236_v53 = vld [vmem:[%s7511_s1 + $0x6c8] ss:$16 sps:$4 sm:$0xff]  }
  0xa0   :  { %3332 = vmatprep.subr.bf16.mxu0 %v5150_v54  ;;  %3660 = vmatprep.subr.bf16.mxu1 %v5153_v55  ;;  %v5241_v54 = vld [vmem:[%s7511_s1 + $0x6e4] ss:$16 sps:$4 sm:$0xff]   ;;  %v5244_v55 = vld [vmem:[%s7511_s1 + $0x6ec] ss:$16 sps:$4 sm:$0xff]  }
  0xa3   :  { %3333 = vmatpush1.bf16.msra.mxu0 %v5148_v56  ;;  %3661 = vmatpush1.bf16.msra.mxu1 %v5151_v57  ;;  %v5239_v56 = vld [vmem:[%s7511_s1 + $0x6e0] ss:$16 sps:$4 sm:$0xff]   ;;  %v5242_v57 = vld [vmem:[%s7511_s1 + $0x6e8] ss:$16 sps:$4 sm:$0xff]  }
  0xa4   :  { %3334 = vmatprep.subr.bf16.mxu0 %v5156_v58  ;;  %3662 = vmatprep.subr.bf16.mxu1 %v5159_v59  ;;  %v5247_v58 = vld [vmem:[%s7511_s1 + $0x704] ss:$16 sps:$4 sm:$0xff]   ;;  %v5250_v59 = vld [vmem:[%s7511_s1 + $0x70c] ss:$16 sps:$4 sm:$0xff]  }
  0xa7   :  { %3335 = vmatpush1.bf16.msra.mxu0 %v5154_v60  ;;  %3663 = vmatpush1.bf16.msra.mxu1 %v5157_v61  ;;  %v5245_v60 = vld [vmem:[%s7511_s1 + $0x700] ss:$16 sps:$4 sm:$0xff]   ;;  %v5248_v61 = vld [vmem:[%s7511_s1 + $0x708] ss:$16 sps:$4 sm:$0xff]  }
  0xa8   :  { %3336 = vmatprep.subr.bf16.mxu0 %v5162_v62  ;;  %3664 = vmatprep.subr.bf16.mxu1 %v5165_v63  ;;  %v5253_v62 = vld [vmem:[%s7511_s1 + $0x724] ss:$16 sps:$4 sm:$0xff]   ;;  %v5256_v63 = vld [vmem:[%s7511_s1 + $0x72c] ss:$16 sps:$4 sm:$0xff]  }
  0xab   :  { %3337 = vmatpush1.bf16.msra.mxu0 %v5160_v0  ;;  %3665 = vmatpush1.bf16.msra.mxu1 %v5163_v1  ;;  %v5251_v0 = vld [vmem:[%s7511_s1 + $0x720] ss:$16 sps:$4 sm:$0xff]   ;;  %v5254_v1 = vld [vmem:[%s7511_s1 + $0x728] ss:$16 sps:$4 sm:$0xff]  }
  0xac   :  { %3338 = vmatprep.subr.bf16.mxu0 %v5168_v2  ;;  %3666 = vmatprep.subr.bf16.mxu1 %v5171_v3  ;;  %v5259_v2 = vld [vmem:[%s7511_s1 + $0x744] ss:$16 sps:$4 sm:$0xff]   ;;  %v5262_v3 = vld [vmem:[%s7511_s1 + $0x74c] ss:$16 sps:$4 sm:$0xff]  }
  0xaf   :  { %3339 = vmatpush1.bf16.msra.mxu0 %v5166_v4  ;;  %3667 = vmatpush1.bf16.msra.mxu1 %v5169_v5  ;;  %v5257_v4 = vld [vmem:[%s7511_s1 + $0x740] ss:$16 sps:$4 sm:$0xff]   ;;  %v5260_v5 = vld [vmem:[%s7511_s1 + $0x748] ss:$16 sps:$4 sm:$0xff]  }
  0xb0   :  { %3340 = vmatprep.subr.bf16.mxu0 %v5174_v6  ;;  %3668 = vmatprep.subr.bf16.mxu1 %v5177_v7  ;;  %v5265_v6 = vld [vmem:[%s7511_s1 + $0x764] ss:$16 sps:$4 sm:$0xff]   ;;  %v5268_v7 = vld [vmem:[%s7511_s1 + $0x76c] ss:$16 sps:$4 sm:$0xff]  }
  0xb3   :  { %3341 = vmatpush1.bf16.msra.mxu0 %v5172_v8  ;;  %3669 = vmatpush1.bf16.msra.mxu1 %v5175_v9  ;;  %v5263_v8 = vld [vmem:[%s7511_s1 + $0x760] ss:$16 sps:$4 sm:$0xff]   ;;  %v5266_v9 = vld [vmem:[%s7511_s1 + $0x768] ss:$16 sps:$4 sm:$0xff]  }
  0xb4   :  { %3342 = vmatprep.subr.bf16.mxu0 %v5180_v10  ;;  %3670 = vmatprep.subr.bf16.mxu1 %v5183_v11  ;;  %v5271_v10 = vld [vmem:[%s7511_s1 + $0x784] ss:$16 sps:$4 sm:$0xff]   ;;  %v5274_v11 = vld [vmem:[%s7511_s1 + $0x78c] ss:$16 sps:$4 sm:$0xff]  }
  0xb7   :  { %3343 = vmatpush1.bf16.msra.mxu0 %v5178_v12  ;;  %3671 = vmatpush1.bf16.msra.mxu1 %v5181_v52  ;;  %v5269_v12 = vld [vmem:[%s7511_s1 + $0x780] ss:$16 sps:$4 sm:$0xff]   ;;  %v5272_v52 = vld [vmem:[%s7511_s1 + $0x788] ss:$16 sps:$4 sm:$0xff]  }
  0xb8   :  { %3344 = vmatprep.subr.bf16.mxu0 %v5186_v15  ;;  %3672 = vmatprep.subr.bf16.mxu1 %v5189_v16  ;;  %v5277_v15 = vld [vmem:[%s7511_s1 + $0x7a4] ss:$16 sps:$4 sm:$0xff]   ;;  %v5280_v16 = vld [vmem:[%s7511_s1 + $0x7ac] ss:$16 sps:$4 sm:$0xff]  }
  0xbb   :  { %3345 = vmatpush1.bf16.msra.mxu0 %v5184_v17  ;;  %3673 = vmatpush1.bf16.msra.mxu1 %v5187_v18  ;;  %v5275_v17 = vld [vmem:[%s7511_s1 + $0x7a0] ss:$16 sps:$4 sm:$0xff]   ;;  %v5278_v18 = vld [vmem:[%s7511_s1 + $0x7a8] ss:$16 sps:$4 sm:$0xff]  }
  0xbc   :  { %3346 = vmatprep.subr.bf16.mxu0 %v5192_v19  ;;  %3674 = vmatprep.subr.bf16.mxu1 %v5195_v20  ;;  %v5283_v19 = vld [vmem:[%s7511_s1 + $0x7c4] ss:$16 sps:$4 sm:$0xff]   ;;  %v5286_v20 = vld [vmem:[%s7511_s1 + $0x7cc] ss:$16 sps:$4 sm:$0xff]  }
  0xbf   :  { %3347 = vmatpush1.bf16.msra.mxu0 %v5190_v21  ;;  %3675 = vmatpush1.bf16.msra.mxu1 %v5193_v22  ;;  %v6559_v21 = vld [vmem:[%s7510_s0 + $0x8] sm:$0xff]  ;;  %v5281_v22 = vld [vmem:[%s7511_s1 + $0x7c0] ss:$16 sps:$4 sm:$0xff]  }
  0xc0   :  { %3357 = vmatprep.subr.bf16.mxu0 %v5199_v23  ;;  %3685 = vmatprep.subr.bf16.mxu1 %v5202_v24  ;;  %v5284_v23 = vld [vmem:[%s7511_s1 + $0x7c8] ss:$16 sps:$4 sm:$0xff]   ;;  %v5289_v24 = vld [vmem:[%s7511_s1 + $0x7e4] ss:$16 sps:$4 sm:$0xff]  }
  0xc2   :  { %3349 = vmatmul.mubr.bf16.vlgmr.msra.gmra.mrb[0].mxu0 %v6385_v26  ;;  %3677 = vmatmul.mubr.bf16.vlgmr.msra.gmra.mrb[0].mxu1 %v6385_v26 }
  0xc3   :  { %3358 = vmatpush1.bf16.msra.mxu0 %v5197_v13  ;;  %3686 = vmatpush1.bf16.msra.mxu1 %v5200_v27  ;;  %v5292_v13 = vld [vmem:[%s7511_s1 + $0x7ec] ss:$16 sps:$4 sm:$0xff]   ;;  %v6575_v27 = vrot.slane %v6559_v21, %v5901_v49 }
  0xc4   :  { %3359 = vmatprep.subr.bf16.mxu0 %v5205_v28  ;;  %3687 = vmatprep.subr.bf16.mxu1 %v5208_v29  ;;  %v5287_v28 = vld [vmem:[%s7511_s1 + $0x7e0] ss:$16 sps:$4 sm:$0xff]   ;;  %v5290_v29 = vld [vmem:[%s7511_s1 + $0x7e8] ss:$16 sps:$4 sm:$0xff]  }
  0xc5   :  { %3389 = vmatprep.mubr.bf16.mxu0 %v608_v14  ;;  %3717 = vmatprep.mubr.bf16.mxu1 %v608_v14  ;;  %v5295_v14 = vld [vmem:[%s7511_s1 + $0x804] ss:$16 sps:$4 sm:$0xff]  }
  0xc7   :  { %3360 = vmatpush1.bf16.msra.mxu0 %v5203_v30  ;;  %3688 = vmatpush1.bf16.msra.mxu1 %v5206_v31  ;;  %v5298_v30 = vld [vmem:[%s7511_s1 + $0x80c] ss:$16 sps:$4 sm:$0xff]   ;;  %v624_v31 = vcombine.high %v6575_v27, %v6575_v27 }
  0xc8   :  { %3361 = vmatprep.subr.bf16.mxu0 %v5211_v25  ;;  %3689 = vmatprep.subr.bf16.mxu1 %v5214_v32  ;;  %v606_v25 = vcombine.high %v6385_v26, %v6385_v26  ;;  %v5293_v32 = vld [vmem:[%s7511_s1 + $0x800] ss:$16 sps:$4 sm:$0xff]   ;;  %v5304_v26 = vld [vmem:[%s7511_s1 + $0x82c] ss:$16 sps:$4 sm:$0xff]  }
  0xcb   :  { %3362 = vmatpush1.bf16.msra.mxu0 %v5209_v33  ;;  %3690 = vmatpush1.bf16.msra.mxu1 %v5212_v34  ;;  %v5296_v33 = vld [vmem:[%s7511_s1 + $0x808] ss:$16 sps:$4 sm:$0xff]   ;;  %v5301_v34 = vld [vmem:[%s7511_s1 + $0x824] ss:$16 sps:$4 sm:$0xff]  }
  0xcc   :  { %3363 = vmatprep.subr.bf16.mxu0 %v5217_v35  ;;  %3691 = vmatprep.subr.bf16.mxu1 %v5220_v36  ;;  %v6606_v35 = vrot.slane %v624_v31, %v5901_v49  ;;  %v5299_v36 = vld [vmem:[%s7511_s1 + $0x820] ss:$16 sps:$4 sm:$0xff]   ;;  %v5380_v31 = vld [vmem:[%s7511_s1 + $0x9c8] ss:$16 sps:$4 sm:$0xff]  }
  0xcf   :  { %3364 = vmatpush1.bf16.msra.mxu0 %v5215_v37  ;;  %3692 = vmatpush1.bf16.msra.mxu1 %v5218_v38  ;;  %v5302_v37 = vld [vmem:[%s7511_s1 + $0x828] ss:$16 sps:$4 sm:$0xff]   ;;  %v5307_v38 = vld [vmem:[%s7511_s1 + $0x844] ss:$16 sps:$4 sm:$0xff]  }
  0xd0   :  { %3365 = vmatprep.subr.bf16.mxu0 %v5223_v39  ;;  %3693 = vmatprep.subr.bf16.mxu1 %v5226_v40  ;;  %v5310_v39 = vld [vmem:[%s7511_s1 + $0x84c] ss:$16 sps:$4 sm:$0xff]   ;;  %v5305_v40 = vld [vmem:[%s7511_s1 + $0x840] ss:$16 sps:$4 sm:$0xff]  }
  0xd3   :  { %3366 = vmatpush1.bf16.msra.mxu0 %v5221_v41  ;;  %3694 = vmatpush1.bf16.msra.mxu1 %v5224_v43  ;;  %v5308_v41 = vld [vmem:[%s7511_s1 + $0x848] ss:$16 sps:$4 sm:$0xff]   ;;  %v5313_v43 = vld [vmem:[%s7511_s1 + $0x864] ss:$16 sps:$4 sm:$0xff]  }
  0xd4   :  { %3367 = vmatprep.subr.bf16.mxu0 %v5229_v44  ;;  %3695 = vmatprep.subr.bf16.mxu1 %v5232_v45  ;;  %v5316_v44 = vld [vmem:[%s7511_s1 + $0x86c] ss:$16 sps:$4 sm:$0xff]   ;;  %v5311_v45 = vld [vmem:[%s7511_s1 + $0x860] ss:$16 sps:$4 sm:$0xff]  }
  0xd7   :  { %3368 = vmatpush1.bf16.msra.mxu0 %v5227_v46  ;;  %3696 = vmatpush1.bf16.msra.mxu1 %v5230_v47  ;;  %v5314_v46 = vld [vmem:[%s7511_s1 + $0x868] ss:$16 sps:$4 sm:$0xff]   ;;  %v5319_v47 = vld [vmem:[%s7511_s1 + $0x884] ss:$16 sps:$4 sm:$0xff]  }
  0xd8   :  { %3369 = vmatprep.subr.bf16.mxu0 %v5235_v48  ;;  %3697 = vmatprep.subr.bf16.mxu1 %v5238_v50  ;;  %v5322_v48 = vld [vmem:[%s7511_s1 + $0x88c] ss:$16 sps:$4 sm:$0xff]   ;;  %v5317_v50 = vld [vmem:[%s7511_s1 + $0x880] ss:$16 sps:$4 sm:$0xff]  }
  0xdb   :  { %3370 = vmatpush1.bf16.msra.mxu0 %v5233_v51  ;;  %3698 = vmatpush1.bf16.msra.mxu1 %v5236_v53  ;;  %v5320_v51 = vld [vmem:[%s7511_s1 + $0x888] ss:$16 sps:$4 sm:$0xff]   ;;  %v5325_v53 = vld [vmem:[%s7511_s1 + $0x8a4] ss:$16 sps:$4 sm:$0xff]  }
  0xdc   :  { %3371 = vmatprep.subr.bf16.mxu0 %v5241_v54  ;;  %3699 = vmatprep.subr.bf16.mxu1 %v5244_v55  ;;  %v5328_v54 = vld [vmem:[%s7511_s1 + $0x8ac] ss:$16 sps:$4 sm:$0xff]   ;;  %v5323_v55 = vld [vmem:[%s7511_s1 + $0x8a0] ss:$16 sps:$4 sm:$0xff]  }
  0xdf   :  { %3372 = vmatpush1.bf16.msra.mxu0 %v5239_v56  ;;  %3700 = vmatpush1.bf16.msra.mxu1 %v5242_v57  ;;  %v5326_v56 = vld [vmem:[%s7511_s1 + $0x8a8] ss:$16 sps:$4 sm:$0xff]   ;;  %v5331_v57 = vld [vmem:[%s7511_s1 + $0x8c4] ss:$16 sps:$4 sm:$0xff]  }
  0xe0   :  { %3373 = vmatprep.subr.bf16.mxu0 %v5247_v58  ;;  %3701 = vmatprep.subr.bf16.mxu1 %v5250_v59  ;;  %v5334_v58 = vld [vmem:[%s7511_s1 + $0x8cc] ss:$16 sps:$4 sm:$0xff]   ;;  %v5329_v59 = vld [vmem:[%s7511_s1 + $0x8c0] ss:$16 sps:$4 sm:$0xff]  }
  0xe3   :  { %3374 = vmatpush1.bf16.msra.mxu0 %v5245_v60  ;;  %3702 = vmatpush1.bf16.msra.mxu1 %v5248_v61  ;;  %v5332_v60 = vld [vmem:[%s7511_s1 + $0x8c8] ss:$16 sps:$4 sm:$0xff]   ;;  %v5337_v61 = vld [vmem:[%s7511_s1 + $0x8e4] ss:$16 sps:$4 sm:$0xff]  }
  0xe4   :  { %3375 = vmatprep.subr.bf16.mxu0 %v5253_v62  ;;  %3703 = vmatprep.subr.bf16.mxu1 %v5256_v63  ;;  %v5340_v62 = vld [vmem:[%s7511_s1 + $0x8ec] ss:$16 sps:$4 sm:$0xff]   ;;  %v5335_v63 = vld [vmem:[%s7511_s1 + $0x8e0] ss:$16 sps:$4 sm:$0xff]  }
  0xe7   :  { %3376 = vmatpush1.bf16.msra.mxu0 %v5251_v0  ;;  %3704 = vmatpush1.bf16.msra.mxu1 %v5254_v1  ;;  %v5338_v0 = vld [vmem:[%s7511_s1 + $0x8e8] ss:$16 sps:$4 sm:$0xff]   ;;  %v5343_v1 = vld [vmem:[%s7511_s1 + $0x904] ss:$16 sps:$4 sm:$0xff]  }
  0xe8   :  { %3377 = vmatprep.subr.bf16.mxu0 %v5259_v2  ;;  %3705 = vmatprep.subr.bf16.mxu1 %v5262_v3  ;;  %v5346_v2 = vld [vmem:[%s7511_s1 + $0x90c] ss:$16 sps:$4 sm:$0xff]   ;;  %v5341_v3 = vld [vmem:[%s7511_s1 + $0x900] ss:$16 sps:$4 sm:$0xff]  }
  0xeb   :  { %3378 = vmatpush1.bf16.msra.mxu0 %v5257_v4  ;;  %3706 = vmatpush1.bf16.msra.mxu1 %v5260_v5  ;;  %v5344_v4 = vld [vmem:[%s7511_s1 + $0x908] ss:$16 sps:$4 sm:$0xff]   ;;  %v5349_v5 = vld [vmem:[%s7511_s1 + $0x924] ss:$16 sps:$4 sm:$0xff]  }
  0xec   :  { %3379 = vmatprep.subr.bf16.mxu0 %v5265_v6  ;;  %3707 = vmatprep.subr.bf16.mxu1 %v5268_v7  ;;  %v5352_v6 = vld [vmem:[%s7511_s1 + $0x92c] ss:$16 sps:$4 sm:$0xff]   ;;  %v5347_v7 = vld [vmem:[%s7511_s1 + $0x920] ss:$16 sps:$4 sm:$0xff]  }
  0xef   :  { %3380 = vmatpush1.bf16.msra.mxu0 %v5263_v8  ;;  %3708 = vmatpush1.bf16.msra.mxu1 %v5266_v9  ;;  %v5350_v8 = vld [vmem:[%s7511_s1 + $0x928] ss:$16 sps:$4 sm:$0xff]   ;;  %v5355_v9 = vld [vmem:[%s7511_s1 + $0x944] ss:$16 sps:$4 sm:$0xff]  }
  0xf0   :  { %3381 = vmatprep.subr.bf16.mxu0 %v5271_v10  ;;  %3709 = vmatprep.subr.bf16.mxu1 %v5274_v11  ;;  %v5358_v10 = vld [vmem:[%s7511_s1 + $0x94c] ss:$16 sps:$4 sm:$0xff]   ;;  %v5353_v11 = vld [vmem:[%s7511_s1 + $0x940] ss:$16 sps:$4 sm:$0xff]  }
  0xf3   :  { %3382 = vmatpush1.bf16.msra.mxu0 %v5269_v12  ;;  %3710 = vmatpush1.bf16.msra.mxu1 %v5272_v52  ;;  %v5356_v12 = vld [vmem:[%s7511_s1 + $0x948] ss:$16 sps:$4 sm:$0xff]   ;;  %v5361_v52 = vld [vmem:[%s7511_s1 + $0x964] ss:$16 sps:$4 sm:$0xff]  }
  0xf4   :  { %3383 = vmatprep.subr.bf16.mxu0 %v5277_v15  ;;  %3711 = vmatprep.subr.bf16.mxu1 %v5280_v16  ;;  %v5364_v15 = vld [vmem:[%s7511_s1 + $0x96c] ss:$16 sps:$4 sm:$0xff]   ;;  %v5359_v16 = vld [vmem:[%s7511_s1 + $0x960] ss:$16 sps:$4 sm:$0xff]  }
  0xf7   :  { %3384 = vmatpush1.bf16.msra.mxu0 %v5275_v17  ;;  %3712 = vmatpush1.bf16.msra.mxu1 %v5278_v18  ;;  %v5362_v17 = vld [vmem:[%s7511_s1 + $0x968] ss:$16 sps:$4 sm:$0xff]   ;;  %v5367_v18 = vld [vmem:[%s7511_s1 + $0x984] ss:$16 sps:$4 sm:$0xff]  }
  0xf8   :  { %3385 = vmatprep.subr.bf16.mxu0 %v5283_v19  ;;  %3713 = vmatprep.subr.bf16.mxu1 %v5286_v20  ;;  %v5370_v19 = vld [vmem:[%s7511_s1 + $0x98c] ss:$16 sps:$4 sm:$0xff]   ;;  %v5365_v20 = vld [vmem:[%s7511_s1 + $0x980] ss:$16 sps:$4 sm:$0xff]  }
  0xfb   :  { %3386 = vmatpush1.bf16.msra.mxu0 %v5281_v22  ;;  %3714 = vmatpush1.bf16.msra.mxu1 %v5284_v23  ;;  %v5368_v22 = vld [vmem:[%s7511_s1 + $0x988] ss:$16 sps:$4 sm:$0xff]   ;;  %v5373_v23 = vld [vmem:[%s7511_s1 + $0x9a4] ss:$16 sps:$4 sm:$0xff]  }
  0xfc   :  { %3387 = vmatprep.subr.bf16.mxu0 %v5289_v24  ;;  %3715 = vmatprep.subr.bf16.mxu1 %v5292_v13  ;;  %v5376_v24 = vld [vmem:[%s7511_s1 + $0x9ac] ss:$16 sps:$4 sm:$0xff]   ;;  %v5371_v13 = vld [vmem:[%s7511_s1 + $0x9a0] ss:$16 sps:$4 sm:$0xff]  }
  0xff   :  { %3388 = vmatpush1.bf16.msra.mxu0 %v5287_v28  ;;  %3716 = vmatpush1.bf16.msra.mxu1 %v5290_v29  ;;  %v5374_v28 = vld [vmem:[%s7511_s1 + $0x9a8] ss:$16 sps:$4 sm:$0xff]   ;;  %v5379_v29 = vld [vmem:[%s7511_s1 + $0x9c4] ss:$16 sps:$4 sm:$0xff]  }
 0x100   :  { %3398 = vmatprep.subr.bf16.mxu0 %v5295_v14  ;;  %3726 = vmatprep.subr.bf16.mxu1 %v5298_v30  ;;  %v5382_v14 = vld [vmem:[%s7511_s1 + $0x9cc] ss:$16 sps:$4 sm:$0xff]   ;;  %v5377_v30 = vld [vmem:[%s7511_s1 + $0x9c0] ss:$16 sps:$4 sm:$0xff]  }
 0x102   :  { %3390 = vmatmul.mubr.bf16.vlgmr.msra.gmra.mrb[0].mxu0 %v606_v25  ;;  %3718 = vmatmul.mubr.bf16.vlgmr.msra.gmra.mrb[0].mxu1 %v606_v25  ;;  %v5385_v25 = vld [vmem:[%s7511_s1 + $0x9e4] ss:$16 sps:$4 sm:$0xff]  }
 0x103   :  { %3399 = vmatpush1.bf16.msra.mxu0 %v5293_v32  ;;  %3727 = vmatpush1.bf16.msra.mxu1 %v5296_v33  ;;  %v5388_v32 = vld [vmem:[%s7511_s1 + $0x9ec] ss:$16 sps:$4 sm:$0xff]   ;;  %v5383_v33 = vld [vmem:[%s7511_s1 + $0x9e0] ss:$16 sps:$4 sm:$0xff]  }
 0x104   :  { %3400 = vmatprep.subr.bf16.mxu0 %v5301_v34  ;;  %3728 = vmatprep.subr.bf16.mxu1 %v5304_v26  ;;  %v5386_v34 = vld [vmem:[%s7511_s1 + $0x9e8] ss:$16 sps:$4 sm:$0xff]   ;;  %v5391_v26 = vld [vmem:[%s7511_s1 + $0xa04] ss:$16 sps:$4 sm:$0xff]  }
 0x105   :  { %3430 = vmatprep.mubr.bf16.mxu0 %v6606_v35  ;;  %3758 = vmatprep.mubr.bf16.mxu1 %v6606_v35 }
 0x107   :  { %3401 = vmatpush1.bf16.msra.mxu0 %v5299_v36  ;;  %3729 = vmatpush1.bf16.msra.mxu1 %v5302_v37  ;;  %v5394_v36 = vld [vmem:[%s7511_s1 + $0xa0c] ss:$16 sps:$4 sm:$0xff]   ;;  %v6792_v37 = vrot.slane %v6575_v27, %v5901_v49 }
 0x108   :  { %3402 = vmatprep.subr.bf16.mxu0 %v5307_v38  ;;  %3730 = vmatprep.subr.bf16.mxu1 %v5310_v39  ;;  %v5389_v38 = vld [vmem:[%s7511_s1 + $0xa00] ss:$16 sps:$4 sm:$0xff]   ;;  %v5392_v39 = vld [vmem:[%s7511_s1 + $0xa08] ss:$16 sps:$4 sm:$0xff]   ;;  %v5400_v27 = vld [vmem:[%s7511_s1 + $0xa2c] ss:$16 sps:$4 sm:$0xff]  }
 0x10b   :  { %3403 = vmatpush1.bf16.msra.mxu0 %v5305_v40  ;;  %3731 = vmatpush1.bf16.msra.mxu1 %v5308_v41  ;;  %v5397_v40 = vld [vmem:[%s7511_s1 + $0xa24] ss:$16 sps:$4 sm:$0xff]   ;;  %v656_v41 = vcombine.high %v6606_v35, %v6606_v35 }
 0x10c   :  { %3404 = vmatprep.subr.bf16.mxu0 %v5313_v43  ;;  %3732 = vmatprep.subr.bf16.mxu1 %v5316_v44  ;;  %v5395_v43 = vld [vmem:[%s7511_s1 + $0xa20] ss:$16 sps:$4 sm:$0xff]   ;;  %v5398_v44 = vld [vmem:[%s7511_s1 + $0xa28] ss:$16 sps:$4 sm:$0xff]   ;;  %v5403_v35 = vld [vmem:[%s7511_s1 + $0xa44] ss:$16 sps:$4 sm:$0xff]  }
 0x10f   :  { %3405 = vmatpush1.bf16.msra.mxu0 %v5311_v45  ;;  %3733 = vmatpush1.bf16.msra.mxu1 %v5314_v46  ;;  %v5406_v45 = vld [vmem:[%s7511_s1 + $0xa4c] ss:$16 sps:$4 sm:$0xff]   ;;  %v5401_v46 = vld [vmem:[%s7511_s1 + $0xa40] ss:$16 sps:$4 sm:$0xff]  }
 0x110   :  { %3406 = vmatprep.subr.bf16.mxu0 %v5319_v47  ;;  %3734 = vmatprep.subr.bf16.mxu1 %v5322_v48  ;;  %v5404_v47 = vld [vmem:[%s7511_s1 + $0xa48] ss:$16 sps:$4 sm:$0xff]   ;;  %v5409_v48 = vld [vmem:[%s7511_s1 + $0xa64] ss:$16 sps:$4 sm:$0xff]  }
 0x113   :  { %3407 = vmatpush1.bf16.msra.mxu0 %v5317_v50  ;;  %3735 = vmatpush1.bf16.msra.mxu1 %v5320_v51  ;;  %v5412_v50 = vld [vmem:[%s7511_s1 + $0xa6c] ss:$16 sps:$4 sm:$0xff]   ;;  %v5407_v51 = vld [vmem:[%s7511_s1 + $0xa60] ss:$16 sps:$4 sm:$0xff]  }
 0x114   :  { %3408 = vmatprep.subr.bf16.mxu0 %v5325_v53  ;;  %3736 = vmatprep.subr.bf16.mxu1 %v5328_v54  ;;  %v5410_v53 = vld [vmem:[%s7511_s1 + $0xa68] ss:$16 sps:$4 sm:$0xff]   ;;  %v5415_v54 = vld [vmem:[%s7511_s1 + $0xa84] ss:$16 sps:$4 sm:$0xff]  }
 0x117   :  { %3409 = vmatpush1.bf16.msra.mxu0 %v5323_v55  ;;  %3737 = vmatpush1.bf16.msra.mxu1 %v5326_v56  ;;  %v5418_v55 = vld [vmem:[%s7511_s1 + $0xa8c] ss:$16 sps:$4 sm:$0xff]   ;;  %v5413_v56 = vld [vmem:[%s7511_s1 + $0xa80] ss:$16 sps:$4 sm:$0xff]  }
 0x118   :  { %3410 = vmatprep.subr.bf16.mxu0 %v5331_v57  ;;  %3738 = vmatprep.subr.bf16.mxu1 %v5334_v58  ;;  %v5416_v57 = vld [vmem:[%s7511_s1 + $0xa88] ss:$16 sps:$4 sm:$0xff]   ;;  %v5421_v58 = vld [vmem:[%s7511_s1 + $0xaa4] ss:$16 sps:$4 sm:$0xff]  }
 0x11b   :  { %3411 = vmatpush1.bf16.msra.mxu0 %v5329_v59  ;;  %3739 = vmatpush1.bf16.msra.mxu1 %v5332_v60  ;;  %v5424_v59 = vld [vmem:[%s7511_s1 + $0xaac] ss:$16 sps:$4 sm:$0xff]   ;;  %v5419_v60 = vld [vmem:[%s7511_s1 + $0xaa0] ss:$16 sps:$4 sm:$0xff]  }
 0x11c   :  { %3412 = vmatprep.subr.bf16.mxu0 %v5337_v61  ;;  %3740 = vmatprep.subr.bf16.mxu1 %v5340_v62  ;;  %v5422_v61 = vld [vmem:[%s7511_s1 + $0xaa8] ss:$16 sps:$4 sm:$0xff]   ;;  %v5427_v62 = vld [vmem:[%s7511_s1 + $0xac4] ss:$16 sps:$4 sm:$0xff]  }
 0x11f   :  { %3413 = vmatpush1.bf16.msra.mxu0 %v5335_v63  ;;  %3741 = vmatpush1.bf16.msra.mxu1 %v5338_v0  ;;  %v5430_v63 = vld [vmem:[%s7511_s1 + $0xacc] ss:$16 sps:$4 sm:$0xff]   ;;  %v5425_v0 = vld [vmem:[%s7511_s1 + $0xac0] ss:$16 sps:$4 sm:$0xff]  }
 0x120   :  { %3414 = vmatprep.subr.bf16.mxu0 %v5343_v1  ;;  %3742 = vmatprep.subr.bf16.mxu1 %v5346_v2  ;;  %v5428_v1 = vld [vmem:[%s7511_s1 + $0xac8] ss:$16 sps:$4 sm:$0xff]   ;;  %v5433_v2 = vld [vmem:[%s7511_s1 + $0xae4] ss:$16 sps:$4 sm:$0xff]  }
 0x123   :  { %3415 = vmatpush1.bf16.msra.mxu0 %v5341_v3  ;;  %3743 = vmatpush1.bf16.msra.mxu1 %v5344_v4  ;;  %v5436_v3 = vld [vmem:[%s7511_s1 + $0xaec] ss:$16 sps:$4 sm:$0xff]   ;;  %v5431_v4 = vld [vmem:[%s7511_s1 + $0xae0] ss:$16 sps:$4 sm:$0xff]  }
 0x124   :  { %3416 = vmatprep.subr.bf16.mxu0 %v5349_v5  ;;  %3744 = vmatprep.subr.bf16.mxu1 %v5352_v6  ;;  %v5434_v5 = vld [vmem:[%s7511_s1 + $0xae8] ss:$16 sps:$4 sm:$0xff]   ;;  %v5439_v6 = vld [vmem:[%s7511_s1 + $0xb04] ss:$16 sps:$4 sm:$0xff]  }
 0x127   :  { %3417 = vmatpush1.bf16.msra.mxu0 %v5347_v7  ;;  %3745 = vmatpush1.bf16.msra.mxu1 %v5350_v8  ;;  %v5442_v7 = vld [vmem:[%s7511_s1 + $0xb0c] ss:$16 sps:$4 sm:$0xff]   ;;  %v5437_v8 = vld [vmem:[%s7511_s1 + $0xb00] ss:$16 sps:$4 sm:$0xff]  }
 0x128   :  { %3418 = vmatprep.subr.bf16.mxu0 %v5355_v9  ;;  %3746 = vmatprep.subr.bf16.mxu1 %v5358_v10  ;;  %v5440_v9 = vld [vmem:[%s7511_s1 + $0xb08] ss:$16 sps:$4 sm:$0xff]   ;;  %v5445_v10 = vld [vmem:[%s7511_s1 + $0xb24] ss:$16 sps:$4 sm:$0xff]  }
 0x12b   :  { %3419 = vmatpush1.bf16.msra.mxu0 %v5353_v11  ;;  %3747 = vmatpush1.bf16.msra.mxu1 %v5356_v12  ;;  %v5448_v11 = vld [vmem:[%s7511_s1 + $0xb2c] ss:$16 sps:$4 sm:$0xff]  }
 0x12c   :  { %3420 = vmatprep.subr.bf16.mxu0 %v5361_v52  ;;  %3748 = vmatprep.subr.bf16.mxu1 %v5364_v15 }
 0x12f   :  { %3421 = vmatpush1.bf16.msra.mxu0 %v5359_v16  ;;  %3749 = vmatpush1.bf16.msra.mxu1 %v5362_v17 }
 0x130   :  { %3422 = vmatprep.subr.bf16.mxu0 %v5367_v18  ;;  %3750 = vmatprep.subr.bf16.mxu1 %v5370_v19 }
 0x133   :  { %3423 = vmatpush1.bf16.msra.mxu0 %v5365_v20  ;;  %3751 = vmatpush1.bf16.msra.mxu1 %v5368_v22 }
 0x134   :  { %3424 = vmatprep.subr.bf16.mxu0 %v5373_v23  ;;  %3752 = vmatprep.subr.bf16.mxu1 %v5376_v24 }
 0x137   :  { %3425 = vmatpush1.bf16.msra.mxu0 %v5371_v13  ;;  %3753 = vmatpush1.bf16.msra.mxu1 %v5374_v28 }
 0x138   :  { %3426 = vmatprep.subr.bf16.mxu0 %v5379_v29  ;;  %3754 = vmatprep.subr.bf16.mxu1 %v5382_v14 }
 0x13b   :  { %3427 = vmatpush1.bf16.msra.mxu0 %v5377_v30  ;;  %3755 = vmatpush1.bf16.msra.mxu1 %v5380_v31 }
 0x13c   :  { %3428 = vmatprep.subr.bf16.mxu0 %v5385_v25  ;;  %3756 = vmatprep.subr.bf16.mxu1 %v5388_v32 }
 0x13f   :  { %3429 = vmatpush1.bf16.msra.mxu0 %v5383_v33  ;;  %3757 = vmatpush1.bf16.msra.mxu1 %v5386_v34 }
 0x140   :  { %3439 = vmatprep.subr.bf16.mxu0 %v5391_v26  ;;  %3767 = vmatprep.subr.bf16.mxu1 %v5394_v36 }
 0x142   :  { %3431 = vmatmul.mubr.bf16.vlgmr.msra.gmra.mrb[0].mxu0 %v6792_v37  ;;  %3759 = vmatmul.mubr.bf16.vlgmr.msra.gmra.mrb[0].mxu1 %v6792_v37 }
 0x143   :  { %3440 = vmatpush1.bf16.msra.mxu0 %v5389_v38  ;;  %3768 = vmatpush1.bf16.msra.mxu1 %v5392_v39 }
 0x144   :  { %3441 = vmatprep.subr.bf16.mxu0 %v5397_v40  ;;  %3769 = vmatprep.subr.bf16.mxu1 %v5400_v27 }
 0x145   :  { %3471 = vmatprep.mubr.bf16.mxu0 %v656_v41  ;;  %3799 = vmatprep.mubr.bf16.mxu1 %v656_v41 }
 0x147   :  { %3442 = vmatpush1.bf16.msra.mxu0 %v5395_v43  ;;  %3770 = vmatpush1.bf16.msra.mxu1 %v5398_v44 }
 0x148   :  { %3443 = vmatprep.subr.bf16.mxu0 %v5403_v35  ;;  %3771 = vmatprep.subr.bf16.mxu1 %v5406_v45 }
 0x14b   :  { %3444 = vmatpush1.bf16.msra.mxu0 %v5401_v46  ;;  %3772 = vmatpush1.bf16.msra.mxu1 %v5404_v47 }
 0x14c   :  { %3445 = vmatprep.subr.bf16.mxu0 %v5409_v48  ;;  %3773 = vmatprep.subr.bf16.mxu1 %v5412_v50 }
 0x14f   :  { %3446 = vmatpush1.bf16.msra.mxu0 %v5407_v51  ;;  %3774 = vmatpush1.bf16.msra.mxu1 %v5410_v53 }
 0x150   :  { %3447 = vmatprep.subr.bf16.mxu0 %v5415_v54  ;;  %3775 = vmatprep.subr.bf16.mxu1 %v5418_v55 }
 0x153   :  { %3448 = vmatpush1.bf16.msra.mxu0 %v5413_v56  ;;  %3776 = vmatpush1.bf16.msra.mxu1 %v5416_v57 }
 0x154   :  { %3449 = vmatprep.subr.bf16.mxu0 %v5421_v58  ;;  %3777 = vmatprep.subr.bf16.mxu1 %v5424_v59 }
 0x157   :  { %3450 = vmatpush1.bf16.msra.mxu0 %v5419_v60  ;;  %3778 = vmatpush1.bf16.msra.mxu1 %v5422_v61 }
 0x158   :  { %3451 = vmatprep.subr.bf16.mxu0 %v5427_v62  ;;  %3779 = vmatprep.subr.bf16.mxu1 %v5430_v63 }
 0x15b   :  { %3452 = vmatpush1.bf16.msra.mxu0 %v5425_v0  ;;  %3780 = vmatpush1.bf16.msra.mxu1 %v5428_v1 }
 0x15c   :  { %3453 = vmatprep.subr.bf16.mxu0 %v5433_v2  ;;  %3781 = vmatprep.subr.bf16.mxu1 %v5436_v3 }
 0x15f   :  { %3454 = vmatpush1.bf16.msra.mxu0 %v5431_v4  ;;  %3782 = vmatpush1.bf16.msra.mxu1 %v5434_v5 }
 0x160   :  { %3455 = vmatprep.subr.bf16.mxu0 %v5439_v6  ;;  %3783 = vmatprep.subr.bf16.mxu1 %v5442_v7 }
 0x161   :  { %10 = vsyncpa [#allocation3], 0  ;;  %v5443_v12 = vld [vmem:[%s7511_s1 + $0xb20] ss:$16 sps:$4 sm:$0xff]   ;;  %v5446_v52 = vld [vmem:[%s7511_s1 + $0xb28] ss:$16 sps:$4 sm:$0xff]   ;;  %v609_v34 = vcombine.high %v6559_v21, %v6559_v21  ;;  %v654_v35 = vcombine.high %v6792_v37, %v6792_v37 }
 0x162   :  { %v5451_v15 = vld [vmem:[%s7511_s1 + $0xb44] ss:$16 sps:$4 sm:$0xff]   ;;  %v5454_v16 = vld [vmem:[%s7511_s1 + $0xb4c] ss:$16 sps:$4 sm:$0xff]   ;;  %v5449_v17 = vld [vmem:[%s7511_s1 + $0xb40] ss:$16 sps:$4 sm:$0xff]  }
 0x163   :  { %3456 = vmatpush1.bf16.msra.mxu0 %v5437_v8  ;;  %3784 = vmatpush1.bf16.msra.mxu1 %v5440_v9  ;;  %v5452_v18 = vld [vmem:[%s7511_s1 + $0xb48] ss:$16 sps:$4 sm:$0xff]   ;;  %v5457_v19 = vld [vmem:[%s7511_s1 + $0xb64] ss:$16 sps:$4 sm:$0xff]   ;;  %v5460_v20 = vld [vmem:[%s7511_s1 + $0xb6c] ss:$16 sps:$4 sm:$0xff]   ;;  %v6981_v39 = vrot.slane %v609_v34, %v5901_v49 }
 0x164   :  { %3457 = vmatprep.subr.bf16.mxu0 %v5445_v10  ;;  %3785 = vmatprep.subr.bf16.mxu1 %v5448_v11  ;;  %v5455_v22 = vld [vmem:[%s7511_s1 + $0xb60] ss:$16 sps:$4 sm:$0xff]   ;;  %v5458_v23 = vld [vmem:[%s7511_s1 + $0xb68] ss:$16 sps:$4 sm:$0xff]   ;;  %v5463_v24 = vld [vmem:[%s7511_s1 + $0xb84] ss:$16 sps:$4 sm:$0xff]  }
 0x165   :  { %v5466_v13 = vld [vmem:[%s7511_s1 + $0xb8c] ss:$16 sps:$4 sm:$0xff]   ;;  %v5461_v28 = vld [vmem:[%s7511_s1 + $0xb80] ss:$16 sps:$4 sm:$0xff]   ;;  %v5464_v29 = vld [vmem:[%s7511_s1 + $0xb88] ss:$16 sps:$4 sm:$0xff]   ;;  %v625_v44 = vcombine.high %v6981_v39, %v6981_v39 }
 0x166   :  { %v5469_v14 = vld [vmem:[%s7511_s1 + $0xba4] ss:$16 sps:$4 sm:$0xff]   ;;  %v5472_v30 = vld [vmem:[%s7511_s1 + $0xbac] ss:$16 sps:$4 sm:$0xff]   ;;  %v5467_v31 = vld [vmem:[%s7511_s1 + $0xba0] ss:$16 sps:$4 sm:$0xff]  }
 0x167   :  { %3458 = vmatpush1.bf16.msra.mxu0 %v5443_v12  ;;  %3786 = vmatpush1.bf16.msra.mxu1 %v5446_v52  ;;  %v5470_v25 = vld [vmem:[%s7511_s1 + $0xba8] ss:$16 sps:$4 sm:$0xff]   ;;  %v5475_v32 = vld [vmem:[%s7511_s1 + $0xbc4] ss:$16 sps:$4 sm:$0xff]   ;;  %v5478_v33 = vld [vmem:[%s7511_s1 + $0xbcc] ss:$16 sps:$4 sm:$0xff]   ;;  %v7012_v48 = vrot.slane %v625_v44, %v5901_v49 }
 0x168   :  { %3459 = vmatprep.subr.bf16.mxu0 %v5451_v15  ;;  %3787 = vmatprep.subr.bf16.mxu1 %v5454_v16  ;;  %v5473_v26 = vld [vmem:[%s7511_s1 + $0xbc0] ss:$16 sps:$4 sm:$0xff]   ;;  %v5476_v36 = vld [vmem:[%s7511_s1 + $0xbc8] ss:$16 sps:$4 sm:$0xff]   ;;  %v5481_v38 = vld [vmem:[%s7511_s1 + $0xbe4] ss:$16 sps:$4 sm:$0xff]  }
 0x169   :  { %v5484_v21 = vld [vmem:[%s7511_s1 + $0xbec] ss:$16 sps:$4 sm:$0xff]   ;;  %v5479_v40 = vld [vmem:[%s7511_s1 + $0xbe0] ss:$16 sps:$4 sm:$0xff]   ;;  %v5482_v27 = vld [vmem:[%s7511_s1 + $0xbe8] ss:$16 sps:$4 sm:$0xff]  }
 0x16a   :  { %v5487_v41 = vld [vmem:[%s7511_s1 + $0xc04] ss:$16 sps:$4 sm:$0xff]   ;;  %v5490_v43 = vld [vmem:[%s7511_s1 + $0xc0c] ss:$16 sps:$4 sm:$0xff]   ;;  %v5485_v45 = vld [vmem:[%s7511_s1 + $0xc00] ss:$16 sps:$4 sm:$0xff]  }
 0x16b   :  { %3460 = vmatpush1.bf16.msra.mxu0 %v5449_v17  ;;  %3788 = vmatpush1.bf16.msra.mxu1 %v5452_v18  ;;  %v5488_v46 = vld [vmem:[%s7511_s1 + $0xc08] ss:$16 sps:$4 sm:$0xff]   ;;  %v5493_v47 = vld [vmem:[%s7511_s1 + $0xc24] ss:$16 sps:$4 sm:$0xff]   ;;  %v5496_v37 = vld [vmem:[%s7511_s1 + $0xc2c] ss:$16 sps:$4 sm:$0xff]  }
 0x16c   :  { %3461 = vmatprep.subr.bf16.mxu0 %v5457_v19  ;;  %3789 = vmatprep.subr.bf16.mxu1 %v5460_v20  ;;  %v5491_v50 = vld [vmem:[%s7511_s1 + $0xc20] ss:$16 sps:$4 sm:$0xff]   ;;  %v5494_v51 = vld [vmem:[%s7511_s1 + $0xc28] ss:$16 sps:$4 sm:$0xff]   ;;  %v5499_v53 = vld [vmem:[%s7511_s1 + $0xc44] ss:$16 sps:$4 sm:$0xff]  }
 0x16d   :  { %v5502_v54 = vld [vmem:[%s7511_s1 + $0xc4c] ss:$16 sps:$4 sm:$0xff]   ;;  %v5497_v55 = vld [vmem:[%s7511_s1 + $0xc40] ss:$16 sps:$4 sm:$0xff]   ;;  %v5500_v56 = vld [vmem:[%s7511_s1 + $0xc48] ss:$16 sps:$4 sm:$0xff]  }
 0x16e   :  { %v5505_v57 = vld [vmem:[%s7511_s1 + $0xc64] ss:$16 sps:$4 sm:$0xff]   ;;  %v5508_v58 = vld [vmem:[%s7511_s1 + $0xc6c] ss:$16 sps:$4 sm:$0xff]   ;;  %v5503_v59 = vld [vmem:[%s7511_s1 + $0xc60] ss:$16 sps:$4 sm:$0xff]  }
 0x16f   :  { %3462 = vmatpush1.bf16.msra.mxu0 %v5455_v22  ;;  %3790 = vmatpush1.bf16.msra.mxu1 %v5458_v23  ;;  %v5506_v60 = vld [vmem:[%s7511_s1 + $0xc68] ss:$16 sps:$4 sm:$0xff]   ;;  %v5511_v61 = vld [vmem:[%s7511_s1 + $0xc84] ss:$16 sps:$4 sm:$0xff]   ;;  %v5514_v62 = vld [vmem:[%s7511_s1 + $0xc8c] ss:$16 sps:$4 sm:$0xff]  }
 0x170   :  { %3463 = vmatprep.subr.bf16.mxu0 %v5463_v24  ;;  %3791 = vmatprep.subr.bf16.mxu1 %v5466_v13  ;;  %v5509_v63 = vld [vmem:[%s7511_s1 + $0xc80] ss:$16 sps:$4 sm:$0xff]   ;;  %v5512_v0 = vld [vmem:[%s7511_s1 + $0xc88] ss:$16 sps:$4 sm:$0xff]   ;;  %v5517_v1 = vld [vmem:[%s7511_s1 + $0xca4] ss:$16 sps:$4 sm:$0xff]  }
 0x171   :  { %v5520_v2 = vld [vmem:[%s7511_s1 + $0xcac] ss:$16 sps:$4 sm:$0xff]   ;;  %v5515_v3 = vld [vmem:[%s7511_s1 + $0xca0] ss:$16 sps:$4 sm:$0xff]   ;;  %v5518_v4 = vld [vmem:[%s7511_s1 + $0xca8] ss:$16 sps:$4 sm:$0xff]  }
 0x172   :  { %v5523_v5 = vld [vmem:[%s7511_s1 + $0xcc4] ss:$16 sps:$4 sm:$0xff]   ;;  %v5526_v6 = vld [vmem:[%s7511_s1 + $0xccc] ss:$16 sps:$4 sm:$0xff]   ;;  %v5521_v7 = vld [vmem:[%s7511_s1 + $0xcc0] ss:$16 sps:$4 sm:$0xff]  }
 0x173   :  { %3464 = vmatpush1.bf16.msra.mxu0 %v5461_v28  ;;  %3792 = vmatpush1.bf16.msra.mxu1 %v5464_v29  ;;  %v5524_v8 = vld [vmem:[%s7511_s1 + $0xcc8] ss:$16 sps:$4 sm:$0xff]   ;;  %v5529_v9 = vld [vmem:[%s7511_s1 + $0xce4] ss:$16 sps:$4 sm:$0xff]   ;;  %v5532_v10 = vld [vmem:[%s7511_s1 + $0xcec] ss:$16 sps:$4 sm:$0xff]  }
 0x174   :  { %3465 = vmatprep.subr.bf16.mxu0 %v5469_v14  ;;  %3793 = vmatprep.subr.bf16.mxu1 %v5472_v30  ;;  %v5527_v11 = vld [vmem:[%s7511_s1 + $0xce0] ss:$16 sps:$4 sm:$0xff]   ;;  %v5530_v12 = vld [vmem:[%s7511_s1 + $0xce8] ss:$16 sps:$4 sm:$0xff]   ;;  %v5535_v52 = vld [vmem:[%s7511_s1 + $0xd04] ss:$16 sps:$4 sm:$0xff]  }
 0x175   :  { %v5538_v15 = vld [vmem:[%s7511_s1 + $0xd0c] ss:$16 sps:$4 sm:$0xff]   ;;  %v5533_v16 = vld [vmem:[%s7511_s1 + $0xd00] ss:$16 sps:$4 sm:$0xff]   ;;  %v5536_v17 = vld [vmem:[%s7511_s1 + $0xd08] ss:$16 sps:$4 sm:$0xff]  }
 0x176   :  { %v5541_v18 = vld [vmem:[%s7511_s1 + $0xd24] ss:$16 sps:$4 sm:$0xff]   ;;  %v5544_v19 = vld [vmem:[%s7511_s1 + $0xd2c] ss:$16 sps:$4 sm:$0xff]   ;;  %v5539_v20 = vld [vmem:[%s7511_s1 + $0xd20] ss:$16 sps:$4 sm:$0xff]  }
 0x177   :  { %3466 = vmatpush1.bf16.msra.mxu0 %v5467_v31  ;;  %3794 = vmatpush1.bf16.msra.mxu1 %v5470_v25  ;;  %v5542_v22 = vld [vmem:[%s7511_s1 + $0xd28] ss:$16 sps:$4 sm:$0xff]   ;;  %v5547_v23 = vld [vmem:[%s7511_s1 + $0xd44] ss:$16 sps:$4 sm:$0xff]   ;;  %v5550_v24 = vld [vmem:[%s7511_s1 + $0xd4c] ss:$16 sps:$4 sm:$0xff]  }
 0x178   :  { %3467 = vmatprep.subr.bf16.mxu0 %v5475_v32  ;;  %3795 = vmatprep.subr.bf16.mxu1 %v5478_v33  ;;  %v5545_v13 = vld [vmem:[%s7511_s1 + $0xd40] ss:$16 sps:$4 sm:$0xff]   ;;  %v5548_v28 = vld [vmem:[%s7511_s1 + $0xd48] ss:$16 sps:$4 sm:$0xff]   ;;  %v5553_v29 = vld [vmem:[%s7511_s1 + $0xd64] ss:$16 sps:$4 sm:$0xff]  }
 0x179   :  { %v5556_v14 = vld [vmem:[%s7511_s1 + $0xd6c] ss:$16 sps:$4 sm:$0xff]   ;;  %v5551_v30 = vld [vmem:[%s7511_s1 + $0xd60] ss:$16 sps:$4 sm:$0xff]   ;;  %v5554_v31 = vld [vmem:[%s7511_s1 + $0xd68] ss:$16 sps:$4 sm:$0xff]  }
 0x17a   :  { %v5559_v25 = vld [vmem:[%s7511_s1 + $0xd84] ss:$16 sps:$4 sm:$0xff]   ;;  %v5562_v32 = vld [vmem:[%s7511_s1 + $0xd8c] ss:$16 sps:$4 sm:$0xff]   ;;  %v5557_v33 = vld [vmem:[%s7511_s1 + $0xd80] ss:$16 sps:$4 sm:$0xff]  }
 0x17b   :  { %3468 = vmatpush1.bf16.msra.mxu0 %v5473_v26  ;;  %3796 = vmatpush1.bf16.msra.mxu1 %v5476_v36  ;;  %v5560_v34 = vld [vmem:[%s7511_s1 + $0xd88] ss:$16 sps:$4 sm:$0xff]   ;;  %v5565_v26 = vld [vmem:[%s7511_s1 + $0xda4] ss:$16 sps:$4 sm:$0xff]   ;;  %v5568_v36 = vld [vmem:[%s7511_s1 + $0xdac] ss:$16 sps:$4 sm:$0xff]  }
 0x17c   :  { %3469 = vmatprep.subr.bf16.mxu0 %v5481_v38  ;;  %3797 = vmatprep.subr.bf16.mxu1 %v5484_v21  ;;  %v5563_v38 = vld [vmem:[%s7511_s1 + $0xda0] ss:$16 sps:$4 sm:$0xff]   ;;  %v5566_v21 = vld [vmem:[%s7511_s1 + $0xda8] ss:$16 sps:$4 sm:$0xff]   ;;  %v5577_v44 = vld [vmem:[%s7511_s1 + $0xde4] ss:$16 sps:$4 sm:$0xff]  }
 0x17d   :  { %s5735_s11 = smov [#allocation2]   ;;  %vm4241_vm0 = vcmask 74752  }
 0x17e   :  { %s4249_s12 = sshll.u32 %s5735_s11, 4  ;;  %s4250_s12 = int_to_ptr.vmem [resolvable:$true] %s4249_s12 }
 0x17f   :  { %3470 = vmatpush1.bf16.msra.mxu0 %v5479_v40  ;;  %3798 = vmatpush1.bf16.msra.mxu1 %v5482_v27  ;;  %v5571_v40 = vld [vmem:[%s7511_s1 + $0xdc4] ss:$16 sps:$4 sm:$0xff]   ;;  %v5574_v27 = vld [vmem:[%s7511_s1 + $0xdcc] ss:$16 sps:$4 sm:$0xff]   ;;  %s5710_s13 = scalar_lea.vmem %s4250_s12, 32  ;;  %p5715_p1 = scmp.lt.s32.totalorder %s4250_s12, %s4250_s12 }
 0x180   :  { %3480 = vmatprep.subr.bf16.mxu0 %v5487_v41  ;;  %3808 = vmatprep.subr.bf16.mxu1 %v5490_v43  ;;  %v5569_v41 = vld [vmem:[%s7511_s1 + $0xdc0] ss:$16 sps:$4 sm:$0xff]   ;;  %v5572_v43 = vld [vmem:[%s7511_s1 + $0xdc8] ss:$16 sps:$4 sm:$0xff]   ;;  %p5711_p0 = scmp.ne.s32.totalorder %s4250_s12, %s5710_s13  ;;  %p5716_p2 = scmp.lt.s32.totalorder %s5710_s13, %s5710_s13 }
 0x182   :  { %3472 = vmatmul.mubr.bf16.vlgmr.msra.gmra.mrb[0].mxu0 %v654_v35  ;;  %3800 = vmatmul.mubr.bf16.vlgmr.msra.gmra.mrb[0].mxu1 %v654_v35  ;;  %v5580_v35 = vld [vmem:[%s7511_s1 + $0xdec] ss:$16 sps:$4 sm:$0xff]   ;;  %p5717_p3 = por %p5716_p2, %p5715_p1 }
 0x183   :  { %3481 = vmatpush1.bf16.msra.mxu0 %v5485_v45  ;;  %3809 = vmatpush1.bf16.msra.mxu1 %v5488_v46  ;;  %v5575_v45 = vld [vmem:[%s7511_s1 + $0xde0] ss:$16 sps:$4 sm:$0xff]   ;;  %v5578_v46 = vld [vmem:[%s7511_s1 + $0xde8] ss:$16 sps:$4 sm:$0xff]  }
 0x184   :  { %3482 = vmatprep.subr.bf16.mxu0 %v5493_v47  ;;  %3810 = vmatprep.subr.bf16.mxu1 %v5496_v37  ;;  %v5584_v47 = vld [vmem:[%s7511_s1 + $0xe04] ss:$16 sps:$4 sm:$0xff]   ;;  %v5587_v37 = vld [vmem:[%s7511_s1 + $0xe0c] ss:$16 sps:$4 sm:$0xff]   ;;  %p5718_p4 = pnand %p5717_p3, %p5711_p0 }
 0x185   :  { %3512 = vmatprep.mubr.bf16.mxu0 %v7012_v48  ;;  %3840 = vmatprep.mubr.bf16.mxu1 %v7012_v48 }
 0x187   :  { %3483 = vmatpush1.bf16.msra.mxu0 %v5491_v50  ;;  %3811 = vmatpush1.bf16.msra.mxu1 %v5494_v51  ;;  %v7198_v50 = vrot.slane %v6981_v39, %v5901_v49  ;;  %v5582_v51 = vld [vmem:[%s7511_s1 + $0xe00] ss:$16 sps:$4 sm:$0xff]   ;;  %v5593_v49 = vld [vmem:[%s7511_s1 + $0xe2c] ss:$16 sps:$4 sm:$0xff]   ;;  %v657_v39 = vcombine.high %v7012_v48, %v7012_v48  ;;  %v5596_v48 = vld [vmem:[%s7511_s1 + $0xe44] ss:$16 sps:$4 sm:$0xff]  }
 0x188   :  { %3484 = vmatprep.subr.bf16.mxu0 %v5499_v53  ;;  %3812 = vmatprep.subr.bf16.mxu1 %v5502_v54  ;;  %v5585_v53 = vld [vmem:[%s7511_s1 + $0xe08] ss:$16 sps:$4 sm:$0xff]   ;;  %v5590_v54 = vld [vmem:[%s7511_s1 + $0xe24] ss:$16 sps:$4 sm:$0xff]  }
 0x18b   :  { %3485 = vmatpush1.bf16.msra.mxu0 %v5497_v55  ;;  %3813 = vmatpush1.bf16.msra.mxu1 %v5500_v56  ;;  %v5588_v55 = vld [vmem:[%s7511_s1 + $0xe20] ss:$16 sps:$4 sm:$0xff]   ;;  %v5591_v56 = vld [vmem:[%s7511_s1 + $0xe28] ss:$16 sps:$4 sm:$0xff]  }
 0x18c   :  { %3486 = vmatprep.subr.bf16.mxu0 %v5505_v57  ;;  %3814 = vmatprep.subr.bf16.mxu1 %v5508_v58  ;;  %v5599_v57 = vld [vmem:[%s7511_s1 + $0xe4c] ss:$16 sps:$4 sm:$0xff]   ;;  %v5594_v58 = vld [vmem:[%s7511_s1 + $0xe40] ss:$16 sps:$4 sm:$0xff]  }
 0x18f   :  { %3487 = vmatpush1.bf16.msra.mxu0 %v5503_v59  ;;  %3815 = vmatpush1.bf16.msra.mxu1 %v5506_v60  ;;  %v5597_v59 = vld [vmem:[%s7511_s1 + $0xe48] ss:$16 sps:$4 sm:$0xff]   ;;  %v5602_v60 = vld [vmem:[%s7511_s1 + $0xe64] ss:$16 sps:$4 sm:$0xff]  }
 0x190   :  { %3488 = vmatprep.subr.bf16.mxu0 %v5511_v61  ;;  %3816 = vmatprep.subr.bf16.mxu1 %v5514_v62  ;;  %v5605_v61 = vld [vmem:[%s7511_s1 + $0xe6c] ss:$16 sps:$4 sm:$0xff]   ;;  %v5600_v62 = vld [vmem:[%s7511_s1 + $0xe60] ss:$16 sps:$4 sm:$0xff]  }
 0x193   :  { %3489 = vmatpush1.bf16.msra.mxu0 %v5509_v63  ;;  %3817 = vmatpush1.bf16.msra.mxu1 %v5512_v0  ;;  %v5603_v63 = vld [vmem:[%s7511_s1 + $0xe68] ss:$16 sps:$4 sm:$0xff]   ;;  %v5608_v0 = vld [vmem:[%s7511_s1 + $0xe84] ss:$16 sps:$4 sm:$0xff]  }
 0x194   :  { %3490 = vmatprep.subr.bf16.mxu0 %v5517_v1  ;;  %3818 = vmatprep.subr.bf16.mxu1 %v5520_v2  ;;  %v5611_v1 = vld [vmem:[%s7511_s1 + $0xe8c] ss:$16 sps:$4 sm:$0xff]   ;;  %v5606_v2 = vld [vmem:[%s7511_s1 + $0xe80] ss:$16 sps:$4 sm:$0xff]  }
 0x197   :  { %3491 = vmatpush1.bf16.msra.mxu0 %v5515_v3  ;;  %3819 = vmatpush1.bf16.msra.mxu1 %v5518_v4  ;;  %v5609_v3 = vld [vmem:[%s7511_s1 + $0xe88] ss:$16 sps:$4 sm:$0xff]   ;;  %v5614_v4 = vld [vmem:[%s7511_s1 + $0xea4] ss:$16 sps:$4 sm:$0xff]  }
 0x198   :  { %3492 = vmatprep.subr.bf16.mxu0 %v5523_v5  ;;  %3820 = vmatprep.subr.bf16.mxu1 %v5526_v6  ;;  %v5617_v5 = vld [vmem:[%s7511_s1 + $0xeac] ss:$16 sps:$4 sm:$0xff]   ;;  %v5612_v6 = vld [vmem:[%s7511_s1 + $0xea0] ss:$16 sps:$4 sm:$0xff]  }
 0x19b   :  { %3493 = vmatpush1.bf16.msra.mxu0 %v5521_v7  ;;  %3821 = vmatpush1.bf16.msra.mxu1 %v5524_v8  ;;  %v5615_v7 = vld [vmem:[%s7511_s1 + $0xea8] ss:$16 sps:$4 sm:$0xff]   ;;  %v5620_v8 = vld [vmem:[%s7511_s1 + $0xec4] ss:$16 sps:$4 sm:$0xff]  }
 0x19c   :  { %3494 = vmatprep.subr.bf16.mxu0 %v5529_v9  ;;  %3822 = vmatprep.subr.bf16.mxu1 %v5532_v10  ;;  %v5623_v9 = vld [vmem:[%s7511_s1 + $0xecc] ss:$16 sps:$4 sm:$0xff]   ;;  %v5618_v10 = vld [vmem:[%s7511_s1 + $0xec0] ss:$16 sps:$4 sm:$0xff]  }
 0x19f   :  { %3495 = vmatpush1.bf16.msra.mxu0 %v5527_v11  ;;  %3823 = vmatpush1.bf16.msra.mxu1 %v5530_v12  ;;  %v5621_v11 = vld [vmem:[%s7511_s1 + $0xec8] ss:$16 sps:$4 sm:$0xff]   ;;  %v5626_v12 = vld [vmem:[%s7511_s1 + $0xee4] ss:$16 sps:$4 sm:$0xff]  }
 0x1a0   :  { %3496 = vmatprep.subr.bf16.mxu0 %v5535_v52  ;;  %3824 = vmatprep.subr.bf16.mxu1 %v5538_v15  ;;  %v5629_v52 = vld [vmem:[%s7511_s1 + $0xeec] ss:$16 sps:$4 sm:$0xff]   ;;  %v5624_v15 = vld [vmem:[%s7511_s1 + $0xee0] ss:$16 sps:$4 sm:$0xff]  }
 0x1a3   :  { %3497 = vmatpush1.bf16.msra.mxu0 %v5533_v16  ;;  %3825 = vmatpush1.bf16.msra.mxu1 %v5536_v17  ;;  %v5627_v16 = vld [vmem:[%s7511_s1 + $0xee8] ss:$16 sps:$4 sm:$0xff]   ;;  %v5632_v17 = vld [vmem:[%s7511_s1 + $0xf04] ss:$16 sps:$4 sm:$0xff]  }
 0x1a4   :  { %3498 = vmatprep.subr.bf16.mxu0 %v5541_v18  ;;  %3826 = vmatprep.subr.bf16.mxu1 %v5544_v19  ;;  %v5635_v18 = vld [vmem:[%s7511_s1 + $0xf0c] ss:$16 sps:$4 sm:$0xff]   ;;  %v5630_v19 = vld [vmem:[%s7511_s1 + $0xf00] ss:$16 sps:$4 sm:$0xff]  }
 0x1a7   :  { %3499 = vmatpush1.bf16.msra.mxu0 %v5539_v20  ;;  %3827 = vmatpush1.bf16.msra.mxu1 %v5542_v22  ;;  %v5633_v20 = vld [vmem:[%s7511_s1 + $0xf08] ss:$16 sps:$4 sm:$0xff]   ;;  %v5638_v22 = vld [vmem:[%s7511_s1 + $0xf24] ss:$16 sps:$4 sm:$0xff]  }
 0x1a8   :  { %3500 = vmatprep.subr.bf16.mxu0 %v5547_v23  ;;  %3828 = vmatprep.subr.bf16.mxu1 %v5550_v24  ;;  %v5641_v23 = vld [vmem:[%s7511_s1 + $0xf2c] ss:$16 sps:$4 sm:$0xff]   ;;  %v5636_v24 = vld [vmem:[%s7511_s1 + $0xf20] ss:$16 sps:$4 sm:$0xff]  }
 0x1ab   :  { %3501 = vmatpush1.bf16.msra.mxu0 %v5545_v13  ;;  %3829 = vmatpush1.bf16.msra.mxu1 %v5548_v28  ;;  %v5639_v13 = vld [vmem:[%s7511_s1 + $0xf28] ss:$16 sps:$4 sm:$0xff]   ;;  %v5644_v28 = vld [vmem:[%s7511_s1 + $0xf44] ss:$16 sps:$4 sm:$0xff]  }
 0x1ac   :  { %3502 = vmatprep.subr.bf16.mxu0 %v5553_v29  ;;  %3830 = vmatprep.subr.bf16.mxu1 %v5556_v14  ;;  %v5647_v29 = vld [vmem:[%s7511_s1 + $0xf4c] ss:$16 sps:$4 sm:$0xff]   ;;  %v5642_v14 = vld [vmem:[%s7511_s1 + $0xf40] ss:$16 sps:$4 sm:$0xff]  }
 0x1af   :  { %3503 = vmatpush1.bf16.msra.mxu0 %v5551_v30  ;;  %3831 = vmatpush1.bf16.msra.mxu1 %v5554_v31  ;;  %v5645_v30 = vld [vmem:[%s7511_s1 + $0xf48] ss:$16 sps:$4 sm:$0xff]   ;;  %v5650_v31 = vld [vmem:[%s7511_s1 + $0xf64] ss:$16 sps:$4 sm:$0xff]  }
 0x1b0   :  { %3504 = vmatprep.subr.bf16.mxu0 %v5559_v25  ;;  %3832 = vmatprep.subr.bf16.mxu1 %v5562_v32  ;;  %v5653_v25 = vld [vmem:[%s7511_s1 + $0xf6c] ss:$16 sps:$4 sm:$0xff]   ;;  %v5648_v32 = vld [vmem:[%s7511_s1 + $0xf60] ss:$16 sps:$4 sm:$0xff]  }
 0x1b3   :  { %3505 = vmatpush1.bf16.msra.mxu0 %v5557_v33  ;;  %3833 = vmatpush1.bf16.msra.mxu1 %v5560_v34  ;;  %v5651_v33 = vld [vmem:[%s7511_s1 + $0xf68] ss:$16 sps:$4 sm:$0xff]   ;;  %v5656_v34 = vld [vmem:[%s7511_s1 + $0xf84] ss:$16 sps:$4 sm:$0xff]  }
 0x1b4   :  { %3506 = vmatprep.subr.bf16.mxu0 %v5565_v26  ;;  %3834 = vmatprep.subr.bf16.mxu1 %v5568_v36  ;;  %v5659_v26 = vld [vmem:[%s7511_s1 + $0xf8c] ss:$16 sps:$4 sm:$0xff]   ;;  %v5654_v36 = vld [vmem:[%s7511_s1 + $0xf80] ss:$16 sps:$4 sm:$0xff]  }
 0x1b7   :  { %3507 = vmatpush1.bf16.msra.mxu0 %v5563_v38  ;;  %3835 = vmatpush1.bf16.msra.mxu1 %v5566_v21  ;;  %v5657_v38 = vld [vmem:[%s7511_s1 + $0xf88] ss:$16 sps:$4 sm:$0xff]   ;;  %v5662_v21 = vld [vmem:[%s7511_s1 + $0xfa4] ss:$16 sps:$4 sm:$0xff]  }
 0x1b8   :  { %3508 = vmatprep.subr.bf16.mxu0 %v5571_v40  ;;  %3836 = vmatprep.subr.bf16.mxu1 %v5574_v27  ;;  %v5665_v40 = vld [vmem:[%s7511_s1 + $0xfac] ss:$16 sps:$4 sm:$0xff]   ;;  %v5660_v27 = vld [vmem:[%s7511_s1 + $0xfa0] ss:$16 sps:$4 sm:$0xff]  }
 0x1bb   :  { %3509 = vmatpush1.bf16.msra.mxu0 %v5569_v41  ;;  %3837 = vmatpush1.bf16.msra.mxu1 %v5572_v43  ;;  %v5663_v41 = vld [vmem:[%s7511_s1 + $0xfa8] ss:$16 sps:$4 sm:$0xff]   ;;  %v5668_v43 = vld [vmem:[%s7511_s1 + $0xfc4] ss:$16 sps:$4 sm:$0xff]  }
 0x1bc   :  { %3510 = vmatprep.subr.bf16.mxu0 %v5577_v44  ;;  %3838 = vmatprep.subr.bf16.mxu1 %v5580_v35  ;;  %v5671_v44 = vld [vmem:[%s7511_s1 + $0xfcc] ss:$16 sps:$4 sm:$0xff]   ;;  %v5666_v35 = vld [vmem:[%s7511_s1 + $0xfc0] ss:$16 sps:$4 sm:$0xff]  }
 0x1bf   :  { %3511 = vmatpush1.bf16.msra.mxu0 %v5575_v45  ;;  %3839 = vmatpush1.bf16.msra.mxu1 %v5578_v46  ;;  %v5669_v45 = vld [vmem:[%s7511_s1 + $0xfc8] ss:$16 sps:$4 sm:$0xff]   ;;  %v5674_v46 = vld [vmem:[%s7511_s1 + $0xfe4] ss:$16 sps:$4 sm:$0xff]  }
 0x1c0   :  { %3521 = vmatprep.subr.bf16.mxu0 %v5584_v47  ;;  %3849 = vmatprep.subr.bf16.mxu1 %v5587_v37  ;;  %v5677_v47 = vld [vmem:[%s7511_s1 + $0xfec] ss:$16 sps:$4 sm:$0xff]   ;;  %v5672_v37 = vld [vmem:[%s7511_s1 + $0xfe0] ss:$16 sps:$4 sm:$0xff]  }
 0x1c2   :  { %3513 = vmatmul.mubr.bf16.vlgmr.msra.gmra.mrb[0].mxu0 %v7198_v50  ;;  %3841 = vmatmul.mubr.bf16.vlgmr.msra.gmra.mrb[0].mxu1 %v7198_v50 }
 0x1c3   :  { %3522 = vmatpush1.bf16.msra.mxu0 %v5582_v51  ;;  %3850 = vmatpush1.bf16.msra.mxu1 %v5585_v53  ;;  %v5675_v51 = vld [vmem:[%s7511_s1 + $0xfe8] ss:$16 sps:$4 sm:$0xff]   ;;  %v5678_v53 = vld [vmem:[%s7513_s3 + $0x40] sm:$0xff]  }
 0x1c4   :  { %3523 = vmatprep.subr.bf16.mxu0 %v5590_v54  ;;  %3851 = vmatprep.subr.bf16.mxu1 %v5593_v49  ;;  %v5679_v54 = vld [vmem:[%s7513_s3 + $0xc0] sm:$0xff]   ;;  %v655_v49 = vcombine.high %v7198_v50, %v7198_v50  ;;  %v5683_v50 = vld [vmem:[%s7513_s3 + $0xc8] sm:$0xff]  }
 0x1c5   :  { %3553 = vmatprep.mubr.bf16.mxu0 %v657_v39  ;;  %3881 = vmatprep.mubr.bf16.mxu1 %v657_v39  ;;  %v5680_v39 = vld [vmem:[%s7513_s3] sm:$0xff]  }
 0x1c7   :  { %3524 = vmatpush1.bf16.msra.mxu0 %v5588_v55  ;;  %3852 = vmatpush1.bf16.msra.mxu1 %v5591_v56  ;;  %v5681_v55 = vld [vmem:[%s7513_s3 + $0x80] sm:$0xff]   ;;  %v5682_v56 = vld [vmem:[%s7513_s3 + $0x48] sm:$0xff]  }
 0x1c8   :  { %3525 = vmatprep.subr.bf16.mxu0 %v5596_v48  ;;  %3853 = vmatprep.subr.bf16.mxu1 %v5599_v57  ;;  %v5684_v48 = vld [vmem:[%s7513_s3 + $0x8] sm:$0xff]  }
 0x1c9   :  { %v5685_v57 = vld [vmem:[%s7513_s3 + $0x88] sm:$0xff]  }
 0x1cb   :  { %3526 = vmatpush1.bf16.msra.mxu0 %v5594_v58  ;;  %3854 = vmatpush1.bf16.msra.mxu1 %v5597_v59  ;;  %v5686_v58 = vld [vmem:[%s7513_s3 + $0x50] sm:$0xff]  }
 0x1cc   :  { %3527 = vmatprep.subr.bf16.mxu0 %v5602_v60  ;;  %3855 = vmatprep.subr.bf16.mxu1 %v5605_v61  ;;  %v5687_v59 = vld [vmem:[%s7513_s3 + $0xd0] sm:$0xff]  }
 0x1cd   :  { %v5688_v60 = vld [vmem:[%s7513_s3 + $0x10] sm:$0xff]  }
 0x1ce   :  { %v5689_v61 = vld [vmem:[%s7513_s3 + $0x90] sm:$0xff]  }
 0x1cf   :  { %3528 = vmatpush1.bf16.msra.mxu0 %v5600_v62  ;;  %3856 = vmatpush1.bf16.msra.mxu1 %v5603_v63  ;;  %v5690_v62 = vld [vmem:[%s7513_s3 + $0x58] sm:$0xff]  }
 0x1d0   :  { %3529 = vmatprep.subr.bf16.mxu0 %v5608_v0  ;;  %3857 = vmatprep.subr.bf16.mxu1 %v5611_v1  ;;  %v5691_v63 = vld [vmem:[%s7513_s3 + $0xd8] sm:$0xff]  }
 0x1d1   :  { %v5692_v0 = vld [vmem:[%s7513_s3 + $0x18] sm:$0xff]  }
 0x1d2   :  { %v5693_v1 = vld [vmem:[%s7513_s3 + $0x98] sm:$0xff]  }
 0x1d3   :  { %3530 = vmatpush1.bf16.msra.mxu0 %v5606_v2  ;;  %3858 = vmatpush1.bf16.msra.mxu1 %v5609_v3  ;;  %v5694_v2 = vld [vmem:[%s7513_s3 + $0x60] sm:$0xff]  }
 0x1d4   :  { %3531 = vmatprep.subr.bf16.mxu0 %v5614_v4  ;;  %3859 = vmatprep.subr.bf16.mxu1 %v5617_v5  ;;  %v5695_v3 = vld [vmem:[%s7513_s3 + $0xe0] sm:$0xff]  }
 0x1d5   :  { %v5696_v4 = vld [vmem:[%s7513_s3 + $0x20] sm:$0xff]  }
 0x1d6   :  { %v5697_v5 = vld [vmem:[%s7513_s3 + $0xa0] sm:$0xff]  }
 0x1d7   :  { %3532 = vmatpush1.bf16.msra.mxu0 %v5612_v6  ;;  %3860 = vmatpush1.bf16.msra.mxu1 %v5615_v7  ;;  %v5698_v6 = vld [vmem:[%s7513_s3 + $0x68] sm:$0xff]  }
 0x1d8   :  { %3533 = vmatprep.subr.bf16.mxu0 %v5620_v8  ;;  %3861 = vmatprep.subr.bf16.mxu1 %v5623_v9  ;;  %v5699_v7 = vld [vmem:[%s7513_s3 + $0xe8] sm:$0xff]  }
 0x1d9   :  { %v5700_v8 = vld [vmem:[%s7513_s3 + $0x28] sm:$0xff]  }
 0x1da   :  { %v5701_v9 = vld [vmem:[%s7513_s3 + $0xa8] sm:$0xff]  }
 0x1db   :  { %3534 = vmatpush1.bf16.msra.mxu0 %v5618_v10  ;;  %3862 = vmatpush1.bf16.msra.mxu1 %v5621_v11  ;;  %v5702_v10 = vld [vmem:[%s7513_s3 + $0x70] sm:$0xff]  }
 0x1dc   :  { %3535 = vmatprep.subr.bf16.mxu0 %v5626_v12  ;;  %3863 = vmatprep.subr.bf16.mxu1 %v5629_v52  ;;  %v5703_v11 = vld [vmem:[%s7513_s3 + $0xf0] sm:$0xff]  }
 0x1dd   :  { %v5704_v12 = vld [vmem:[%s7513_s3 + $0x30] sm:$0xff]  }
 0x1de   :  { %v5705_v52 = vld [vmem:[%s7513_s3 + $0xb0] sm:$0xff]  }
 0x1df   :  { %3536 = vmatpush1.bf16.msra.mxu0 %v5624_v15  ;;  %3864 = vmatpush1.bf16.msra.mxu1 %v5627_v16  ;;  %v5706_v15 = vld [vmem:[%s7513_s3 + $0x78] sm:$0xff]  }
 0x1e0   :  { %3537 = vmatprep.subr.bf16.mxu0 %v5632_v17  ;;  %3865 = vmatprep.subr.bf16.mxu1 %v5635_v18  ;;  %v5707_v16 = vld [vmem:[%s7513_s3 + $0xf8] sm:$0xff]  }
 0x1e1   :  { %v5708_v17 = vld [vmem:[%s7513_s3 + $0x38] sm:$0xff]  }
 0x1e2   :  { %v5709_v18 = vld [vmem:[%s7513_s3 + $0xb8] sm:$0xff]  }
 0x1e3   :  { %3538 = vmatpush1.bf16.msra.mxu0 %v5630_v19  ;;  %3866 = vmatpush1.bf16.msra.mxu1 %v5633_v20  ;;  %v540_v19 = vsub.s32 0, %v5883_v42  ;;  %v548_v20 = vsub.s32 2, %v5883_v42 }
 0x1e4   :  { %3539 = vmatprep.subr.bf16.mxu0 %v5638_v22  ;;  %3867 = vmatprep.subr.bf16.mxu1 %v5641_v23  ;;  %v536_v22 = vld [vmem:[%s7512_s2] sm:$0xf]  ;;  %v544_v23 = vsub.s32 1, %v5883_v42 }
 0x1e7   :  { %3540 = vmatpush1.bf16.msra.mxu0 %v5636_v24  ;;  %3868 = vmatpush1.bf16.msra.mxu1 %v5639_v13  ;;  %v552_v24 = vsub.s32 3, %v5883_v42  ;;  %v541_v13 = vrot.slane %v536_v22, %v540_v19 }
 0x1e8   :  { %3541 = vmatprep.subr.bf16.mxu0 %v5644_v28  ;;  %3869 = vmatprep.subr.bf16.mxu1 %v5647_v29  ;;  %v549_v28 = vrot.slane %v536_v22, %v548_v20  ;;  %v545_v29 = vrot.slane %v536_v22, %v544_v23 }
 0x1eb   :  { %3542 = vmatpush1.bf16.msra.mxu0 %v5642_v14  ;;  %3870 = vmatpush1.bf16.msra.mxu1 %v5645_v30  ;;  %v553_v14 = vrot.slane %v536_v22, %v552_v24 }
 0x1ec   :  { %3543 = vmatprep.subr.bf16.mxu0 %v5650_v31  ;;  %3871 = vmatprep.subr.bf16.mxu1 %v5653_v25 }
 0x1ef   :  { %3544 = vmatpush1.bf16.msra.mxu0 %v5648_v32  ;;  %3872 = vmatpush1.bf16.msra.mxu1 %v5651_v33 }
 0x1f0   :  { %3545 = vmatprep.subr.bf16.mxu0 %v5656_v34  ;;  %3873 = vmatprep.subr.bf16.mxu1 %v5659_v26 }
 0x1f3   :  { %3546 = vmatpush1.bf16.msra.mxu0 %v5654_v36  ;;  %3874 = vmatpush1.bf16.msra.mxu1 %v5657_v38 }
 0x1f4   :  { %3547 = vmatprep.subr.bf16.mxu0 %v5662_v21  ;;  %3875 = vmatprep.subr.bf16.mxu1 %v5665_v40 }
 0x1f7   :  { %3548 = vmatpush1.bf16.msra.mxu0 %v5660_v27  ;;  %3876 = vmatpush1.bf16.msra.mxu1 %v5663_v41 }
 0x1f8   :  { %3549 = vmatprep.subr.bf16.mxu0 %v5668_v43  ;;  %3877 = vmatprep.subr.bf16.mxu1 %v5671_v44 }
 0x1fb   :  { %3550 = vmatpush1.bf16.msra.mxu0 %v5666_v35  ;;  %3878 = vmatpush1.bf16.msra.mxu1 %v5669_v45 }
 0x1fc   :  { %3551 = vmatprep.subr.bf16.mxu0 %v5674_v46  ;;  %3879 = vmatprep.subr.bf16.mxu1 %v5677_v47 }
 0x1ff   :  { %3552 = vmatpush1.bf16.msra.mxu0 %v5672_v37  ;;  %3880 = vmatpush1.bf16.msra.mxu1 %v5675_v51 }
 0x200   :  { %4802 = vmatprep.subr.bf16.mxu0 %v5678_v53  ;;  %4824 = vmatprep.subr.bf16.mxu1 %v5679_v54  ;;  %v4769_v53 = vld [vmem:[%s7514_s4] ss:$0 sm:$0xff] }
 0x202   :  { %3554 = vmatmul.mubr.bf16.vlgmr.msra.gmra.mrb[0].mxu0 %v655_v49  ;;  %3882 = vmatmul.mubr.bf16.vlgmr.msra.gmra.mrb[0].mxu1 %v655_v49 }
 0x203   :  { %4803 = vmatpush3.bf16.msra.mxu0 %v5680_v39  ;;  %4825 = vmatpush3.bf16.msra.mxu1 %v5681_v55 }
 0x204   :  { %4804 = vmatprep.subr.bf16.mxu0 %v5682_v56  ;;  %4826 = vmatprep.subr.bf16.mxu1 %v5683_v50 }
 0x207   :  { %4805 = vmatpush3.bf16.msra.mxu0 %v5684_v48  ;;  %4827 = vmatpush3.bf16.msra.mxu1 %v5685_v57 }
 0x208   :  { %4806 = vmatprep.subr.bf16.mxu0 %v5686_v58  ;;  %4828 = vmatprep.subr.bf16.mxu1 %v5687_v59 }
 0x20b   :  { %4807 = vmatpush3.bf16.msra.mxu0 %v5688_v60  ;;  %4829 = vmatpush3.bf16.msra.mxu1 %v5689_v61 }
 0x20c   :  { %4808 = vmatprep.subr.bf16.mxu0 %v5690_v62  ;;  %4830 = vmatprep.subr.bf16.mxu1 %v5691_v63 }
 0x20f   :  { %4809 = vmatpush3.bf16.msra.mxu0 %v5692_v0  ;;  %4831 = vmatpush3.bf16.msra.mxu1 %v5693_v1 }
 0x210   :  { %4810 = vmatprep.subr.bf16.mxu0 %v5694_v2  ;;  %4832 = vmatprep.subr.bf16.mxu1 %v5695_v3 }
 0x213   :  { %4811 = vmatpush3.bf16.msra.mxu0 %v5696_v4  ;;  %4833 = vmatpush3.bf16.msra.mxu1 %v5697_v5 }
 0x214   :  { %4812 = vmatprep.subr.bf16.mxu0 %v5698_v6  ;;  %4834 = vmatprep.subr.bf16.mxu1 %v5699_v7 }
 0x217   :  { %4813 = vmatpush3.bf16.msra.mxu0 %v5700_v8  ;;  %4835 = vmatpush3.bf16.msra.mxu1 %v5701_v9 }
 0x218   :  { %4814 = vmatprep.subr.bf16.mxu0 %v5702_v10  ;;  %4836 = vmatprep.subr.bf16.mxu1 %v5703_v11 }
 0x21b   :  { %4815 = vmatpush3.bf16.msra.mxu0 %v5704_v12  ;;  %4837 = vmatpush3.bf16.msra.mxu1 %v5705_v52 }
 0x21c   :  { %4816 = vmatprep.subr.bf16.mxu0 %v5706_v15  ;;  %4838 = vmatprep.subr.bf16.mxu1 %v5707_v16 }
 0x21f   :  { %4817 = vmatpush3.bf16.msra.mxu0 %v5708_v17  ;;  %4839 = vmatpush3.bf16.msra.mxu1 %v5709_v18 }
 0x2d5   :  { %v3555_v30 = vpop.f32.mrb[0].mxu0  ;;  %v3883_v31 = vpop.f32.mrb[0].mxu1 }
 0x2d6   :  { %v4846_v25 = vadd.f32 %v3555_v30, %v541_v13  ;;  %v4848_v32 = vadd.f32 %v3883_v31, %v549_v28  ;;  %v3557_v33 = vpop.f32.mrb[1].mxu0  ;;  %v3885_v34 = vpop.f32.mrb[1].mxu1 }
 0x2d7   :  { %v4847_v26 = vadd.f32 %v3557_v33, %v545_v29  ;;  %v4849_v36 = vadd.f32 %v3885_v34, %v553_v14  ;;  %v3559_v38 = vpop.f32.mrb[2].mxu0  ;;  %v3887_v21 = vpop.f32.mrb[2].mxu1 }
 0x2d8   :  { %v3890_v40 = vmax.f32 %v4846_v25, 0.0  ;;  %v3892_v27 = vmax.f32 %v4848_v32, 0.0  ;;  %v3560_v41 = vpop.f32.mrb[3].mxu0  ;;  %v3888_v43 = vpop.f32.mrb[3].mxu1 }
 0x2d9   :  { %v3891_v44 = vmax.f32 %v4847_v26, 0.0  ;;  %v3893_v42 = vmax.f32 %v4849_v36, 0.0 }
 0x2da   :  { %v3894_v46 = vpack.c.bf16 %v3890_v40, %v3890_v40  ;;  %v3896_v47 = vpack.c.bf16 %v3892_v27, %v3892_v27 }
 0x2db   :  { %v3895_v35 = vpack.c.bf16 %v3891_v44, %v3891_v44  ;;  %v3897_v45 = vpack.c.bf16 %v3893_v42, %v3893_v42 }
 0x2dd   :  { %4193 = vmatprep.mubr.bf16.mxu0 %v3895_v35  ;;  %4233 = vmatprep.mubr.bf16.mxu1 %v3897_v45 }
 0x2de   :  { %4194 = vmatmul.mubr.bf16.vlgmr.msra.gmra.mrb[4].mxu0 %v3894_v46  ;;  %4234 = vmatmul.mubr.bf16.vlgmr.msra.gmra.mrb[4].mxu1 %v3896_v47 }
 0x3b1   :  { %v4818_v37 = vpop.f32.mrb[4].mxu0  ;;  %v4840_v51 = vpop.f32.mrb[4].mxu1 }
 0x3b2   :  { %v4819_v54 = vpop.f32.mrb[5].mxu0  ;;  %v4841_v49 = vpop.f32.mrb[5].mxu1 }
 0x3b3   :  { %v4820_v39 = vadd.f32 %v4819_v54, %v4818_v37  ;;  %v4842_v55 = vadd.f32 %v4841_v49, %v4840_v51  ;;  %v4821_v56 = vpop.f32.mrb[6].mxu0  ;;  %v4843_v50 = vpop.f32.mrb[6].mxu1 }
 0x3b4   :  { %v4822_v48 = vpop.f32.mrb[7].mxu0  ;;  %v4844_v57 = vpop.f32.mrb[7].mxu1 }
 0x3b5   :  { %v4196_v58 = vadd.f32 %v4820_v39, %v4769_v53 }
 0x3b7   :  { %v4236_v59 = vadd.f32 %v4842_v55, %v4196_v58 }
 0x3b9   :  { %4242 = vst.msk [vmem:[#allocation2] sm:$0x3] %vm4241_vm0, %v4236_v59 }
 0x3ba   :  { %5721 = shalt.err (!%p5718_p4)
}
 0x3bb   :  { %s5722_s15 = scalar_lea.hbm %s7515_s5, 32 }
 0x3bc   :  { %p5723_p5 = scmp.ne.s32.totalorder %s7515_s5, %s5722_s15  ;;  %p5726_p6 = scmp.lt.u32.totalorder %s5722_s15, %s7515_s5 }
 0x3be   :  { %p5728_p7 = pnand %p5726_p6, %p5723_p5 }
 0x3c0   :  { %5731 = shalt.err (!%p5728_p7)
}
 0x3c1   :  { %4252 = dma.vmem_to_hbm [thread:$0]  %s4250_s12, 32, %s7515_s5, [#allocation3]  }
 0x3c2   :  { %5732 = dma.done.wait [#allocation3], 32  }
 0x3c3   :  { %5733 = vsyncadd [#allocation3], 4294967264 }
 0x3c4   :  { %4256 = vsyncpa [#allocation3], 1 }

// kernel: cnn_forward.2
= control target key start
LH: loop header
LB: loop body
LE: loop exit
PB: predicated region body
PF: predicated region fallthrough
CT: control target
= control target key end

     0   :  { %12 = vsyncpa [#allocation8], 0  ;;  %s16149_s0 = inlined_call_operand.vmem [shape: bf16[2,1024,9], index: 0, kind: input, shape index: {}]   ;;  %s16150_s1 = inlined_call_operand.hbm [shape: bf16[9,32], index: 1, kind: input, shape index: {}]   ;;  %s16151_s2 = inlined_call_operand.hbm [shape: f32[1,32], index: 2, kind: input, shape index: {}]   ;;  %s16152_s3 = inlined_call_operand.hbm [shape: bf16[9,32,64], index: 3, kind: input, shape index: {}]   ;;  %s16153_s4 = inlined_call_operand.hbm [shape: f32[1,64], index: 4, kind: input, shape index: {}]   ;;  %s16154_s5 = inlined_call_operand.hbm [shape: bf16[9,64,128], index: 5, kind: input, shape index: {}]   ;;  %s16155_s6 = inlined_call_operand.hbm [shape: f32[1,128], index: 6, kind: input, shape index: {}]   ;;  %s16156_s7 = inlined_call_operand.vmem [shape: bf16[2,16,128], index: 7, kind: output, shape index: {}]  }
   0x1   :  { %13 = vsyncpa [#allocation10], 0 }
   0x2   :  { %14 = vsyncpa [#allocation13], 0 }
   0x3   :  { %15 = vsyncpa [#allocation16], 0  ;;  %s12695_s24 = smov 0  }
   0x4 LB: > { %s12641_s25 = smov [#allocation9]   ;;  %s12701_s27 = sadd.s32 4294967295, %s12639_s24   ;;  %s12639_s24 = sphi %s12695_s24, %s21_s24  }
   0x5   : > { %s230_s26 = sshll.u32 %s12641_s25, 4  ;;  %p10239_p0 = scmp.ge.s32.totalorder %s12639_s24, 1  ;;  %s12706_s26 = int_to_ptr.vmem [resolvable:$true] %s230_s26 }
   0x6   : > { %p204_p1 = scmp.lt.s32.totalorder %s12639_s24, 3  ;;  %p16157_p2 = scmp.eq.s32.totalorder %s12701_s27, 0 }
   0x7   : > { %s12642_s29 = smov [#allocation12]   ;;  %s12643_s8 = smov [#allocation7]  }
   0x8   : > { %p12708_p3 = pnand %p10239_p0, %p204_p1  ;;  %s254_s30 = sshll.u32 %s12642_s29, 4  ;;  %s12714_s30 = int_to_ptr.vmem [resolvable:$true] %s254_s30 }
   0x9   : > { %s216_s9 = sshll.u32 %s12643_s8, 4  ;;  %s12644_s11 = smov [#allocation11]   ;;  %s12722_s9 = int_to_ptr.vmem [resolvable:$true] %s216_s9 }
   0xa   : > { %s16319_s28 = scalar_select %p12708_p3, 1, 0 }
   0xb   : > { %p12197_p4 = pneg %p12708_p3  ;;  %s12724_s12 = sshll.u32 %s12644_s11, 4  ;;  %s241_s12 = int_to_ptr.vmem [resolvable:$true] %s12724_s12 }
   0xc   : > { %s12449_s15 = scalar_lea.hbm %s16151_s2, 16 }
   0xd   : > { %p12718_p5 = pnand %p16157_p2, %p12197_p4  ;;  %p12450_p6 = scmp.ne.s32.totalorder %s16151_s2, %s12449_s15 }
   0xe   : > { %p12456_p10 = scmp.lt.u32.totalorder %s12449_s15, %s16151_s2 }
   0xf   : > { %p12734_p7 = pneg %p12718_p5 }
  0x11   : > { %p12452_p8 = pnand %p12734_p7, %p12450_p6 }
  0x13   : > { %p12453_p9 = pneg %p12452_p8 }
  0x15   : > { %p12458_p11 = pnand %p12456_p10, %p12453_p9 }
  0x17   : > { %12461 = shalt.err (!%p12458_p11)
}
  0x18   : > { %s12462_s21 = scalar_lea.vmem %s12706_s26, 16  ;;  %s12469_s22 = scalar_lea.vmem %s12706_s26, 32 }
  0x19   : > { %p12463_p12 = scmp.ne.s32.totalorder %s12706_s26, %s12462_s21  ;;  %p12470_p1 = scmp.lt.s32.totalorder %s12706_s26, %s12706_s26 }
  0x1a   : > { %p12471_p4 = scmp.lt.s32.totalorder %s12469_s22, %s12462_s21 }
  0x1b   : > { %p12465_p13 = pnand %p12463_p12, %p12734_p7 }
  0x1c   : > { %p12472_p6 = por %p12471_p4, %p12470_p1 }
  0x1d   : > { %p12466_p0 = pneg %p12465_p13 }
  0x1f   : > { %p12473_p8 = pnand %p12472_p6, %p12466_p0 }
  0x21   : > { %12476 = shalt.err (!%p12473_p8)
}
  0x22   : > { %12203 = dma.hbm_to_vmem [thread:$0]  (!%p12718_p5), %s16151_s2, 16, %s12706_s26, [#allocation10]  }
  0x23   : > { %s12477_s11 = scalar_lea.hbm %s16153_s4, 16 }
  0x24   : > { %p12478_p9 = scmp.ne.s32.totalorder %s16153_s4, %s12477_s11  ;;  %p12484_p12 = scmp.lt.u32.totalorder %s12477_s11, %s16153_s4 }
  0x26   : > { %p12480_p10 = pnand %p12478_p9, %p12734_p7 }
  0x28   : > { %p12481_p11 = pneg %p12480_p10 }
  0x2a   : > { %p12486_p13 = pnand %p12484_p12, %p12481_p11 }
  0x2c   : > { %12489 = shalt.err (!%p12486_p13)
}
  0x2d   : > { %s12490_s26 = scalar_lea.vmem %s12714_s30, 16  ;;  %s12497_s17 = scalar_lea.vmem %s12714_s30, 32 }
  0x2e   : > { %p12491_p0 = scmp.ne.s32.totalorder %s12714_s30, %s12490_s26  ;;  %p12498_p6 = scmp.lt.s32.totalorder %s12714_s30, %s12714_s30 }
  0x2f   : > { %p12499_p8 = scmp.lt.s32.totalorder %s12497_s17, %s12490_s26 }
  0x30   : > { %p12493_p1 = pnand %p12491_p0, %p12734_p7 }
  0x31   : > { %p12500_p9 = por %p12499_p8, %p12498_p6 }
  0x32   : > { %p12494_p4 = pneg %p12493_p1 }
  0x34   : > { %p12501_p10 = pnand %p12500_p9, %p12494_p4 }
  0x36   : > { %12504 = shalt.err (!%p12501_p10)
}
  0x37   : > { %12209 = dma.hbm_to_vmem [thread:$0]  (!%p12718_p5), %s16153_s4, 16, %s12714_s30, [#allocation13]  }
  0x38   : > { %s12505_s23 = scalar_lea.hbm %s16150_s1, 128 }
  0x39   : > { %p12506_p11 = scmp.ne.s32.totalorder %s16150_s1, %s12505_s23  ;;  %p12512_p0 = scmp.lt.u32.totalorder %s12505_s23, %s16150_s1 }
  0x3b   : > { %p12508_p12 = pnand %p12506_p11, %p12734_p7 }
  0x3d   : > { %p12509_p13 = pneg %p12508_p12 }
  0x3f   : > { %p12514_p1 = pnand %p12512_p0, %p12509_p13 }
  0x41   : > { %12517 = shalt.err (!%p12514_p1)
}
  0x42   : > { %s12518_s30 = scalar_lea.vmem %s12722_s9, 128  ;;  %p12526_p9 = scmp.lt.s32.totalorder %s12722_s9, %s12722_s9 }
  0x43   : > { %p12519_p4 = scmp.ne.s32.totalorder %s12722_s9, %s12518_s30  ;;  %p12527_p10 = scmp.lt.s32.totalorder %s12518_s30, %s12518_s30 }
  0x45   : > { %p12521_p6 = pnand %p12519_p4, %p12734_p7  ;;  %p12528_p11 = por %p12527_p10, %p12526_p9 }
  0x47   : > { %p12522_p8 = pneg %p12521_p6 }
  0x49   : > { %p12529_p12 = pnand %p12528_p11, %p12522_p8 }
  0x4b   : > { %12532 = shalt.err (!%p12529_p12)
}
  0x4c   : > { %s12645_s13 = smov 64   ;;  %s12646_s14 = smov 4  }
  0x4d   : > { %12200 = dma.hbm_to_vmem [thread:$0]  (!%p12718_p5), %s16150_s1, 128, %s12722_s9, [#allocation8], %s12645_s13, %s12645_s13, %s12646_s14  }
  0x4e   : > { %s12533_s19 = scalar_lea.hbm %s16152_s3, 2304 }
  0x4f   : > { %p12534_p13 = scmp.ne.s32.totalorder %s16152_s3, %s12533_s19  ;;  %p12540_p4 = scmp.lt.u32.totalorder %s12533_s19, %s16152_s3 }
  0x51   : > { %p12536_p0 = pnand %p12534_p13, %p12734_p7 }
  0x53   : > { %p12537_p1 = pneg %p12536_p0 }
  0x55   : > { %p12542_p6 = pnand %p12540_p4, %p12537_p1 }
  0x57   : > { %12545 = shalt.err (!%p12542_p6)
}
  0x58   : > { %s12546_s25 = scalar_lea.vmem %s241_s12, 2304  ;;  %p12554_p11 = scmp.lt.s32.totalorder %s241_s12, %s241_s12 }
  0x59   : > { %p12547_p8 = scmp.ne.s32.totalorder %s241_s12, %s12546_s25  ;;  %p12555_p12 = scmp.lt.s32.totalorder %s12546_s25, %s12546_s25 }
  0x5b   : > { %p12549_p9 = pnand %p12547_p8, %p12734_p7  ;;  %p12556_p2 = por %p12555_p12, %p12554_p11 }
  0x5d   : > { %p12550_p10 = pneg %p12549_p9 }
  0x5f   : > { %p12557_p3 = pnand %p12556_p2, %p12550_p10 }
  0x61   : > { %12560 = shalt.err (!%p12557_p3)
}
  0x62   : > { %12206 = dma.hbm_to_vmem [thread:$0]  (!%p12718_p5), %s16152_s3, 2304, %s241_s12, [#allocation10], %s12645_s13, %s12645_s13, %s12646_s14  }
  0x63   : > { %s12647_s8 = smov [#allocation14]   ;;  %s12648_s30 = smov [#allocation15]  }
  0x64   : > { %s264_s11 = sshll.u32 %s12647_s8, 4  ;;  %s278_s15 = sshll.u32 %s12648_s30, 4  ;;  %s265_s11 = int_to_ptr.vmem [resolvable:$true] %s264_s11  ;;  %s279_s15 = int_to_ptr.vmem [resolvable:$true] %s278_s15 }
  0x65   : > { %s12561_s17 = scalar_lea.hbm %s16154_s5, 4608 }
  0x66   : > { %p12562_p2 = scmp.ne.s32.totalorder %s16154_s5, %s12561_s17  ;;  %p12568_p0 = scmp.lt.u32.totalorder %s12561_s17, %s16154_s5 }
  0x68   : > { %p12564_p3 = pnand %p12562_p2, %p12734_p7 }
  0x6a   : > { %p12565_p13 = pneg %p12564_p3 }
  0x6c   : > { %p12570_p1 = pnand %p12568_p0, %p12565_p13 }
  0x6e   : > { %12573 = shalt.err (!%p12570_p1)
}
  0x6f   : > { %s12574_s12 = scalar_lea.vmem %s265_s11, 4608  ;;  %p12582_p9 = scmp.lt.s32.totalorder %s265_s11, %s265_s11 }
  0x70   : > { %p12575_p4 = scmp.ne.s32.totalorder %s265_s11, %s12574_s12  ;;  %p12583_p10 = scmp.lt.s32.totalorder %s12574_s12, %s12574_s12 }
  0x72   : > { %p12577_p6 = pnand %p12575_p4, %p12734_p7  ;;  %p12584_p11 = por %p12583_p10, %p12582_p9 }
  0x74   : > { %p12578_p8 = pneg %p12577_p6 }
  0x76   : > { %p12585_p12 = pnand %p12584_p11, %p12578_p8 }
  0x78   : > { %12588 = shalt.err (!%p12585_p12)
}
  0x79   : > { %12212 = dma.hbm_to_vmem [thread:$0]  (!%p12718_p5), %s16154_s5, 4608, %s265_s11, [#allocation13], %s12645_s13, %s12645_s13, %s12646_s14  }
  0x7a   : > { %s12589_s8 = scalar_lea.hbm %s16155_s6, 16 }
  0x7b   : > { %p12590_p2 = scmp.ne.s32.totalorder %s16155_s6, %s12589_s8  ;;  %p12596_p0 = scmp.lt.u32.totalorder %s12589_s8, %s16155_s6 }
  0x7d   : > { %p12592_p3 = pnand %p12590_p2, %p12734_p7 }
  0x7f   : > { %p12593_p13 = pneg %p12592_p3 }
  0x81   : > { %p12598_p1 = pnand %p12596_p0, %p12593_p13 }
  0x83   : > { %12601 = shalt.err (!%p12598_p1)
}
  0x84   : > { %s12602_s19 = scalar_lea.vmem %s279_s15, 16  ;;  %s12609_s13 = scalar_lea.vmem %s279_s15, 32 }
  0x85   : > { %p12603_p4 = scmp.ne.s32.totalorder %s279_s15, %s12602_s19  ;;  %p12610_p9 = scmp.lt.s32.totalorder %s279_s15, %s279_s15 }
  0x86   : > { %p12611_p10 = scmp.lt.s32.totalorder %s12609_s13, %s12602_s19 }
  0x87   : > { %p12605_p6 = pnand %p12603_p4, %p12734_p7 }
  0x88   : > { %p12612_p11 = por %p12611_p10, %p12610_p9 }
  0x89   : > { %p12606_p8 = pneg %p12605_p6 }
  0x8b   : > { %p12613_p12 = pnand %p12612_p11, %p12606_p8 }
  0x8d   : > { %12616 = shalt.err (!%p12613_p12)
}
  0x8e   : > { %12215 = dma.hbm_to_vmem [thread:$0]  (!%p12718_p5), %s16155_s6, 16, %s279_s15, [#allocation16]  }
  0x8f   : > { %p16322_p2 = scmp.ne.s32.totalorder %s16319_s28, 0 }
  0x91   : > { %299 = sbr.rel (%p16322_p2) target bundleno = 1745 (0x6d1), region = 48 }
  0x98   : > { %p16323_p3 = scmp.eq.s32.totalorder %s12701_s27, 0 }
  0x9a   : > { %12622 = dma.done.wait (%p16323_p3), [#allocation8], 128   ;;  %p16324_p7 = pmov %p16323_p3 }
  0x9b   : > { %p16325_p13 = pmov %p16323_p3 }
  0x9c   : > { %12624 = vsyncadd (%p16324_p7), [#allocation8], 4294967168 }
  0x9d   : > { %12626 = dma.done.wait (%p16325_p13), [#allocation10], 2320   ;;  %p16326_p0 = pmov %p16323_p3 }
  0x9f   : > { %12628 = vsyncadd (%p16326_p0), [#allocation10], 4294964976  ;;  %p16327_p1 = pmov %p16326_p0 }
  0xa0   : > { %p16328_p5 = pmov %p16326_p0 }
  0xa1   : > { %12630 = dma.done.wait (%p16327_p1), [#allocation13], 4624  }
  0xa2   : > { %12632 = vsyncadd (%p16328_p5), [#allocation13], 4294962672  ;;  %p16329_p4 = pmov %p16326_p0 }
  0xa3   : > { %p16330_p6 = pmov %p16326_p0 }
  0xa4   : > { %12634 = dma.done.wait (%p16329_p4), [#allocation16], 16  }
  0xa5   : > { %12636 = vsyncadd (%p16330_p6), [#allocation16], 4294967280  ;;  %vm1017_vm0 = vcmask 1043456   ;;  %p351_p8 = scmp.lt.s32.totalorder %s12701_s27, 1  ;;  %vm1018_vm1 = vcmask 1044480   ;;  %v12649_v0 = vmov 65535   ;;  %v2752_v57 = vlaneseq }
  0xa6   : > { %v1019_v1 = vsel %vm1017_vm0, 4294967295, %v12649_v0  ;;  %vm824_vm2 = vcmask 72704   ;;  %v12250_v3 = vld [vmem:[#allocation7] sm:$0x1f]   ;;  %vm1826_vm3 = vcmask 257024   ;;  %vm1863_vm4 = vcmask 253952  }
  0xa7   : > { %s16726_s27 = smov (!%p351_p8, %s12701_s27), 1  ;;  %v1020_v2 = vsel %vm1018_vm1, %v1019_v1, 0  ;;  %v16159_v33 = vmov 0   ;;  %v12317_v45 = vld [vmem:[#allocation11 + $0x10] sm:$0xff]   ;;  %v12318_v46 = vld [vmem:[#allocation11 + $0x18] sm:$0xff]   ;;  %v13069_v60 = vshrl.u32 %v2752_v57, 7 }
  0xa8   : > { %s10908_s28 = sshll.u32 %s16726_s27, 9  ;;  %v1022_v5 = vand.u32 %v12250_v3, %v1020_v2  ;;  %1831 = vst.msk [vmem:[#allocation3 + $0x10] sm:$0xf] %vm1826_vm3, %v16159_v33  ;;  %1827 = vst.msk [vmem:[#allocation3] sm:$0xf] %vm1826_vm3, %v16159_v33  ;;  %vm1697_vm8 = vcmask 261120  }
  0xa9   : > { %s12893_s15 = scalar_lea.vmem %s16149_s0, %s10908_s28  ;;  %1828 = vst.msk [vmem:[#allocation3 + $0x4] sm:$0xf] %vm1826_vm3, %v16159_v33  ;;  %1829 = vst.msk [vmem:[#allocation3 + $0x8] sm:$0xf] %vm1826_vm3, %v16159_v33  ;;  %v13074_v61 = vadd.s32 16, %v13069_v60  ;;  %v13077_v62 = vadd.s32 8, %v13069_v60 }
  0xaa   : > { %v12251_v4 = vld [vmem:[%s12893_s15] sm:$0xff]   ;;  %11251 = vmatprep.subr.bf16.mxu0 %v1022_v5  ;;  %v12252_v6 = vld [vmem:[%s12893_s15 + $0x8] sm:$0xff]   ;;  %v12253_v7 = vld [vmem:[%s12893_s15 + $0x10] sm:$0xff]   ;;  %1830 = vst.msk [vmem:[#allocation3 + $0xc] sm:$0xf] %vm1826_vm3, %v16159_v33  ;;  %v13080_v63 = vadd.s32 24, %v13069_v60 }
  0xab   : > { %11253 = vmatprep.mubr.msk.bf16.mxu0 %vm824_vm2, %v12251_v4  ;;  %11252 = vmatpush3.bf16.msra.mxu0 %v1022_v5  ;;  %v12254_v8 = vld [vmem:[%s12893_s15 + $0x18] sm:$0xff]   ;;  %v12255_v9 = vld [vmem:[%s12893_s15 + $0x20] sm:$0xff]   ;;  %v12256_v10 = vld [vmem:[%s12893_s15 + $0x28] sm:$0xff]   ;;  %1832 = vst.msk [vmem:[#allocation3 + $0x14] sm:$0xf] %vm1826_vm3, %v16159_v33  ;;  %v2803_v2 = vand.u32 15, %v13074_v61 }
  0xac   : > { %v12257_v11 = vld [vmem:[%s12893_s15 + $0x30] sm:$0xff]   ;;  %v12258_v12 = vld [vmem:[%s12893_s15 + $0x38] sm:$0xff]   ;;  %v12259_v13 = vld [vmem:[%s12893_s15 + $0x40] sm:$0xff]   ;;  %1833 = vst.msk [vmem:[#allocation3 + $0x18] sm:$0xf] %vm1826_vm3, %v16159_v33  ;;  %11381 = vmatprep.subr.bf16.mxu0 %v12317_v45  ;;  %v2796_v3 = vand.u32 15, %v13077_v62 }
  0xad   : > { %v12260_v14 = vld [vmem:[%s12893_s15 + $0x48] sm:$0xff]   ;;  %v12261_v15 = vld [vmem:[%s12893_s15 + $0x50] sm:$0xff]   ;;  %v12262_v16 = vld [vmem:[%s12893_s15 + $0x58] sm:$0xff]   ;;  %1834 = vst.msk [vmem:[#allocation3 + $0x1c] sm:$0xf] %vm1826_vm3, %v16159_v33  ;;  %v2810_v4 = vand.u32 15, %v13080_v63 }
  0xae   : > { %11254 = vmatmul.mubr.msk.bf16.vlgmr.msra.gmra.mrb[0].mxu0 %vm824_vm2, %v12252_v6  ;;  %v12263_v17 = vld [vmem:[%s12893_s15 + $0x60] sm:$0xff]   ;;  %v12264_v18 = vld [vmem:[%s12893_s15 + $0x68] sm:$0xff]   ;;  %v12265_v19 = vld [vmem:[%s12893_s15 + $0x70] sm:$0xff]   ;;  %1835 = vst.msk [vmem:[#allocation3 + $0x20] sm:$0xf] %vm1826_vm3, %v16159_v33  ;;  %vm3171_vm5 = vcmp.ge.s32.totalorder %v2803_v2, 1 }
  0xaf   : > { %11257 = vmatprep.mubr.msk.bf16.mxu0 %vm824_vm2, %v12253_v7  ;;  %v12266_v20 = vld [vmem:[%s12893_s15 + $0x78] sm:$0xff]   ;;  %v12267_v21 = vld [vmem:[%s12893_s15 + $0x80] sm:$0xff]   ;;  %v12268_v22 = vld [vmem:[%s12893_s15 + $0x88] sm:$0xff]   ;;  %1836 = vst.msk [vmem:[#allocation3 + $0x24] sm:$0xf] %vm1826_vm3, %v16159_v33  ;;  %11382 = vmatpush3.bf16.msra.mxu0 %v12317_v45  ;;  %vm3282_vm6 = vcmp.le.s32.totalorder %v2796_v3, 14 }
  0xb0   : > { %v12269_v23 = vld [vmem:[%s12893_s15 + $0x90] sm:$0xff]   ;;  %v12270_v24 = vld [vmem:[%s12893_s15 + $0x98] sm:$0xff]   ;;  %v12271_v25 = vld [vmem:[%s12893_s15 + $0xa0] sm:$0xff]   ;;  %1837 = vst.msk [vmem:[#allocation3 + $0x28] sm:$0xf] %vm1826_vm3, %v16159_v33  ;;  %11383 = vmatprep.subr.bf16.mxu0 %v12318_v46  ;;  %vm3284_vm7 = vcmp.le.s32.totalorder %v2810_v4, 14 }
  0xb1   : > { %v12272_v26 = vld [vmem:[%s12893_s15 + $0xa8] sm:$0xff]   ;;  %v12273_v27 = vld [vmem:[%s12893_s15 + $0xb0] sm:$0xff]   ;;  %v12274_v28 = vld [vmem:[%s12893_s15 + $0xb8] sm:$0xff]   ;;  %1838 = vst.msk [vmem:[#allocation3 + $0x2c] sm:$0xf] %vm1826_vm3, %v16159_v33  ;;  %v13133_v45 = vadd.s32 32, %v13069_v60 }
  0xb2   : > { %v12275_v29 = vld [vmem:[%s12893_s15 + $0xc0] sm:$0xff]   ;;  %v12276_v30 = vld [vmem:[%s12893_s15 + $0xc8] sm:$0xff]   ;;  %v12277_v31 = vld [vmem:[%s12893_s15 + $0xd0] sm:$0xff]   ;;  %1839 = vst.msk [vmem:[#allocation3 + $0x30] sm:$0xf] %vm1826_vm3, %v16159_v33  ;;  %vm4718_vm11 = vcmask 1040384  }
  0xb3   : > { %v12278_v32 = vld [vmem:[%s12893_s15 + $0xd8] sm:$0xff]   ;;  %1840 = vst.msk [vmem:[#allocation3 + $0x34] sm:$0xf] %vm1826_vm3, %v16159_v33  ;;  %1841 = vst.msk [vmem:[#allocation3 + $0x38] sm:$0xf] %vm1826_vm3, %v16159_v33  ;;  %v12279_v34 = vld [vmem:[%s12893_s15 + $0xe0] sm:$0xff]   ;;  %11384 = vmatpush3.bf16.msra.mxu0 %v12318_v46 }
  0xb4   : > { %1842 = vst.msk [vmem:[#allocation3 + $0x3c] sm:$0xf] %vm1826_vm3, %v16159_v33  ;;  %1843 = vst.msk [vmem:[#allocation3 + $0x40] sm:$0xf] %vm1826_vm3, %v16159_v33  ;;  %v12280_v35 = vld [vmem:[%s12893_s15 + $0xe8] sm:$0xff]   ;;  %v12281_v36 = vld [vmem:[%s12893_s15 + $0xf0] sm:$0xff]  }
  0xb5   : > { %1844 = vst.msk [vmem:[#allocation3 + $0x44] sm:$0xf] %vm1826_vm3, %v16159_v33  ;;  %1845 = vst.msk [vmem:[#allocation3 + $0x48] sm:$0xf] %vm1826_vm3, %v16159_v33  ;;  %v12282_v37 = vld [vmem:[%s12893_s15 + $0xf8] sm:$0xff]   ;;  %v12283_v38 = vld [vmem:[%s12893_s15 + $0x100] sm:$0xff]  }
  0xb6   : > { %11258 = vmatmul.mubr.msk.bf16.gmra.mrb[4].mxu0 %vm824_vm2, %v12254_v8  ;;  %1846 = vst.msk [vmem:[#allocation3 + $0x4c] sm:$0xf] %vm1826_vm3, %v16159_v33  ;;  %1847 = vst.msk [vmem:[#allocation3 + $0x50] sm:$0xf] %vm1826_vm3, %v16159_v33  ;;  %v12284_v39 = vld [vmem:[%s12893_s15 + $0x108] sm:$0xff]   ;;  %v12285_v40 = vld [vmem:[%s12893_s15 + $0x110] sm:$0xff]  }
  0xb7   : > { %11261 = vmatprep.mubr.msk.bf16.mxu0 %vm824_vm2, %v12255_v9  ;;  %1848 = vst.msk [vmem:[#allocation3 + $0x54] sm:$0xf] %vm1826_vm3, %v16159_v33  ;;  %1849 = vst.msk [vmem:[#allocation3 + $0x58] sm:$0xf] %vm1826_vm3, %v16159_v33  ;;  %v12286_v41 = vld [vmem:[%s12893_s15 + $0x118] sm:$0xff]   ;;  %v12287_v42 = vld [vmem:[%s12893_s15 + $0x120] sm:$0xff]  }
  0xb8   : > { %1850 = vst.msk [vmem:[#allocation3 + $0x5c] sm:$0xf] %vm1826_vm3, %v16159_v33  ;;  %1851 = vst.msk [vmem:[#allocation3 + $0x60] sm:$0xf] %vm1826_vm3, %v16159_v33  ;;  %v12288_v43 = vld [vmem:[%s12893_s15 + $0x128] sm:$0xff]   ;;  %v12289_v44 = vld [vmem:[%s12893_s15 + $0x130] sm:$0xff]  }
  0xb9   : > { %1852 = vst.msk [vmem:[#allocation3 + $0x64] sm:$0xf] %vm1826_vm3, %v16159_v33  ;;  %1853 = vst.msk [vmem:[#allocation3 + $0x68] sm:$0xf] %vm1826_vm3, %v16159_v33  ;;  %v12290_v47 = vld [vmem:[%s12893_s15 + $0x138] sm:$0xff]   ;;  %v12291_v48 = vld [vmem:[%s12893_s15 + $0x140] sm:$0xff]  }
  0xba   : > { %1854 = vst.msk [vmem:[#allocation3 + $0x6c] sm:$0xf] %vm1826_vm3, %v16159_v33  ;;  %1855 = vst.msk [vmem:[#allocation3 + $0x70] sm:$0xf] %vm1826_vm3, %v16159_v33  ;;  %v12292_v49 = vld [vmem:[%s12893_s15 + $0x148] sm:$0xff]   ;;  %v12293_v50 = vld [vmem:[%s12893_s15 + $0x150] sm:$0xff]  }
  0xbb   : > { %1856 = vst.msk [vmem:[#allocation3 + $0x74] sm:$0xf] %vm1826_vm3, %v16159_v33  ;;  %1857 = vst.msk [vmem:[#allocation3 + $0x78] sm:$0xf] %vm1826_vm3, %v16159_v33  ;;  %v12294_v51 = vld [vmem:[%s12893_s15 + $0x158] sm:$0xff]   ;;  %v12295_v52 = vld [vmem:[%s12893_s15 + $0x160] sm:$0xff]  }
  0xbc   : > { %1858 = vst.msk [vmem:[#allocation3 + $0x7c] sm:$0xf] %vm1826_vm3, %v16159_v33  ;;  %1859 = vst.msk [vmem:[#allocation3 + $0x80] sm:$0xf] %vm1826_vm3, %v16159_v33  ;;  %v12296_v53 = vld [vmem:[%s12893_s15 + $0x168] sm:$0xff]   ;;  %v12297_v54 = vld [vmem:[%s12893_s15 + $0x170] sm:$0xff]  }
  0xbd   : > { %1860 = vst.msk [vmem:[#allocation3 + $0x84] sm:$0xf] %vm1826_vm3, %v16159_v33  ;;  %1861 = vst.msk [vmem:[#allocation3 + $0x88] sm:$0xf] %vm1826_vm3, %v16159_v33  ;;  %v12298_v55 = vld [vmem:[%s12893_s15 + $0x178] sm:$0xff]   ;;  %v12299_v56 = vld [vmem:[%s12893_s15 + $0x180] sm:$0xff]  }
  0xbe   : > { %11262 = vmatmul.mubr.msk.bf16.gmra.mrb[8].mxu0 %vm824_vm2, %v12256_v10  ;;  %1862 = vst.msk [vmem:[#allocation3 + $0x8c] sm:$0xf] %vm1826_vm3, %v16159_v33  ;;  %v12300_v58 = vld [vmem:[%s12893_s15 + $0x188] sm:$0xff]   ;;  %v12301_v59 = vld [vmem:[%s12893_s15 + $0x190] sm:$0xff]   ;;  %16331 = vst [vmem:[#allocation21_spill] sm:$0xff] %v13069_v60  ;;  %v13090_v10 = vadd.s32 40, %v13069_v60 }
  0xbf   : > { %11265 = vmatprep.mubr.msk.bf16.mxu0 %vm824_vm2, %v12257_v11  ;;  %1864 = vst.msk [vmem:[#allocation3 + $0x90] sm:$0x1] %vm1863_vm4, %v16159_v33  ;;  %16332 = vst [vmem:[#allocation22_spill] sm:$0xff] %v13074_v61  ;;  %v12302_v0 = vld [vmem:[%s12893_s15 + $0x198] sm:$0xff]   ;;  %v12303_v1 = vld [vmem:[%s12893_s15 + $0x1a0] sm:$0xff]   ;;  %v2817_v2 = vand.u32 15, %v13133_v45 }
  0xc0   : > { %16333 = vst [vmem:[#allocation23_spill] sm:$0xff] %v13077_v62  ;;  %16334 = vst [vmem:[#allocation24_spill] sm:$0xff] %v13080_v63  ;;  %v12651_v5 = vmov 839922192   ;;  %v12652_v7 = vmov 1985246804  }
  0xc1   : > { %v3442_v6 = vunpack.c.l.s4 %v12651_v5  ;;  %v3449_v8 = vunpack.c.l.s4 %v12652_v7  ;;  %16335 = vst [vmem:[#allocation25_spill] sm:$0xff] %v13090_v10  ;;  %v12304_v11 = vld [vmem:[%s12893_s15 + $0x1a8] sm:$0xff]   ;;  %16342 = vst [vmem:[#allocation30_spill] sm:$0xff] %v13133_v45  ;;  %vm4719_vm12 = vcmask 1044484   ;;  %vm13178_vm13 = vcmp.ge.s32.totalorder %v2817_v2, 1  ;;  %s10909_s20 = sshll.u32 %s16726_s27, 3 }
  0xc2   : > { %vm13192_vm15 = vmor %vm4718_vm11, %vm4719_vm12  ;;  %s360_s12 = scalar_lea.vmem %s16156_s7, %s10909_s20 }
  0xc3   : > { %v3443_v9 = vunpack.c.0.s8 %v3442_v6 }
  0xc6   : > { %11266 = vmatmul.mubr.msk.bf16.gmra.mrb[12].mxu0 %vm824_vm2, %v12258_v12  ;;  %v16173_v12 = vmov 0.0  }
  0xc7   : > { %11269 = vmatprep.mubr.msk.bf16.mxu0 %vm824_vm2, %v12259_v13  ;;  %v10421_v13 = vsel %vm3171_vm5, 1.0, %v16173_v12  ;;  %vm1892_vm5 = vsmask.f32 256 }
  0xce   : > { %11270 = vmatmul.mubr.msk.bf16.gmra.mrb[16].mxu0 %vm824_vm2, %v12260_v14  ;;  %v3450_v14 = vunpack.c.0.s8 %v3449_v8 }
  0xcf   : > { %11273 = vmatprep.mubr.msk.bf16.mxu0 %vm824_vm2, %v12261_v15  ;;  %v13095_v15 = vadd.s32 56, %v13069_v60 }
  0xd1   : > { %16336 = vst [vmem:[#allocation26_spill] sm:$0xff] %v13095_v15 }
  0xd6   : > { %11274 = vmatmul.mubr.msk.bf16.gmra.mrb[20].mxu0 %vm824_vm2, %v12262_v16  ;;  %v12305_v16 = vld [vmem:[%s12893_s15 + $0x1b0] sm:$0xff]  }
  0xd7   : > { %11277 = vmatprep.mubr.msk.bf16.mxu0 %vm824_vm2, %v12263_v17  ;;  %v10436_v17 = vsel %vm3282_vm6, 1.0, %v16173_v12  ;;  %vm1893_vm6 = vsmask.f32 4368 }
  0xd8   : > { %vm13341_vm11 = vmor %vm1892_vm5, %vm1893_vm6  ;;  %vm4970_vm6 = vcmask 1046528  }
  0xde   : > { %11278 = vmatmul.mubr.msk.bf16.gmra.mrb[24].mxu0 %vm824_vm2, %v12264_v18  ;;  %v10437_v18 = vsel %vm3284_vm7, 1.0, %v16173_v12  ;;  %vm1916_vm7 = vsmask.f32 7938 }
  0xdf   : > { %11281 = vmatprep.mubr.msk.bf16.mxu0 %vm824_vm2, %v12265_v19  ;;  %v3393_v19 = vld [vmem:[#allocation3] sm:$0xf]  ;;  %vm13354_vm12 = vmand %vm1826_vm3, %vm1916_vm7 }
  0xe6   : > { %11282 = vmatmul.mubr.msk.bf16.gmra.mrb[28].mxu0 %vm824_vm2, %v12266_v20  ;;  %v3394_v20 = vld [vmem:[#allocation3 + $0x4] sm:$0xf] }
  0xe7   : > { %11285 = vmatprep.mubr.msk.bf16.mxu0 %vm824_vm2, %v12267_v21  ;;  %v16161_v21 = vmov 1.0  }
  0xee   : > { %11286 = vmatmul.mubr.msk.bf16.gmra.mrb[32].mxu0 %vm824_vm2, %v12268_v22  ;;  %v3266_v22 = vpack.c.bf16 %v16161_v21, %v10421_v13 }
  0xef   : > { %11289 = vmatprep.mubr.msk.bf16.mxu0 %vm824_vm2, %v12269_v23  ;;  %v13102_v23 = vsub.s32 %v3443_v9, %v13069_v60 }
  0xf1   : > { %16337 = vst [vmem:[#allocation27_spill] sm:$0xff] %v13102_v23 }
  0xf6   : > { %11290 = vmatmul.mubr.msk.bf16.gmra.mrb[36].mxu0 %vm824_vm2, %v12270_v24  ;;  %v2824_v24 = vand.u32 15, %v13090_v10 }
  0xf7   : > { %11293 = vmatprep.mubr.msk.bf16.mxu0 %vm824_vm2, %v12271_v25  ;;  %v13107_v25 = vsub.s32 %v3450_v14, %v13069_v60  ;;  %v12308_v14 = vld [vmem:[%s12893_s15 + $0x1c8] sm:$0xff]  }
  0xf8   : > { %vm13120_vm9 = vcmp.le.s32.totalorder %v2824_v24, 14 }
  0xf9   : > { %16338 = vst [vmem:[#allocation28_spill] sm:$0xff] %v13107_v25 }
  0xfe   : > { %11294 = vmatmul.mubr.msk.bf16.gmra.mrb[40].mxu0 %vm824_vm2, %v12272_v26  ;;  %v3377_v26 = vpack.c.bf16 %v10436_v17, %v16161_v21 }
  0xff   : > { %11297 = vmatprep.mubr.msk.bf16.mxu0 %vm824_vm2, %v12273_v27  ;;  %v3378_v27 = vpack.c.bf16 %v10437_v18, %v16161_v21 }
 0x106   : > { %11298 = vmatmul.mubr.msk.bf16.gmra.mrb[44].mxu0 %vm824_vm2, %v12274_v28  ;;  %v2838_v28 = vand.u32 15, %v13095_v15 }
 0x107   : > { %11301 = vmatprep.mubr.msk.bf16.mxu0 %vm824_vm2, %v12275_v29  ;;  %v13112_v29 = vld [vmem:[#allocation9] ss:$0 sm:$0xff] }
 0x108   : > { %vm3288_vm10 = vcmp.le.s32.totalorder %v2838_v28, 14 }
 0x10e   : > { %11302 = vmatmul.mubr.msk.bf16.gmra.mrb[48].mxu0 %vm824_vm2, %v12276_v30  ;;  %v13115_v30 = vcombine.low %v3393_v19, %v3394_v20 }
 0x10f   : > { %11305 = vmatprep.mubr.msk.bf16.mxu0 %vm824_vm2, %v12277_v31 }
 0x110   : > { %v3824_v3 = vshrl.u32 %v13115_v30, 16 }
 0x116   : > { %11306 = vmatmul.mubr.msk.bf16.gmra.mrb[52].mxu0 %vm824_vm2, %v12278_v32  ;;  %v13118_v32 = vrot.slane %v3266_v22, %v13102_v23 }
 0x117   : > { %11309 = vmatprep.mubr.msk.bf16.mxu0 %vm824_vm2, %v12279_v34 }
 0x118   : > { %16339 = vst [vmem:[#allocation29_spill] sm:$0xff] %v13118_v32 }
 0x11e   : > { %11310 = vmatmul.mubr.msk.bf16.gmra.mrb[56].mxu0 %vm824_vm2, %v12280_v35 }
 0x11f   : > { %11313 = vmatprep.mubr.msk.bf16.mxu0 %vm824_vm2, %v12281_v36 }
 0x126   : > { %11314 = vmatmul.mubr.msk.bf16.gmra.mrb[60].mxu0 %vm824_vm2, %v12282_v37  ;;  %v12306_v37 = vld [vmem:[%s12893_s15 + $0x1b8] sm:$0xff]  }
 0x127   : > { %11317 = vmatprep.mubr.msk.bf16.mxu0 %vm824_vm2, %v12283_v38  ;;  %v4507_v38 = vrot.slane %v3377_v26, %v13107_v25 }
 0x129   : > { %v13150_v57 = vrot.slane %v4507_v38, 7  ;;  %v16349_v38 = vmov 0 }
 0x12a   : > { %v16350_v38 = vsel %vm13192_vm15, 4294967295, %v16349_v38 }
 0x12b   : > { %v4725_v17 = vrot.slane %v13150_v57, 4  ;;  %16351 = vst [vmem:[#allocation33_spill] sm:$0xff] %v16350_v38 }
 0x12e   : > { %11318 = vmatmul.mubr.msk.bf16.gmra.mrb[64].mxu0 %vm824_vm2, %v12284_v39  ;;  %v4514_v39 = vrot.slane %v3378_v27, %v13102_v23 }
 0x12f   : > { %11321 = vmatprep.mubr.msk.bf16.mxu0 %vm824_vm2, %v12285_v40 }
 0x136   : > { %11322 = vmatmul.mubr.msk.bf16.gmra.mrb[68].mxu0 %vm824_vm2, %v12286_v41 }
 0x137   : > { %11325 = vmatprep.mubr.msk.bf16.mxu0 %vm824_vm2, %v12287_v42  ;;  %v12307_v42 = vld [vmem:[%s12893_s15 + $0x1c0] sm:$0xff]  }
 0x13e   : > { %11326 = vmatmul.mubr.msk.bf16.gmra.mrb[72].mxu0 %vm824_vm2, %v12288_v43  ;;  %v3826_v43 = vshll.u32 %v13115_v30, 16 }
 0x13f   : > { %11329 = vmatprep.mubr.msk.bf16.mxu0 %vm824_vm2, %v12289_v44  ;;  %v4500_v44 = vrot.slane %v3377_v26, %v13102_v23 }
 0x140   : > { %v3828_v8 = vrot.slane %v3826_v43, 1  ;;  %v13203_v43 = vld [vmem:[#allocation11] sm:$0xff]  }
 0x141   : > { %v13161_v4 = vrot.slane %v4500_v44, 7  ;;  %11849 = vmatprep.subr.bf16.mxu1 %v13203_v43  ;;  %11417 = vmatprep.subr.bf16.mxu0 %v13203_v43 }
 0x142   : > { %11851 = vmatpush3.bf16.msra.mxu1 %v13203_v43 }
 0x146   : > { %11330 = vmatmul.mubr.msk.bf16.gmra.mrb[76].mxu0 %vm824_vm2, %v12290_v47 }
 0x147   : > { %11333 = vmatprep.mubr.msk.bf16.mxu0 %vm824_vm2, %v12291_v48 }
 0x14e   : > { %11334 = vmatmul.mubr.msk.bf16.gmra.mrb[80].mxu0 %vm824_vm2, %v12292_v49  ;;  %v10438_v49 = vsel %vm13120_vm9, 1.0, %v16173_v12 }
 0x14f   : > { %11337 = vmatprep.mubr.msk.bf16.mxu0 %vm824_vm2, %v12293_v50  ;;  %v2762_v50 = vadd.s32 72, %v13069_v60 }
 0x151   : > { %v2852_v6 = vand.u32 15, %v2762_v50  ;;  %v2761_v50 = vadd.s32 64, %v13069_v60 }
 0x153   : > { %vm13185_vm14 = vcmp.le.s32.totalorder %v2852_v6, 14 }
 0x156   : > { %11338 = vmatmul.mubr.msk.bf16.gmra.mrb[84].mxu0 %vm824_vm2, %v12294_v51 }
 0x157   : > { %11341 = vmatprep.mubr.msk.bf16.mxu0 %vm824_vm2, %v12295_v52 }
 0x15e   : > { %11342 = vmatmul.mubr.msk.bf16.gmra.mrb[88].mxu0 %vm824_vm2, %v12296_v53  ;;  %v10439_v53 = vsel %vm3288_vm10, 1.0, %v16173_v12  ;;  %vm13332_vm10 = vmand %vm1863_vm4, %vm1892_vm5 }
 0x15f   : > { %11345 = vmatprep.mubr.msk.bf16.mxu0 %vm824_vm2, %v12297_v54  ;;  %v13143_v54 = vadd.s32 48, %v13069_v60  ;;  %v13164_v5 = vpack.c.bf16 %v10439_v53, %v16161_v21 }
 0x161   : > { %16343 = vst [vmem:[#allocation31_spill] sm:$0xff] %v13143_v54  ;;  %v2831_v9 = vand.u32 15, %v13143_v54  ;;  %v4542_v34 = vrot.slane %v13164_v5, %v13102_v23 }
 0x163   : > { %vm13197_vm0 = vcmp.ge.s32.totalorder %v2831_v9, 1  ;;  %v13224_v53 = vrot.slane %v4542_v34, 7  ;;  %v13247_v9 = vld [vmem:[#allocation11 + $0x8] sm:$0xff]  }
 0x164   : > { %11850 = vmatprep.subr.bf16.mxu1 %v13247_v9 }
 0x165   : > { %11852 = vmatpush3.bf16.msra.mxu1 %v13247_v9 }
 0x166   : > { %11346 = vmatmul.mubr.msk.bf16.gmra.mrb[92].mxu0 %vm824_vm2, %v12298_v55 }
 0x167   : > { %11349 = vmatprep.mubr.msk.bf16.mxu0 %vm824_vm2, %v12299_v56  ;;  %v13148_v56 = vrot.slane %v3266_v22, %v13107_v25  ;;  %v12309_v22 = vld [vmem:[%s12893_s15 + $0x1d0] sm:$0xff]  }
 0x169   : > { %16344 = vst [vmem:[#allocation32_spill] sm:$0xff] %v13148_v56 }
 0x16e   : > { %11350 = vmatmul.mubr.msk.bf16.gmra.mrb[96].mxu0 %vm824_vm2, %v12300_v58  ;;  %v13152_v58 = vrot.slane %v4514_v39, 7 }
 0x16f   : > { %11353 = vmatprep.mubr.msk.bf16.mxu0 %vm824_vm2, %v12301_v59 }
 0x170   : > { %v4728_v18 = vrot.slane %v13152_v58, 4 }
 0x176   : > { %11354 = vmatmul.mubr.msk.bf16.gmra.mrb[100].mxu0 %vm824_vm2, %v12302_v0  ;;  %v4521_v0 = vrot.slane %v3378_v27, %v13107_v25 }
 0x177   : > { %11357 = vmatprep.mubr.msk.bf16.mxu0 %vm824_vm2, %v12303_v1  ;;  %v3379_v1 = vpack.c.bf16 %v10438_v49, %v16161_v21  ;;  %v10440_v49 = vsel %vm13185_vm14, 1.0, %v16173_v12 }
 0x178   : > { %v13175_v24 = vrot.slane %v4521_v0, 7 }
 0x179   : > { %v4528_v26 = vrot.slane %v3379_v1, %v13102_v23  ;;  %v4535_v39 = vrot.slane %v3379_v1, %v13107_v25 }
 0x17a   : > { %v13235_v0 = vsel %vm13192_vm15, %v4728_v18, %v13175_v24 }
 0x17b   : > { %16355 = vst [vmem:[#allocation35_spill] sm:$0xff] %v13235_v0  ;;  %v13238_v1 = vrot.slane %v4535_v39, 7 }
 0x17e   : > { %11358 = vmatmul.mubr.msk.bf16.gmra.mrb[104].mxu0 %vm824_vm2, %v12304_v11 }
 0x17f   : > { %11361 = vmatprep.mubr.msk.bf16.mxu0 %vm824_vm2, %v12305_v16  ;;  %v2764_v16 = vadd.s32 88, %v13069_v60 }
 0x181   : > { %v11255_v31 = vpop.f32.mrb[0].mxu0 }
 0x182   : > { %v1067_v35 = vadd.f32 %v11255_v31, %v13112_v29  ;;  %v1058_v36 = vpop.f32.mrb[1].mxu0 }
 0x183   : > { %v1059_v40 = vadd.f32 %v13112_v29, %v1058_v36  ;;  %v11256_v41 = vpop.f32.mrb[2].mxu0 }
 0x184   : > { %v1571_v46 = vmax.f32 %v1067_v35, 0.0  ;;  %v1070_v47 = vadd.f32 %v11256_v41, %v13112_v29  ;;  %v1061_v48 = vpop.f32.mrb[3].mxu0 }
 0x185   : > { %v1569_v51 = vmax.f32 %v1059_v40, 0.0  ;;  %v1062_v52 = vadd.f32 %v13112_v29, %v1061_v48  ;;  %v4732_v48 = vrot.slane %v4528_v26, 7 }
 0x186   : > { %1700 = vst.msk [vmem:[#allocation2 + $0x10] sm:$0xff] %vm1697_vm8, %v1571_v46  ;;  %v1572_v55 = vmax.f32 %v1070_v47, 0.0  ;;  %11362 = vmatmul.mubr.msk.bf16.gmra.mrb[108].mxu0 %vm824_vm2, %v12306_v37  ;;  %v10422_v46 = vsel %vm13178_vm13, 1.0, %v16173_v12 }
 0x187   : > { %1698 = vst.msk [vmem:[#allocation2] sm:$0xff] %vm1697_vm8, %v1569_v51  ;;  %v1570_v59 = vmax.f32 %v1062_v52, 0.0  ;;  %11365 = vmatprep.mubr.msk.bf16.mxu0 %vm824_vm2, %v12307_v42  ;;  %v2866_v42 = vand.u32 15, %v2764_v16  ;;  %v13216_v51 = vor.u32 %v3828_v8, %v3824_v3  ;;  %v13222_v52 = vsel %vm13192_vm15, %v4725_v17, %v13152_v58  ;;  %v12311_v17 = vld [vmem:[%s12893_s15 + $0x1e0] sm:$0xff]  }
 0x188   : > { %1701 = vst.msk [vmem:[#allocation2 + $0x18] sm:$0xff] %vm1697_vm8, %v1572_v55  ;;  %16354 = vst [vmem:[#allocation34_spill] sm:$0xff] %v13222_v52  ;;  %v10423_v55 = vsel %vm13197_vm0, 1.0, %v16173_v12  ;;  %v4731_v58 = vrot.slane %v13175_v24, 4  ;;  %v3267_v2 = vpack.c.bf16 %v16161_v21, %v10422_v46  ;;  %v4734_v18 = vrot.slane %v4732_v48, 4 }
 0x189   : > { %1699 = vst.msk [vmem:[#allocation2 + $0x8] sm:$0xff] %vm1697_vm8, %v1570_v59  ;;  %v11259_v7 = vpop.f32.mrb[4].mxu0  ;;  %vm13243_vm1 = vcmp.le.s32.totalorder %v2866_v42, 14 }
 0x18a   : > { %v1083_v11 = vadd.f32 %v11259_v7, %v13112_v29  ;;  %v1074_v13 = vpop.f32.mrb[5].mxu0  ;;  %v12310_v7 = vld [vmem:[%s12893_s15 + $0x1d8] sm:$0xff]   ;;  %v10441_v35 = vsel %vm13243_vm1, 1.0, %v16173_v12  ;;  %v13278_v46 = vrot.slane %v3267_v2, %v13107_v25 }
 0x18b   : > { %v1075_v19 = vadd.f32 %v13112_v29, %v1074_v13  ;;  %v11260_v20 = vpop.f32.mrb[6].mxu0  ;;  %v13252_v13 = vpack.c.bf16 %v10440_v49, %v16161_v21 }
 0x18c   : > { %v1575_v28 = vmax.f32 %v1083_v11, 0.0  ;;  %v1086_v30 = vadd.f32 %v11260_v20, %v13112_v29  ;;  %v1077_v31 = vpop.f32.mrb[7].mxu0  ;;  %v4549_v11 = vrot.slane %v13164_v5, %v13107_v25  ;;  %v2845_v20 = vand.u32 15, %v2761_v50  ;;  %16359 = vst [vmem:[#allocation37_spill] sm:$0xff] %v13278_v46 }
 0x18d   : > { %v1573_v36 = vmax.f32 %v1075_v19, 0.0  ;;  %v1078_v37 = vadd.f32 %v13112_v29, %v1077_v31  ;;  %v13257_v19 = vpack.c.bf16 %v16161_v21, %v10423_v55  ;;  %v4737_v5 = vrot.slane %v13238_v1, 4 }
 0x18e   : > { %1704 = vst.msk [vmem:[#allocation2 + $0x30] sm:$0xff] %vm1697_vm8, %v1575_v28  ;;  %v1576_v41 = vmax.f32 %v1086_v30, 0.0  ;;  %11366 = vmatmul.mubr.msk.bf16.gmra.mrb[112].mxu0 %vm824_vm2, %v12308_v14  ;;  %v4556_v42 = vrot.slane %v13252_v13, %v13102_v23  ;;  %v13284_v55 = vsel %vm13192_vm15, %v4731_v58, %v4732_v48  ;;  %vm13291_vm9 = vcmp.ge.s32.totalorder %v2845_v20, 1 }
 0x18f   : > { %1702 = vst.msk [vmem:[#allocation2 + $0x20] sm:$0xff] %vm1697_vm8, %v1573_v36  ;;  %v1574_v47 = vmax.f32 %v1078_v37, 0.0  ;;  %11369 = vmatprep.mubr.msk.bf16.mxu0 %vm824_vm2, %v12309_v22  ;;  %v1867_v28 = vld [vmem:[#allocation2 + $0x10] ss:$2 sm:$0xff]  ;;  %v1871_v30 = vld [vmem:[#allocation2 + $0x11] ss:$2 sm:$0xff]  ;;  %v13269_v36 = vrot.slane %v3267_v2, %v13102_v23  ;;  %v13299_v48 = vrot.slane %v13257_v19, %v13102_v23 }
 0x190   : > { %1705 = vst.msk [vmem:[#allocation2 + $0x38] sm:$0xff] %vm1697_vm8, %v1576_v41  ;;  %v1865_v37 = vld [vmem:[#allocation2] ss:$2 sm:$0xff]  ;;  %v1869_v39 = vld [vmem:[#allocation2 + $0x1] ss:$2 sm:$0xff]  ;;  %v13273_v41 = vrot.slane %v4549_v11, 7  ;;  %v3382_v11 = vpack.c.bf16 %v10441_v35, %v16161_v21 }
 0x191   : > { %1703 = vst.msk [vmem:[#allocation2 + $0x28] sm:$0xff] %vm1697_vm8, %v1574_v47  ;;  %v11263_v59 = vpop.f32.mrb[8].mxu0  ;;  %16358 = vst [vmem:[#allocation36_spill] sm:$0xff] %v13269_v36  ;;  %v1880_v58 = vmax.f32 %v1865_v37, %v1869_v39  ;;  %v12313_v37 = vld [vmem:[%s12893_s15 + $0x1f0] sm:$0xff]  }
 0x192   : > { %v1099_v3 = vadd.f32 %v11263_v59, %v13112_v29  ;;  %v1090_v6 = vpop.f32.mrb[9].mxu0  ;;  %16360 = vst [vmem:[#allocation38_spill] sm:$0xff] %v13284_v55  ;;  %v13289_v59 = vsel %vm13192_vm15, %v4734_v18, %v13238_v1  ;;  %16364 = vst [vmem:[#allocation40_spill] sm:$0xff] %v13299_v48  ;;  %v2763_v18 = vadd.s32 80, %v13069_v60  ;;  %v4577_v39 = vrot.slane %v3382_v11, %v13107_v25 }
 0x193   : > { %v1091_v14 = vadd.f32 %v13112_v29, %v1090_v6  ;;  %v11264_v16 = vpop.f32.mrb[10].mxu0  ;;  %16361 = vst [vmem:[#allocation39_spill] sm:$0xff] %v13289_v59  ;;  %v16377_v1 = vrot.slane %v13224_v53, 4 }
 0x194   : > { %v1579_v22 = vmax.f32 %v1099_v3, 0.0  ;;  %v1102_v24 = vadd.f32 %v11264_v16, %v13112_v29  ;;  %v1093_v26 = vpop.f32.mrb[11].mxu0  ;;  %v1881_v3 = vmax.f32 %v1867_v28, %v1871_v30  ;;  %v13307_v28 = vrot.slane %v4556_v42, 7 }
 0x195   : > { %v1577_v31 = vmax.f32 %v1091_v14, 0.0  ;;  %v1094_v34 = vadd.f32 %v13112_v29, %v1093_v26  ;;  %v12312_v26 = vld [vmem:[%s12893_s15 + $0x1e8] sm:$0xff]   ;;  %v10424_v30 = vsel %vm13291_vm9, 1.0, %v16173_v12  ;;  %v4570_v42 = vrot.slane %v3382_v11, %v13102_v23 }
 0x196   : > { %1708 = vst.msk [vmem:[#allocation2 + $0x50] sm:$0xff] %vm1697_vm8, %v1579_v22  ;;  %v1580_v40 = vmax.f32 %v1102_v24, 0.0  ;;  %11370 = vmatmul.mubr.msk.bf16.gmra.mrb[116].mxu0 %vm824_vm2, %v12310_v7 }
 0x197   : > { %v1875_v47 = vld [vmem:[#allocation2 + $0x30] ss:$2 sm:$0xff]  ;;  %v1879_v49 = vld [vmem:[#allocation2 + $0x31] ss:$2 sm:$0xff]  ;;  %1706 = vst.msk [vmem:[#allocation2 + $0x40] sm:$0xff] %vm1697_vm8, %v1577_v31  ;;  %v1578_v50 = vmax.f32 %v1094_v34, 0.0  ;;  %11373 = vmatprep.mubr.msk.bf16.mxu0 %vm824_vm2, %v12311_v17  ;;  %v4563_v17 = vrot.slane %v13252_v13, %v13107_v25 }
 0x198   : > { %v1883_v6 = vmax.f32 %v1875_v47, %v1879_v49  ;;  %v1873_v7 = vld [vmem:[#allocation2 + $0x20] ss:$2 sm:$0xff]  ;;  %v1877_v8 = vld [vmem:[#allocation2 + $0x21] ss:$2 sm:$0xff]  ;;  %1709 = vst.msk [vmem:[#allocation2 + $0x58] sm:$0xff] %vm1697_vm8, %v1580_v40  ;;  %v2766_v13 = vadd.s32 104, %v13069_v60 }
 0x199   : > { %v1882_v14 = vmax.f32 %v1873_v7, %v1877_v8  ;;  %1707 = vst.msk [vmem:[#allocation2 + $0x48] sm:$0xff] %vm1697_vm8, %v1578_v50  ;;  %v11267_v16 = vpop.f32.mrb[12].mxu0  ;;  %v2859_v7 = vand.u32 15, %v2763_v18  ;;  %v13328_v18 = vpack.c.bf16 %v16161_v21, %v10424_v30  ;;  %v2784_v30 = vadd.s32 248, %v13069_v60 }
 0x19a   : > { %v1885_v20 = vmax.f32 %v1881_v3, %v1883_v6  ;;  %v1115_v22 = vadd.f32 %v11267_v16, %v13112_v29  ;;  %v1106_v24 = vpop.f32.mrb[13].mxu0  ;;  %v2880_v11 = vand.u32 15, %v2766_v13  ;;  %v13370_v16 = vadd.s32 96, %v13069_v60 }
 0x19b   : > { %v1884_v31 = vmax.f32 %v1880_v58, %v1882_v14  ;;  %v1107_v34 = vadd.f32 %v13112_v29, %v1106_v24  ;;  %v11268_v35 = vpop.f32.mrb[14].mxu0  ;;  %vm13347_vm4 = vcmp.ge.s32.totalorder %v2859_v7, 1 }
 0x19c   : > { %v10911_v40 = vpack.c.bf16 %v1885_v20, %v1885_v20  ;;  %v1583_v47 = vmax.f32 %v1115_v22, 0.0  ;;  %v1118_v49 = vadd.f32 %v11268_v35, %v13112_v29  ;;  %v1109_v50 = vpop.f32.mrb[15].mxu0  ;;  %v13325_v22 = vrot.slane %v4563_v17, 7 }
 0x19d   : > { %v10910_v3 = vpack.c.bf16 %v1884_v31, %v1884_v31  ;;  %v1581_v6 = vmax.f32 %v1107_v34, 0.0  ;;  %v1110_v2 = vadd.f32 %v13112_v29, %v1109_v50  ;;  %v1924_v34 = vld [vmem:[#allocation3 + $0x10] sm:$0x1]  ;;  %vm13362_vm13 = vcmp.le.s32.totalorder %v2880_v11, 14 }
 0x19e   : > { %v1904_v8 = vshrl.u32 %v10911_v40, 16  ;;  %1712 = vst.msk [vmem:[#allocation2 + $0x70] sm:$0xff] %vm1697_vm8, %v1583_v47  ;;  %v1584_v58 = vmax.f32 %v1118_v49, 0.0  ;;  %11374 = vmatmul.mubr.msk.bf16.gmra.mrb[120].mxu0 %vm824_vm2, %v12312_v26  ;;  %v1907_v31 = vshll.u32 %v10911_v40, 16  ;;  %v13345_v47 = vrot.slane %v4570_v42, 7 }
 0x19f   : > { %v1896_v20 = vshrl.u32 %v10910_v3, 16  ;;  %1710 = vst.msk [vmem:[#allocation2 + $0x60] sm:$0xff] %vm1697_vm8, %v1581_v6  ;;  %11377 = vmatprep.mubr.msk.bf16.mxu0 %vm824_vm2, %v12313_v37  ;;  %v1582_v35 = vmax.f32 %v1110_v2, 0.0  ;;  %v13337_v37 = vrot.slane %v4577_v39, 7  ;;  %v1899_v13 = vshll.u32 %v10910_v3, 16 }
 0x1a0   : > { %v1906_v24 = vrot.slane %v1904_v8, 7  ;;  %1713 = vst.msk [vmem:[#allocation2 + $0x78] sm:$0xff] %vm1697_vm8, %v1584_v58  ;;  %v12314_v8 = vld [vmem:[%s12893_s15 + $0x1f8] sm:$0xff]   ;;  %v1918_v42 = vld [vmem:[#allocation3 + $0x8] sm:$0xf]  ;;  %v4749_v7 = vrot.slane %v13325_v22, 4 }
 0x1a1   : > { %v1898_v17 = vrot.slane %v1896_v20, 7  ;;  %v11271_v40 = vpop.f32.mrb[16].mxu0  ;;  %1711 = vst.msk [vmem:[#allocation2 + $0x68] sm:$0xff] %vm1697_vm8, %v1582_v35  ;;  %v4752_v49 = vrot.slane %v13345_v47, 4  ;;  %v13429_v35 = vrot.slane %v13328_v18, %v13107_v25 }
 0x1a2   : > { %v1909_v50 = vor.u32 %v1907_v31, %v1906_v24  ;;  %v1911_v6 = vrot.slane %v1906_v24, 4  ;;  %v1131_v3 = vadd.f32 %v11271_v40, %v13112_v29  ;;  %v1122_v2 = vpop.f32.mrb[17].mxu0 }
 0x1a3   : > { %v1901_v58 = vor.u32 %v1899_v13, %v1898_v17  ;;  %v1902_v20 = vrot.slane %v1898_v17, 4  ;;  %v1123_v31 = vadd.f32 %v13112_v29, %v1122_v2  ;;  %v11272_v24 = vpop.f32.mrb[18].mxu0  ;;  %v1930_v13 = vld [vmem:[#allocation2 + $0x50] ss:$2 sm:$0xff]  ;;  %v1934_v17 = vld [vmem:[#allocation2 + $0x51] ss:$2 sm:$0xff] }
 0x1a4   : > { %v1925_v33 = vsel %vm13332_vm10, %v1911_v6, %v1924_v34  ;;  %v1587_v44 = vmax.f32 %v1131_v3, 0.0  ;;  %v1134_v40 = vadd.f32 %v11272_v24, %v13112_v29  ;;  %v1125_v21 = vpop.f32.mrb[19].mxu0  ;;  %v1928_v34 = vld [vmem:[#allocation2 + $0x40] ss:$2 sm:$0xff]  ;;  %v1932_v6 = vld [vmem:[#allocation2 + $0x41] ss:$2 sm:$0xff] }
 0x1a5   : > { %1926 = vst [vmem:[#allocation3 + $0x10] sm:$0x1] %v1925_v33  ;;  %v1585_v14 = vmax.f32 %v1123_v31, 0.0  ;;  %v1126_v2 = vadd.f32 %v13112_v29, %v1125_v21  ;;  %v1910_v11 = vsel %vm13341_vm11, %v1902_v20, %v1909_v50  ;;  %v1919_v27 = vsel %vm13354_vm12, %v1901_v58, %v1918_v42  ;;  %16384 = vst [vmem:[#allocation47_spill] sm:$0xff] %v13429_v35 }
 0x1a6   : > { %1716 = vst.msk [vmem:[#allocation2 + $0x90] sm:$0xff] %vm1697_vm8, %v1587_v44  ;;  %v1588_v3 = vmax.f32 %v1134_v40, 0.0  ;;  %11378 = vmatmul.mubr.msk.bf16.gmra.mrb[124].mxu0 %vm824_vm2, %v12314_v8  ;;  %1920 = vst [vmem:[#allocation3 + $0x8] sm:$0xf] %v1919_v27  ;;  %v13385_v33 = vsel %vm13192_vm15, %v4737_v5, %v13224_v53  ;;  %v13389_v21 = vrot.slane %v13257_v19, %v13107_v25  ;;  %v10425_v44 = vsel %vm13347_vm4, 1.0, %v16173_v12 }
 0x1a7   : > { %1921 = vst.msk [vmem:[#allocation3 + $0xc] sm:$0xf] %vm1826_vm3, %v1910_v11  ;;  %16375 = vst [vmem:[#allocation41_spill] sm:$0xff] %v13385_v33  ;;  %v1938_v50 = vld [vmem:[#allocation2 + $0x70] ss:$2 sm:$0xff]  ;;  %v1586_v27 = vmax.f32 %v1126_v2, 0.0  ;;  %v13400_v5 = vsel %vm13192_vm15, %v16377_v1, %v13273_v41  ;;  %v1944_v58 = vmax.f32 %v1930_v13, %v1934_v17  ;;  %v13425_v17 = vrot.slane %v13328_v18, %v13102_v23 }
 0x1a8   : > { %16376 = vst [vmem:[#allocation42_spill] sm:$0xff] %v13389_v21  ;;  %v1942_v8 = vld [vmem:[#allocation2 + $0x71] ss:$2 sm:$0xff]  ;;  %1714 = vst.msk [vmem:[#allocation2 + $0x80] sm:$0xff] %vm1697_vm8, %v1585_v14  ;;  %v16379_v19 = vrot.slane %v13273_v41, 4  ;;  %v10442_v53 = vsel %vm13362_vm13, 1.0, %v16173_v12  ;;  %v13442_v18 = vsel %vm13192_vm15, %v4749_v7, %v13345_v47 }
 0x1a9   : > { %16378 = vst [vmem:[#allocation43_spill] sm:$0xff] %v13400_v5  ;;  %v1946_v20 = vmax.f32 %v1938_v50, %v1942_v8  ;;  %1717 = vst.msk [vmem:[#allocation2 + $0x98] sm:$0xff] %vm1697_vm8, %v1588_v3  ;;  %v16381_v14 = vrot.slane %v13307_v28, 4  ;;  %v1936_v31 = vld [vmem:[#allocation2 + $0x60] ss:$2 sm:$0xff]  ;;  %v11275_v40 = vpop.f32.mrb[20].mxu0 }
 0x1aa   : > { %v13407_v42 = vsel %vm13192_vm15, %v16379_v19, %v13307_v28  ;;  %v1940_v24 = vld [vmem:[#allocation2 + $0x61] ss:$2 sm:$0xff]  ;;  %1715 = vst.msk [vmem:[#allocation2 + $0x88] sm:$0xff] %vm1697_vm8, %v1586_v27  ;;  %v2873_v13 = vand.u32 15, %v13370_v16  ;;  %16383 = vst [vmem:[#allocation46_spill] sm:$0xff] %v13425_v17  ;;  %v16385_v28 = vmov 1.0   ;;  %v1147_v50 = vadd.f32 %v11275_v40, %v13112_v29 }
 0x1ab   : > { %16380 = vst [vmem:[#allocation44_spill] sm:$0xff] %v13407_v42  ;;  %v13419_v41 = vsel %vm13192_vm15, %v16381_v14, %v13325_v22  ;;  %v13432_v2 = vpack.c.bf16 %v16385_v28, %v10425_v44  ;;  %v1943_v22 = vmax.f32 %v1928_v34, %v1932_v6  ;;  %v1948_v11 = vmax.f32 %v1944_v58, %v1946_v20  ;;  %v1138_v8 = vpop.f32.mrb[21].mxu0 }
 0x1ac   : > { %16382 = vst [vmem:[#allocation45_spill] sm:$0xff] %v13419_v41  ;;  %v1945_v3 = vmax.f32 %v1936_v31, %v1940_v24  ;;  %vm3822_vm2 = vsmask.f32 7424  ;;  %v1139_v16 = vadd.f32 %v13112_v29, %v1138_v8  ;;  %v11276_v27 = vpop.f32.mrb[22].mxu0  ;;  %v13437_v1 = vpack.c.bf16 %v10442_v53, %v16385_v28  ;;  %16386 = vst [vmem:[#allocation48_spill] sm:$0xff] %v13442_v18 }
 0x1ad   : > { %v13447_v34 = vsel %vm13192_vm15, %v4752_v49, %v13337_v37  ;;  %v10913_v6 = vpack.c.bf16 %v1948_v11, %v1948_v11  ;;  %v1591_v19 = vmax.f32 %v1147_v50, 0.0  ;;  %v1150_v58 = vadd.f32 %v11276_v27, %v13112_v29  ;;  %v1141_v20 = vpop.f32.mrb[23].mxu0  ;;  %v13451_v31 = vld [vmem:[#allocation3 + $0x8] sm:$0xf] }
 0x1ae   : > { %16387 = vst [vmem:[#allocation49_spill] sm:$0xff] %v13447_v34  ;;  %v1947_v44 = vmax.f32 %v1943_v22, %v1945_v3  ;;  %v1589_v14 = vmax.f32 %v1139_v16, 0.0  ;;  %v1142_v53 = vadd.f32 %v13112_v29, %v1141_v20  ;;  %v13453_v24 = vld [vmem:[#allocation3 + $0xc] sm:$0xf]  ;;  %v2768_v47 = vadd.s32 120, %v13069_v60 }
 0x1af   : > { %v13458_v7 = vrot.slane %v13432_v2, %v13102_v23  ;;  %v1964_v49 = vshrl.u32 %v10913_v6, 16  ;;  %1720 = vst.msk [vmem:[#allocation2 + $0xb0] sm:$0xff] %vm1697_vm8, %v1591_v19  ;;  %v1592_v22 = vmax.f32 %v1150_v58, 0.0  ;;  %vm13461_vm14 = vcmp.ge.s32.totalorder %v2873_v13, 1  ;;  %v1979_v58 = vld [vmem:[#allocation3 + $0x18] sm:$0x1] }
 0x1b0   : > { %v10912_v40 = vpack.c.bf16 %v1947_v44, %v1947_v44  ;;  %1718 = vst.msk [vmem:[#allocation2 + $0xa0] sm:$0xff] %vm1697_vm8, %v1589_v14  ;;  %v1590_v3 = vmax.f32 %v1142_v53, 0.0  ;;  %v3699_v50 = vmul.bf16 %v13118_v32, %v13451_v31  ;;  %v3700_v8 = vmul.bf16 %v13148_v56, %v13453_v24 }
 0x1b1   : > { %16388 = vst [vmem:[#allocation50_spill] sm:$0xff] %v13458_v7  ;;  %v13472_v16 = vcombine.low %v13451_v31, %v13453_v24  ;;  %v1966_v27 = vrot.slane %v1964_v49, 7  ;;  %v1967_v44 = vshll.u32 %v10913_v6, 16  ;;  %1721 = vst.msk [vmem:[#allocation2 + $0xb8] sm:$0xff] %vm1697_vm8, %v1592_v22  ;;  %v4584_v13 = vrot.slane %v13437_v1, %v13102_v23  ;;  %v11279_v20 = vpop.f32.mrb[24].mxu0 }
 0x1b2   : > { %v1956_v19 = vshrl.u32 %v10912_v40, 16  ;;  %1719 = vst.msk [vmem:[#allocation2 + $0xa8] sm:$0xff] %vm1697_vm8, %v1590_v3  ;;  %v13479_v53 = vcombine.low %v3699_v50, %v3700_v8  ;;  %v10426_v15 = vsel %vm13461_vm14, 1.0, %v16173_v12  ;;  %v2894_v49 = vand.u32 15, %v2768_v47  ;;  %v1154_v45 = vpop.f32.mrb[25].mxu0 }
 0x1b3   : > { %v3831_v14 = vshll.u32 %v13472_v16, 16  ;;  %v1969_v6 = vor.u32 %v1967_v44, %v1966_v27  ;;  %v1971_v54 = vrot.slane %v1966_v27, 4  ;;  %v1959_v22 = vshll.u32 %v10912_v40, 16  ;;  %v11280_v3 = vpop.f32.mrb[26].mxu0  ;;  %v1975_v47 = vld [vmem:[#allocation3 + $0x10] sm:$0xf] }
 0x1b4   : > { %16391 = vst [vmem:[#allocation51_spill] sm:$0xff] %v13479_v53  ;;  %v1958_v10 = vrot.slane %v1956_v19, 7  ;;  %v1163_v62 = vadd.f32 %v11279_v20, %v13112_v29  ;;  %v1155_v63 = vadd.f32 %v13112_v29, %v1154_v45  ;;  %v2767_v50 = vadd.s32 112, %v13069_v60  ;;  %v1157_v44 = vpop.f32.mrb[27].mxu0  ;;  %v1985_v40 = vld [vmem:[#allocation2 + $0x90] ss:$2 sm:$0xff] }
 0x1b5   : > { %v13486_v61 = vrot.slane %v3831_v14, 1  ;;  %v1980_v8 = vsel %vm13332_vm10, %v1971_v54, %v1979_v58  ;;  %v1166_v27 = vadd.f32 %v11280_v3, %v13112_v29  ;;  %v1989_v19 = vld [vmem:[#allocation2 + $0x91] ss:$2 sm:$0xff]  ;;  %v1158_v45 = vadd.f32 %v13112_v29, %v1157_v44  ;;  %v1983_v58 = vld [vmem:[#allocation2 + $0x80] ss:$2 sm:$0xff] }
 0x1b6   : > { %v1961_v11 = vor.u32 %v1959_v22, %v1958_v10  ;;  %v1962_v12 = vrot.slane %v1958_v10, 4  ;;  %1981 = vst [vmem:[#allocation3 + $0x18] sm:$0x1] %v1980_v8  ;;  %v1595_v20 = vmax.f32 %v1163_v62, 0.0  ;;  %v1593_v56 = vmax.f32 %v1155_v63, 0.0 }
 0x1b7   : > { %v3834_v14 = vsel %vm3822_vm2, %v13216_v51, %v13486_v61  ;;  %v1987_v22 = vld [vmem:[#allocation2 + $0x81] ss:$2 sm:$0xff]  ;;  %v1596_v3 = vmax.f32 %v1166_v27, 0.0  ;;  %vm13501_vm0 = vcmp.le.s32.totalorder %v2894_v49, 14  ;;  %v4851_v8 = vmul.bf16 %v13222_v52, %v13451_v31 }
 0x1b8   : > { %v1970_v54 = vsel %vm13341_vm11, %v1962_v12, %v1969_v6  ;;  %v1976_v10 = vsel %vm13354_vm12, %v1961_v11, %v1975_v47  ;;  %11385 = vmatprep.mubr.msk.bf16.mxu0 %vm1697_vm8, %v3834_v14  ;;  %v1993_v63 = vld [vmem:[#allocation2 + $0xb0] ss:$2 sm:$0xff]  ;;  %v1997_v51 = vld [vmem:[#allocation2 + $0xb1] ss:$2 sm:$0xff]  ;;  %1724 = vst.msk [vmem:[#allocation2 + $0xd0] sm:$0xff] %vm1697_vm8, %v1595_v20  ;;  %1722 = vst.msk [vmem:[#allocation2 + $0xc0] sm:$0xff] %vm1697_vm8, %v1593_v56  ;;  %v4852_v49 = vmul.bf16 %v13235_v0, %v13453_v24 }
 0x1b9   : > { %1977 = vst [vmem:[#allocation3 + $0x10] sm:$0xf] %v1976_v10  ;;  %1978 = vst.msk [vmem:[#allocation3 + $0x14] sm:$0xf] %vm1826_vm3, %v1970_v54  ;;  %v1594_v12 = vmax.f32 %v1158_v45, 0.0  ;;  %v2887_v6 = vand.u32 15, %v2767_v50  ;;  %v1999_v11 = vmax.f32 %v1985_v40, %v1989_v19  ;;  %v2001_v47 = vmax.f32 %v1993_v63, %v1997_v51 }
 0x1ba   : > { %v1991_v27 = vld [vmem:[#allocation2 + $0xa0] ss:$2 sm:$0xff]  ;;  %v1995_v44 = vld [vmem:[#allocation2 + $0xa1] ss:$2 sm:$0xff]  ;;  %1725 = vst.msk [vmem:[#allocation2 + $0xd8] sm:$0xff] %vm1697_vm8, %v1596_v3  ;;  %v13513_v14 = vrot.slane %v4584_v13, 7  ;;  %v13517_v20 = vrot.slane %v13432_v2, %v13107_v25  ;;  %v1998_v56 = vmax.f32 %v1983_v58, %v1987_v22  ;;  %v13520_v45 = vcombine.low %v4851_v8, %v4852_v49 }
 0x1bb   : > { %v2000_v50 = vmax.f32 %v1991_v27, %v1995_v44  ;;  %1723 = vst.msk [vmem:[#allocation2 + $0xc8] sm:$0xff] %vm1697_vm8, %v1594_v12  ;;  %v11283_v31 = vpop.f32.mrb[28].mxu0  ;;  %v16395_v24 = vmov 0.0   ;;  %v2003_v19 = vmax.f32 %v1999_v11, %v2001_v47  ;;  %v3271_v10 = vpack.c.bf16 %v16385_v28, %v10426_v15 }
 0x1bc   : > { %16394 = vst [vmem:[#allocation52_spill] sm:$0xff] %v13517_v20  ;;  %v10443_v40 = vsel %vm13501_vm0, 1.0, %v16395_v24  ;;  %v1179_v54 = vadd.f32 %v11283_v31, %v13112_v29  ;;  %v1170_v13 = vpop.f32.mrb[29].mxu0  ;;  %v4591_v2 = vrot.slane %v13437_v1, %v13107_v25  ;;  %v4755_v63 = vrot.slane %v13337_v37, 4 }
 0x1bd   : > { %v2002_v58 = vmax.f32 %v1998_v56, %v2000_v50  ;;  %v1171_v22 = vadd.f32 %v13112_v29, %v1170_v13  ;;  %v11284_v3 = vpop.f32.mrb[30].mxu0  ;;  %vm13531_vm1 = vcmp.ge.s32.totalorder %v2887_v6, 1  ;;  %v10915_v62 = vpack.c.bf16 %v2003_v19, %v2003_v19 }
 0x1be   : > { %v1599_v12 = vmax.f32 %v1179_v54, 0.0  ;;  %v1182_v8 = vadd.f32 %v11284_v3, %v13112_v29  ;;  %v1173_v49 = vpop.f32.mrb[31].mxu0  ;;  %v13537_v15 = vpack.c.bf16 %v10443_v40, %v16385_v28  ;;  %v4758_v27 = vrot.slane %v13513_v14, 4 }
 0x1bf   : > { %v10914_v11 = vpack.c.bf16 %v2002_v58, %v2002_v58  ;;  %v1597_v1 = vmax.f32 %v1171_v22, 0.0  ;;  %v1174_v47 = vadd.f32 %v13112_v29, %v1173_v49  ;;  %v2019_v44 = vshrl.u32 %v10915_v62, 16 }
 0x1c0   : > { %1728 = vst.msk [vmem:[#allocation2 + $0xf0] sm:$0xff] %vm1697_vm8, %v1599_v12  ;;  %v1600_v37 = vmax.f32 %v1182_v8, 0.0  ;;  %v13542_v6 = vld [vmem:[#allocation3 + $0x10] sm:$0xf]  ;;  %v13545_v56 = vrot.slane %v3271_v10, %v13102_v23  ;;  %v13547_v50 = vrot.slane %v4591_v2, 7  ;;  %v13551_v40 = vrot.slane %v3271_v10, %v13107_v25 }
 0x1c1   : > { %v2011_v31 = vshrl.u32 %v10914_v11, 16  ;;  %1726 = vst.msk [vmem:[#allocation2 + $0xe0] sm:$0xff] %vm1697_vm8, %v1597_v1  ;;  %v13556_v19 = vsel %vm13192_vm15, %v4755_v63, %v13513_v14  ;;  %v13561_v54 = vsel %vm13531_vm1, 1.0, %v16395_v24  ;;  %v2021_v13 = vrot.slane %v2019_v44, 7  ;;  %v2034_v2 = vld [vmem:[#allocation3 + $0x20] sm:$0x1] }
 0x1c2   : > { %16398 = vst [vmem:[#allocation53_spill] sm:$0xff] %v13545_v56  ;;  %16399 = vst [vmem:[#allocation54_spill] sm:$0xff] %v13551_v40  ;;  %v2022_v58 = vshll.u32 %v10915_v62, 16  ;;  %v1598_v22 = vmax.f32 %v1174_v47, 0.0  ;;  %v4598_v10 = vrot.slane %v13537_v15, %v13102_v23  ;;  %v2014_v12 = vshll.u32 %v10914_v11, 16  ;;  %v11287_v14 = vpop.f32.mrb[32].mxu0 }
 0x1c3   : > { %1729 = vst.msk [vmem:[#allocation2 + $0xf8] sm:$0xff] %vm1697_vm8, %v1600_v37  ;;  %v2013_v3 = vrot.slane %v2011_v31, 7  ;;  %v3835_v8 = vshrl.u32 %v13472_v16, 16  ;;  %v3398_v63 = vld [vmem:[#allocation3 + $0x14] sm:$0xf]  ;;  %v4853_v51 = vmul.bf16 %v13284_v55, %v13542_v6  ;;  %v2026_v1 = vrot.slane %v2021_v13, 4 }
 0x1c4   : > { %v2024_v49 = vor.u32 %v2022_v58, %v2021_v13  ;;  %1727 = vst.msk [vmem:[#allocation2 + $0xe8] sm:$0xff] %vm1697_vm8, %v1598_v22  ;;  %v1195_v62 = vadd.f32 %v11287_v14, %v13112_v29  ;;  %v1186_v44 = vpop.f32.mrb[33].mxu0  ;;  %v13572_v47 = vcombine.low %v13542_v6, %v3398_v63  ;;  %v3701_v32 = vmul.bf16 %v13269_v36, %v13542_v6  ;;  %v2030_v13 = vld [vmem:[#allocation3 + $0x18] sm:$0xf] }
 0x1c5   : > { %v2016_v37 = vor.u32 %v2014_v12, %v2013_v3  ;;  %v2017_v31 = vrot.slane %v2013_v3, 4  ;;  %v1187_v11 = vadd.f32 %v13112_v29, %v1186_v44  ;;  %v11288_v16 = vpop.f32.mrb[34].mxu0  ;;  %v2035_v58 = vsel %vm13332_vm10, %v2026_v1, %v2034_v2  ;;  %v2040_v12 = vld [vmem:[#allocation2 + $0xd0] ss:$2 sm:$0xff]  ;;  %v2044_v44 = vld [vmem:[#allocation2 + $0xd1] ss:$2 sm:$0xff] }
 0x1c6   : > { %v1603_v53 = vmax.f32 %v1195_v62, 0.0  ;;  %v1198_v22 = vadd.f32 %v11288_v16, %v13112_v29  ;;  %v1189_v14 = vpop.f32.mrb[35].mxu0  ;;  %v3839_v55 = vshll.u32 %v13572_v47, 16  ;;  %2036 = vst [vmem:[#allocation3 + $0x20] sm:$0x1] %v2035_v58  ;;  %v3837_v16 = vor.u32 %v3835_v8, %v13486_v61 }
 0x1c7   : > { %v2031_v3 = vsel %vm13354_vm12, %v2016_v37, %v2030_v13  ;;  %v1601_v0 = vmax.f32 %v1187_v11, 0.0  ;;  %v1190_v6 = vadd.f32 %v13112_v29, %v1189_v14  ;;  %v2025_v2 = vsel %vm13341_vm11, %v2017_v31, %v2024_v49  ;;  %v2038_v1 = vld [vmem:[#allocation2 + $0xc0] ss:$2 sm:$0xff]  ;;  %v2042_v62 = vld [vmem:[#allocation2 + $0xc1] ss:$2 sm:$0xff] }
 0x1c8   : > { %2032 = vst [vmem:[#allocation3 + $0x18] sm:$0xf] %v2031_v3  ;;  %1732 = vst.msk [vmem:[#allocation2 + $0x110] sm:$0xff] %vm1697_vm8, %v1603_v53  ;;  %v1604_v36 = vmax.f32 %v1198_v22, 0.0  ;;  %v13588_v58 = vrot.slane %v3839_v55, 1  ;;  %v13594_v37 = vsel %vm13192_vm15, %v4758_v27, %v13547_v50  ;;  %v4854_v61 = vmul.bf16 %v13289_v59, %v3398_v63 }
 0x1c9   : > { %2033 = vst.msk [vmem:[#allocation3 + $0x1c] sm:$0xf] %vm1826_vm3, %v2025_v2  ;;  %v1602_v49 = vmax.f32 %v1190_v6, 0.0  ;;  %v3702_v53 = vmul.bf16 %v13278_v46, %v3398_v63  ;;  %v2054_v55 = vmax.f32 %v2040_v12, %v2044_v44  ;;  %v13603_v27 = vrot.slane %v4598_v10, 7 }
 0x1ca   : > { %v2048_v11 = vld [vmem:[#allocation2 + $0xf0] ss:$2 sm:$0xff]  ;;  %v2052_v13 = vld [vmem:[#allocation2 + $0xf1] ss:$2 sm:$0xff]  ;;  %1730 = vst.msk [vmem:[#allocation2 + $0x100] sm:$0xff] %vm1697_vm8, %v1601_v0  ;;  %1733 = vst.msk [vmem:[#allocation2 + $0x118] sm:$0xff] %vm1697_vm8, %v1604_v36  ;;  %v3842_v22 = vsel %vm3822_vm2, %v3837_v16, %v13588_v58  ;;  %v13609_v6 = vpack.c.bf16 %v16385_v28, %v13561_v54  ;;  %v13612_v12 = vcombine.low %v4853_v51, %v4854_v61 }
 0x1cb   : > { %v2056_v8 = vmax.f32 %v2048_v11, %v2052_v13  ;;  %v2046_v14 = vld [vmem:[#allocation2 + $0xe0] ss:$2 sm:$0xff]  ;;  %v2050_v3 = vld [vmem:[#allocation2 + $0xe1] ss:$2 sm:$0xff]  ;;  %1731 = vst.msk [vmem:[#allocation2 + $0x108] sm:$0xff] %vm1697_vm8, %v1602_v49  ;;  %11386 = vmatmul.mubr.msk.bf16.vlgmr.msra.gmra.mrb[128].mxu0 %vm1697_vm8, %v3842_v22  ;;  %v11291_v0 = vpop.f32.mrb[36].mxu0  ;;  %v13614_v36 = vcombine.low %v3701_v32, %v3702_v53  ;;  %v2053_v44 = vmax.f32 %v2038_v1, %v2042_v62 }
 0x1cc   : > { %v2769_v63 = vadd.s32 128, %v13069_v60  ;;  %v2055_v2 = vmax.f32 %v2046_v14, %v2050_v3  ;;  %v1211_v16 = vadd.f32 %v11291_v0, %v13112_v29  ;;  %v1202_v11 = vpop.f32.mrb[37].mxu0  ;;  %11418 = vmatpush3.bf16.msra.mxu0 %v13203_v43  ;;  %v16185_v54 = vrot.slane %v13520_v45, 1 }
 0x1cd   : > { %16400 = vst [vmem:[#allocation55_spill] sm:$0xff] %v13614_v36  ;;  %v2058_v10 = vmax.f32 %v2054_v55, %v2056_v8  ;;  %v1203_v13 = vadd.f32 %v13112_v29, %v1202_v11  ;;  %v11292_v49 = vpop.f32.mrb[38].mxu0  ;;  %v16186_v22 = vrot.slane %v13612_v12, 1  ;;  %11419 = vmatprep.subr.bf16.mxu0 %v13247_v9  ;;  %v13623_v32 = vadd.s32 136, %v13069_v60 }
 0x1ce   : > { %v2057_v1 = vmax.f32 %v2053_v44, %v2055_v2  ;;  %v1607_v62 = vmax.f32 %v1211_v16, 0.0  ;;  %v1214_v61 = vadd.f32 %v11292_v49, %v13112_v29  ;;  %v1205_v53 = vpop.f32.mrb[39].mxu0  ;;  %v2901_v3 = vand.u32 15, %v2769_v63 }
 0x1cf   : > { %v10917_v51 = vpack.c.bf16 %v2058_v10, %v2058_v10  ;;  %v1605_v55 = vmax.f32 %v1203_v13, 0.0  ;;  %v1206_v43 = vadd.f32 %v13112_v29, %v1205_v53  ;;  %v13627_v8 = vld [vmem:[#allocation3 + $0x18] sm:$0xf]  ;;  %v13636_v0 = vsel %vm4970_vm6, %v16185_v54, %v16186_v22 }
 0x1d0   : > { %v13629_v14 = vld [vmem:[#allocation3 + $0x1c] sm:$0xf]  ;;  %v10916_v10 = vpack.c.bf16 %v2057_v1, %v2057_v1  ;;  %1736 = vst.msk [vmem:[#allocation2 + $0x130] sm:$0xff] %vm1697_vm8, %v1607_v62  ;;  %v1608_v2 = vmax.f32 %v1214_v61, 0.0  ;;  %11420 = vmatpush3.bf16.msra.mxu0 %v13247_v9  ;;  %v3843_v13 = vshrl.u32 %v13572_v47, 16  ;;  %v2908_v9 = vand.u32 15, %v13623_v32 }
 0x1d1   : > { %v2074_v44 = vshrl.u32 %v10917_v51, 16  ;;  %1734 = vst.msk [vmem:[#allocation2 + $0x120] sm:$0xff] %vm1697_vm8, %v1605_v55  ;;  %v1606_v63 = vmax.f32 %v1206_v43, 0.0  ;;  %v13645_v11 = vcombine.low %v13627_v8, %v13629_v14  ;;  %v2077_v53 = vshll.u32 %v10917_v51, 16  ;;  %v2089_v61 = vld [vmem:[#allocation3 + $0x28] sm:$0x1] }
 0x1d2   : > { %v2066_v62 = vshrl.u32 %v10916_v10, 16  ;;  %1737 = vst.msk [vmem:[#allocation2 + $0x138] sm:$0xff] %vm1697_vm8, %v1608_v2  ;;  %v11295_v55 = vpop.f32.mrb[40].mxu0  ;;  %v3845_v43 = vor.u32 %v3843_v13, %v13588_v58  ;;  %vm13654_vm9 = vcmp.ge.s32.totalorder %v2901_v3, 1  ;;  %v4855_v47 = vmul.bf16 %v13385_v33, %v13627_v8 }
 0x1d3   : > { %v2076_v1 = vrot.slane %v2074_v44, 7  ;;  %1735 = vst.msk [vmem:[#allocation2 + $0x128] sm:$0xff] %vm1697_vm8, %v1606_v63  ;;  %v3847_v54 = vshll.u32 %v13645_v11, 16  ;;  %v2069_v49 = vshll.u32 %v10916_v10, 16  ;;  %v1218_v32 = vpop.f32.mrb[41].mxu0  ;;  %v1227_v22 = vadd.f32 %v11295_v55, %v13112_v29 }
 0x1d4   : > { %v2068_v2 = vrot.slane %v2066_v62, 7  ;;  %v1219_v63 = vadd.f32 %v13112_v29, %v1218_v32  ;;  %v11296_v16 = vpop.f32.mrb[42].mxu0  ;;  %v4856_v3 = vmul.bf16 %v13400_v5, %v13629_v14  ;;  %v2095_v55 = vld [vmem:[#allocation2 + $0x110] ss:$2 sm:$0xff]  ;;  %v2099_v29 = vld [vmem:[#allocation2 + $0x111] ss:$2 sm:$0xff] }
 0x1d5   : > { %v2079_v51 = vor.u32 %v2077_v53, %v2076_v1  ;;  %v2081_v44 = vrot.slane %v2076_v1, 4  ;;  %v13662_v58 = vrot.slane %v3847_v54, 1  ;;  %v2085_v53 = vld [vmem:[#allocation3 + $0x20] sm:$0xf]  ;;  %v13668_v1 = vld [vmem:[#allocation9] ss:$0 sm:$0xff] }
 0x1d6   : > { %v2071_v46 = vor.u32 %v2069_v49, %v2068_v2  ;;  %v2072_v36 = vrot.slane %v2068_v2, 4  ;;  %v1230_v10 = vadd.f32 %v13668_v1, %v11296_v16  ;;  %v1221_v62 = vpop.f32.mrb[43].mxu0  ;;  %v1611_v32 = vmax.f32 %v1227_v22, 0.0 }
 0x1d7   : > { %v2090_v13 = vsel %vm13332_vm10, %v2081_v44, %v2089_v61  ;;  %v1609_v54 = vmax.f32 %v1219_v63, 0.0  ;;  %v1222_v33 = vadd.f32 %v13668_v1, %v1221_v62  ;;  %v3850_v5 = vsel %vm3822_vm2, %v3845_v43, %v13662_v58  ;;  %v2093_v61 = vld [vmem:[#allocation2 + $0x100] ss:$2 sm:$0xff]  ;;  %v2097_v44 = vld [vmem:[#allocation2 + $0x101] ss:$2 sm:$0xff] }
 0x1d8   : > { %2091 = vst [vmem:[#allocation3 + $0x28] sm:$0x1] %v2090_v13  ;;  %v2086_v49 = vsel %vm13354_vm12, %v2071_v46, %v2085_v53  ;;  %v1612_v2 = vmax.f32 %v1230_v10, 0.0  ;;  %11389 = vmatprep.mubr.msk.bf16.mxu0 %vm1697_vm8, %v3850_v5  ;;  %v2080_v16 = vsel %vm13341_vm11, %v2072_v36, %v2079_v51  ;;  %vm13679_vm4 = vcmp.le.s32.totalorder %v2908_v9, 14  ;;  %1740 = vst.msk [vmem:[#allocation2 + $0x150] sm:$0xff] %vm1697_vm8, %v1611_v32 }
 0x1d9   : > { %2087 = vst [vmem:[#allocation3 + $0x20] sm:$0xf] %v2086_v49  ;;  %v2103_v22 = vld [vmem:[#allocation2 + $0x130] ss:$2 sm:$0xff]  ;;  %v2107_v63 = vld [vmem:[#allocation2 + $0x131] ss:$2 sm:$0xff]  ;;  %v13688_v5 = vrot.slane %v13609_v6, %v13102_v23  ;;  %v13693_v9 = vcombine.low %v4855_v47, %v4856_v3  ;;  %v2109_v43 = vmax.f32 %v2095_v55, %v2099_v29  ;;  %v3703_v32 = vmul.bf16 %v13299_v48, %v13627_v8 }
 0x1da   : > { %1738 = vst.msk [vmem:[#allocation2 + $0x140] sm:$0xff] %vm1697_vm8, %v1609_v54  ;;  %v1610_v46 = vmax.f32 %v1222_v33, 0.0  ;;  %v10428_v36 = vsel %vm13654_vm9, 1.0, %v16395_v24  ;;  %v2111_v51 = vmax.f32 %v2103_v22, %v2107_v63  ;;  %v2101_v53 = vld [vmem:[#allocation2 + $0x120] ss:$2 sm:$0xff]  ;;  %1741 = vst.msk [vmem:[#allocation2 + $0x158] sm:$0xff] %vm1697_vm8, %v1612_v2  ;;  %v16406_v33 = vrot.slane %v13537_v15, %v13107_v25 }
 0x1db   : > { %2088 = vst.msk [vmem:[#allocation3 + $0x24] sm:$0xf] %vm1826_vm3, %v2080_v16  ;;  %16405 = vst [vmem:[#allocation56_spill] sm:$0xff] %v13688_v5  ;;  %v2105_v10 = vld [vmem:[#allocation2 + $0x121] ss:$2 sm:$0xff]  ;;  %v2108_v54 = vmax.f32 %v2093_v61, %v2097_v44  ;;  %v11299_v31 = vpop.f32.mrb[44].mxu0  ;;  %v3704_v3 = vmul.bf16 %v13389_v21, %v13629_v14  ;;  %v3273_v15 = vpack.c.bf16 %v16385_v28, %v10428_v36 }
 0x1dc   : > { %v13699_v62 = vrot.slane %v16406_v33, 7  ;;  %v2110_v49 = vmax.f32 %v2101_v53, %v2105_v10  ;;  %1739 = vst.msk [vmem:[#allocation2 + $0x148] sm:$0xff] %vm1697_vm8, %v1610_v46  ;;  %v16193_v47 = vrot.slane %v13693_v9, 1  ;;  %v2113_v55 = vmax.f32 %v2109_v43, %v2111_v51  ;;  %v1234_v2 = vpop.f32.mrb[45].mxu0 }
 0x1dd   : > { %v1243_v29 = vadd.f32 %v13668_v1, %v11299_v31  ;;  %v10444_v8 = vsel %vm13679_vm4, 1.0, %v16395_v24  ;;  %v1235_v44 = vadd.f32 %v13668_v1, %v1234_v2  ;;  %v11300_v16 = vpop.f32.mrb[46].mxu0  ;;  %v13714_v22 = vadd.s32 144, %v13069_v60 }
 0x1de   : > { %v2112_v61 = vmax.f32 %v2108_v54, %v2110_v49  ;;  %v16407_v14 = vrot.slane %v13612_v12, 1  ;;  %v10919_v46 = vpack.c.bf16 %v2113_v55, %v2113_v55  ;;  %v1246_v43 = vadd.f32 %v13668_v1, %v11300_v16  ;;  %v1237_v13 = vpop.f32.mrb[47].mxu0 }
 0x1df   : > { %v1615_v36 = vmax.f32 %v1243_v29, 0.0  ;;  %v13724_v51 = vcombine.low %v3703_v32, %v3704_v3  ;;  %v1613_v10 = vmax.f32 %v1235_v44, 0.0  ;;  %v1238_v33 = vadd.f32 %v13668_v1, %v1237_v13  ;;  %v2140_v21 = vld [vmem:[#allocation3 + $0x28] sm:$0xf] }
 0x1e0   : > { %v13721_v63 = vsel %vm4970_vm6, %v16407_v14, %v16193_v47  ;;  %v10918_v53 = vpack.c.bf16 %v2112_v61, %v2112_v61  ;;  %v13728_v54 = vpack.c.bf16 %v10444_v8, %v16385_v28  ;;  %v2129_v49 = vshrl.u32 %v10919_v46, 16  ;;  %v13743_v29 = vld [vmem:[#allocation3 + $0x20] sm:$0xf] }
 0x1e1   : > { %16408 = vst [vmem:[#allocation57_spill] sm:$0xff] %v13721_v63  ;;  %16409 = vst [vmem:[#allocation58_spill] sm:$0xff] %v13724_v51  ;;  %v1616_v12 = vmax.f32 %v1246_v43, 0.0  ;;  %v13733_v31 = vrot.slane %v13609_v6, %v13107_v25  ;;  %v16411_v55 = vrot.slane %v13547_v50, 4  ;;  %v13746_v2 = vrot.slane %v3273_v15, %v13102_v23  ;;  %v11303_v13 = vpop.f32.mrb[48].mxu0 }
 0x1e2   : > { %1744 = vst.msk [vmem:[#allocation2 + $0x170] sm:$0xff] %vm1697_vm8, %v1615_v36  ;;  %v2121_v3 = vshrl.u32 %v10918_v53, 16  ;;  %1742 = vst.msk [vmem:[#allocation2 + $0x160] sm:$0xff] %vm1697_vm8, %v1613_v10  ;;  %v13749_v8 = vrot.slane %v3273_v15, %v13107_v25  ;;  %v16414_v6 = vrot.slane %v13603_v27, 4  ;;  %v2131_v61 = vrot.slane %v2129_v49, 7  ;;  %v1250_v49 = vpop.f32.mrb[49].mxu0 }
 0x1e3   : > { %16410 = vst [vmem:[#allocation59_spill] sm:$0xff] %v13733_v31  ;;  %v13740_v32 = vsel %vm13192_vm15, %v16411_v55, %v13603_v27  ;;  %16412 = vst [vmem:[#allocation60_spill] sm:$0xff] %v13746_v2  ;;  %v2132_v44 = vshll.u32 %v10919_v46, 16  ;;  %v1614_v16 = vmax.f32 %v1238_v33, 0.0  ;;  %v2915_v14 = vand.u32 15, %v13714_v22 }
 0x1e4   : > { %16413 = vst [vmem:[#allocation61_spill] sm:$0xff] %v13749_v8  ;;  %v13756_v50 = vsel %vm13192_vm15, %v16414_v6, %v13699_v62  ;;  %1745 = vst.msk [vmem:[#allocation2 + $0x178] sm:$0xff] %vm1697_vm8, %v1616_v12  ;;  %v2123_v36 = vrot.slane %v2121_v3, 7  ;;  %v2124_v43 = vshll.u32 %v10918_v53, 16  ;;  %v3402_v10 = vld [vmem:[#allocation3 + $0x24] sm:$0xf]  ;;  %v4612_v27 = vrot.slane %v13728_v54, %v13102_v23 }
 0x1e5   : > { %v3851_v15 = vshrl.u32 %v13645_v11, 16  ;;  %v2134_v55 = vor.u32 %v2132_v44, %v2131_v61  ;;  %v2136_v47 = vrot.slane %v2131_v61, 4  ;;  %1743 = vst.msk [vmem:[#allocation2 + $0x168] sm:$0xff] %vm1697_vm8, %v1614_v16  ;;  %v1259_v46 = vadd.f32 %v13668_v1, %v11303_v13  ;;  %v11304_v3 = vpop.f32.mrb[50].mxu0  ;;  %v2144_v6 = vld [vmem:[#allocation3 + $0x30] sm:$0x1] }
 0x1e6   : > { %v13766_v33 = vcombine.low %v13743_v29, %v3402_v10  ;;  %v2126_v22 = vor.u32 %v2124_v43, %v2123_v36  ;;  %v2127_v12 = vrot.slane %v2123_v36, 4  ;;  %v1251_v53 = vadd.f32 %v13668_v1, %v1250_v49  ;;  %v1253_v16 = vpop.f32.mrb[51].mxu0  ;;  %v2150_v43 = vld [vmem:[#allocation2 + $0x150] ss:$2 sm:$0xff]  ;;  %v2154_v49 = vld [vmem:[#allocation2 + $0x151] ss:$2 sm:$0xff] }
 0x1e7   : > { %v4857_v11 = vmul.bf16 %v13407_v42, %v13743_v29  ;;  %v1619_v44 = vmax.f32 %v1259_v46, 0.0  ;;  %v1262_v61 = vadd.f32 %v13668_v1, %v11304_v3  ;;  %v3705_v48 = vmul.bf16 %v13425_v17, %v13743_v29  ;;  %v2148_v46 = vld [vmem:[#allocation2 + $0x140] ss:$2 sm:$0xff]  ;;  %v2152_v3 = vld [vmem:[#allocation2 + $0x141] ss:$2 sm:$0xff] }
 0x1e8   : > { %v3855_v13 = vshll.u32 %v13766_v33, 16  ;;  %v2141_v36 = vsel %vm13354_vm12, %v2126_v22, %v2140_v21  ;;  %v1617_v51 = vmax.f32 %v1251_v53, 0.0  ;;  %v1254_v59 = vadd.f32 %v13668_v1, %v1253_v16 }
 0x1e9   : > { %v2135_v42 = vsel %vm13341_vm11, %v2127_v12, %v2134_v55  ;;  %2142 = vst [vmem:[#allocation3 + $0x28] sm:$0xf] %v2141_v36  ;;  %1748 = vst.msk [vmem:[#allocation2 + $0x190] sm:$0xff] %vm1697_vm8, %v1619_v44  ;;  %v1620_v52 = vmax.f32 %v1262_v61, 0.0  ;;  %v3853_v63 = vor.u32 %v3851_v15, %v13662_v58  ;;  %v2145_v21 = vsel %vm13332_vm10, %v2136_v47, %v2144_v6  ;;  %v11307_v6 = vpop.f32.mrb[52].mxu0 }
 0x1ea   : > { %v13782_v29 = vrot.slane %v3855_v13, 1  ;;  %2143 = vst.msk [vmem:[#allocation3 + $0x2c] sm:$0xf] %vm1826_vm3, %v2135_v42  ;;  %v1618_v55 = vmax.f32 %v1254_v59, 0.0  ;;  %2146 = vst [vmem:[#allocation3 + $0x30] sm:$0x1] %v2145_v21  ;;  %v4858_v12 = vmul.bf16 %v13419_v41, %v3402_v10  ;;  %v3706_v61 = vmul.bf16 %v13429_v35, %v3402_v10 }
 0x1eb   : > { %v2158_v22 = vld [vmem:[#allocation2 + $0x170] ss:$2 sm:$0xff]  ;;  %v2162_v53 = vld [vmem:[#allocation2 + $0x171] ss:$2 sm:$0xff]  ;;  %1746 = vst.msk [vmem:[#allocation2 + $0x180] sm:$0xff] %vm1697_vm8, %v1617_v51  ;;  %v2164_v58 = vmax.f32 %v2150_v43, %v2154_v49  ;;  %1749 = vst.msk [vmem:[#allocation2 + $0x198] sm:$0xff] %vm1697_vm8, %v1620_v52  ;;  %v4619_v10 = vrot.slane %v13728_v54, %v13107_v25  ;;  %v1275_v43 = vadd.f32 %v13668_v1, %v11307_v6 }
 0x1ec   : > { %v2166_v15 = vmax.f32 %v2158_v22, %v2162_v53  ;;  %v3858_v42 = vsel %vm3822_vm2, %v3853_v63, %v13782_v29  ;;  %vm13794_vm13 = vcmp.ge.s32.totalorder %v2915_v14, 1  ;;  %v2156_v51 = vld [vmem:[#allocation2 + $0x160] ss:$2 sm:$0xff]  ;;  %v2160_v59 = vld [vmem:[#allocation2 + $0x161] ss:$2 sm:$0xff]  ;;  %1747 = vst.msk [vmem:[#allocation2 + $0x188] sm:$0xff] %vm1697_vm8, %v1618_v55  ;;  %v13800_v16 = vcombine.low %v4857_v11, %v4858_v12 }
 0x1ed   : > { %11390 = vmatmul.mubr.msk.bf16.gmra.mrb[132].mxu0 %vm1697_vm8, %v3858_v42  ;;  %v13804_v52 = vrot.slane %v4612_v27, 7  ;;  %v13806_v13 = vcombine.low %v3705_v48, %v3706_v61  ;;  %v2163_v63 = vmax.f32 %v2148_v46, %v2152_v3  ;;  %v2165_v36 = vmax.f32 %v2156_v51, %v2160_v59  ;;  %v1266_v49 = vpop.f32.mrb[53].mxu0 }
 0x1ee   : > { %v2168_v14 = vmax.f32 %v2164_v58, %v2166_v15  ;;  %v1267_v21 = vadd.f32 %v13668_v1, %v1266_v49  ;;  %v11308_v22 = vpop.f32.mrb[54].mxu0  ;;  %v10429_v11 = vsel %vm13794_vm13, 1.0, %v16395_v24  ;;  %v16204_v53 = vrot.slane %v13800_v16, 1 }
 0x1ef   : > { %16417 = vst [vmem:[#allocation62_spill] sm:$0xff] %v13806_v13  ;;  %v13815_v54 = vadd.s32 152, %v13069_v60  ;;  %v2167_v27 = vmax.f32 %v2163_v63, %v2165_v36  ;;  %v1623_v46 = vmax.f32 %v1275_v43, 0.0  ;;  %v1278_v3 = vadd.f32 %v13668_v1, %v11308_v22  ;;  %v1269_v55 = vpop.f32.mrb[55].mxu0 }
 0x1f0   : > { %v10921_v48 = vpack.c.bf16 %v2168_v14, %v2168_v14  ;;  %v1621_v12 = vmax.f32 %v1267_v21, 0.0  ;;  %v1270_v61 = vadd.f32 %v13668_v1, %v1269_v55  ;;  %v13819_v58 = vld [vmem:[#allocation3 + $0x28] sm:$0xf]  ;;  %v16418_v42 = vrot.slane %v13693_v9, 1 }
 0x1f1   : > { %v13821_v15 = vld [vmem:[#allocation3 + $0x2c] sm:$0xf]  ;;  %v13830_v51 = vrot.slane %v4619_v10, 7  ;;  %v10920_v6 = vpack.c.bf16 %v2167_v27, %v2167_v27  ;;  %1752 = vst.msk [vmem:[#allocation2 + $0x1b0] sm:$0xff] %vm1697_vm8, %v1623_v46  ;;  %v1624_v63 = vmax.f32 %v1278_v3, 0.0  ;;  %v4770_v14 = vrot.slane %v13804_v52, 4 }
 0x1f2   : > { %v13828_v47 = vsel %vm4970_vm6, %v16418_v42, %v16204_v53  ;;  %v2184_v59 = vshrl.u32 %v10921_v48, 16  ;;  %1750 = vst.msk [vmem:[#allocation2 + $0x1a0] sm:$0xff] %vm1697_vm8, %v1621_v12  ;;  %v1622_v36 = vmax.f32 %v1270_v61, 0.0  ;;  %v13837_v43 = vcombine.low %v13819_v58, %v13821_v15  ;;  %v2199_v46 = vld [vmem:[#allocation3 + $0x38] sm:$0x1]  ;;  %v11311_v3 = vpop.f32.mrb[56].mxu0 }
 0x1f3   : > { %16419 = vst [vmem:[#allocation63_spill] sm:$0xff] %v13828_v47  ;;  %v3859_v9 = vshrl.u32 %v13766_v33, 16  ;;  %v13841_v49 = vpack.c.bf16 %v16385_v28, %v10429_v11  ;;  %v2187_v21 = vshll.u32 %v10921_v48, 16  ;;  %v2176_v22 = vshrl.u32 %v10920_v6, 16  ;;  %1753 = vst.msk [vmem:[#allocation2 + $0x1b8] sm:$0xff] %vm1697_vm8, %v1624_v63  ;;  %v1282_v63 = vpop.f32.mrb[57].mxu0 }
 0x1f4   : > { %v2186_v10 = vrot.slane %v2184_v59, 7  ;;  %v2922_v27 = vand.u32 15, %v13815_v54  ;;  %1751 = vst.msk [vmem:[#allocation2 + $0x1a8] sm:$0xff] %vm1697_vm8, %v1622_v36  ;;  %v3863_v12 = vshll.u32 %v13837_v43, 16  ;;  %v13849_v33 = vadd.s32 160, %v13069_v60  ;;  %v11312_v53 = vpop.f32.mrb[58].mxu0 }
 0x1f5   : > { %v3861_v55 = vor.u32 %v3859_v9, %v13782_v29  ;;  %v4859_v11 = vmul.bf16 %v13442_v18, %v13819_v58  ;;  %v2178_v42 = vrot.slane %v2176_v22, 7  ;;  %v2179_v59 = vshll.u32 %v10920_v6, 16  ;;  %v2195_v6 = vld [vmem:[#allocation3 + $0x30] sm:$0xf]  ;;  %v2207_v41 = vld [vmem:[#allocation2 + $0x181] ss:$2 sm:$0xff] }
 0x1f6   : > { %v2189_v48 = vor.u32 %v2187_v21, %v2186_v10  ;;  %v2191_v61 = vrot.slane %v2186_v10, 4  ;;  %v1291_v54 = vadd.f32 %v13668_v1, %v11311_v3  ;;  %v1283_v36 = vadd.f32 %v13668_v1, %v1282_v63  ;;  %v1285_v21 = vpop.f32.mrb[59].mxu0  ;;  %v2205_v22 = vld [vmem:[#allocation2 + $0x190] ss:$2 sm:$0xff]  ;;  %v2209_v3 = vld [vmem:[#allocation2 + $0x191] ss:$2 sm:$0xff] }
 0x1f7   : > { %v13855_v44 = vrot.slane %v3863_v12, 1  ;;  %v4860_v29 = vmul.bf16 %v13447_v34, %v13821_v15  ;;  %v2181_v35 = vor.u32 %v2179_v59, %v2178_v42  ;;  %v2182_v17 = vrot.slane %v2178_v42, 4  ;;  %v2203_v34 = vld [vmem:[#allocation2 + $0x180] ss:$2 sm:$0xff] }
 0x1f8   : > { %v2200_v9 = vsel %vm13332_vm10, %v2191_v61, %v2199_v46  ;;  %v1294_v10 = vadd.f32 %v13668_v1, %v11312_v53  ;;  %v1627_v13 = vmax.f32 %v1291_v54, 0.0  ;;  %v1625_v63 = vmax.f32 %v1283_v36, 0.0 }
 0x1f9   : > { %2201 = vst [vmem:[#allocation3 + $0x38] sm:$0x1] %v2200_v9  ;;  %v1286_v12 = vadd.f32 %v13668_v1, %v1285_v21  ;;  %v3866_v18 = vsel %vm3822_vm2, %v3861_v55, %v13855_v44  ;;  %v2190_v53 = vsel %vm13341_vm11, %v2182_v17, %v2189_v48  ;;  %v2196_v46 = vsel %vm13354_vm12, %v2181_v35, %v2195_v6 }
 0x1fa   : > { %v1628_v47 = vmax.f32 %v1294_v10, 0.0  ;;  %11393 = vmatprep.mubr.msk.bf16.mxu0 %vm1697_vm8, %v3866_v18  ;;  %v16420_v61 = vrot.slane %v13699_v62, 4  ;;  %v2213_v59 = vld [vmem:[#allocation2 + $0x1b0] ss:$2 sm:$0xff]  ;;  %v2217_v55 = vld [vmem:[#allocation2 + $0x1b1] ss:$2 sm:$0xff]  ;;  %v13880_v17 = vcombine.low %v4859_v11, %v4860_v29  ;;  %v13885_v35 = vsel %vm13192_vm15, %v4770_v14, %v13830_v51 }
 0x1fb   : > { %1756 = vst.msk [vmem:[#allocation2 + $0x1d0] sm:$0xff] %vm1697_vm8, %v1627_v13  ;;  %1754 = vst.msk [vmem:[#allocation2 + $0x1c0] sm:$0xff] %vm1697_vm8, %v1625_v63  ;;  %v1626_v18 = vmax.f32 %v1286_v12, 0.0  ;;  %vm13887_vm14 = vcmp.le.s32.totalorder %v2922_v27, 14  ;;  %v2221_v48 = vmax.f32 %v2213_v59, %v2217_v55  ;;  %v2211_v13 = vld [vmem:[#allocation2 + $0x1a0] ss:$2 sm:$0xff]  ;;  %v2218_v29 = vmax.f32 %v2203_v34, %v2207_v41 }
 0x1fc   : > { %v13875_v42 = vsel %vm13192_vm15, %v16420_v61, %v13804_v52  ;;  %2197 = vst [vmem:[#allocation3 + $0x30] sm:$0xf] %v2196_v46  ;;  %2198 = vst.msk [vmem:[#allocation3 + $0x34] sm:$0xf] %vm1826_vm3, %v2190_v53  ;;  %v2219_v52 = vmax.f32 %v2205_v22, %v2209_v3  ;;  %v2215_v54 = vld [vmem:[#allocation2 + $0x1a1] ss:$2 sm:$0xff]  ;;  %v13897_v27 = vrot.slane %v13841_v49, %v13102_v23 }
 0x1fd   : > { %1757 = vst.msk [vmem:[#allocation2 + $0x1d8] sm:$0xff] %vm1697_vm8, %v1628_v47  ;;  %v2929_v36 = vand.u32 15, %v13849_v33  ;;  %v2220_v9 = vmax.f32 %v2211_v13, %v2215_v54  ;;  %1755 = vst.msk [vmem:[#allocation2 + $0x1c8] sm:$0xff] %vm1697_vm8, %v1626_v18  ;;  %v11315_v14 = vpop.f32.mrb[60].mxu0  ;;  %v16215_v10 = vrot.slane %v13880_v17, 1  ;;  %v2775_v47 = vadd.s32 176, %v13069_v60 }
 0x1fe   : > { %16423 = vst [vmem:[#allocation64_spill] sm:$0xff] %v13897_v27  ;;  %v2223_v21 = vmax.f32 %v2219_v52, %v2221_v48  ;;  %v1307_v6 = vadd.f32 %v13668_v1, %v11315_v14  ;;  %v1298_v22 = vpop.f32.mrb[61].mxu0  ;;  %v10445_v41 = vsel %vm13887_vm14, 1.0, %v16395_v24  ;;  %v13908_v63 = vrot.slane %v13841_v49, %v13107_v25 }
 0x1ff   : > { %v2222_v34 = vmax.f32 %v2218_v29, %v2220_v9  ;;  %v1299_v33 = vadd.f32 %v13668_v1, %v1298_v22  ;;  %v11316_v3 = vpop.f32.mrb[62].mxu0  ;;  %v16425_v12 = vrot.slane %v13800_v16, 1  ;;  %vm3189_vm0 = vcmp.ge.s32.totalorder %v2929_v36, 1 }
 0x200   : > { %16424 = vst [vmem:[#allocation65_spill] sm:$0xff] %v13908_v63  ;;  %v10923_v46 = vpack.c.bf16 %v2223_v21, %v2223_v21  ;;  %v1631_v61 = vmax.f32 %v1307_v6, 0.0  ;;  %v1310_v59 = vadd.f32 %v13668_v1, %v11316_v3  ;;  %v1301_v55 = vpop.f32.mrb[63].mxu0  ;;  %v13920_v49 = vpack.c.bf16 %v10445_v41, %v16385_v28  ;;  %v2254_v41 = vld [vmem:[#allocation3 + $0x40] sm:$0x1] }
 0x201   : > { %v13915_v53 = vsel %vm4970_vm6, %v16425_v12, %v16215_v10  ;;  %v10922_v18 = vpack.c.bf16 %v2222_v34, %v2222_v34  ;;  %v1629_v62 = vmax.f32 %v1299_v33, 0.0  ;;  %v1302_v52 = vadd.f32 %v13668_v1, %v1301_v55  ;;  %v11319_v12 = vpop.f32.mrb[64].mxu0 }
 0x202   : > { %v2239_v48 = vshrl.u32 %v10923_v46, 16  ;;  %1760 = vst.msk [vmem:[#allocation2 + $0x1f0] sm:$0xff] %vm1697_vm8, %v1631_v61  ;;  %v1632_v16 = vmax.f32 %v1310_v59, 0.0  ;;  %v2943_v54 = vand.u32 15, %v2775_v47  ;;  %v13924_v29 = vadd.s32 168, %v13069_v60 }
 0x203   : > { %v3405_v13 = vld [vmem:[#allocation3 + $0x30] sm:$0xf]  ;;  %v2231_v9 = vshrl.u32 %v10922_v18, 16  ;;  %1758 = vst.msk [vmem:[#allocation2 + $0x1e0] sm:$0xff] %vm1697_vm8, %v1629_v62  ;;  %v3867_v36 = vshrl.u32 %v13837_v43, 16  ;;  %v13929_v14 = vsel %vm3189_vm0, 1.0, %v16395_v24  ;;  %v3707_v21 = vmul.bf16 %v13458_v7, %v13819_v58 }
 0x204   : > { %v2241_v6 = vrot.slane %v2239_v48, 7  ;;  %v2242_v22 = vshll.u32 %v10923_v46, 16  ;;  %1761 = vst.msk [vmem:[#allocation2 + $0x1f8] sm:$0xff] %vm1697_vm8, %v1632_v16  ;;  %v1630_v47 = vmax.f32 %v1302_v52, 0.0  ;;  %v3709_v34 = vmul.bf16 %v13545_v56, %v3405_v13  ;;  %v3406_v61 = vld [vmem:[#allocation3 + $0x34] sm:$0xf] }
 0x205   : > { %v2233_v33 = vrot.slane %v2231_v9, 7  ;;  %v2234_v3 = vshll.u32 %v10922_v18, 16  ;;  %v4861_v43 = vmul.bf16 %v13556_v19, %v3405_v13  ;;  %v3708_v59 = vmul.bf16 %v13517_v20, %v13821_v15  ;;  %v1314_v46 = vpop.f32.mrb[65].mxu0  ;;  %v2258_v20 = vld [vmem:[#allocation2 + $0x1c0] ss:$2 sm:$0xff] }
 0x206   : > { %v2244_v55 = vor.u32 %v2242_v22, %v2241_v6  ;;  %v2246_v62 = vrot.slane %v2241_v6, 4  ;;  %1759 = vst.msk [vmem:[#allocation2 + $0x1e8] sm:$0xff] %vm1697_vm8, %v1630_v47  ;;  %v1323_v58 = vadd.f32 %v13668_v1, %v11319_v12  ;;  %v3710_v52 = vmul.bf16 %v13551_v40, %v3406_v61  ;;  %v11320_v15 = vpop.f32.mrb[66].mxu0  ;;  %v2250_v22 = vld [vmem:[#allocation3 + $0x38] sm:$0xf] }
 0x207   : > { %vm13941_vm1 = vcmp.ge.s32.totalorder %v2943_v54, 1  ;;  %v2236_v18 = vor.u32 %v2234_v3, %v2233_v33  ;;  %v2237_v16 = vrot.slane %v2233_v33, 4  ;;  %v1315_v9 = vadd.f32 %v13668_v1, %v1314_v46  ;;  %v1317_v40 = vpop.f32.mrb[67].mxu0  ;;  %v2260_v3 = vld [vmem:[#allocation2 + $0x1d0] ss:$2 sm:$0xff] }
 0x208   : > { %v13946_v11 = vcombine.low %v3405_v13, %v3406_v61  ;;  %v2255_v6 = vsel %vm13332_vm10, %v2246_v62, %v2254_v41  ;;  %v1635_v47 = vmax.f32 %v1323_v58, 0.0  ;;  %v10493_v12 = vcombine.low %v3709_v34, %v3710_v52  ;;  %v2264_v33 = vld [vmem:[#allocation2 + $0x1d1] ss:$2 sm:$0xff]  ;;  %v2262_v41 = vld [vmem:[#allocation2 + $0x1c1] ss:$2 sm:$0xff] }
 0x209   : > { %v4862_v10 = vmul.bf16 %v13594_v37, %v3406_v61  ;;  %2256 = vst [vmem:[#allocation3 + $0x40] sm:$0x1] %v2255_v6  ;;  %v2251_v54 = vsel %vm13354_vm12, %v2236_v18, %v2250_v22  ;;  %v1633_v56 = vmax.f32 %v1315_v9, 0.0  ;;  %v1326_v13 = vadd.f32 %v13668_v1, %v11320_v15 }
 0x20a   : > { %v1318_v46 = vadd.f32 %v13668_v1, %v1317_v40  ;;  %2252 = vst [vmem:[#allocation3 + $0x38] sm:$0xf] %v2251_v54  ;;  %1764 = vst.msk [vmem:[#allocation2 + $0x210] sm:$0xff] %vm1697_vm8, %v1635_v47  ;;  %11433 = vmatprep.mubr.msk.bf16.mxu1 %vm1697_vm8, %v10493_v12  ;;  %v3871_v34 = vshll.u32 %v13946_v11, 16  ;;  %v2245_v61 = vsel %vm13341_vm11, %v2237_v16, %v2244_v55  ;;  %v2936_v58 = vand.u32 15, %v13924_v29  ;;  %v13970_v16 = vld [vmem:[#allocation11 + $0x20] sm:$0xff]  }
 0x20b   : > { %v4626_v62 = vrot.slane %v13920_v49, %v13102_v23  ;;  %v2268_v52 = vld [vmem:[#allocation2 + $0x1f0] ss:$2 sm:$0xff]  ;;  %v2272_v18 = vld [vmem:[#allocation2 + $0x1f1] ss:$2 sm:$0xff]  ;;  %1762 = vst.msk [vmem:[#allocation2 + $0x200] sm:$0xff] %vm1697_vm8, %v1633_v56  ;;  %v1636_v40 = vmax.f32 %v1326_v13, 0.0  ;;  %v3869_v15 = vor.u32 %v3867_v36, %v13855_v44  ;;  %v13966_v6 = vcombine.low %v4861_v43, %v4862_v10  ;;  %11453 = vmatprep.subr.bf16.mxu1 %v13970_v16 }
 0x20c   : > { %v1634_v9 = vmax.f32 %v1318_v46, 0.0  ;;  %2253 = vst.msk [vmem:[#allocation3 + $0x3c] sm:$0xf] %vm1826_vm3, %v2245_v61  ;;  %v2274_v22 = vmax.f32 %v2260_v3, %v2264_v33  ;;  %v2276_v47 = vmax.f32 %v2268_v52, %v2272_v18  ;;  %v13968_v55 = vrot.slane %v3871_v34, 1  ;;  %v11323_v56 = vpop.f32.mrb[68].mxu0 }
 0x20d   : > { %v13972_v12 = vcombine.low %v3707_v21, %v3708_v59  ;;  %v2273_v29 = vmax.f32 %v2258_v20, %v2262_v41  ;;  %v2266_v54 = vld [vmem:[#allocation2 + $0x1e0] ss:$2 sm:$0xff]  ;;  %v2270_v7 = vld [vmem:[#allocation2 + $0x1e1] ss:$2 sm:$0xff]  ;;  %1765 = vst.msk [vmem:[#allocation2 + $0x218] sm:$0xff] %vm1697_vm8, %v1636_v40  ;;  %v13978_v44 = vpack.c.bf16 %v16385_v28, %v13929_v14  ;;  %v16224_v10 = vrot.slane %v13966_v6, 1 }
 0x20e   : > { %1763 = vst.msk [vmem:[#allocation2 + $0x208] sm:$0xff] %vm1697_vm8, %v1634_v9  ;;  %v2278_v43 = vmax.f32 %v2274_v22, %v2276_v47  ;;  %v2275_v21 = vmax.f32 %v2266_v54, %v2270_v7  ;;  %v3874_v20 = vsel %vm3822_vm2, %v3869_v15, %v13968_v55  ;;  %v1339_v59 = vadd.f32 %v13668_v1, %v11323_v56  ;;  %v1330_v3 = vpop.f32.mrb[69].mxu0 }
 0x20f   : > { %16428 = vst [vmem:[#allocation66_spill] sm:$0xff] %v13972_v12  ;;  %11394 = vmatmul.mubr.msk.bf16.gmra.mrb[136].mxu0 %vm1697_vm8, %v3874_v20  ;;  %v1331_v14 = vadd.f32 %v13668_v1, %v1330_v3  ;;  %v11324_v33 = vpop.f32.mrb[70].mxu0  ;;  %v16429_v13 = vrot.slane %v13880_v17, 1  ;;  %v13996_v7 = vrot.slane %v4626_v62, 7  ;;  %vm13998_vm9 = vcmp.le.s32.totalorder %v2936_v58, 14 }
 0x210   : > { %v10925_v34 = vpack.c.bf16 %v2278_v43, %v2278_v43  ;;  %v2277_v61 = vmax.f32 %v2273_v29, %v2275_v21  ;;  %v1639_v52 = vmax.f32 %v1339_v59, 0.0  ;;  %v1342_v18 = vadd.f32 %v13668_v1, %v11324_v33  ;;  %v1333_v40 = vpop.f32.mrb[71].mxu0 }
 0x211   : > { %v13994_v46 = vsel %vm4970_vm6, %v16429_v13, %v16224_v10  ;;  %v1637_v9 = vmax.f32 %v1331_v14, 0.0  ;;  %v1334_v15 = vadd.f32 %v13668_v1, %v1333_v40  ;;  %v14004_v22 = vld [vmem:[#allocation3 + $0x38] sm:$0xf]  ;;  %v10431_v17 = vsel %vm13941_vm1, 1.0, %v16395_v24  ;;  %v2309_v13 = vld [vmem:[#allocation3 + $0x48] sm:$0x1] }
 0x212   : > { %v14010_v62 = vadd.s32 192, %v13069_v60  ;;  %v2294_v58 = vshrl.u32 %v10925_v34, 16  ;;  %v10924_v47 = vpack.c.bf16 %v2277_v61, %v2277_v61  ;;  %1768 = vst.msk [vmem:[#allocation2 + $0x230] sm:$0xff] %vm1697_vm8, %v1639_v52  ;;  %v1640_v29 = vmax.f32 %v1342_v18, 0.0 }
 0x213   : > { %v14013_v54 = vld [vmem:[#allocation3 + $0x3c] sm:$0xf]  ;;  %v10446_v56 = vsel %vm13998_vm9, 1.0, %v16395_v24  ;;  %1766 = vst.msk [vmem:[#allocation2 + $0x220] sm:$0xff] %vm1697_vm8, %v1637_v9  ;;  %v1638_v43 = vmax.f32 %v1334_v15, 0.0  ;;  %v3711_v48 = vmul.bf16 %v13688_v5, %v14004_v22  ;;  %v2297_v3 = vshll.u32 %v10925_v34, 16 }
 0x214   : > { %v3712_v21 = vmul.bf16 %v13733_v31, %v14013_v54  ;;  %v14025_v20 = vcombine.low %v14004_v22, %v14013_v54  ;;  %v2296_v59 = vrot.slane %v2294_v58, 7  ;;  %v2286_v14 = vshrl.u32 %v10924_v47, 16  ;;  %1769 = vst.msk [vmem:[#allocation2 + $0x238] sm:$0xff] %vm1697_vm8, %v1640_v29  ;;  %v11327_v58 = vpop.f32.mrb[72].mxu0 }
 0x215   : > { %v14029_v33 = vpack.c.bf16 %v16385_v28, %v10431_v17  ;;  %1767 = vst.msk [vmem:[#allocation2 + $0x228] sm:$0xff] %vm1697_vm8, %v1638_v43  ;;  %v3875_v61 = vshrl.u32 %v13946_v11, 16  ;;  %v14035_v18 = vpack.c.bf16 %v10446_v56, %v16385_v28  ;;  %v2289_v15 = vshll.u32 %v10924_v47, 16  ;;  %v1346_v17 = vpop.f32.mrb[73].mxu0  ;;  %v2305_v47 = vld [vmem:[#allocation3 + $0x40] sm:$0xf] }
 0x216   : > { %v10494_v41 = vcombine.low %v3711_v48, %v3712_v21  ;;  %v2299_v40 = vor.u32 %v2297_v3, %v2296_v59  ;;  %v2301_v9 = vrot.slane %v2296_v59, 4  ;;  %v2288_v34 = vrot.slane %v2286_v14, 7  ;;  %v2315_v3 = vld [vmem:[#allocation2 + $0x210] ss:$2 sm:$0xff] }
 0x217   : > { %v1355_v29 = vadd.f32 %v13668_v1, %v11327_v58  ;;  %v3879_v43 = vshll.u32 %v14025_v20, 16  ;;  %v4863_v11 = vmul.bf16 %v13740_v32, %v14004_v22  ;;  %v4864_v48 = vmul.bf16 %v13756_v50, %v14013_v54  ;;  %v11328_v58 = vpop.f32.mrb[74].mxu0 }
 0x218   : > { %11434 = vmatmul.mubr.msk.bf16.vlgmr.msra.gmra.mrb[0].mxu1 %vm1697_vm8, %v10494_v41  ;;  %v2310_v56 = vsel %vm13332_vm10, %v2301_v9, %v2309_v13  ;;  %v2291_v21 = vor.u32 %v2289_v15, %v2288_v34  ;;  %v2292_v59 = vrot.slane %v2288_v34, 4  ;;  %v1347_v14 = vadd.f32 %v13668_v1, %v1346_v17  ;;  %v2319_v41 = vld [vmem:[#allocation2 + $0x211] ss:$2 sm:$0xff]  ;;  %v1349_v52 = vpop.f32.mrb[75].mxu0  ;;  %v2313_v9 = vld [vmem:[#allocation2 + $0x200] ss:$2 sm:$0xff] }
 0x219   : > { %11454 = vmatpush3.bf16.msra.mxu1 %v13970_v16  ;;  %2311 = vst [vmem:[#allocation3 + $0x48] sm:$0x1] %v2310_v56  ;;  %v1643_v10 = vmax.f32 %v1355_v29, 0.0  ;;  %v1358_v22 = vadd.f32 %v13668_v1, %v11328_v58  ;;  %v3877_v54 = vor.u32 %v3875_v61, %v13968_v55  ;;  %v14050_v36 = vrot.slane %v3879_v43, 1  ;;  %v2317_v34 = vld [vmem:[#allocation2 + $0x201] ss:$2 sm:$0xff] }
 0x21a   : > { %v2306_v13 = vsel %vm13354_vm12, %v2291_v21, %v2305_v47  ;;  %v1641_v15 = vmax.f32 %v1347_v14, 0.0  ;;  %v1350_v17 = vadd.f32 %v13668_v1, %v1349_v52  ;;  %v2300_v16 = vsel %vm13341_vm11, %v2292_v59, %v2299_v40  ;;  %v12328_v56 = vld [vmem:[#allocation11 + $0x28] sm:$0xff]   ;;  %v12330_v40 = vld [vmem:[#allocation11 + $0x30] sm:$0xff]  }
 0x21b   : > { %2307 = vst [vmem:[#allocation3 + $0x40] sm:$0xf] %v2306_v13  ;;  %v2323_v29 = vld [vmem:[#allocation2 + $0x230] ss:$2 sm:$0xff]  ;;  %v2327_v58 = vld [vmem:[#allocation2 + $0x231] ss:$2 sm:$0xff]  ;;  %v3882_v61 = vsel %vm3822_vm2, %v3877_v54, %v14050_v36  ;;  %v14063_v43 = vrot.slane %v13978_v44, %v13102_v23  ;;  %v14067_v52 = vrot.slane %v13978_v44, %v13107_v25  ;;  %v2329_v21 = vmax.f32 %v2315_v3, %v2319_v41 }
 0x21c   : > { %1772 = vst.msk [vmem:[#allocation2 + $0x250] sm:$0xff] %vm1697_vm8, %v1643_v10  ;;  %v1644_v55 = vmax.f32 %v1358_v22, 0.0  ;;  %v2331_v59 = vmax.f32 %v2323_v29, %v2327_v58  ;;  %v2321_v47 = vld [vmem:[#allocation2 + $0x220] ss:$2 sm:$0xff]  ;;  %v2325_v14 = vld [vmem:[#allocation2 + $0x221] ss:$2 sm:$0xff]  ;;  %11397 = vmatprep.mubr.msk.bf16.mxu0 %vm1697_vm8, %v3882_v61  ;;  %11455 = vmatprep.subr.bf16.mxu1 %v12328_v56  ;;  %v14071_v22 = vcombine.low %v4863_v11, %v4864_v48 }
 0x21d   : > { %2308 = vst.msk [vmem:[#allocation3 + $0x44] sm:$0xf] %vm1826_vm3, %v2300_v16  ;;  %16432 = vst [vmem:[#allocation67_spill] sm:$0xff] %v14063_v43  ;;  %v1642_v10 = vmax.f32 %v1350_v17, 0.0  ;;  %v2328_v54 = vmax.f32 %v2313_v9, %v2317_v34  ;;  %v2330_v13 = vmax.f32 %v2321_v47, %v2325_v14  ;;  %v11331_v16 = vpop.f32.mrb[76].mxu0  ;;  %v14076_v44 = vrot.slane %v14029_v33, %v13102_v23 }
 0x21e   : > { %16433 = vst [vmem:[#allocation68_spill] sm:$0xff] %v14067_v52  ;;  %1770 = vst.msk [vmem:[#allocation2 + $0x240] sm:$0xff] %vm1697_vm8, %v1641_v15  ;;  %11456 = vmatpush3.bf16.msra.mxu1 %v12328_v56  ;;  %v16435_v3 = vrot.slane %v13920_v49, %v13107_v25  ;;  %v2333_v15 = vmax.f32 %v2329_v21, %v2331_v59  ;;  %v1371_v11 = vadd.f32 %v13668_v1, %v11331_v16  ;;  %v1362_v48 = vpop.f32.mrb[77].mxu0 }
 0x21f   : > { %1773 = vst.msk [vmem:[#allocation2 + $0x258] sm:$0xff] %vm1697_vm8, %v1644_v55  ;;  %16434 = vst [vmem:[#allocation69_spill] sm:$0xff] %v14076_v44  ;;  %11489 = vmatprep.subr.bf16.mxu1 %v12330_v40  ;;  %v16225_v9 = vrot.slane %v14071_v22, 1  ;;  %v4640_v34 = vrot.slane %v14035_v18, %v13102_v23  ;;  %v2332_v17 = vmax.f32 %v2328_v54, %v2330_v13  ;;  %v11332_v29 = vpop.f32.mrb[78].mxu0  ;;  %v16436_v49 = vand.u32 15, %v14010_v62 }
 0x220   : > { %v14081_v41 = vrot.slane %v16435_v3, 7  ;;  %1771 = vst.msk [vmem:[#allocation2 + $0x248] sm:$0xff] %vm1697_vm8, %v1642_v10  ;;  %v1363_v56 = vadd.f32 %v13668_v1, %v1362_v48  ;;  %v14092_v58 = vadd.s32 184, %v13069_v60  ;;  %v10927_v55 = vpack.c.bf16 %v2333_v15, %v2333_v15  ;;  %v1365_v40 = vpop.f32.mrb[79].mxu0  ;;  %v2360_v12 = vld [vmem:[#allocation3 + $0x48] sm:$0xf] }
 0x221   : > { %vm3193_vm4 = vcmp.ge.s32.totalorder %v16436_v49, 1  ;;  %v1647_v61 = vmax.f32 %v1371_v11, 0.0  ;;  %v1374_v21 = vadd.f32 %v13668_v1, %v11332_v29  ;;  %v16437_v59 = vrot.slane %v13966_v6, 1 }
 0x222   : > { %v10926_v14 = vpack.c.bf16 %v2332_v17, %v2332_v17  ;;  %v1645_v10 = vmax.f32 %v1363_v56, 0.0  ;;  %v1366_v62 = vadd.f32 %v13668_v1, %v1365_v40  ;;  %v2349_v13 = vshrl.u32 %v10927_v55, 16  ;;  %v3409_v3 = vld [vmem:[#allocation3 + $0x40] sm:$0xf] }
 0x223   : > { %v14100_v47 = vsel %vm4970_vm6, %v16437_v59, %v16225_v9  ;;  %1776 = vst.msk [vmem:[#allocation2 + $0x270] sm:$0xff] %vm1697_vm8, %v1647_v61  ;;  %v1648_v16 = vmax.f32 %v1374_v21, 0.0  ;;  %v14106_v15 = vsel %vm3193_vm4, 1.0, %v16395_v24  ;;  %v14108_v11 = vrot.slane %v4640_v34, 7  ;;  %v2364_v59 = vld [vmem:[#allocation3 + $0x50] sm:$0x1] }
 0x224   : > { %v2341_v6 = vshrl.u32 %v10926_v14, 16  ;;  %1774 = vst.msk [vmem:[#allocation2 + $0x260] sm:$0xff] %vm1697_vm8, %v1645_v10  ;;  %v1646_v48 = vmax.f32 %v1366_v62, 0.0  ;;  %v3410_v17 = vld [vmem:[#allocation3 + $0x44] sm:$0xf]  ;;  %v3713_v56 = vmul.bf16 %v13746_v2, %v3409_v3  ;;  %v2950_v29 = vand.u32 15, %v14092_v58 }
 0x225   : > { %v2351_v49 = vrot.slane %v2349_v13, 7  ;;  %v2352_v40 = vshll.u32 %v10927_v55, 16  ;;  %1777 = vst.msk [vmem:[#allocation2 + $0x278] sm:$0xff] %vm1697_vm8, %v1648_v16  ;;  %v3714_v61 = vmul.bf16 %v13749_v8, %v3410_v17  ;;  %v14115_v21 = vcombine.low %v3409_v3, %v3410_v17  ;;  %v11335_v10 = vpop.f32.mrb[80].mxu0 }
 0x226   : > { %v2343_v34 = vrot.slane %v2341_v6, 7  ;;  %v2344_v9 = vshll.u32 %v10926_v14, 16  ;;  %1775 = vst.msk [vmem:[#allocation2 + $0x268] sm:$0xff] %vm1697_vm8, %v1646_v48  ;;  %v3883_v62 = vshrl.u32 %v14025_v20, 16  ;;  %v4865_v54 = vmul.bf16 %v13875_v42, %v3409_v3  ;;  %v1378_v13 = vpop.f32.mrb[81].mxu0 }
 0x227   : > { %v2354_v2 = vor.u32 %v2352_v40, %v2351_v49  ;;  %v2356_v58 = vrot.slane %v2351_v49, 4  ;;  %v1387_v55 = vadd.f32 %v13668_v1, %v11335_v10  ;;  %v4866_v16 = vmul.bf16 %v13885_v35, %v3410_v17  ;;  %v11336_v14 = vpop.f32.mrb[82].mxu0 }
 0x228   : > { %v2346_v8 = vor.u32 %v2344_v9, %v2343_v34  ;;  %v2347_v31 = vrot.slane %v2343_v34, 4  ;;  %v1379_v5 = vadd.f32 %v13668_v1, %v1378_v13  ;;  %v10495_v6 = vcombine.low %v3713_v56, %v3714_v61  ;;  %v1381_v40 = vpop.f32.mrb[83].mxu0  ;;  %v2370_v9 = vld [vmem:[#allocation2 + $0x250] ss:$2 sm:$0xff]  ;;  %v2374_v34 = vld [vmem:[#allocation2 + $0x251] ss:$2 sm:$0xff] }
 0x229   : > { %v2365_v48 = vsel %vm13332_vm10, %v2356_v58, %v2364_v59  ;;  %v1651_v20 = vmax.f32 %v1387_v55, 0.0  ;;  %v1390_v3 = vadd.f32 %v13668_v1, %v11336_v14  ;;  %v3887_v49 = vshll.u32 %v14115_v21, 16  ;;  %v2368_v59 = vld [vmem:[#allocation2 + $0x240] ss:$2 sm:$0xff]  ;;  %v2372_v58 = vld [vmem:[#allocation2 + $0x241] ss:$2 sm:$0xff] }
 0x22a   : > { %2366 = vst [vmem:[#allocation3 + $0x50] sm:$0x1] %v2365_v48  ;;  %v2361_v17 = vsel %vm13354_vm12, %v2346_v8, %v2360_v12  ;;  %v1649_v10 = vmax.f32 %v1379_v5, 0.0  ;;  %11437 = vmatprep.mubr.msk.bf16.mxu1 %vm1697_vm8, %v10495_v6  ;;  %v1382_v56 = vadd.f32 %v13668_v1, %v1381_v40  ;;  %v2355_v61 = vsel %vm13341_vm11, %v2347_v31, %v2354_v2 }
 0x22b   : > { %2362 = vst [vmem:[#allocation3 + $0x48] sm:$0xf] %v2361_v17  ;;  %1780 = vst.msk [vmem:[#allocation2 + $0x290] sm:$0xff] %vm1697_vm8, %v1651_v20  ;;  %v1652_v55 = vmax.f32 %v1390_v3, 0.0  ;;  %v3885_v13 = vor.u32 %v3883_v62, %v14050_v36  ;;  %v14135_v14 = vrot.slane %v3887_v49, 1  ;;  %v14138_v5 = vcombine.low %v4865_v54, %v4866_v16 }
 0x22c   : > { %2363 = vst.msk [vmem:[#allocation3 + $0x4c] sm:$0xf] %vm1826_vm3, %v2355_v61  ;;  %v2378_v8 = vld [vmem:[#allocation2 + $0x270] ss:$2 sm:$0xff]  ;;  %v2382_v12 = vld [vmem:[#allocation2 + $0x271] ss:$2 sm:$0xff]  ;;  %v2384_v16 = vmax.f32 %v2370_v9, %v2374_v34  ;;  %v4647_v49 = vrot.slane %v14035_v18, %v13107_v25  ;;  %v14173_v61 = vpack.c.bf16 %v16385_v28, %v14106_v15 }
 0x22d   : > { %1778 = vst.msk [vmem:[#allocation2 + $0x280] sm:$0xff] %vm1697_vm8, %v1649_v10  ;;  %v1650_v1 = vmax.f32 %v1382_v56, 0.0  ;;  %v16438_v31 = vrot.slane %v13830_v51, 4  ;;  %v16439_v36 = vrot.slane %v13996_v7, 4  ;;  %vm14155_vm13 = vcmp.le.s32.totalorder %v2950_v29, 14  ;;  %1781 = vst.msk [vmem:[#allocation2 + $0x298] sm:$0xff] %vm1697_vm8, %v1652_v55 }
 0x22e   : > { %v2386_v6 = vmax.f32 %v2378_v8, %v2382_v12  ;;  %v2376_v48 = vld [vmem:[#allocation2 + $0x260] ss:$2 sm:$0xff]  ;;  %v2380_v20 = vld [vmem:[#allocation2 + $0x261] ss:$2 sm:$0xff]  ;;  %v3890_v51 = vsel %vm3822_vm2, %v3885_v13, %v14135_v14  ;;  %v16234_v3 = vrot.slane %v14138_v5, 1  ;;  %v11339_v29 = vpop.f32.mrb[84].mxu0 }
 0x22f   : > { %v14146_v2 = vsel %vm13192_vm15, %v16438_v31, %v13996_v7  ;;  %v14153_v62 = vsel %vm13192_vm15, %v16439_v36, %v14081_v41  ;;  %v2383_v7 = vmax.f32 %v2368_v59, %v2372_v58  ;;  %v2385_v40 = vmax.f32 %v2376_v48, %v2380_v20  ;;  %1779 = vst.msk [vmem:[#allocation2 + $0x288] sm:$0xff] %vm1697_vm8, %v1650_v1  ;;  %v14168_v34 = vld [vmem:[#allocation9] ss:$0 sm:$0xff]  ;;  %v1394_v56 = vpop.f32.mrb[85].mxu0 }
 0x230   : > { %11398 = vmatmul.mubr.msk.bf16.gmra.mrb[140].mxu0 %vm1697_vm8, %v3890_v51  ;;  %v2388_v9 = vmax.f32 %v2384_v16, %v2386_v6  ;;  %v1403_v10 = vadd.f32 %v14168_v34, %v11339_v29  ;;  %v16442_v59 = vrot.slane %v14071_v22, 1  ;;  %v1395_v55 = vadd.f32 %v14168_v34, %v1394_v56  ;;  %v11340_v13 = vpop.f32.mrb[86].mxu0 }
 0x231   : > { %v2387_v18 = vmax.f32 %v2383_v7, %v2385_v40  ;;  %v10447_v12 = vsel %vm14155_vm13, 1.0, %v16395_v24  ;;  %v1406_v31 = vadd.f32 %v14168_v34, %v11340_v13  ;;  %v1397_v36 = vpop.f32.mrb[87].mxu0  ;;  %v14189_v22 = vadd.s32 200, %v13069_v60 }
 0x232   : > { %v14180_v58 = vsel %vm4970_vm6, %v16442_v59, %v16234_v3  ;;  %v10929_v1 = vpack.c.bf16 %v2388_v9, %v2388_v9  ;;  %v1655_v15 = vmax.f32 %v1403_v10, 0.0  ;;  %v1653_v6 = vmax.f32 %v1395_v55, 0.0  ;;  %v14192_v20 = vld [vmem:[#allocation3 + $0x48] sm:$0xf] }
 0x233   : > { %16443 = vst [vmem:[#allocation70_spill] sm:$0xff] %v14180_v58  ;;  %v10928_v16 = vpack.c.bf16 %v2387_v18, %v2387_v18  ;;  %v1398_v48 = vadd.f32 %v14168_v34, %v1397_v36  ;;  %v14194_v51 = vld [vmem:[#allocation3 + $0x4c] sm:$0xf]  ;;  %v14196_v7 = vrot.slane %v4647_v49, 7  ;;  %v1656_v40 = vmax.f32 %v1406_v31, 0.0 }
 0x234   : > { %v2404_v54 = vshrl.u32 %v10929_v1, 16  ;;  %1784 = vst.msk [vmem:[#allocation2 + $0x2b0] sm:$0xff] %vm1697_vm8, %v1655_v15  ;;  %v3715_v29 = vmul.bf16 %v13897_v27, %v14192_v20  ;;  %v14202_v9 = vpack.c.bf16 %v10447_v12, %v16385_v28  ;;  %1782 = vst.msk [vmem:[#allocation2 + $0x2a0] sm:$0xff] %vm1697_vm8, %v1653_v6  ;;  %v3716_v56 = vmul.bf16 %v13908_v63, %v14194_v51  ;;  %v2419_v15 = vld [vmem:[#allocation3 + $0x58] sm:$0x1]  ;;  %v11343_v6 = vpop.f32.mrb[88].mxu0 }
 0x235   : > { %v2396_v10 = vshrl.u32 %v10928_v16, 16  ;;  %v14209_v49 = vcombine.low %v14192_v20, %v14194_v51  ;;  %v3891_v59 = vshrl.u32 %v14115_v21, 16  ;;  %v2407_v55 = vshll.u32 %v10929_v1, 16  ;;  %1785 = vst.msk [vmem:[#allocation2 + $0x2b8] sm:$0xff] %vm1697_vm8, %v1656_v40 }
 0x236   : > { %v2406_v18 = vrot.slane %v2404_v54, 7  ;;  %v1654_v13 = vmax.f32 %v1398_v48, 0.0  ;;  %v2964_v12 = vand.u32 15, %v14189_v22  ;;  %v2399_v36 = vshll.u32 %v10928_v16, 16  ;;  %v1410_v54 = vpop.f32.mrb[89].mxu0 }
 0x237   : > { %v2398_v31 = vrot.slane %v2396_v10, 7  ;;  %v10496_v3 = vcombine.low %v3715_v29, %v3716_v56  ;;  %v3895_v8 = vshll.u32 %v14209_v49, 16  ;;  %v1419_v21 = vadd.f32 %v14168_v34, %v11343_v6  ;;  %v11344_v16 = vpop.f32.mrb[90].mxu0  ;;  %v2415_v56 = vld [vmem:[#allocation3 + $0x50] sm:$0xf] }
 0x238   : > { %v2409_v17 = vor.u32 %v2407_v55, %v2406_v18  ;;  %v2411_v63 = vrot.slane %v2406_v18, 4  ;;  %1783 = vst.msk [vmem:[#allocation2 + $0x2a8] sm:$0xff] %vm1697_vm8, %v1654_v13  ;;  %v3893_v1 = vor.u32 %v3891_v59, %v14135_v14  ;;  %v1411_v22 = vadd.f32 %v14168_v34, %v1410_v54  ;;  %v1413_v13 = vpop.f32.mrb[91].mxu0  ;;  %v2427_v6 = vld [vmem:[#allocation2 + $0x281] ss:$2 sm:$0xff] }
 0x239   : > { %v2401_v40 = vor.u32 %v2399_v36, %v2398_v31  ;;  %v2402_v48 = vrot.slane %v2398_v31, 4  ;;  %11438 = vmatmul.mubr.msk.bf16.gmra.mrb[4].mxu1 %vm1697_vm8, %v10496_v3  ;;  %v14220_v10 = vrot.slane %v3895_v8, 1  ;;  %v1659_v18 = vmax.f32 %v1419_v21, 0.0  ;;  %v2425_v31 = vld [vmem:[#allocation2 + $0x290] ss:$2 sm:$0xff] }
 0x23a   : > { %v2420_v29 = vsel %vm13332_vm10, %v2411_v63, %v2419_v15  ;;  %v1422_v55 = vadd.f32 %v14168_v34, %v11344_v16  ;;  %v4867_v14 = vmul.bf16 %v14146_v2, %v14192_v20  ;;  %v2429_v3 = vld [vmem:[#allocation2 + $0x291] ss:$2 sm:$0xff]  ;;  %v1657_v36 = vmax.f32 %v1411_v22, 0.0  ;;  %v2423_v15 = vld [vmem:[#allocation2 + $0x280] ss:$2 sm:$0xff] }
 0x23b   : > { %2421 = vst [vmem:[#allocation3 + $0x58] sm:$0x1] %v2420_v29  ;;  %v2416_v59 = vsel %vm13354_vm12, %v2401_v40, %v2415_v56  ;;  %v1414_v8 = vadd.f32 %v14168_v34, %v1413_v13  ;;  %v3898_v63 = vsel %vm3822_vm2, %v3893_v1, %v14220_v10  ;;  %1788 = vst.msk [vmem:[#allocation2 + $0x2d0] sm:$0xff] %vm1697_vm8, %v1659_v18  ;;  %v14256_v56 = vadd.s32 208, %v13069_v60 }
 0x23c   : > { %2417 = vst [vmem:[#allocation3 + $0x50] sm:$0xf] %v2416_v59  ;;  %v1660_v21 = vmax.f32 %v1422_v55, 0.0  ;;  %11401 = vmatprep.mubr.msk.bf16.mxu0 %vm1697_vm8, %v3898_v63  ;;  %v2410_v20 = vsel %vm13341_vm11, %v2402_v48, %v2409_v17  ;;  %v14238_v54 = vrot.slane %v14029_v33, %v13107_v25  ;;  %v4868_v40 = vmul.bf16 %v14153_v62, %v14194_v51  ;;  %v2433_v22 = vld [vmem:[#allocation2 + $0x2b0] ss:$2 sm:$0xff] }
 0x23d   : > { %v2437_v1 = vld [vmem:[#allocation2 + $0x2b1] ss:$2 sm:$0xff]  ;;  %1786 = vst.msk [vmem:[#allocation2 + $0x2c0] sm:$0xff] %vm1697_vm8, %v1657_v36  ;;  %v1658_v16 = vmax.f32 %v1414_v8, 0.0  ;;  %v14246_v29 = vrot.slane %v14173_v61, %v13102_v23  ;;  %v14250_v17 = vrot.slane %v14173_v61, %v13107_v25  ;;  %v4654_v33 = vrot.slane %v14202_v9, %v13102_v23  ;;  %v11347_v36 = vpop.f32.mrb[92].mxu0 }
 0x23e   : > { %16444 = vst [vmem:[#allocation71_spill] sm:$0xff] %v14238_v54  ;;  %2418 = vst.msk [vmem:[#allocation3 + $0x54] sm:$0xf] %vm1826_vm3, %v2410_v20  ;;  %v2439_v48 = vmax.f32 %v2425_v31, %v2429_v3  ;;  %v2441_v51 = vmax.f32 %v2433_v22, %v2437_v1  ;;  %v14258_v18 = vcombine.low %v4867_v14, %v4868_v40  ;;  %v16447_v61 = vrot.slane %v14081_v41, 4  ;;  %v1426_v41 = vpop.f32.mrb[93].mxu0 }
 0x23f   : > { %16445 = vst [vmem:[#allocation72_spill] sm:$0xff] %v14246_v29  ;;  %16446 = vst [vmem:[#allocation73_spill] sm:$0xff] %v14250_v17  ;;  %v2438_v55 = vmax.f32 %v2423_v15, %v2427_v6  ;;  %v2431_v13 = vld [vmem:[#allocation2 + $0x2a0] ss:$2 sm:$0xff]  ;;  %v2435_v59 = vld [vmem:[#allocation2 + $0x2a1] ss:$2 sm:$0xff]  ;;  %v1435_v6 = vadd.f32 %v14168_v34, %v11347_v36  ;;  %v1427_v20 = vadd.f32 %v14168_v34, %v1426_v41 }
 0x240   : > { %1789 = vst.msk [vmem:[#allocation2 + $0x2d8] sm:$0xff] %vm1697_vm8, %v1660_v21  ;;  %1787 = vst.msk [vmem:[#allocation2 + $0x2c8] sm:$0xff] %vm1697_vm8, %v1658_v16  ;;  %v14266_v31 = vsel %vm13192_vm15, %v16447_v61, %v14108_v11  ;;  %v16449_v3 = vrot.slane %v14108_v11, 4  ;;  %vm14275_vm14 = vcmp.le.s32.totalorder %v2964_v12, 14  ;;  %v2443_v63 = vmax.f32 %v2439_v48, %v2441_v51  ;;  %v11348_v40 = vpop.f32.mrb[94].mxu0 }
 0x241   : > { %16448 = vst [vmem:[#allocation74_spill] sm:$0xff] %v14266_v31  ;;  %v2440_v15 = vmax.f32 %v2431_v13, %v2435_v59  ;;  %v16237_v21 = vrot.slane %v14258_v18, 1  ;;  %v14284_v22 = vrot.slane %v4654_v33, 7  ;;  %v14287_v12 = vadd.s32 216, %v13069_v60  ;;  %v1429_v13 = vpop.f32.mrb[95].mxu0 }
 0x242   : > { %v14273_v14 = vsel %vm13192_vm15, %v16449_v3, %v14196_v7  ;;  %v10931_v1 = vpack.c.bf16 %v2443_v63, %v2443_v63  ;;  %v1663_v48 = vmax.f32 %v1435_v6, 0.0  ;;  %v1438_v51 = vadd.f32 %v14168_v34, %v11348_v40 }
 0x243   : > { %16450 = vst [vmem:[#allocation75_spill] sm:$0xff] %v14273_v14  ;;  %v2442_v16 = vmax.f32 %v2438_v55, %v2440_v15  ;;  %v1661_v59 = vmax.f32 %v1427_v20, 0.0  ;;  %v1430_v36 = vadd.f32 %v14168_v34, %v1429_v13  ;;  %v14291_v61 = vld [vmem:[#allocation3 + $0x50] sm:$0xf]  ;;  %v16453_v3 = vrot.slane %v14138_v5, 1 }
 0x244   : > { %v10448_v55 = vsel %vm14275_vm14, 1.0, %v16395_v24  ;;  %v2459_v63 = vshrl.u32 %v10931_v1, 16  ;;  %1792 = vst.msk [vmem:[#allocation2 + $0x2f0] sm:$0xff] %vm1697_vm8, %v1663_v48  ;;  %v1664_v6 = vmax.f32 %v1438_v51, 0.0  ;;  %v3899_v20 = vshrl.u32 %v14209_v49, 16 }
 0x245   : > { %v14298_v33 = vsel %vm4970_vm6, %v16453_v3, %v16237_v21  ;;  %v10930_v15 = vpack.c.bf16 %v2442_v16, %v2442_v16  ;;  %v3414_v41 = vld [vmem:[#allocation3 + $0x54] sm:$0xf]  ;;  %1790 = vst.msk [vmem:[#allocation2 + $0x2e0] sm:$0xff] %vm1697_vm8, %v1661_v59  ;;  %v1662_v40 = vmax.f32 %v1430_v36, 0.0  ;;  %v3717_v5 = vmul.bf16 %v14063_v43, %v14291_v61  ;;  %v2474_v49 = vld [vmem:[#allocation3 + $0x60] sm:$0x1] }
 0x246   : > { %16454 = vst [vmem:[#allocation76_spill] sm:$0xff] %v14298_v33  ;;  %v3718_v13 = vmul.bf16 %v14067_v52, %v3414_v41  ;;  %v14310_v3 = vcombine.low %v14291_v61, %v3414_v41  ;;  %v2461_v8 = vrot.slane %v2459_v63, 7  ;;  %v2462_v21 = vshll.u32 %v10931_v1, 16  ;;  %1793 = vst.msk [vmem:[#allocation2 + $0x2f8] sm:$0xff] %vm1697_vm8, %v1664_v6  ;;  %v11351_v59 = vpop.f32.mrb[96].mxu0 }
 0x247   : > { %v2451_v16 = vshrl.u32 %v10930_v15, 16  ;;  %v14314_v48 = vpack.c.bf16 %v10448_v55, %v16385_v28  ;;  %v2454_v51 = vshll.u32 %v10930_v15, 16  ;;  %1791 = vst.msk [vmem:[#allocation2 + $0x2e8] sm:$0xff] %vm1697_vm8, %v1662_v40  ;;  %v3901_v11 = vor.u32 %v3899_v20, %v14220_v10  ;;  %v1442_v1 = vpop.f32.mrb[97].mxu0 }
 0x248   : > { %v10497_v36 = vcombine.low %v3717_v5, %v3718_v13  ;;  %v3903_v52 = vshll.u32 %v14310_v3, 16  ;;  %v2464_v43 = vor.u32 %v2462_v21, %v2461_v8  ;;  %v2466_v27 = vrot.slane %v2461_v8, 4  ;;  %v11352_v15 = vpop.f32.mrb[98].mxu0  ;;  %v2470_v13 = vld [vmem:[#allocation3 + $0x58] sm:$0xf] }
 0x249   : > { %v2453_v63 = vrot.slane %v2451_v16, 7  ;;  %v4869_v6 = vmul.bf16 %v14266_v31, %v14291_v61  ;;  %v1451_v55 = vadd.f32 %v14168_v34, %v11351_v59  ;;  %v1443_v33 = vadd.f32 %v14168_v34, %v1442_v1  ;;  %v1445_v61 = vpop.f32.mrb[99].mxu0  ;;  %v2480_v16 = vld [vmem:[#allocation2 + $0x2d0] ss:$2 sm:$0xff]  ;;  %v2484_v59 = vld [vmem:[#allocation2 + $0x2d1] ss:$2 sm:$0xff] }
 0x24a   : > { %11441 = vmatprep.mubr.msk.bf16.mxu1 %vm1697_vm8, %v10497_v36  ;;  %v14324_v40 = vrot.slane %v3903_v52, 1  ;;  %v4870_v10 = vmul.bf16 %v14273_v14, %v3414_v41  ;;  %v2475_v21 = vsel %vm13332_vm10, %v2466_v27, %v2474_v49  ;;  %v1454_v8 = vadd.f32 %v14168_v34, %v11352_v15  ;;  %v2478_v27 = vld [vmem:[#allocation2 + $0x2c0] ss:$2 sm:$0xff]  ;;  %v2482_v49 = vld [vmem:[#allocation2 + $0x2c1] ss:$2 sm:$0xff] }
 0x24b   : > { %v2456_v20 = vor.u32 %v2454_v51, %v2453_v63  ;;  %v2457_v5 = vrot.slane %v2453_v63, 4  ;;  %2476 = vst [vmem:[#allocation3 + $0x60] sm:$0x1] %v2475_v21  ;;  %v1667_v1 = vmax.f32 %v1451_v55, 0.0  ;;  %v1665_v31 = vmax.f32 %v1443_v33, 0.0 }
 0x24c   : > { %v1446_v36 = vadd.f32 %v14168_v34, %v1445_v61  ;;  %v3906_v52 = vsel %vm3822_vm2, %v3901_v11, %v14324_v40  ;;  %v1668_v51 = vmax.f32 %v1454_v8, 0.0  ;;  %v4785_v15 = vrot.slane %v14196_v7, 4 }
 0x24d   : > { %v2471_v41 = vsel %vm13354_vm12, %v2456_v20, %v2470_v13  ;;  %11402 = vmatmul.mubr.msk.bf16.gmra.mrb[144].mxu0 %vm1697_vm8, %v3906_v52  ;;  %v2465_v63 = vsel %vm13341_vm11, %v2457_v5, %v2464_v43  ;;  %v2488_v33 = vld [vmem:[#allocation2 + $0x2f0] ss:$2 sm:$0xff]  ;;  %v2492_v55 = vld [vmem:[#allocation2 + $0x2f1] ss:$2 sm:$0xff]  ;;  %1796 = vst.msk [vmem:[#allocation2 + $0x310] sm:$0xff] %vm1697_vm8, %v1667_v1  ;;  %1794 = vst.msk [vmem:[#allocation2 + $0x300] sm:$0xff] %vm1697_vm8, %v1665_v31  ;;  %v14343_v20 = vcombine.low %v4869_v6, %v4870_v10 }
 0x24e   : > { %2472 = vst [vmem:[#allocation3 + $0x58] sm:$0xf] %v2471_v41  ;;  %v1666_v11 = vmax.f32 %v1446_v36, 0.0  ;;  %2473 = vst.msk [vmem:[#allocation3 + $0x5c] sm:$0xf] %vm1826_vm3, %v2465_v63  ;;  %v2971_v21 = vand.u32 15, %v14256_v56  ;;  %v4668_v13 = vrot.slane %v14314_v48, %v13102_v23  ;;  %v2494_v43 = vmax.f32 %v2480_v16, %v2484_v59 }
 0x24f   : > { %v2496_v5 = vmax.f32 %v2488_v33, %v2492_v55  ;;  %v2486_v7 = vld [vmem:[#allocation2 + $0x2e0] ss:$2 sm:$0xff]  ;;  %v2490_v8 = vld [vmem:[#allocation2 + $0x2e1] ss:$2 sm:$0xff]  ;;  %1797 = vst.msk [vmem:[#allocation2 + $0x318] sm:$0xff] %vm1697_vm8, %v1668_v51  ;;  %v16455_v61 = vrot.slane %v14202_v9, %v13107_v25  ;;  %v2978_v1 = vand.u32 15, %v14287_v12  ;;  %v2493_v36 = vmax.f32 %v2478_v27, %v2482_v49 }
 0x250   : > { %v2495_v56 = vmax.f32 %v2486_v7, %v2490_v8  ;;  %1795 = vst.msk [vmem:[#allocation2 + $0x308] sm:$0xff] %vm1697_vm8, %v1666_v11  ;;  %v11355_v6 = vpop.f32.mrb[100].mxu0  ;;  %v16246_v10 = vrot.slane %v14343_v20, 1  ;;  %v4788_v16 = vrot.slane %v14284_v22, 4  ;;  %v14359_v51 = vadd.s32 224, %v13069_v60 }
 0x251   : > { %v14351_v31 = vrot.slane %v16455_v61, 7  ;;  %v2498_v59 = vmax.f32 %v2494_v43, %v2496_v5  ;;  %v1467_v52 = vadd.f32 %v14168_v34, %v11355_v6  ;;  %v1458_v41 = vpop.f32.mrb[101].mxu0  ;;  %v14364_v9 = vsel %vm13192_vm15, %v4785_v15, %v14284_v22 }
 0x252   : > { %16456 = vst [vmem:[#allocation77_spill] sm:$0xff] %v14364_v9  ;;  %v2497_v12 = vmax.f32 %v2493_v36, %v2495_v56  ;;  %v1459_v27 = vadd.f32 %v14168_v34, %v1458_v41  ;;  %v11356_v49 = vpop.f32.mrb[102].mxu0  ;;  %v16457_v63 = vrot.slane %v14258_v18, 1  ;;  %v14374_v55 = vrot.slane %v4668_v13, 7 }
 0x253   : > { %v10933_v11 = vpack.c.bf16 %v2498_v59, %v2498_v59  ;;  %v1671_v43 = vmax.f32 %v1467_v52, 0.0  ;;  %v1470_v5 = vadd.f32 %v14168_v34, %v11356_v49  ;;  %v1461_v7 = vpop.f32.mrb[103].mxu0  ;;  %vm3308_vm0 = vcmp.le.s32.totalorder %v2978_v1, 14 }
 0x254   : > { %v14372_v33 = vsel %vm4970_vm6, %v16457_v63, %v16246_v10  ;;  %v10932_v22 = vpack.c.bf16 %v2497_v12, %v2497_v12  ;;  %v1669_v15 = vmax.f32 %v1459_v27, 0.0  ;;  %v1462_v8 = vadd.f32 %v14168_v34, %v1461_v7  ;;  %v2529_v27 = vld [vmem:[#allocation3 + $0x68] sm:$0x1] }
 0x255   : > { %16458 = vst [vmem:[#allocation78_spill] sm:$0xff] %v14372_v33  ;;  %vm14378_vm1 = vcmp.ge.s32.totalorder %v2971_v21, 1  ;;  %v14385_v18 = vsel %vm13192_vm15, %v4788_v16, %v14351_v31  ;;  %v2514_v13 = vshrl.u32 %v10933_v11, 16  ;;  %1800 = vst.msk [vmem:[#allocation2 + $0x330] sm:$0xff] %vm1697_vm8, %v1671_v43  ;;  %v1672_v36 = vmax.f32 %v1470_v5, 0.0  ;;  %v11359_v5 = vpop.f32.mrb[104].mxu0 }
 0x256   : > { %v14388_v56 = vld [vmem:[#allocation3 + $0x58] sm:$0xf]  ;;  %v4675_v1 = vrot.slane %v14314_v48, %v13107_v25  ;;  %v2506_v21 = vshrl.u32 %v10932_v22, 16  ;;  %1798 = vst.msk [vmem:[#allocation2 + $0x320] sm:$0xff] %vm1697_vm8, %v1669_v15  ;;  %v10449_v52 = vsel %vm3308_vm0, 1.0, %v16395_v24  ;;  %v14397_v16 = vadd.s32 232, %v13069_v60 }
 0x257   : > { %v2516_v41 = vrot.slane %v2514_v13, 7  ;;  %v2517_v12 = vshll.u32 %v10933_v11, 16  ;;  %1801 = vst.msk [vmem:[#allocation2 + $0x338] sm:$0xff] %vm1697_vm8, %v1672_v36  ;;  %v1670_v49 = vmax.f32 %v1462_v8, 0.0  ;;  %v3719_v48 = vmul.bf16 %v14076_v44, %v14388_v56  ;;  %v3416_v7 = vld [vmem:[#allocation3 + $0x5c] sm:$0xf] }
 0x258   : > { %v2508_v63 = vrot.slane %v2506_v21, 7  ;;  %v2509_v43 = vshll.u32 %v10932_v22, 16  ;;  %v3907_v15 = vshrl.u32 %v14310_v3, 16  ;;  %v4871_v10 = vmul.bf16 %v14364_v9, %v14388_v56  ;;  %v1474_v13 = vpop.f32.mrb[105].mxu0  ;;  %v2533_v58 = vld [vmem:[#allocation2 + $0x300] ss:$2 sm:$0xff] }
 0x259   : > { %v2519_v59 = vor.u32 %v2517_v12, %v2516_v41  ;;  %v2521_v6 = vrot.slane %v2516_v41, 4  ;;  %1799 = vst.msk [vmem:[#allocation2 + $0x328] sm:$0xff] %vm1697_vm8, %v1670_v49  ;;  %v1483_v11 = vadd.f32 %v14168_v34, %v11359_v5  ;;  %v3720_v8 = vmul.bf16 %v14238_v54, %v3416_v7  ;;  %v11360_v21 = vpop.f32.mrb[106].mxu0  ;;  %v2525_v12 = vld [vmem:[#allocation3 + $0x60] sm:$0xf] }
 0x25a   : > { %v2511_v36 = vor.u32 %v2509_v43, %v2508_v63  ;;  %v2512_v44 = vrot.slane %v2508_v63, 4  ;;  %v1475_v22 = vadd.f32 %v14168_v34, %v1474_v13  ;;  %v14410_v14 = vcombine.low %v14388_v56, %v3416_v7  ;;  %v1477_v5 = vpop.f32.mrb[107].mxu0  ;;  %v2535_v63 = vld [vmem:[#allocation2 + $0x310] ss:$2 sm:$0xff]  ;;  %v2539_v54 = vld [vmem:[#allocation2 + $0x311] ss:$2 sm:$0xff] }
 0x25b   : > { %v2530_v3 = vsel %vm13332_vm10, %v2521_v6, %v2529_v27  ;;  %v1675_v41 = vmax.f32 %v1483_v11, 0.0  ;;  %v10498_v9 = vcombine.low %v3719_v48, %v3720_v8  ;;  %v1486_v49 = vadd.f32 %v14168_v34, %v11360_v21  ;;  %v2537_v6 = vld [vmem:[#allocation2 + $0x301] ss:$2 sm:$0xff] }
 0x25c   : > { %2531 = vst [vmem:[#allocation3 + $0x68] sm:$0x1] %v2530_v3  ;;  %v2526_v43 = vsel %vm13354_vm12, %v2511_v36, %v2525_v12  ;;  %v1673_v13 = vmax.f32 %v1475_v22, 0.0  ;;  %v1478_v33 = vadd.f32 %v14168_v34, %v1477_v5  ;;  %v3911_v56 = vshll.u32 %v14410_v14, 16 }
 0x25d   : > { %2527 = vst [vmem:[#allocation3 + $0x60] sm:$0xf] %v2526_v43  ;;  %1804 = vst.msk [vmem:[#allocation2 + $0x350] sm:$0xff] %vm1697_vm8, %v1675_v41  ;;  %11442 = vmatmul.mubr.msk.bf16.gmra.mrb[8].mxu1 %vm1697_vm8, %v10498_v9  ;;  %v1676_v27 = vmax.f32 %v1486_v49, 0.0  ;;  %v2520_v48 = vsel %vm13341_vm11, %v2512_v44, %v2519_v59  ;;  %v4872_v11 = vmul.bf16 %v14385_v18, %v3416_v7  ;;  %v14424_v8 = vrot.slane %v4675_v1, 7 }
 0x25e   : > { %v2543_v36 = vld [vmem:[#allocation2 + $0x330] ss:$2 sm:$0xff]  ;;  %v2547_v22 = vld [vmem:[#allocation2 + $0x331] ss:$2 sm:$0xff]  ;;  %1802 = vst.msk [vmem:[#allocation2 + $0x340] sm:$0xff] %vm1697_vm8, %v1673_v13  ;;  %v1674_v21 = vmax.f32 %v1478_v33, 0.0  ;;  %v3909_v3 = vor.u32 %v3907_v15, %v14324_v40  ;;  %v14430_v9 = vpack.c.bf16 %v10449_v52, %v16385_v28  ;;  %v2549_v41 = vmax.f32 %v2535_v63, %v2539_v54 }
 0x25f   : > { %v3913_v12 = vrot.slane %v3911_v56, 1  ;;  %2528 = vst.msk [vmem:[#allocation3 + $0x64] sm:$0xf] %vm1826_vm3, %v2520_v48  ;;  %v2551_v49 = vmax.f32 %v2543_v36, %v2547_v22  ;;  %v14436_v44 = vsel %vm14378_vm1, 1.0, %v16395_v24  ;;  %v14438_v1 = vcombine.low %v4871_v10, %v4872_v11  ;;  %v11363_v52 = vpop.f32.mrb[108].mxu0 }
 0x260   : > { %1805 = vst.msk [vmem:[#allocation2 + $0x358] sm:$0xff] %vm1697_vm8, %v1676_v27  ;;  %v2548_v33 = vmax.f32 %v2533_v58, %v2537_v6  ;;  %v2541_v59 = vld [vmem:[#allocation2 + $0x320] ss:$2 sm:$0xff]  ;;  %v2545_v40 = vld [vmem:[#allocation2 + $0x321] ss:$2 sm:$0xff]  ;;  %1803 = vst.msk [vmem:[#allocation2 + $0x348] sm:$0xff] %vm1697_vm8, %v1674_v21  ;;  %v1499_v58 = vadd.f32 %v14168_v34, %v11363_v52  ;;  %v4682_v6 = vrot.slane %v14430_v9, %v13102_v23 }
 0x261   : > { %v3914_v7 = vsel %vm3822_vm2, %v3909_v3, %v3913_v12  ;;  %v2985_v54 = vand.u32 15, %v14359_v51  ;;  %v16461_v15 = vrot.slane %v14351_v31, 4  ;;  %v2553_v5 = vmax.f32 %v2549_v41, %v2551_v49  ;;  %v1490_v43 = vpop.f32.mrb[109].mxu0 }
 0x262   : > { %v2550_v10 = vmax.f32 %v2541_v59, %v2545_v40  ;;  %11405 = vmatprep.mubr.msk.bf16.mxu0 %vm1697_vm8, %v3914_v7  ;;  %v16255_v63 = vrot.slane %v14438_v1, 1  ;;  %v1491_v13 = vadd.f32 %v14168_v34, %v1490_v43  ;;  %v11364_v56 = vpop.f32.mrb[110].mxu0  ;;  %v16463_v51 = vrot.slane %v14374_v55, 4 }
 0x263   : > { %v14448_v61 = vsel %vm13192_vm15, %v16461_v15, %v14374_v55  ;;  %v2992_v27 = vand.u32 15, %v14397_v16  ;;  %v10935_v48 = vpack.c.bf16 %v2553_v5, %v2553_v5  ;;  %v1679_v36 = vmax.f32 %v1499_v58, 0.0  ;;  %v1493_v21 = vpop.f32.mrb[111].mxu0 }
 0x264   : > { %16462 = vst [vmem:[#allocation79_spill] sm:$0xff] %v14448_v61  ;;  %v14459_v31 = vsel %vm13192_vm15, %v16463_v51, %v14424_v8  ;;  %v2552_v11 = vmax.f32 %v2548_v33, %v2550_v10  ;;  %v1502_v22 = vadd.f32 %v14168_v34, %v11364_v56  ;;  %v1677_v3 = vmax.f32 %v1491_v13, 0.0  ;;  %v14466_v49 = vld [vmem:[#allocation3 + $0x60] sm:$0xf] }
 0x265   : > { %16464 = vst [vmem:[#allocation80_spill] sm:$0xff] %v14459_v31  ;;  %v1494_v41 = vadd.f32 %v14168_v34, %v1493_v21  ;;  %vm14468_vm9 = vcmp.ge.s32.totalorder %v2985_v54, 1  ;;  %v16467_v59 = vrot.slane %v14343_v20, 1  ;;  %v2569_v40 = vshrl.u32 %v10935_v48, 16  ;;  %1808 = vst.msk [vmem:[#allocation2 + $0x370] sm:$0xff] %vm1697_vm8, %v1679_v36  ;;  %v11367_v36 = vpop.f32.mrb[112].mxu0 }
 0x266   : > { %v10934_v7 = vpack.c.bf16 %v2552_v11, %v2552_v11  ;;  %v1680_v52 = vmax.f32 %v1502_v22, 0.0  ;;  %v3418_v15 = vld [vmem:[#allocation3 + $0x64] sm:$0xf]  ;;  %v3915_v54 = vshrl.u32 %v14410_v14, 16  ;;  %1806 = vst.msk [vmem:[#allocation2 + $0x360] sm:$0xff] %vm1697_vm8, %v1677_v3  ;;  %v3721_v20 = vmul.bf16 %v14246_v29, %v14466_v49 }
 0x267   : > { %v14477_v16 = vsel %vm4970_vm6, %v16467_v59, %v16255_v63  ;;  %v1678_v5 = vmax.f32 %v1494_v41, 0.0  ;;  %v3722_v10 = vmul.bf16 %v14250_v17, %v3418_v15  ;;  %v14488_v58 = vcombine.low %v14466_v49, %v3418_v15  ;;  %v2584_v14 = vld [vmem:[#allocation3 + $0x70] sm:$0x1] }
 0x268   : > { %v2571_v43 = vrot.slane %v2569_v40, 7  ;;  %v2572_v13 = vshll.u32 %v10935_v48, 16  ;;  %v2561_v56 = vshrl.u32 %v10934_v7, 16  ;;  %1809 = vst.msk [vmem:[#allocation2 + $0x378] sm:$0xff] %vm1697_vm8, %v1680_v52  ;;  %vm14491_vm4 = vcmp.le.s32.totalorder %v2992_v27, 14  ;;  %v1506_v48 = vpop.f32.mrb[113].mxu0 }
 0x269   : > { %v2564_v11 = vshll.u32 %v10934_v7, 16  ;;  %1807 = vst.msk [vmem:[#allocation2 + $0x368] sm:$0xff] %vm1697_vm8, %v1678_v5  ;;  %v10499_v22 = vcombine.low %v3721_v20, %v3722_v10  ;;  %v3917_v21 = vor.u32 %v3915_v54, %v3913_v12  ;;  %v3919_v3 = vshll.u32 %v14488_v58, 16  ;;  %v11368_v7 = vpop.f32.mrb[114].mxu0 }
 0x26a   : > { %v2574_v41 = vor.u32 %v2572_v13, %v2571_v43  ;;  %v2576_v59 = vrot.slane %v2571_v43, 4  ;;  %v2563_v40 = vrot.slane %v2561_v56, 7  ;;  %v4873_v52 = vmul.bf16 %v14448_v61, %v14466_v49  ;;  %v2580_v43 = vld [vmem:[#allocation3 + $0x68] sm:$0xf]  ;;  %v1509_v49 = vpop.f32.mrb[115].mxu0  ;;  %v16515_v61 = vld [vmem:[#allocation49_spill] sm:$0xff] }
 0x26b   : > { %v1515_v27 = vadd.f32 %v14168_v34, %v11367_v36  ;;  %v1507_v63 = vadd.f32 %v14168_v34, %v1506_v48  ;;  %11445 = vmatprep.mubr.msk.bf16.mxu1 %vm1697_vm8, %v10499_v22  ;;  %v14502_v5 = vrot.slane %v3919_v3, 1  ;;  %v4874_v12 = vmul.bf16 %v14459_v31, %v3418_v15  ;;  %v2590_v56 = vld [vmem:[#allocation2 + $0x350] ss:$2 sm:$0xff]  ;;  %v2594_v36 = vld [vmem:[#allocation2 + $0x351] ss:$2 sm:$0xff] }
 0x26c   : > { %v2585_v54 = vsel %vm13332_vm10, %v2576_v59, %v2584_v14  ;;  %v2566_v20 = vor.u32 %v2564_v11, %v2563_v40  ;;  %v2567_v10 = vrot.slane %v2563_v40, 4  ;;  %v1518_v13 = vadd.f32 %v14168_v34, %v11368_v7  ;;  %v2588_v14 = vld [vmem:[#allocation2 + $0x340] ss:$2 sm:$0xff]  ;;  %v2592_v11 = vld [vmem:[#allocation2 + $0x341] ss:$2 sm:$0xff] }
 0x26d   : > { %2586 = vst [vmem:[#allocation3 + $0x70] sm:$0x1] %v2585_v54  ;;  %v1683_v48 = vmax.f32 %v1515_v27, 0.0  ;;  %v1681_v33 = vmax.f32 %v1507_v63, 0.0  ;;  %v1510_v22 = vadd.f32 %v14168_v34, %v1509_v49  ;;  %v3922_v3 = vsel %vm3822_vm2, %v3917_v21, %v14502_v5 }
 0x26e   : > { %v2581_v15 = vsel %vm13354_vm12, %v2566_v20, %v2580_v43  ;;  %v1684_v59 = vmax.f32 %v1518_v13, 0.0  ;;  %11406 = vmatmul.mubr.msk.bf16.gmra.mrb[148].mxu0 %vm1697_vm8, %v3922_v3  ;;  %v2575_v40 = vsel %vm13341_vm11, %v2567_v10, %v2574_v41  ;;  %v4798_v63 = vrot.slane %v4682_v6, 7 }
 0x26f   : > { %2582 = vst [vmem:[#allocation3 + $0x68] sm:$0xf] %v2581_v15  ;;  %v2598_v27 = vld [vmem:[#allocation2 + $0x370] ss:$2 sm:$0xff]  ;;  %v2602_v7 = vld [vmem:[#allocation2 + $0x371] ss:$2 sm:$0xff]  ;;  %v3278_v54 = vpack.c.bf16 %v16385_v28, %v14436_v44  ;;  %v14531_v6 = vcombine.low %v4873_v52, %v4874_v12  ;;  %v2604_v10 = vmax.f32 %v2590_v56, %v2594_v36  ;;  %v16471_v55 = vrot.slane %v14430_v9, %v13107_v25 }
 0x270   : > { %1812 = vst.msk [vmem:[#allocation2 + $0x390] sm:$0xff] %vm1697_vm8, %v1683_v48  ;;  %1810 = vst.msk [vmem:[#allocation2 + $0x380] sm:$0xff] %vm1697_vm8, %v1681_v33  ;;  %v1682_v21 = vmax.f32 %v1510_v22, 0.0  ;;  %v16470_v41 = vrot.slane %v13161_v4, 4  ;;  %v2606_v43 = vmax.f32 %v2598_v27, %v2602_v7  ;;  %v2596_v13 = vld [vmem:[#allocation2 + $0x360] ss:$2 sm:$0xff]  ;;  %v2603_v48 = vmax.f32 %v2588_v14, %v2592_v11 }
 0x271   : > { %2583 = vst.msk [vmem:[#allocation3 + $0x6c] sm:$0xf] %vm1826_vm3, %v2575_v40  ;;  %v2600_v49 = vld [vmem:[#allocation2 + $0x361] ss:$2 sm:$0xff]  ;;  %v10434_v33 = vsel %vm14468_vm9, 1.0, %v16395_v24  ;;  %v10450_v44 = vsel %vm14491_vm4, 1.0, %v16395_v24 }
 0x272   : > { %v14529_v20 = vsel %vm13192_vm15, %v16470_v41, %v13150_v57  ;;  %1813 = vst.msk [vmem:[#allocation2 + $0x398] sm:$0xff] %vm1697_vm8, %v1684_v59  ;;  %v2605_v22 = vmax.f32 %v2596_v13, %v2600_v49  ;;  %1811 = vst.msk [vmem:[#allocation2 + $0x388] sm:$0xff] %vm1697_vm8, %v1682_v21  ;;  %v11371_v57 = vpop.f32.mrb[116].mxu0  ;;  %v16256_v52 = vrot.slane %v14531_v6, 1  ;;  %v4797_v12 = vrot.slane %v14424_v8, 4 }
 0x273   : > { %v2608_v56 = vmax.f32 %v2604_v10, %v2606_v43  ;;  %v1531_v36 = vadd.f32 %v14168_v34, %v11371_v57  ;;  %v1522_v3 = vpop.f32.mrb[117].mxu0  ;;  %v4800_v15 = vrot.slane %v4798_v63, 4  ;;  %v14547_v59 = vrot.slane %v16471_v55, 7 }
 0x274   : > { %v2607_v51 = vmax.f32 %v2603_v48, %v2605_v22  ;;  %v1523_v14 = vadd.f32 %v14168_v34, %v1522_v3  ;;  %v11372_v11 = vpop.f32.mrb[118].mxu0  ;;  %v16472_v40 = vrot.slane %v14438_v1, 1  ;;  %v14558_v27 = vpack.c.bf16 %v10450_v44, %v16385_v28 }
 0x275   : > { %v10937_v7 = vpack.c.bf16 %v2608_v56, %v2608_v56  ;;  %v1687_v21 = vmax.f32 %v1531_v36, 0.0  ;;  %v1534_v9 = vadd.f32 %v14168_v34, %v11372_v11  ;;  %v1525_v41 = vpop.f32.mrb[119].mxu0  ;;  %v14562_v10 = vrot.slane %v3278_v54, %v13102_v23 }
 0x276   : > { %v14555_v8 = vsel %vm4970_vm6, %v16472_v40, %v16256_v52  ;;  %v10936_v43 = vpack.c.bf16 %v2607_v51, %v2607_v51  ;;  %v1685_v13 = vmax.f32 %v1523_v14, 0.0  ;;  %v1526_v49 = vadd.f32 %v14168_v34, %v1525_v41  ;;  %v14569_v22 = vld [vmem:[#allocation3 + $0x68] sm:$0xf]  ;;  %v2639_v14 = vld [vmem:[#allocation3 + $0x78] sm:$0x1] }
 0x277   : > { %16473 = vst [vmem:[#allocation81_spill] sm:$0xff] %v14562_v10  ;;  %v14566_v1 = vrot.slane %v3278_v54, %v13107_v25  ;;  %v2624_v48 = vshrl.u32 %v10937_v7, 16  ;;  %1816 = vst.msk [vmem:[#allocation2 + $0x3b0] sm:$0xff] %vm1697_vm8, %v1687_v21  ;;  %v1688_v44 = vmax.f32 %v1534_v9, 0.0  ;;  %v14572_v57 = vpack.c.bf16 %v16385_v28, %v10434_v33  ;;  %v11375_v9 = vpop.f32.mrb[120].mxu0 }
 0x278   : > { %v14576_v56 = vsel %vm13192_vm15, %v4797_v12, %v4798_v63  ;;  %v2616_v36 = vshrl.u32 %v10936_v43, 16  ;;  %1814 = vst.msk [vmem:[#allocation2 + $0x3a0] sm:$0xff] %vm1697_vm8, %v1685_v13  ;;  %v14580_v3 = vadd.s32 240, %v13069_v60  ;;  %v14585_v54 = vsel %vm13192_vm15, %v4800_v15, %v14547_v59  ;;  %v3420_v21 = vld [vmem:[#allocation3 + $0x6c] sm:$0xf] }
 0x279   : > { %16474 = vst [vmem:[#allocation82_spill] sm:$0xff] %v14566_v1  ;;  %16475 = vst [vmem:[#allocation83_spill] sm:$0xff] %v14576_v56  ;;  %v4696_v55 = vrot.slane %v14558_v27, %v13102_v23  ;;  %v2626_v33 = vrot.slane %v2624_v48, 7  ;;  %v2627_v51 = vshll.u32 %v10937_v7, 16  ;;  %v1686_v63 = vmax.f32 %v1526_v49, 0.0  ;;  %v1538_v48 = vpop.f32.mrb[121].mxu0 }
 0x27a   : > { %16476 = vst [vmem:[#allocation84_spill] sm:$0xff] %v14585_v54  ;;  %1817 = vst.msk [vmem:[#allocation2 + $0x3b8] sm:$0xff] %vm1697_vm8, %v1688_v44  ;;  %v3723_v12 = vmul.bf16 %v14562_v10, %v14569_v22  ;;  %v2618_v11 = vrot.slane %v2616_v36, 7  ;;  %v2619_v40 = vshll.u32 %v10936_v43, 16  ;;  %v3923_v41 = vshrl.u32 %v14488_v58, 16  ;;  %v11376_v58 = vpop.f32.mrb[122].mxu0 }
 0x27b   : > { %v4875_v15 = vmul.bf16 %v14576_v56, %v14569_v22  ;;  %v2629_v13 = vor.u32 %v2627_v51, %v2626_v33  ;;  %v2631_v52 = vrot.slane %v2626_v33, 4  ;;  %1815 = vst.msk [vmem:[#allocation2 + $0x3a8] sm:$0xff] %vm1697_vm8, %v1686_v63  ;;  %v3724_v7 = vmul.bf16 %v14566_v1, %v3420_v21  ;;  %v2635_v51 = vld [vmem:[#allocation3 + $0x70] sm:$0xf]  ;;  %v1541_v1 = vpop.f32.mrb[123].mxu0 }
 0x27c   : > { %v1547_v49 = vadd.f32 %v14168_v34, %v11375_v9  ;;  %v2621_v44 = vor.u32 %v2619_v40, %v2618_v11  ;;  %v2622_v10 = vrot.slane %v2618_v11, 4  ;;  %v14599_v43 = vcombine.low %v14569_v22, %v3420_v21  ;;  %v2645_v11 = vld [vmem:[#allocation2 + $0x390] ss:$2 sm:$0xff]  ;;  %v2649_v9 = vld [vmem:[#allocation2 + $0x391] ss:$2 sm:$0xff] }
 0x27d   : > { %v1539_v36 = vadd.f32 %v14168_v34, %v1538_v48  ;;  %v2640_v17 = vsel %vm13332_vm10, %v2631_v52, %v2639_v14  ;;  %v10500_v33 = vcombine.low %v3723_v12, %v3724_v7  ;;  %v1550_v63 = vadd.f32 %v14168_v34, %v11376_v58  ;;  %v2643_v31 = vld [vmem:[#allocation2 + $0x380] ss:$2 sm:$0xff]  ;;  %v2647_v52 = vld [vmem:[#allocation2 + $0x381] ss:$2 sm:$0xff] }
 0x27e   : > { %v1691_v29 = vmax.f32 %v1547_v49, 0.0  ;;  %2641 = vst [vmem:[#allocation3 + $0x78] sm:$0x1] %v2640_v17  ;;  %v2636_v40 = vsel %vm13354_vm12, %v2621_v44, %v2635_v51  ;;  %v3927_v22 = vshll.u32 %v14599_v43, 16  ;;  %v1542_v48 = vadd.f32 %v14168_v34, %v1541_v1 }
 0x27f   : > { %v1689_v56 = vmax.f32 %v1539_v36, 0.0  ;;  %2637 = vst [vmem:[#allocation3 + $0x70] sm:$0xf] %v2636_v40  ;;  %11446 = vmatmul.mubr.msk.bf16.gmra.mrb[12].mxu1 %vm1697_vm8, %v10500_v33  ;;  %v1692_v14 = vmax.f32 %v1550_v63, 0.0  ;;  %v2630_v17 = vsel %vm13341_vm11, %v2622_v10, %v2629_v13  ;;  %v4876_v12 = vmul.bf16 %v14585_v54, %v3420_v21  ;;  %v11379_v13 = vpop.f32.mrb[124].mxu0  ;;  %v16514_v54 = vld [vmem:[#allocation48_spill] sm:$0xff] }
 0x280   : > { %1820 = vst.msk [vmem:[#allocation2 + $0x3d0] sm:$0xff] %vm1697_vm8, %v1691_v29  ;;  %v4804_v7 = vrot.slane %v4696_v55, 7  ;;  %v3925_v36 = vor.u32 %v3923_v41, %v14502_v5  ;;  %v14615_v58 = vrot.slane %v3927_v22, 1  ;;  %v1690_v1 = vmax.f32 %v1542_v48, 0.0 }
 0x281   : > { %v2653_v49 = vld [vmem:[#allocation2 + $0x3b0] ss:$2 sm:$0xff]  ;;  %v2657_v44 = vld [vmem:[#allocation2 + $0x3b1] ss:$2 sm:$0xff]  ;;  %1818 = vst.msk [vmem:[#allocation2 + $0x3c0] sm:$0xff] %vm1697_vm8, %v1689_v56  ;;  %v4703_v29 = vrot.slane %v14558_v27, %v13107_v25  ;;  %v2659_v51 = vmax.f32 %v2645_v11, %v2649_v9  ;;  %1821 = vst.msk [vmem:[#allocation2 + $0x3d8] sm:$0xff] %vm1697_vm8, %v1692_v14  ;;  %v14623_v55 = vcombine.low %v4875_v15, %v4876_v12 }
 0x282   : > { %2638 = vst.msk [vmem:[#allocation3 + $0x74] sm:$0xf] %vm1826_vm3, %v2630_v17  ;;  %v2661_v33 = vmax.f32 %v2653_v49, %v2657_v44  ;;  %v2999_v10 = vand.u32 15, %v14580_v3  ;;  %v2658_v21 = vmax.f32 %v2643_v31, %v2647_v52  ;;  %v2651_v5 = vld [vmem:[#allocation2 + $0x3a0] ss:$2 sm:$0xff]  ;;  %v3930_v56 = vsel %vm3822_vm2, %v3925_v36, %v14615_v58  ;;  %v1554_v3 = vpop.f32.mrb[125].mxu0 }
 0x283   : > { %v2655_v41 = vld [vmem:[#allocation2 + $0x3a1] ss:$2 sm:$0xff]  ;;  %1819 = vst.msk [vmem:[#allocation2 + $0x3c8] sm:$0xff] %vm1697_vm8, %v1690_v1  ;;  %v14630_v27 = vrot.slane %v14572_v57, %v13102_v23  ;;  %v4803_v63 = vrot.slane %v14547_v59, 4  ;;  %11409 = vmatprep.mubr.msk.bf16.mxu0 %vm1697_vm8, %v3930_v56  ;;  %v1563_v31 = vadd.f32 %v14168_v34, %v11379_v13  ;;  %v4996_v15 = vrot.slane %v14623_v55, 1  ;;  %v11380_v22 = vpop.f32.mrb[126].mxu0 }
 0x284   : > { %v2663_v40 = vmax.f32 %v2659_v51, %v2661_v33  ;;  %v2660_v11 = vmax.f32 %v2651_v5, %v2655_v41  ;;  %v1555_v9 = vadd.f32 %v14168_v34, %v1554_v3  ;;  %v14639_v48 = vrot.slane %v14572_v57, %v13107_v25  ;;  %v1557_v44 = vpop.f32.mrb[127].mxu0 }
 0x285   : > { %16477 = vst [vmem:[#allocation85_spill] sm:$0xff] %v14630_v27  ;;  %v4806_v52 = vrot.slane %v4804_v7, 4  ;;  %v14641_v14 = vrot.slane %v4703_v29, 7  ;;  %v1695_v12 = vmax.f32 %v1563_v31, 0.0  ;;  %v1566_v49 = vadd.f32 %v14168_v34, %v11380_v22 }
 0x286   : > { %16478 = vst [vmem:[#allocation86_spill] sm:$0xff] %v14639_v48  ;;  %v10939_v59 = vpack.c.bf16 %v2663_v40, %v2663_v40  ;;  %v2662_v17 = vmax.f32 %v2658_v21, %v2660_v11  ;;  %v1693_v36 = vmax.f32 %v1555_v9, 0.0  ;;  %v1558_v1 = vadd.f32 %v14168_v34, %v1557_v44  ;;  %v3421_v51 = vld [vmem:[#allocation3 + $0x70] sm:$0xf] }
 0x287   : > { %vm14645_vm13 = vcmp.ge.s32.totalorder %v2999_v10, 1  ;;  %v16481_v57 = vrot.slane %v14531_v6, 1  ;;  %1824 = vst.msk [vmem:[#allocation2 + $0x3f0] sm:$0xff] %vm1697_vm8, %v1695_v12  ;;  %v1696_v41 = vmax.f32 %v1566_v49, 0.0  ;;  %v14659_v34 = vsel %vm13192_vm15, %v4803_v63, %v4804_v7  ;;  %v2694_v7 = vld [vmem:[#allocation3 + $0x80] sm:$0x1] }
 0x288   : > { %v2679_v21 = vshrl.u32 %v10939_v59, 16  ;;  %v10938_v5 = vpack.c.bf16 %v2662_v17, %v2662_v17  ;;  %16482 = vst [vmem:[#allocation87_spill] sm:$0xff] %v14659_v34  ;;  %1822 = vst.msk [vmem:[#allocation2 + $0x3e0] sm:$0xff] %vm1697_vm8, %v1693_v36  ;;  %v1694_v10 = vmax.f32 %v1558_v1, 0.0  ;;  %v3725_v13 = vmul.bf16 %v14630_v27, %v3421_v51  ;;  %v4477_v1 = vld [vmem:[#allocation3] sm:$0xe] }
 0x289   : > { %v14654_v29 = vsel %vm4970_vm6, %v16481_v57, %v4996_v15  ;;  %v3422_v56 = vld [vmem:[#allocation3 + $0x74] sm:$0xf]  ;;  %v2682_v31 = vshll.u32 %v10939_v59, 16  ;;  %1825 = vst.msk [vmem:[#allocation2 + $0x3f8] sm:$0xff] %vm1697_vm8, %v1696_v41  ;;  %v14670_v9 = vsel %vm13192_vm15, %v4806_v52, %v14641_v14  ;;  %v3931_v22 = vshrl.u32 %v14599_v43, 16 }
 0x28a   : > { %v3726_v6 = vmul.bf16 %v14639_v48, %v3422_v56  ;;  %v14664_v40 = vcombine.low %v3421_v51, %v3422_v56  ;;  %v2681_v11 = vrot.slane %v2679_v21, 7  ;;  %v2671_v3 = vshrl.u32 %v10938_v5, 16  ;;  %16483 = vst [vmem:[#allocation88_spill] sm:$0xff] %v14670_v9  ;;  %1823 = vst.msk [vmem:[#allocation2 + $0x3e8] sm:$0xff] %vm1697_vm8, %v1694_v10  ;;  %v2700_v57 = vld [vmem:[#allocation2 + $0x3d0] ss:$2 sm:$0xff] }
 0x28b   : > { %v4877_v12 = vmul.bf16 %v14659_v34, %v3421_v51  ;;  %v2674_v36 = vshll.u32 %v10938_v5, 16  ;;  %v2704_v21 = vld [vmem:[#allocation2 + $0x3d1] ss:$2 sm:$0xff]  ;;  %v3933_v52 = vor.u32 %v3931_v22, %v14615_v58  ;;  %v4878_v10 = vmul.bf16 %v14670_v9, %v3422_v56  ;;  %v2698_v51 = vld [vmem:[#allocation2 + $0x3c0] ss:$2 sm:$0xff] }
 0x28c   : > { %v10501_v63 = vcombine.low %v3725_v13, %v3726_v6  ;;  %v3935_v17 = vshll.u32 %v14664_v40, 16  ;;  %v2684_v49 = vor.u32 %v2682_v31, %v2681_v11  ;;  %v2686_v59 = vrot.slane %v2681_v11, 4  ;;  %v2702_v31 = vld [vmem:[#allocation2 + $0x3c1] ss:$2 sm:$0xff]  ;;  %v2690_v11 = vld [vmem:[#allocation3 + $0x78] sm:$0xf] }
 0x28d   : > { %v2673_v44 = vrot.slane %v2671_v3, 7  ;;  %v10435_v5 = vsel %vm14645_vm13, 1.0, %v16395_v24  ;;  %v4849_v58 = vmul.bf16 %v13161_v4, %v4477_v1  ;;  %v14778_v48 = vld [vmem:[#allocation3 + $0x1c] sm:$0xf]  ;;  %v16499_v27 = vld [vmem:[#allocation63_spill] sm:$0xff] }
 0x28e   : > { %11449 = vmatprep.mubr.msk.bf16.mxu1 %vm1697_vm8, %v10501_v63  ;;  %v3937_v41 = vrot.slane %v3935_v17, 1  ;;  %v2695_v43 = vsel %vm13332_vm10, %v2686_v59, %v2694_v7  ;;  %v14686_v63 = vld [vmem:[#allocation3 + $0x4] sm:$0xf]  ;;  %v14690_v7 = vcombine.low %v4877_v12, %v4878_v10  ;;  %v2714_v17 = vmax.f32 %v2700_v57, %v2704_v21  ;;  %v14831_v34 = vld [vmem:[#allocation3 + $0x4c] sm:$0xf] }
 0x28f   : > { %v2676_v13 = vor.u32 %v2674_v36, %v2673_v44  ;;  %v2677_v6 = vrot.slane %v2673_v44, 4  ;;  %2696 = vst [vmem:[#allocation3 + $0x80] sm:$0x1] %v2695_v43  ;;  %v4850_v56 = vmul.bf16 %v14686_v63, %v14529_v20  ;;  %v2713_v59 = vmax.f32 %v2698_v51, %v2702_v31 }
 0x290   : > { %v3938_v3 = vsel %vm3822_vm2, %v3933_v52, %v3937_v41  ;;  %v2708_v44 = vld [vmem:[#allocation2 + $0x3f0] ss:$2 sm:$0xff]  ;;  %v2712_v36 = vld [vmem:[#allocation2 + $0x3f1] ss:$2 sm:$0xff]  ;;  %v3280_v1 = vpack.c.bf16 %v16385_v28, %v10435_v5  ;;  %v16269_v12 = vrot.slane %v14690_v7, 1 }
 0x291   : > { %v2691_v22 = vsel %vm13354_vm12, %v2676_v13, %v2690_v11  ;;  %11410 = vmatmul.mubr.msk.bf16.gmra.mrb[152].mxu0 %vm1697_vm8, %v3938_v3  ;;  %v2685_v33 = vsel %vm13341_vm11, %v2677_v6, %v2684_v49  ;;  %v2716_v52 = vmax.f32 %v2708_v44, %v2712_v36  ;;  %v2706_v10 = vld [vmem:[#allocation2 + $0x3e0] ss:$2 sm:$0xff]  ;;  %v2710_v43 = vld [vmem:[#allocation2 + $0x3e1] ss:$2 sm:$0xff]  ;;  %v10521_v57 = vcombine.low %v4849_v58, %v4850_v56 }
 0x292   : > { %2692 = vst [vmem:[#allocation3 + $0x78] sm:$0xf] %v2691_v22  ;;  %2693 = vst.msk [vmem:[#allocation3 + $0x7c] sm:$0xf] %vm1826_vm3, %v2685_v33  ;;  %v2715_v13 = vmax.f32 %v2706_v10, %v2710_v43  ;;  %v14705_v49 = vsel %vm4970_vm6, %v4996_v15, %v16269_v12  ;;  %v14708_v51 = vrot.slane %v3280_v1, %v13102_v23  ;;  %v2789_v58 = vand.u32 15, %v13069_v60 }
 0x293   : > { %v2718_v21 = vmax.f32 %v2714_v17, %v2716_v52  ;;  %v14711_v31 = vrot.slane %v3280_v1, %v13107_v25  ;;  %v4971_v3 = vrot.slane %v10521_v57, 1 }
 0x294   : > { %v2717_v6 = vmax.f32 %v2713_v59, %v2715_v13  ;;  %16484 = vst [vmem:[#allocation89_spill] sm:$0xff] %v14708_v51  ;;  %vm3169_vm14 = vcmp.ge.s32.totalorder %v2789_v58, 1  ;;  %v3939_v13 = vshrl.u32 %v14664_v40, 16 }
 0x295   : > { %16485 = vst [vmem:[#allocation90_spill] sm:$0xff] %v14711_v31  ;;  %v10941_v5 = vpack.c.bf16 %v2718_v21, %v2718_v21  ;;  %v10420_v58 = vsel %vm3169_vm14, 1.0, %v16395_v24 }
 0x296   : > { %v10940_v11 = vpack.c.bf16 %v2717_v6, %v2717_v6  ;;  %v3941_v12 = vor.u32 %v3939_v13, %v3937_v41  ;;  %v14742_v41 = vld [vmem:[#allocation3 + $0xc] sm:$0xf] }
 0x297   : > { %v2734_v56 = vshrl.u32 %v10941_v5, 16  ;;  %v2737_v22 = vshll.u32 %v10941_v5, 16  ;;  %v16486_v5 = vrot.slane %v13520_v45, 1  ;;  %v3265_v45 = vpack.c.bf16 %v16385_v28, %v10420_v58  ;;  %16487 = vst [vmem:[#allocation91_spill] sm:$0xff] %v14742_v41  ;;  %v16494_v58 = vld [vmem:[#allocation34_spill] sm:$0xff] }
 0x298   : > { %v2726_v15 = vshrl.u32 %v10940_v11, 16  ;;  %v2729_v17 = vshll.u32 %v10940_v11, 16 }
 0x299   : > { %v14714_v33 = vld [vmem:[#allocation3 + $0x78] sm:$0xf]  ;;  %v14716_v55 = vld [vmem:[#allocation3 + $0x7c] sm:$0xf]  ;;  %v14722_v36 = vrot.slane %v2734_v56, 7  ;;  %v4973_v11 = vsel %vm4970_vm6, %v4971_v3, %v16486_v5  ;;  %v12332_v3 = vld [vmem:[#allocation11 + $0x38] sm:$0xff]   ;;  %v14747_v39 = vrot.slane %v3265_v45, %v13102_v23 }
 0x29a   : > { %v3727_v59 = vmul.bf16 %v14708_v51, %v14714_v33  ;;  %v3728_v44 = vmul.bf16 %v14711_v31, %v14716_v55  ;;  %v10467_v1 = vcombine.low %v14714_v33, %v14716_v55  ;;  %v2728_v52 = vrot.slane %v2726_v15, 7  ;;  %v2745_v56 = vld [vmem:[#allocation3 + $0x80] sm:$0xf]  ;;  %v14765_v5 = vld [vmem:[#allocation11 + $0x40] sm:$0xff]  }
 0x29b   : > { %v2739_v43 = vor.u32 %v2737_v22, %v14722_v36  ;;  %16488 = vst [vmem:[#allocation92_spill] sm:$0xff] %v14747_v39  ;;  %16493 = vst [vmem:[#allocation95_spill] sm:$0xff] %v14765_v5 }
 0x29c   : > { %v10502_v10 = vcombine.low %v3727_v59, %v3728_v44  ;;  %v3943_v57 = vshll.u32 %v10467_v1, 16  ;;  %v2731_v21 = vor.u32 %v2729_v17, %v2728_v52  ;;  %v2732_v6 = vrot.slane %v2728_v52, 4  ;;  %v6165_v59 = vld [vmem:[#allocation3 + $0x8] sm:$0xe]  ;;  %v14750_v44 = vld [vmem:[#allocation3 + $0x10] sm:$0xf] }
 0x29d   : > { %16489 = vst [vmem:[#allocation93_spill] sm:$0xff] %v14750_v44  ;;  %v12431_v52 = vld [vmem:[#allocation11 + $0x30] sm:$0xff]   ;;  %v6166_v13 = vmul.bf16 %v6165_v59, %v13161_v4  ;;  %v3947_v59 = vshrl.u32 %v10467_v1, 16 }
 0x29e   : > { %11450 = vmatmul.mubr.msk.bf16.gmra.mrb[16].mxu1 %vm1697_vm8, %v10502_v10  ;;  %v3945_v15 = vrot.slane %v3943_v57, 1  ;;  %v2746_v22 = vsel %vm13354_vm12, %v2731_v21, %v2745_v56  ;;  %v2740_v40 = vsel %vm13341_vm11, %v2732_v6, %v2739_v43  ;;  %v16491_v10 = vld [vmem:[#allocation57_spill] sm:$0xff]  ;;  %v14757_v43 = vrot.slane %v3265_v45, %v13107_v25 }
 0x29f   : > { %11457 = vmatprep.mubr.msk.bf16.mxu1 %vm1697_vm8, %v4973_v11  ;;  %2747 = vst [vmem:[#allocation3 + $0x80] sm:$0xf] %v2746_v22  ;;  %2748 = vst.msk [vmem:[#allocation3 + $0x84] sm:$0xf] %vm1826_vm3, %v2740_v40  ;;  %v12432_v21 = vld [vmem:[#allocation3] sm:$0xf]  ;;  %v6168_v22 = vmul.bf16 %v14750_v44, %v16494_v58 }
 0x2a0   : > { %v3946_v17 = vsel %vm3822_vm2, %v3941_v12, %v3945_v15  ;;  %v14752_v12 = vld [vmem:[#allocation3 + $0x14] sm:$0xf]  ;;  %16492 = vst [vmem:[#allocation57_spill] sm:$0xff] %v14757_v43  ;;  %v3697_v6 = vmul.bf16 %v12432_v21, %v14747_v39  ;;  %v3698_v56 = vmul.bf16 %v14686_v63, %v14757_v43  ;;  %v3006_v45 = vand.u32 15, %v2784_v30  ;;  %v14776_v21 = vld [vmem:[#allocation3 + $0x18] sm:$0xf] }
 0x2a1   : > { %11413 = vmatprep.mubr.msk.bf16.mxu0 %vm1697_vm8, %v3946_v17  ;;  %16490 = vst [vmem:[#allocation94_spill] sm:$0xff] %v14752_v12  ;;  %v16495_v40 = vld [vmem:[#allocation35_spill] sm:$0xff]  ;;  %16496 = vst [vmem:[#allocation34_spill] sm:$0xff] %v14776_v21  ;;  %v3949_v60 = vor.u32 %v3947_v59, %v3945_v15  ;;  %v14780_v63 = vld [vmem:[#allocation3 + $0x20] sm:$0xf]  ;;  %vm8004_vm11 = vcmask 516096  }
 0x2a2   : > { %v6169_v17 = vmul.bf16 %v14752_v12, %v16495_v40  ;;  %v10487_v51 = vcombine.low %v3697_v6, %v3698_v56  ;;  %16497 = vst [vmem:[#allocation35_spill] sm:$0xff] %v14778_v48  ;;  %16498 = vst [vmem:[#allocation96_spill] sm:$0xff] %v14780_v63  ;;  %vm14784_vm3 = vcmp.le.s32.totalorder %v3006_v45, 14  ;;  %v14790_v30 = vld [vmem:[#allocation3 + $0x28] sm:$0xf]  ;;  %v16507_v45 = vld [vmem:[#allocation39_spill] sm:$0xff] }
 0x2a3   : > { %16503 = vst [vmem:[#allocation97_spill] sm:$0xff] %v14790_v30  ;;  %v14800_v56 = vld [vmem:[#allocation3 + $0x30] sm:$0xf]  ;;  %v16509_v59 = vld [vmem:[#allocation41_spill] sm:$0xff]  ;;  %vm15574_vm0 = vmand %vm8004_vm11, %vm1892_vm5 }
 0x2a4   : > { %v10626_v44 = vcombine.low %v6168_v22, %v6169_v17  ;;  %v14802_v22 = vld [vmem:[#allocation3 + $0x34] sm:$0xf]  ;;  %v14804_v17 = vld [vmem:[#allocation3 + $0x38] sm:$0xf] }
 0x2a5   : > { %v6178_v1 = vmul.bf16 %v14804_v17, %v13556_v19 }
 0x2a6   : > { %11458 = vmatmul.mubr.msk.bf16.vlgmr.msra.gmra.mrb[20].mxu1 %vm1697_vm8, %v13636_v0  ;;  %v6167_v0 = vmul.bf16 %v14742_v41, %v14529_v20  ;;  %v14762_v57 = vld [vmem:[#allocation3 + $0x80] sm:$0x1]  ;;  %v6288_v6 = vrot.slane %v10626_v44, 1  ;;  %v14827_v41 = vld [vmem:[#allocation3 + $0x48] sm:$0xf] }
 0x2a7   : > { %11490 = vmatpush3.bf16.msra.mxu1 %v12431_v52  ;;  %11461 = vmatprep.mubr.msk.bf16.mxu1 %vm1697_vm8, %v16491_v10  ;;  %v10468_v11 = vcombine.low %v14762_v57, %v14762_v57  ;;  %16512 = vst [vmem:[#allocation41_spill] sm:$0xff] %v14827_v41 }
 0x2a8   : > { %11491 = vmatprep.subr.bf16.mxu1 %v12332_v3  ;;  %v10625_v10 = vcombine.low %v6166_v13, %v6167_v0  ;;  %v14795_v13 = vld [vmem:[#allocation3 + $0x2c] sm:$0xf] }
 0x2a9   : > { %v3951_v52 = vshll.u32 %v10468_v11, 16  ;;  %16504 = vst [vmem:[#allocation98_spill] sm:$0xff] %v14795_v13  ;;  %v16505_v11 = vld [vmem:[#allocation38_spill] sm:$0xff] }
 0x2aa   : > { %v6287_v0 = vrot.slane %v10625_v10, 1  ;;  %16506 = vst [vmem:[#allocation38_spill] sm:$0xff] %v14804_v17  ;;  %v16510_v10 = vld [vmem:[#allocation43_spill] sm:$0xff]  ;;  %v6183_v17 = vmul.bf16 %v14831_v34, %v13885_v35 }
 0x2ab   : > { %11492 = vmatpush3.bf16.msra.mxu1 %v12332_v3  ;;  %v3953_v31 = vrot.slane %v3951_v52, 1  ;;  %v14788_v3 = vld [vmem:[#allocation3 + $0x24] sm:$0xf]  ;;  %v6172_v52 = vmul.bf16 %v14780_v63, %v16509_v59 }
 0x2ac   : > { %11525 = vmatprep.subr.bf16.mxu1 %v14765_v5  ;;  %16502 = vst [vmem:[#allocation63_spill] sm:$0xff] %v14788_v3  ;;  %v14814_v44 = vsel %vm4970_vm6, %v6287_v0, %v6288_v6  ;;  %v16513_v0 = vld [vmem:[#allocation45_spill] sm:$0xff] }
 0x2ad   : > { %v3954_v15 = vsel %vm3822_vm2, %v3949_v60, %v3953_v31  ;;  %v14809_v60 = vld [vmem:[#allocation3 + $0x3c] sm:$0xf]  ;;  %v14811_v31 = vld [vmem:[#allocation3 + $0x40] sm:$0xf]  ;;  %16508 = vst [vmem:[#allocation39_spill] sm:$0xff] %v14814_v44  ;;  %v6175_v44 = vmul.bf16 %v14795_v13, %v16513_v0 }
 0x2ae   : > { %11462 = vmatmul.mubr.msk.bf16.gmra.mrb[24].mxu1 %vm1697_vm8, %v16499_v27  ;;  %v6170_v27 = vmul.bf16 %v14776_v21, %v16505_v11  ;;  %11414 = vmatmul.mubr.msk.bf16.gmra.mrb[156].mxu0 %vm1697_vm8, %v3954_v15  ;;  %v6173_v15 = vmul.bf16 %v14788_v3, %v16510_v10  ;;  %v16511_v21 = vld [vmem:[#allocation44_spill] sm:$0xff]  ;;  %v6176_v3 = vmul.bf16 %v14800_v56, %v16514_v54 }
 0x2af   : > { %11465 = vmatprep.mubr.msk.bf16.mxu1 %vm1697_vm8, %v13915_v53  ;;  %v6171_v53 = vmul.bf16 %v14778_v48, %v16507_v45  ;;  %11421 = vmatprep.mubr.msk.bf16.mxu0 %vm1697_vm8, %v10487_v51  ;;  %v6174_v12 = vmul.bf16 %v14790_v30, %v16511_v21  ;;  %v10451_v51 = vsel %vm14784_vm3, 1.0, %v16395_v24  ;;  %v14825_v48 = vld [vmem:[#allocation3 + $0x44] sm:$0xf]  ;;  %v6177_v30 = vmul.bf16 %v14802_v22, %v16515_v61 }
 0x2b0   : > { %v10628_v63 = vcombine.low %v6172_v52, %v6173_v15  ;;  %v6181_v52 = vmul.bf16 %v14825_v48, %v13756_v50  ;;  %v6182_v15 = vmul.bf16 %v14827_v41, %v13875_v42 }
 0x2b1   : > { %v10627_v9 = vcombine.low %v6170_v27, %v6171_v53  ;;  %v10629_v5 = vcombine.low %v6174_v12, %v6175_v44  ;;  %v6179_v27 = vmul.bf16 %v14809_v60, %v13594_v37  ;;  %v6180_v53 = vmul.bf16 %v14811_v31, %v13740_v32 }
 0x2b2   : > { %v6292_v13 = vrot.slane %v10628_v63, 1  ;;  %v10630_v0 = vcombine.low %v6176_v3, %v6177_v30  ;;  %v3392_v63 = vpack.c.bf16 %v10451_v51, %v16385_v28  ;;  %v14857_v3 = vld [vmem:[#allocation3 + $0x50] sm:$0xf]  ;;  %v14859_v30 = vld [vmem:[#allocation3 + $0x54] sm:$0xf] }
 0x2b3   : > { %v6290_v24 = vrot.slane %v10627_v9, 1  ;;  %v6294_v12 = vrot.slane %v10629_v5, 1  ;;  %v10631_v44 = vcombine.low %v6178_v1, %v6179_v27  ;;  %v10633_v27 = vcombine.low %v6182_v15, %v6183_v17 }
 0x2b5   : > { %v14850_v9 = vsel %vm4970_vm6, %v6288_v6, %v6290_v24  ;;  %v14862_v41 = vsel %vm4970_vm6, %v6290_v24, %v6292_v13  ;;  %v10632_v6 = vcombine.low %v6180_v53, %v6181_v52  ;;  %v14867_v5 = vsel %vm4970_vm6, %v6292_v13, %v6294_v12 }
 0x2b6   : > { %11466 = vmatmul.mubr.msk.bf16.gmra.mrb[28].mxu1 %vm1697_vm8, %v13994_v46  ;;  %16516 = vst [vmem:[#allocation43_spill] sm:$0xff] %v14850_v9  ;;  %16517 = vst [vmem:[#allocation44_spill] sm:$0xff] %v14862_v41  ;;  %v6296_v46 = vrot.slane %v10630_v0, 1  ;;  %v16518_v9 = vld [vmem:[#allocation51_spill] sm:$0xff]  ;;  %v6298_v1 = vrot.slane %v10631_v44, 1  ;;  %v6302_v0 = vrot.slane %v10633_v27, 1  ;;  %v6184_v53 = vmul.bf16 %v14857_v3, %v14146_v2 }
 0x2b7   : > { %11469 = vmatprep.mubr.msk.bf16.mxu1 %vm1697_vm8, %v14100_v47  ;;  %11422 = vmatmul.mubr.msk.bf16.vlgmr.msra.gmra.mrb[128].mxu0 %vm1697_vm8, %v16518_v9  ;;  %16519 = vst [vmem:[#allocation48_spill] sm:$0xff] %v14867_v5  ;;  %v16520_v47 = vld [vmem:[#allocation55_spill] sm:$0xff]  ;;  %v6300_v51 = vrot.slane %v10632_v6, 1  ;;  %v6185_v13 = vmul.bf16 %v14859_v30, %v14153_v62  ;;  %v4710_v52 = vrot.slane %v3392_v63, %v13102_v23  ;;  %v16529_v23 = vld [vmem:[#allocation62_spill] sm:$0xff]  ;;  %v16539_v5 = vld [vmem:[#allocation29_spill] sm:$0xff] }
 0x2b8   : > { %11425 = vmatprep.mubr.msk.bf16.mxu0 %vm1697_vm8, %v16520_v47  ;;  %v14872_v28 = vsel %vm4970_vm6, %v6294_v12, %v6296_v46  ;;  %v14875_v24 = vsel %vm4970_vm6, %v6296_v46, %v6298_v1  ;;  %v16525_v12 = vld [vmem:[#allocation70_spill] sm:$0xff]  ;;  %v16526_v46 = vld [vmem:[#allocation76_spill] sm:$0xff]  ;;  %v4717_v6 = vrot.slane %v3392_v63, %v13107_v25  ;;  %v2741_v25 = vrot.slane %v14722_v36, 4 }
 0x2b9   : > { %16521 = vst [vmem:[#allocation49_spill] sm:$0xff] %v14872_v28  ;;  %16522 = vst [vmem:[#allocation51_spill] sm:$0xff] %v14875_v24  ;;  %v14883_v17 = vsel %vm4970_vm6, %v6298_v1, %v6300_v51  ;;  %v14886_v15 = vsel %vm4970_vm6, %v6300_v51, %v6302_v0  ;;  %v10634_v9 = vcombine.low %v6184_v53, %v6185_v13  ;;  %v4810_v27 = vrot.slane %v4710_v52, 7  ;;  %v16527_v47 = vld [vmem:[#allocation58_spill] sm:$0xff]  ;;  %v14913_v52 = vld [vmem:[#allocation3 + $0x58] sm:$0xf] }
 0x2ba   : > { %16523 = vst [vmem:[#allocation55_spill] sm:$0xff] %v14883_v17  ;;  %16524 = vst [vmem:[#allocation99_spill] sm:$0xff] %v14886_v15  ;;  %v4809_v51 = vrot.slane %v14641_v14, 4  ;;  %v4813_v13 = vrot.slane %v4717_v6, 7  ;;  %v16531_v14 = vld [vmem:[#allocation66_spill] sm:$0xff] }
 0x2bb   : > { %v6304_v44 = vrot.slane %v10634_v9, 1  ;;  %v4812_v53 = vrot.slane %v4810_v27, 4  ;;  %v16530_v9 = vld [vmem:[#allocation78_spill] sm:$0xff] }
 0x2bc   : > { %v14907_v63 = vsel %vm13192_vm15, %v4809_v51, %v4810_v27  ;;  %v16533_v27 = vld [vmem:[#allocation75_spill] sm:$0xff] }
 0x2bd   : > { %v14896_v1 = vsel %vm4970_vm6, %v6302_v0, %v6304_v44  ;;  %v14911_v0 = vsel %vm13192_vm15, %v4812_v53, %v4813_v13  ;;  %v14927_v53 = vrot.slane %v4813_v13, 4  ;;  %v5257_v13 = vld [vmem:[#allocation3 + $0x8] sm:$0xf] }
 0x2be   : > { %11470 = vmatmul.mubr.msk.bf16.gmra.mrb[0].mxu1 %vm1697_vm8, %v16525_v12  ;;  %16528 = vst [vmem:[#allocation70_spill] sm:$0xff] %v14896_v1  ;;  %v4879_v12 = vmul.bf16 %v14907_v63, %v14714_v33  ;;  %v16538_v1 = vld [vmem:[#allocation77_spill] sm:$0xff] }
 0x2bf   : > { %11473 = vmatprep.mubr.msk.bf16.mxu1 %vm1697_vm8, %v16526_v46  ;;  %11426 = vmatmul.mubr.msk.bf16.gmra.mrb[132].mxu0 %vm1697_vm8, %v16527_v47  ;;  %v16532_v46 = vld [vmem:[#allocation74_spill] sm:$0xff] }
 0x2c0   : > { %11429 = vmatprep.mubr.msk.bf16.mxu0 %vm1697_vm8, %v16529_v23  ;;  %v14915_v23 = vld [vmem:[#allocation3 + $0x5c] sm:$0xf]  ;;  %v6186_v6 = vmul.bf16 %v14913_v52, %v16532_v46 }
 0x2c1   : > { %v6187_v47 = vmul.bf16 %v14915_v23, %v16533_v27 }
 0x2c3   : > { %v10635_v51 = vcombine.low %v6186_v6, %v6187_v47  ;;  %v7481_v47 = vld [vmem:[#allocation3 + $0x10] sm:$0xe] }
 0x2c4   : > { %v7482_v17 = vmul.bf16 %v7481_v47, %v13161_v4  ;;  %v6982_v4 = vld [vmem:[#allocation3 + $0x2c] sm:$0xf] }
 0x2c6   : > { %11474 = vmatmul.mubr.msk.bf16.gmra.mrb[4].mxu1 %vm1697_vm8, %v16530_v9 }
 0x2c7   : > { %11477 = vmatprep.mubr.msk.bf16.mxu1 %vm1697_vm8, %v14477_v16  ;;  %11430 = vmatmul.mubr.msk.bf16.gmra.mrb[136].mxu0 %vm1697_vm8, %v16531_v14  ;;  %v4880_v16 = vmul.bf16 %v14911_v0, %v14716_v55  ;;  %v6306_v14 = vrot.slane %v10635_v51, 1  ;;  %v4881_v55 = vmul.bf16 %v14927_v53, %v14762_v57  ;;  %v14947_v57 = vld [vmem:[#allocation3 + $0x64] sm:$0xf]  ;;  %v2749_v51 = vld [vmem:[#allocation3 + $0x88] sm:$0x1] }
 0x2c8   : > { %16537 = vst [vmem:[#allocation62_spill] sm:$0xff] %v14947_v57  ;;  %v2750_v36 = vsel %vm13332_vm10, %v2741_v25, %v2749_v51  ;;  %v6189_v15 = vmul.bf16 %v14947_v57, %v14385_v18  ;;  %v5260_v25 = vld [vmem:[#allocation3 + $0x14] sm:$0xf]  ;;  %v5261_v51 = vld [vmem:[#allocation3 + $0x18] sm:$0xf]  ;;  %vm7993_vm10 = vcmask 519168  }
 0x2c9   : > { %v10536_v9 = vcombine.low %v4879_v12, %v4880_v16  ;;  %v14934_v33 = vsel %vm4970_vm6, %v6304_v44, %v6306_v14  ;;  %v10537_v6 = vcombine.low %v4881_v55, %v4881_v55  ;;  %v5258_v16 = vld [vmem:[#allocation3 + $0xc] sm:$0xf]  ;;  %v14945_v44 = vld [vmem:[#allocation3 + $0x60] sm:$0xf]  ;;  %2751 = vst [vmem:[#allocation3 + $0x88] sm:$0x1] %v2750_v36  ;;  %vm15567_vm12 = vmand %vm7993_vm10, %vm1916_vm7 }
 0x2ca   : > { %16534 = vst [vmem:[#allocation76_spill] sm:$0xff] %v14934_v33  ;;  %16536 = vst [vmem:[#allocation58_spill] sm:$0xff] %v14945_v44  ;;  %v6977_v55 = vld [vmem:[#allocation3 + $0x18] sm:$0xf]  ;;  %v5259_v33 = vld [vmem:[#allocation3 + $0x10] sm:$0xf] }
 0x2cb   : > { %v5000_v38 = vrot.slane %v10536_v9, 1  ;;  %v5002_v9 = vrot.slane %v10537_v6, 1  ;;  %v6979_v6 = vld [vmem:[#allocation3 + $0x20] sm:$0xf]  ;;  %v6981_v36 = vld [vmem:[#allocation3 + $0x28] sm:$0xf]  ;;  %v5291_v41 = vmul.bf16 %v5259_v33, %v16539_v5 }
 0x2cc   : > { %v7486_v57 = vmul.bf16 %v6979_v6, %v16505_v11  ;;  %v6986_v33 = vld [vmem:[#allocation3 + $0x3c] sm:$0xf] }
 0x2cd   : > { %v5003_v24 = vsel %vm4970_vm6, %v5000_v38, %v5002_v9 }
 0x2ce   : > { %11478 = vmatmul.mubr.msk.bf16.gmra.mrb[8].mxu1 %vm1697_vm8, %v14555_v8  ;;  %v16535_v8 = vrot.slane %v14690_v7, 1  ;;  %v5290_v7 = vmul.bf16 %v5258_v16, %v14757_v43  ;;  %v6980_v16 = vld [vmem:[#allocation3 + $0x24] sm:$0xf]  ;;  %v7484_v43 = vmul.bf16 %v6977_v55, %v16494_v58  ;;  %v16540_v58 = vld [vmem:[#allocation32_spill] sm:$0xff] }
 0x2cf   : > { %11481 = vmatprep.mubr.msk.bf16.mxu1 %vm1697_vm8, %v14654_v29  ;;  %v6976_v29 = vld [vmem:[#allocation3 + $0x14] sm:$0xf] }
 0x2d0   : > { %v5001_v12 = vsel %vm4970_vm6, %v16535_v8, %v5000_v38  ;;  %v6978_v8 = vld [vmem:[#allocation3 + $0x1c] sm:$0xf]  ;;  %v7483_v26 = vmul.bf16 %v6976_v29, %v14529_v20  ;;  %v6983_v29 = vld [vmem:[#allocation3 + $0x30] sm:$0xf] }
 0x2d1   : > { %v16541_v38 = vld [vmem:[#allocation36_spill] sm:$0xff] }
 0x2d2   : > { %v10729_v47 = vcombine.low %v7482_v17, %v7483_v26  ;;  %v5293_v9 = vmul.bf16 %v5261_v51, %v16541_v38  ;;  %v16542_v17 = vld [vmem:[#allocation37_spill] sm:$0xff]  ;;  %v7490_v51 = vmul.bf16 %v6983_v29, %v16511_v21 }
 0x2d3   : > { %v6988_v26 = vld [vmem:[#allocation3 + $0x44] sm:$0xf] }
 0x2d6   : > { %11482 = vmatmul.mubr.msk.bf16.gmra.mrb[12].mxu1 %vm1697_vm8, %v14705_v49  ;;  %v5289_v49 = vmul.bf16 %v5257_v13, %v14747_v39  ;;  %v7485_v39 = vmul.bf16 %v6978_v8, %v16495_v40  ;;  %v5292_v40 = vmul.bf16 %v5260_v25, %v16540_v58  ;;  %v6989_v25 = vld [vmem:[#allocation3 + $0x48] sm:$0xf] }
 0x2d7   : > { %11485 = vmatprep.mubr.msk.bf16.mxu1 %vm1697_vm8, %v5001_v12  ;;  %v6188_v12 = vmul.bf16 %v14945_v44, %v16538_v1  ;;  %v5262_v44 = vld [vmem:[#allocation3 + $0x1c] sm:$0xf] }
 0x2d8   : > { %v10556_v28 = vcombine.low %v5289_v49, %v5290_v7  ;;  %v6985_v49 = vld [vmem:[#allocation3 + $0x38] sm:$0xf]  ;;  %v7487_v7 = vmul.bf16 %v6980_v16, %v16507_v45  ;;  %v5294_v8 = vmul.bf16 %v5262_v44, %v16542_v17  ;;  %v16543_v45 = vld [vmem:[#allocation45_spill] sm:$0xff] }
 0x2d9   : > { %v14959_v13 = vcombine.low %v6188_v12, %v6189_v15  ;;  %v6984_v15 = vld [vmem:[#allocation3 + $0x34] sm:$0xf]  ;;  %v10730_v12 = vcombine.low %v7484_v43, %v7485_v39  ;;  %v6987_v39 = vld [vmem:[#allocation3 + $0x40] sm:$0xf]  ;;  %v7603_v43 = vrot.slane %v10729_v47, 1  ;;  %v7493_v47 = vmul.bf16 %v6986_v33, %v16515_v61 }
 0x2da   : > { %v10731_v6 = vcombine.low %v7486_v57, %v7487_v7  ;;  %v7491_v16 = vmul.bf16 %v6984_v15, %v16543_v45  ;;  %v7494_v44 = vmul.bf16 %v6987_v39, %v13556_v19  ;;  %v5263_v17 = vld [vmem:[#allocation3 + $0x20] sm:$0xf]  ;;  %v5264_v57 = vld [vmem:[#allocation3 + $0x24] sm:$0xf]  ;;  %v12334_v7 = vld [vmem:[#allocation11 + $0x48] sm:$0xff]   ;;  %v7495_v15 = vmul.bf16 %v6988_v26, %v13594_v37 }
 0x2db   : > { %v16311_v20 = vrot.slane %v14959_v13, 1  ;;  %v7604_v11 = vrot.slane %v10730_v12, 1  ;;  %v10557_v12 = vcombine.low %v5291_v41, %v5292_v40  ;;  %v5266_v40 = vld [vmem:[#allocation3 + $0x2c] sm:$0xf]  ;;  %v14994_v19 = vld [vmem:[#allocation3 + $0x54] sm:$0xf] }
 0x2dc   : > { %16546 = vst [vmem:[#allocation74_spill] sm:$0xff] %v14994_v19  ;;  %v10735_v39 = vcombine.low %v7494_v44, %v7495_v15  ;;  %v15011_v45 = vld [vmem:[#allocation11 + $0x50] sm:$0xff]   ;;  %v16556_v44 = vld [vmem:[#allocation79_spill] sm:$0xff] }
 0x2dd   : > { %v14976_v55 = vsel %vm4970_vm6, %v6306_v14, %v16311_v20  ;;  %v7492_v14 = vmul.bf16 %v6985_v49, %v16514_v54  ;;  %v6990_v20 = vld [vmem:[#allocation3 + $0x4c] sm:$0xf]  ;;  %v6991_v54 = vld [vmem:[#allocation3 + $0x50] sm:$0xf]  ;;  %v15027_v15 = vld [vmem:[#allocation3 + $0x5c] sm:$0xf] }
 0x2de   : > { %11486 = vmatmul.mubr.msk.bf16.gmra.mrb[16].mxu1 %vm1697_vm8, %v5003_v24  ;;  %v7488_v24 = vmul.bf16 %v6981_v36, %v16509_v59  ;;  %v14983_v59 = vsel %vm4970_vm6, %v7603_v43, %v7604_v11  ;;  %v7496_v43 = vmul.bf16 %v6989_v25, %v13740_v32  ;;  %v7497_v37 = vmul.bf16 %v6990_v20, %v13756_v50  ;;  %v16548_v32 = vld [vmem:[#allocation95_spill] sm:$0xff]  ;;  %v15004_v25 = vld [vmem:[#allocation3 + $0x68] sm:$0xf] }
 0x2df   : > { %11493 = vmatprep.mubr.msk.bf16.mxu1 %vm1697_vm8, %v10556_v28  ;;  %v7489_v28 = vmul.bf16 %v6982_v4, %v16510_v10  ;;  %16544 = vst [vmem:[#allocation78_spill] sm:$0xff] %v14983_v59  ;;  %v7606_v10 = vrot.slane %v10731_v6, 1  ;;  %v10733_v4 = vcombine.low %v7490_v51, %v7491_v16  ;;  %v10734_v29 = vcombine.low %v7492_v14, %v7493_v47  ;;  %v15006_v6 = vld [vmem:[#allocation3 + $0x6c] sm:$0xf]  ;;  %v5277_v59 = vld [vmem:[#allocation3 + $0x58] sm:$0xf] }
 0x2e0   : > { %v7614_v20 = vrot.slane %v10735_v39, 1  ;;  %v10736_v16 = vcombine.low %v7496_v43, %v7497_v37  ;;  %v16554_v47 = vld [vmem:[#allocation47_spill] sm:$0xff]  ;;  %16558 = vst [vmem:[#allocation36_spill] sm:$0xff] %v15027_v15 }
 0x2e1   : > { %v10732_v36 = vcombine.low %v7488_v24, %v7489_v28  ;;  %v10558_v24 = vcombine.low %v5293_v9, %v5294_v8  ;;  %v5265_v28 = vld [vmem:[#allocation3 + $0x28] sm:$0xf]  ;;  %v14991_v61 = vsel %vm4970_vm6, %v7604_v11, %v7606_v10  ;;  %v7610_v41 = vrot.slane %v10733_v4, 1  ;;  %v16549_v9 = vld [vmem:[#allocation40_spill] sm:$0xff] }
 0x2e2   : > { %16545 = vst [vmem:[#allocation66_spill] sm:$0xff] %v14991_v61  ;;  %v7612_v33 = vrot.slane %v10734_v29, 1  ;;  %v5295_v11 = vmul.bf16 %v5263_v17, %v16549_v9  ;;  %v16550_v8 = vld [vmem:[#allocation42_spill] sm:$0xff]  ;;  %v7499_v4 = vmul.bf16 %v14994_v19, %v13885_v35  ;;  %v7616_v43 = vrot.slane %v10736_v16, 1  ;;  %v5268_v39 = vld [vmem:[#allocation3 + $0x34] sm:$0xf] }
 0x2e3   : > { %v7608_v21 = vrot.slane %v10732_v36, 1  ;;  %v5296_v26 = vmul.bf16 %v5264_v57, %v16550_v8  ;;  %v7498_v36 = vmul.bf16 %v6991_v54, %v13875_v42  ;;  %v16553_v17 = vld [vmem:[#allocation46_spill] sm:$0xff]  ;;  %v6190_v57 = vmul.bf16 %v15004_v25, %v16556_v44  ;;  %v5276_v61 = vld [vmem:[#allocation3 + $0x54] sm:$0xf] }
 0x2e4   : > { %v15014_v50 = vsel %vm4970_vm6, %v7610_v41, %v7612_v33  ;;  %v5297_v14 = vmul.bf16 %v5265_v28, %v16553_v17  ;;  %v15030_v42 = vsel %vm4970_vm6, %v7612_v33, %v7614_v20  ;;  %v15036_v37 = vsel %vm4970_vm6, %v7614_v20, %v7616_v43  ;;  %v5269_v33 = vld [vmem:[#allocation3 + $0x38] sm:$0xf] }
 0x2e5   : > { %v14997_v49 = vsel %vm4970_vm6, %v7606_v10, %v7608_v21  ;;  %v15009_v51 = vsel %vm4970_vm6, %v7608_v21, %v7610_v41  ;;  %16552 = vst [vmem:[#allocation29_spill] sm:$0xff] %v15014_v50  ;;  %v15019_v10 = vld [vmem:[#allocation3 + $0x58] sm:$0xf]  ;;  %16559 = vst [vmem:[#allocation45_spill] sm:$0xff] %v15030_v42  ;;  %v10737_v54 = vcombine.low %v7498_v36, %v7499_v4  ;;  %v16561_v36 = vld [vmem:[#allocation50_spill] sm:$0xff]  ;;  %v16563_v4 = vrot.slane %v14959_v13, 1 }
 0x2e6   : > { %11494 = vmatmul.mubr.msk.bf16.vlgmr.msra.gmra.mrb[20].mxu1 %vm1697_vm8, %v10557_v12  ;;  %16547 = vst [vmem:[#allocation75_spill] sm:$0xff] %v14997_v49  ;;  %16551 = vst [vmem:[#allocation77_spill] sm:$0xff] %v15009_v51  ;;  %v5298_v12 = vmul.bf16 %v5266_v40, %v16554_v47  ;;  %v16557_v21 = vld [vmem:[#allocation80_spill] sm:$0xff]  ;;  %v7500_v35 = vmul.bf16 %v15019_v10, %v14146_v2  ;;  %v5267_v40 = vld [vmem:[#allocation3 + $0x30] sm:$0xf] }
 0x2e7   : > { %11526 = vmatpush3.bf16.msra.mxu1 %v16548_v32  ;;  %11497 = vmatprep.mubr.msk.bf16.mxu1 %vm1697_vm8, %v10558_v24  ;;  %16555 = vst [vmem:[#allocation32_spill] sm:$0xff] %v15019_v10  ;;  %v6191_v29 = vmul.bf16 %v15006_v6, %v16557_v21  ;;  %v10559_v24 = vcombine.low %v5295_v11, %v5296_v26  ;;  %16560 = vst [vmem:[#allocation95_spill] sm:$0xff] %v15036_v37  ;;  %v5270_v32 = vld [vmem:[#allocation3 + $0x3c] sm:$0xf]  ;;  %v7618_v26 = vrot.slane %v10737_v54, 1 }
 0x2e8   : > { %11527 = vmatprep.subr.bf16.mxu1 %v12334_v7  ;;  %v10560_v41 = vcombine.low %v5297_v14, %v5298_v12  ;;  %v5299_v2 = vmul.bf16 %v5267_v40, %v16561_v36  ;;  %v16562_v14 = vld [vmem:[#allocation52_spill] sm:$0xff]  ;;  %v5273_v13 = vld [vmem:[#allocation3 + $0x48] sm:$0xf]  ;;  %v16605_v36 = vld [vmem:[#allocation63_spill] sm:$0xff] }
 0x2e9   : > { %v10637_v28 = vcombine.low %v6190_v57, %v6191_v29  ;;  %v5300_v12 = vmul.bf16 %v5268_v39, %v16562_v14  ;;  %v16565_v57 = vld [vmem:[#allocation53_spill] sm:$0xff]  ;;  %v16606_v47 = vld [vmem:[#allocation96_spill] sm:$0xff] }
 0x2ea   : > { %v5301_v29 = vmul.bf16 %v5269_v33, %v16565_v57  ;;  %v5272_v39 = vld [vmem:[#allocation3 + $0x44] sm:$0xf]  ;;  %v16568_v33 = vld [vmem:[#allocation56_spill] sm:$0xff]  ;;  %v10593_v17 = vcombine.low %v16606_v47, %v16605_v36 }
 0x2eb   : > { %11528 = vmatpush3.bf16.msra.mxu1 %v12334_v7  ;;  %v7501_v7 = vmul.bf16 %v15027_v15, %v14153_v62  ;;  %v6310_v11 = vrot.slane %v10637_v28, 1  ;;  %v15050_v62 = vsel %vm4970_vm6, %v7616_v43, %v7618_v26  ;;  %v15059_v43 = vld [vmem:[#allocation3 + $0x70] sm:$0xf]  ;;  %v5278_v10 = vld [vmem:[#allocation3 + $0x5c] sm:$0xf]  ;;  %v16598_v57 = vld [vmem:[#allocation94_spill] sm:$0xff] }
 0x2ec   : > { %11561 = vmatprep.subr.bf16.mxu1 %v15011_v45  ;;  %16564 = vst [vmem:[#allocation79_spill] sm:$0xff] %v15050_v62  ;;  %v15061_v62 = vld [vmem:[#allocation3 + $0x74] sm:$0xf]  ;;  %v16599_v14 = vld [vmem:[#allocation93_spill] sm:$0xff]  ;;  %v5804_v36 = vshll.u32 %v10593_v17, 16 }
 0x2ed   : > { %v10738_v16 = vcombine.low %v7500_v35, %v7501_v7  ;;  %v15047_v20 = vsel %vm4970_vm6, %v16563_v4, %v6310_v11  ;;  %v10561_v35 = vcombine.low %v5299_v2, %v5300_v12  ;;  %v5271_v7 = vld [vmem:[#allocation3 + $0x40] sm:$0xf]  ;;  %v5274_v4 = vld [vmem:[#allocation3 + $0x4c] sm:$0xf] }
 0x2ee   : > { %11498 = vmatmul.mubr.msk.bf16.gmra.mrb[24].mxu1 %vm1697_vm8, %v10559_v24  ;;  %v16566_v24 = vld [vmem:[#allocation54_spill] sm:$0xff]  ;;  %v16571_v2 = vld [vmem:[#allocation61_spill] sm:$0xff] }
 0x2ef   : > { %11501 = vmatprep.mubr.msk.bf16.mxu1 %vm1697_vm8, %v10560_v41  ;;  %v5302_v28 = vmul.bf16 %v5270_v32, %v16566_v24  ;;  %v7620_v54 = vrot.slane %v10738_v16, 1  ;;  %v5303_v32 = vmul.bf16 %v5271_v7, %v16568_v33  ;;  %v16569_v16 = vld [vmem:[#allocation59_spill] sm:$0xff]  ;;  %v5306_v12 = vmul.bf16 %v5274_v4, %v16571_v2  ;;  %v16576_v2 = vld [vmem:[#allocation64_spill] sm:$0xff]  ;;  %v16595_v24 = vld [vmem:[#allocation82_spill] sm:$0xff] }
 0x2f0   : > { %v5304_v37 = vmul.bf16 %v5272_v39, %v16569_v16  ;;  %v5275_v4 = vld [vmem:[#allocation3 + $0x50] sm:$0xf] }
 0x2f1   : > { %v15055_v41 = vsel %vm4970_vm6, %v7618_v26, %v7620_v54  ;;  %v10562_v40 = vcombine.low %v5301_v29, %v5302_v28  ;;  %v16570_v26 = vld [vmem:[#allocation60_spill] sm:$0xff]  ;;  %v15067_v29 = vld [vmem:[#allocation3 + $0x60] sm:$0xf]  ;;  %v15069_v28 = vld [vmem:[#allocation3 + $0x64] sm:$0xf] }
 0x2f2   : > { %16567 = vst [vmem:[#allocation80_spill] sm:$0xff] %v15055_v41  ;;  %v5305_v41 = vmul.bf16 %v5273_v13, %v16570_v26  ;;  %16572 = vst [vmem:[#allocation100_spill] sm:$0xff] %v15067_v29  ;;  %v10563_v51 = vcombine.low %v5303_v32, %v5304_v37  ;;  %v7502_v7 = vmul.bf16 %v15067_v29, %v16532_v46  ;;  %v5286_v26 = vld [vmem:[#allocation3 + $0x7c] sm:$0xf] }
 0x2f3   : > { %16573 = vst [vmem:[#allocation101_spill] sm:$0xff] %v15069_v28  ;;  %v7503_v39 = vmul.bf16 %v15069_v28, %v16533_v27  ;;  %v5307_v37 = vmul.bf16 %v5275_v4, %v16576_v2  ;;  %v16578_v27 = vld [vmem:[#allocation67_spill] sm:$0xff] }
 0x2f4   : > { %v10564_v13 = vcombine.low %v5305_v41, %v5306_v12  ;;  %v5309_v41 = vmul.bf16 %v5277_v59, %v16578_v27  ;;  %v16579_v12 = vld [vmem:[#allocation68_spill] sm:$0xff]  ;;  %v5282_v4 = vld [vmem:[#allocation3 + $0x6c] sm:$0xf]  ;;  %v15107_v27 = vld [vmem:[#allocation3 + $0x68] sm:$0xf] }
 0x2f5   : > { %v10739_v19 = vcombine.low %v7502_v7, %v7503_v39  ;;  %v5310_v29 = vmul.bf16 %v5278_v10, %v16579_v12  ;;  %v5279_v7 = vld [vmem:[#allocation3 + $0x60] sm:$0xf]  ;;  %v5280_v39 = vld [vmem:[#allocation3 + $0x64] sm:$0xf]  ;;  %v15097_v59 = vld [vmem:[#allocation3 + $0x7c] sm:$0xf] }
 0x2f6   : > { %11502 = vmatmul.mubr.msk.bf16.gmra.mrb[28].mxu1 %vm1697_vm8, %v10561_v35  ;;  %v16574_v35 = vld [vmem:[#allocation83_spill] sm:$0xff]  ;;  %16588 = vst [vmem:[#allocation104_spill] sm:$0xff] %v15107_v27 }
 0x2f7   : > { %11505 = vmatprep.mubr.msk.bf16.mxu1 %vm1697_vm8, %v10562_v40  ;;  %v6192_v42 = vmul.bf16 %v15059_v43, %v16574_v35  ;;  %v16575_v40 = vld [vmem:[#allocation84_spill] sm:$0xff]  ;;  %v7622_v32 = vrot.slane %v10739_v19, 1 }
 0x2f8   : > { %v6193_v50 = vmul.bf16 %v15061_v62, %v16575_v40  ;;  %v15095_v19 = vld [vmem:[#allocation3 + $0x78] sm:$0xf] }
 0x2fa   : > { %v10638_v49 = vcombine.low %v6192_v42, %v6193_v50  ;;  %v16577_v50 = vld [vmem:[#allocation65_spill] sm:$0xff] }
 0x2fb   : > { %v5308_v42 = vmul.bf16 %v5276_v61, %v16577_v50  ;;  %v16591_v50 = vld [vmem:[#allocation87_spill] sm:$0xff] }
 0x2fc   : > { %v6312_v15 = vrot.slane %v10638_v49, 1  ;;  %v10566_v49 = vcombine.low %v5309_v41, %v5310_v29  ;;  %v16586_v41 = vld [vmem:[#allocation72_spill] sm:$0xff]  ;;  %v6194_v2 = vmul.bf16 %v15095_v19, %v16591_v50 }
 0x2fd   : > { %v10565_v28 = vcombine.low %v5307_v37, %v5308_v42  ;;  %v16584_v37 = vld [vmem:[#allocation71_spill] sm:$0xff] }
 0x2fe   : > { %11506 = vmatmul.mubr.msk.bf16.gmra.mrb[0].mxu1 %vm1697_vm8, %v10563_v51  ;;  %v15084_v46 = vsel %vm4970_vm6, %v6310_v11, %v6312_v15  ;;  %v15089_v51 = vsel %vm4970_vm6, %v7620_v54, %v7622_v32  ;;  %v16583_v11 = vld [vmem:[#allocation69_spill] sm:$0xff]  ;;  %v5312_v29 = vmul.bf16 %v5280_v39, %v16584_v37  ;;  %v5659_v39 = vld [vmem:[#allocation3 + $0x8] sm:$0xf] }
 0x2ff   : > { %11509 = vmatprep.mubr.msk.bf16.mxu1 %vm1697_vm8, %v10564_v13  ;;  %16580 = vst [vmem:[#allocation83_spill] sm:$0xff] %v15089_v51  ;;  %v5281_v13 = vld [vmem:[#allocation3 + $0x68] sm:$0xf]  ;;  %v5311_v54 = vmul.bf16 %v5279_v7, %v16583_v11  ;;  %v16587_v51 = vld [vmem:[#allocation73_spill] sm:$0xff] }
 0x300   : > { %v5314_v12 = vmul.bf16 %v5282_v4, %v16587_v51  ;;  %v5283_v51 = vld [vmem:[#allocation3 + $0x70] sm:$0xf] }
 0x301   : > { %v10567_v11 = vcombine.low %v5311_v54, %v5312_v29  ;;  %v16593_v54 = vld [vmem:[#allocation91_spill] sm:$0xff] }
 0x302   : > { %v10590_v29 = vcombine.low %v5659_v39, %v16593_v54  ;;  %v15136_v39 = vld [vmem:[#allocation3 + $0x80] sm:$0xf]  ;;  %v5288_v54 = vld [vmem:[#allocation3 + $0x84] sm:$0xf] }
 0x303   : > { %v15092_v61 = vpop.f32.mrb[140].mxu0 }
 0x304   : > { %16581 = vst [vmem:[#allocation84_spill] sm:$0xff] %v15092_v61  ;;  %v15099_v10 = vpop.f32.mrb[141].mxu0  ;;  %v15109_v61 = vld [vmem:[#allocation3 + $0x6c] sm:$0xf] }
 0x305   : > { %16582 = vst [vmem:[#allocation102_spill] sm:$0xff] %v15099_v10  ;;  %v15103_v42 = vpop.f32.mrb[142].mxu0  ;;  %16589 = vst [vmem:[#allocation105_spill] sm:$0xff] %v15109_v61  ;;  %v16592_v10 = vld [vmem:[#allocation88_spill] sm:$0xff]  ;;  %v7505_v4 = vmul.bf16 %v15109_v61, %v14385_v18  ;;  %v16597_v61 = vld [vmem:[#allocation86_spill] sm:$0xff] }
 0x306   : > { %11510 = vmatmul.mubr.msk.bf16.gmra.mrb[4].mxu1 %vm1697_vm8, %v10565_v28  ;;  %16585 = vst [vmem:[#allocation103_spill] sm:$0xff] %v15103_v42  ;;  %v5313_v28 = vmul.bf16 %v5281_v13, %v16586_v41  ;;  %v6195_v7 = vmul.bf16 %v15097_v59, %v16592_v10  ;;  %v7504_v13 = vmul.bf16 %v15107_v27, %v16538_v1  ;;  %v5284_v41 = vld [vmem:[#allocation3 + $0x74] sm:$0xf] }
 0x307   : > { %11513 = vmatprep.mubr.msk.bf16.mxu1 %vm1697_vm8, %v10566_v49  ;;  %v15111_v49 = vpop.f32.mrb[143].mxu0  ;;  %v5316_v1 = vmul.bf16 %v5284_v41, %v16595_v24  ;;  %v15152_v24 = vld [vmem:[#allocation3 + $0x70] sm:$0xf] }
 0x308   : > { %16590 = vst [vmem:[#allocation106_spill] sm:$0xff] %v15111_v49  ;;  %v10639_v37 = vcombine.low %v6194_v2, %v6195_v7  ;;  %v10568_v42 = vcombine.low %v5313_v28, %v5314_v12  ;;  %v5285_v49 = vld [vmem:[#allocation3 + $0x78] sm:$0xf]  ;;  %v10740_v33 = vcombine.low %v7504_v13, %v7505_v4  ;;  %v16594_v2 = vld [vmem:[#allocation81_spill] sm:$0xff] }
 0x309   : > { %v5315_v7 = vmul.bf16 %v5283_v51, %v16594_v2  ;;  %v16596_v12 = vld [vmem:[#allocation85_spill] sm:$0xff] }
 0x30a   : > { %v6314_v16 = vrot.slane %v10639_v37, 1  ;;  %v7624_v18 = vrot.slane %v10740_v33, 1  ;;  %v5317_v28 = vmul.bf16 %v5285_v49, %v16596_v12  ;;  %v10591_v37 = vcombine.low %v16599_v14, %v16598_v57  ;;  %v15138_v51 = vld [vmem:[#allocation3 + $0x84] sm:$0xf] }
 0x30b   : > { %v10569_v41 = vcombine.low %v5315_v7, %v5316_v1  ;;  %v6197_v14 = vmul.bf16 %v15138_v51, %v14911_v0  ;;  %v16602_v49 = vld [vmem:[#allocation34_spill] sm:$0xff]  ;;  %v16603_v7 = vld [vmem:[#allocation89_spill] sm:$0xff]  ;;  %v5781_v12 = vshrl.u32 %v10590_v29, 16 }
 0x30c   : > { %v15127_v27 = vsel %vm4970_vm6, %v6312_v15, %v6314_v16  ;;  %v15134_v13 = vsel %vm4970_vm6, %v7622_v32, %v7624_v18  ;;  %v5287_v15 = vld [vmem:[#allocation3 + $0x80] sm:$0xf]  ;;  %v5788_v33 = vshll.u32 %v10591_v37, 16  ;;  %v16601_v32 = vld [vmem:[#allocation35_spill] sm:$0xff] }
 0x30d   : > { %16600 = vst [vmem:[#allocation87_spill] sm:$0xff] %v15134_v13  ;;  %v10592_v13 = vcombine.low %v16602_v49, %v16601_v32  ;;  %v5319_v1 = vmul.bf16 %v5287_v15, %v16603_v7 }
 0x30e   : > { %11514 = vmatmul.mubr.msk.bf16.gmra.mrb[8].mxu1 %vm1697_vm8, %v10567_v11  ;;  %v5318_v11 = vmul.bf16 %v5286_v26, %v16597_v61  ;;  %v6196_v26 = vmul.bf16 %v15136_v39, %v14907_v63  ;;  %v15148_v61 = vld [vmem:[#allocation3 + $0x88] sm:$0x1]  ;;  %v5790_v2 = vrot.slane %v5788_v33, 1 }
 0x30f   : > { %11517 = vmatprep.mubr.msk.bf16.mxu1 %vm1697_vm8, %v10568_v42  ;;  %v5783_v42 = vshll.u32 %v10590_v29, 16  ;;  %v5796_v49 = vshll.u32 %v10592_v13, 16  ;;  %v7506_v29 = vmul.bf16 %v15152_v24, %v16556_v44  ;;  %v5792_v44 = vshrl.u32 %v10591_v37, 16 }
 0x310   : > { %v10570_v4 = vcombine.low %v5317_v28, %v5318_v11  ;;  %v16604_v28 = vld [vmem:[#allocation90_spill] sm:$0xff] }
 0x311   : > { %v5785_v57 = vrot.slane %v5783_v42, 1  ;;  %v5320_v11 = vmul.bf16 %v5288_v54, %v16604_v28  ;;  %v6198_v42 = vmul.bf16 %v15148_v61, %v14927_v53 }
 0x313   : > { %v5786_v32 = vor.u32 %v5785_v57, %v5781_v12  ;;  %v10571_v9 = vcombine.low %v5319_v1, %v5320_v11  ;;  %v10641_v54 = vcombine.low %v6198_v42, %v6198_v42  ;;  %v16607_v57 = vld [vmem:[#allocation98_spill] sm:$0xff]  ;;  %v5800_v42 = vshrl.u32 %v10592_v13, 16 }
 0x315   : > { %v5791_v47 = vsel %vm3822_vm2, %v5786_v32, %v5790_v2  ;;  %v5794_v32 = vor.u32 %v5792_v44, %v5790_v2 }
 0x316   : > { %11518 = vmatmul.mubr.msk.bf16.gmra.mrb[12].mxu1 %vm1697_vm8, %v10569_v41  ;;  %v10640_v41 = vcombine.low %v6196_v26, %v6197_v14  ;;  %v6318_v26 = vrot.slane %v10641_v54, 1  ;;  %v5798_v14 = vrot.slane %v5796_v49, 1 }
 0x317   : > { %11521 = vmatprep.mubr.msk.bf16.mxu1 %vm1697_vm8, %v10570_v4  ;;  %v15158_v4 = vld [vmem:[#allocation3 + $0x74] sm:$0xf] }
 0x318   : > { %v6316_v8 = vrot.slane %v10640_v41, 1  ;;  %v7507_v33 = vmul.bf16 %v15158_v4, %v16557_v21  ;;  %v5806_v21 = vrot.slane %v5804_v36, 1  ;;  %v5802_v49 = vor.u32 %v5800_v42, %v5798_v14 }
 0x31a   : > { %v15161_v15 = vsel %vm4970_vm6, %v6314_v16, %v6316_v8  ;;  %v10741_v12 = vcombine.low %v7506_v29, %v7507_v33  ;;  %v16608_v16 = vld [vmem:[#allocation97_spill] sm:$0xff]  ;;  %v15173_v11 = vsel %vm4970_vm6, %v6316_v8, %v6318_v26  ;;  %v5799_v8 = vsel %vm3822_vm2, %v5794_v32, %v5798_v14  ;;  %v15195_v26 = vld [vmem:[#allocation11 + $0x60] sm:$0xff]   ;;  %v15197_v14 = vld [vmem:[#allocation3 + $0x78] sm:$0xf] }
 0x31b   : > { %v10594_v1 = vcombine.low %v16608_v16, %v16607_v57  ;;  %v12346_v33 = vld [vmem:[#allocation11 + $0x58] sm:$0xff]   ;;  %v5807_v13 = vsel %vm3822_vm2, %v5802_v49, %v5806_v21  ;;  %v15199_v16 = vld [vmem:[#allocation3 + $0x7c] sm:$0xf] }
 0x31c   : > { %v7626_v41 = vrot.slane %v10741_v12, 1  ;;  %v5808_v12 = vshrl.u32 %v10593_v17, 16  ;;  %v7509_v17 = vmul.bf16 %v15199_v16, %v16575_v40  ;;  %v10599_v40 = vcombine.low %v14857_v3, %v14859_v30  ;;  %v15225_v30 = vld [vmem:[#allocation3 + $0x80] sm:$0xf] }
 0x31d   : > { %v5812_v29 = vshll.u32 %v10594_v1, 16  ;;  %v5816_v44 = vshrl.u32 %v10594_v1, 16 }
 0x31e   : > { %11522 = vmatmul.mubr.msk.bf16.gmra.mrb[16].mxu1 %vm1697_vm8, %v10571_v9  ;;  %v10595_v9 = vcombine.low %v14800_v56, %v14802_v22  ;;  %v15178_v54 = vsel %vm4970_vm6, %v7624_v18, %v7626_v41  ;;  %v16609_v18 = vld [vmem:[#allocation38_spill] sm:$0xff]  ;;  %v5810_v32 = vor.u32 %v5808_v12, %v5806_v21  ;;  %v16610_v21 = vld [vmem:[#allocation41_spill] sm:$0xff] }
 0x31f   : > { %11529 = vmatprep.mubr.msk.bf16.mxu1 %vm1697_vm8, %v5791_v47  ;;  %v5814_v2 = vrot.slane %v5812_v29, 1  ;;  %v10596_v36 = vcombine.low %v16609_v18, %v14809_v60  ;;  %v7508_v60 = vmul.bf16 %v15197_v14, %v16574_v35 }
 0x320   : > { %v15180_v47 = vpop.f32.mrb[144].mxu0  ;;  %v5820_v56 = vshll.u32 %v10595_v9, 16  ;;  %v5824_v18 = vshrl.u32 %v10595_v9, 16 }
 0x321   : > { %v15182_v57 = vpop.f32.mrb[145].mxu0  ;;  %v5818_v49 = vor.u32 %v5816_v44, %v5814_v2  ;;  %v5828_v29 = vshll.u32 %v10596_v36, 16  ;;  %v5832_v35 = vshrl.u32 %v10596_v36, 16  ;;  %v10600_v36 = vcombine.low %v14913_v52, %v14915_v23 }
 0x322   : > { %v15185_v37 = vpop.f32.mrb[146].mxu0  ;;  %v5822_v42 = vrot.slane %v5820_v56, 1  ;;  %v7510_v52 = vmul.bf16 %v15225_v30, %v16591_v50 }
 0x323   : > { %v15190_v22 = vpop.f32.mrb[147].mxu0 }
 0x324   : > { %v5823_v1 = vsel %vm3822_vm2, %v5818_v49, %v5822_v42  ;;  %v5826_v44 = vor.u32 %v5824_v18, %v5822_v42 }
 0x326   : > { %11530 = vmatmul.mubr.msk.bf16.vlgmr.msra.gmra.mrb[20].mxu1 %vm1697_vm8, %v5799_v8  ;;  %v5815_v8 = vsel %vm3822_vm2, %v5810_v32, %v5814_v2 }
 0x327   : > { %11562 = vmatpush3.bf16.msra.mxu1 %v15011_v45  ;;  %11533 = vmatprep.mubr.msk.bf16.mxu1 %vm1697_vm8, %v5807_v13  ;;  %v10597_v45 = vcombine.low %v14811_v31, %v14825_v48  ;;  %v10742_v48 = vcombine.low %v7508_v60, %v7509_v17  ;;  %v5830_v31 = vrot.slane %v5828_v29, 1 }
 0x328   : > { %11563 = vmatprep.subr.bf16.mxu1 %v12346_v33 }
 0x329   : > { %v5836_v13 = vshll.u32 %v10597_v45, 16  ;;  %v7628_v56 = vrot.slane %v10742_v48, 1  ;;  %v5834_v32 = vor.u32 %v5832_v35, %v5830_v31  ;;  %v5831_v60 = vsel %vm3822_vm2, %v5826_v44, %v5830_v31  ;;  %v15231_v48 = vld [vmem:[#allocation3 + $0x88] sm:$0xf]  ;;  %v15233_v31 = vld [vmem:[#allocation3 + $0x8c] sm:$0xf] }
 0x32a   : > { %v5840_v3 = vshrl.u32 %v10597_v45, 16  ;;  %v5860_v35 = vshll.u32 %v10600_v36, 16  ;;  %v7513_v44 = vmul.bf16 %v15233_v31, %v14911_v0 }
 0x32b   : > { %11564 = vmatpush3.bf16.msra.mxu1 %v12346_v33  ;;  %v10598_v33 = vcombine.low %v16610_v21, %v14831_v34  ;;  %v5838_v12 = vrot.slane %v5836_v13, 1  ;;  %v15217_v2 = vsel %vm4970_vm6, %v7626_v41, %v7628_v56  ;;  %v5852_v34 = vshll.u32 %v10599_v40, 16  ;;  %v15227_v41 = vld [vmem:[#allocation3 + $0x84] sm:$0xf] }
 0x32c   : > { %11597 = vmatprep.subr.bf16.mxu1 %v15195_v26  ;;  %v7511_v23 = vmul.bf16 %v15227_v41, %v16592_v10  ;;  %v10602_v10 = vcombine.low %v15004_v25, %v15006_v6 }
 0x32d   : > { %v5844_v49 = vshll.u32 %v10598_v33, 16  ;;  %v5839_v29 = vsel %vm3822_vm2, %v5834_v32, %v5838_v12  ;;  %v5848_v42 = vshrl.u32 %v10598_v33, 16  ;;  %v5854_v17 = vrot.slane %v5852_v34, 1 }
 0x32e   : > { %11534 = vmatmul.mubr.msk.bf16.gmra.mrb[24].mxu1 %vm1697_vm8, %v5815_v8  ;;  %v16611_v8 = vld [vmem:[#allocation62_spill] sm:$0xff]  ;;  %v5842_v21 = vor.u32 %v5840_v3, %v5838_v12  ;;  %v7512_v33 = vmul.bf16 %v15231_v48, %v14907_v63  ;;  %v5856_v34 = vshrl.u32 %v10599_v40, 16  ;;  %v10603_v3 = vcombine.low %v15059_v43, %v15061_v62 }
 0x32f   : > { %11537 = vmatprep.mubr.msk.bf16.mxu1 %vm1697_vm8, %v5823_v1  ;;  %v5846_v9 = vrot.slane %v5844_v49, 1  ;;  %v16612_v1 = vld [vmem:[#allocation58_spill] sm:$0xff]  ;;  %v10743_v49 = vcombine.low %v7510_v52, %v7511_v23  ;;  %v5876_v25 = vshll.u32 %v10602_v10, 16  ;;  %v5880_v23 = vshrl.u32 %v10602_v10, 16 }
 0x330   : > { %v10601_v13 = vcombine.low %v16612_v1, %v16611_v8  ;;  %v15247_v50 = vcombine.low %v7512_v33, %v7513_v44  ;;  %v5858_v8 = vor.u32 %v5856_v34, %v5854_v17  ;;  %v5884_v43 = vshll.u32 %v10603_v3, 16 }
 0x331   : > { %v5850_v18 = vor.u32 %v5848_v42, %v5846_v9  ;;  %v5847_v45 = vsel %vm3822_vm2, %v5842_v21, %v5846_v9  ;;  %v5864_v9 = vshrl.u32 %v10600_v36, 16  ;;  %v10605_v33 = vcombine.low %v15136_v39, %v15138_v51 }
 0x332   : > { %v5868_v32 = vshll.u32 %v10601_v13, 16  ;;  %v7632_v63 = vrot.slane %v15247_v50, 1  ;;  %v5872_v52 = vshrl.u32 %v10601_v13, 16 }
 0x333   : > { %v5855_v12 = vsel %vm3822_vm2, %v5850_v18, %v5854_v17  ;;  %v5878_v17 = vrot.slane %v5876_v25, 1 }
 0x334   : > { %v5870_v0 = vrot.slane %v5868_v32, 1 }
 0x336   : > { %11538 = vmatmul.mubr.msk.bf16.gmra.mrb[28].mxu1 %vm1697_vm8, %v5831_v60  ;;  %v5862_v60 = vrot.slane %v5860_v35, 1  ;;  %v10604_v35 = vcombine.low %v15095_v19, %v15097_v59  ;;  %v5874_v44 = vor.u32 %v5872_v52, %v5870_v0  ;;  %v5888_v19 = vshrl.u32 %v10603_v3, 16  ;;  %v15286_v3 = vld [vmem:[#allocation3 + $0x90] sm:$0x1]  ;;  %v12355_v52 = vld [vmem:[#allocation11 + $0x68] sm:$0xff]  }
 0x337   : > { %11541 = vmatprep.mubr.msk.bf16.mxu1 %vm1697_vm8, %v5839_v29  ;;  %v7630_v29 = vrot.slane %v10743_v49, 1  ;;  %v10606_v59 = vcombine.low %v15148_v61, %v15148_v61 }
 0x338   : > { %v5866_v18 = vor.u32 %v5864_v9, %v5862_v60  ;;  %v5863_v40 = vsel %vm3822_vm2, %v5858_v8, %v5862_v60  ;;  %v5892_v32 = vshll.u32 %v10604_v35, 16  ;;  %v5879_v49 = vsel %vm3822_vm2, %v5874_v44, %v5878_v17  ;;  %v16614_v44 = vld [vmem:[#allocation43_spill] sm:$0xff] }
 0x339   : > { %v15255_v42 = vsel %vm4970_vm6, %v7628_v56, %v7630_v29  ;;  %v15258_v1 = vsel %vm4970_vm6, %v7630_v29, %v7632_v63  ;;  %v5900_v60 = vshll.u32 %v10605_v33, 16  ;;  %v5896_v13 = vshrl.u32 %v10604_v35, 16 }
 0x33a   : > { %v5871_v62 = vsel %vm3822_vm2, %v5866_v18, %v5870_v0  ;;  %v5894_v29 = vrot.slane %v5892_v32, 1  ;;  %v5908_v9 = vshll.u32 %v10606_v59, 16  ;;  %v5904_v8 = vshrl.u32 %v10605_v33, 16  ;;  %v12356_v32 = vld [vmem:[#allocation11 + $0x70] sm:$0xff]  }
 0x33b   : > { %v5902_v10 = vrot.slane %v5900_v60, 1  ;;  %v16620_v60 = vld [vmem:[#allocation55_spill] sm:$0xff] }
 0x33c   : > { %v5898_v51 = vor.u32 %v5896_v13, %v5894_v29  ;;  %v5910_v25 = vrot.slane %v5908_v9, 1 }
 0x33d   : > { %v5906_v18 = vor.u32 %v5904_v8, %v5902_v10 }
 0x33e   : > { %11542 = vmatmul.mubr.msk.bf16.gmra.mrb[0].mxu1 %vm1697_vm8, %v5847_v45  ;;  %v5886_v45 = vrot.slane %v5884_v43, 1  ;;  %v5903_v0 = vsel %vm3822_vm2, %v5898_v51, %v5902_v10  ;;  %v16626_v10 = vld [vmem:[#allocation76_spill] sm:$0xff] }
 0x33f   : > { %11545 = vmatprep.mubr.msk.bf16.mxu1 %vm1697_vm8, %v5855_v12  ;;  %v5882_v12 = vor.u32 %v5880_v23, %v5878_v17  ;;  %v5911_v61 = vsel %vm3822_vm2, %v5906_v18, %v5910_v25 }
 0x340   : > { %v5890_v39 = vor.u32 %v5888_v19, %v5886_v45 }
 0x341   : > { %v15260_v21 = vpop.f32.mrb[148].mxu0  ;;  %v5887_v50 = vsel %vm3822_vm2, %v5882_v12, %v5886_v45  ;;  %v16616_v12 = vld [vmem:[#allocation44_spill] sm:$0xff] }
 0x342   : > { %v15262_v6 = vpop.f32.mrb[149].mxu0  ;;  %v5895_v34 = vsel %vm3822_vm2, %v5890_v39, %v5894_v29  ;;  %v16622_v29 = vld [vmem:[#allocation70_spill] sm:$0xff] }
 0x343   : > { %v15265_v36 = vpop.f32.mrb[150].mxu0 }
 0x344   : > { %v15269_v56 = vpop.f32.mrb[151].mxu0 }
 0x346   : > { %11546 = vmatmul.mubr.msk.bf16.gmra.mrb[4].mxu1 %vm1697_vm8, %v5863_v40  ;;  %v7514_v40 = vmul.bf16 %v15286_v3, %v14927_v53 }
 0x347   : > { %11549 = vmatprep.mubr.msk.bf16.mxu1 %vm1697_vm8, %v5871_v62  ;;  %v16613_v62 = vld [vmem:[#allocation39_spill] sm:$0xff] }
 0x348   : > { %v10745_v43 = vcombine.low %v7514_v40, %v7514_v40  ;;  %v6574_v40 = vld [vmem:[#allocation3 + $0x14] sm:$0xf] }
 0x34a   : > { %v7634_v17 = vrot.slane %v10745_v43, 1  ;;  %v16629_v43 = vld [vmem:[#allocation57_spill] sm:$0xff] }
 0x34c   : > { %v15297_v23 = vsel %vm4970_vm6, %v7632_v63, %v7634_v17  ;;  %v16617_v63 = vld [vmem:[#allocation48_spill] sm:$0xff] }
 0x34e   : > { %11550 = vmatmul.mubr.msk.bf16.gmra.mrb[8].mxu1 %vm1697_vm8, %v5879_v49  ;;  %v16618_v49 = vld [vmem:[#allocation49_spill] sm:$0xff] }
 0x34f   : > { %11553 = vmatprep.mubr.msk.bf16.mxu1 %vm1697_vm8, %v5887_v50  ;;  %v16619_v50 = vld [vmem:[#allocation51_spill] sm:$0xff] }
 0x356   : > { %11554 = vmatmul.mubr.msk.bf16.gmra.mrb[12].mxu1 %vm1697_vm8, %v5895_v34 }
 0x357   : > { %11557 = vmatprep.mubr.msk.bf16.mxu1 %vm1697_vm8, %v5903_v0 }
 0x35e   : > { %11558 = vmatmul.mubr.msk.bf16.gmra.mrb[16].mxu1 %vm1697_vm8, %v5911_v61  ;;  %v6573_v61 = vld [vmem:[#allocation3 + $0x10] sm:$0xf] }
 0x35f   : > { %11565 = vmatprep.mubr.msk.bf16.mxu1 %vm1697_vm8, %v16613_v62 }
 0x364   : > { %v15294_v35 = vpop.f32.mrb[152].mxu0 }
 0x365   : > { %v15299_v45 = vpop.f32.mrb[153].mxu0 }
 0x366   : > { %v15301_v33 = vpop.f32.mrb[154].mxu0  ;;  %11566 = vmatmul.mubr.msk.bf16.vlgmr.msra.gmra.mrb[20].mxu1 %vm1697_vm8, %v16614_v44 }
 0x367   : > { %11598 = vmatpush3.bf16.msra.mxu1 %v15195_v26  ;;  %v15306_v53 = vpop.f32.mrb[155].mxu0  ;;  %11569 = vmatprep.mubr.msk.bf16.mxu1 %vm1697_vm8, %v16616_v12  ;;  %v16621_v26 = vld [vmem:[#allocation99_spill] sm:$0xff] }
 0x368   : > { %16615 = vst [vmem:[#allocation88_spill] sm:$0xff] %v15306_v53  ;;  %11599 = vmatprep.subr.bf16.mxu1 %v12355_v52  ;;  %v6604_v53 = vld [vmem:[#allocation3 + $0x8c] sm:$0xf] }
 0x36b   : > { %11600 = vmatpush3.bf16.msra.mxu1 %v12355_v52 }
 0x36c   : > { %11633 = vmatprep.subr.bf16.mxu1 %v12356_v32 }
 0x36e   : > { %11570 = vmatmul.mubr.msk.bf16.gmra.mrb[24].mxu1 %vm1697_vm8, %v16617_v63  ;;  %v6575_v63 = vld [vmem:[#allocation3 + $0x18] sm:$0xf] }
 0x36f   : > { %11573 = vmatprep.mubr.msk.bf16.mxu1 %vm1697_vm8, %v16618_v49 }
 0x376   : > { %11574 = vmatmul.mubr.msk.bf16.gmra.mrb[28].mxu1 %vm1697_vm8, %v16619_v50  ;;  %v6577_v50 = vld [vmem:[#allocation3 + $0x20] sm:$0xf] }
 0x377   : > { %11577 = vmatprep.mubr.msk.bf16.mxu1 %vm1697_vm8, %v16620_v60  ;;  %v6607_v60 = vmul.bf16 %v6575_v63, %v16539_v5  ;;  %v16632_v63 = vld [vmem:[#allocation42_spill] sm:$0xff] }
 0x37e   : > { %11578 = vmatmul.mubr.msk.bf16.gmra.mrb[0].mxu1 %vm1697_vm8, %v16621_v26 }
 0x37f   : > { %11581 = vmatprep.mubr.msk.bf16.mxu1 %vm1697_vm8, %v16622_v29  ;;  %v6609_v29 = vmul.bf16 %v6577_v50, %v16541_v38  ;;  %v15379_v38 = vld [vmem:[#allocation11 + $0x80] sm:$0xff]  }
 0x381   : > { %v15322_v19 = vpop.f32.mrb[156].mxu0 }
 0x382   : > { %16623 = vst [vmem:[#allocation91_spill] sm:$0xff] %v15322_v19  ;;  %v15324_v59 = vpop.f32.mrb[157].mxu0  ;;  %v6603_v19 = vld [vmem:[#allocation3 + $0x88] sm:$0xf] }
 0x383   : > { %16624 = vst [vmem:[#allocation94_spill] sm:$0xff] %v15324_v59  ;;  %v15326_v13 = vpop.f32.mrb[158].mxu0 }
 0x384   : > { %16625 = vst [vmem:[#allocation93_spill] sm:$0xff] %v15326_v13  ;;  %v15330_v39 = vpop.f32.mrb[159].mxu0  ;;  %v16640_v13 = vld [vmem:[#allocation59_spill] sm:$0xff] }
 0x385   : > { %16627 = vst [vmem:[#allocation35_spill] sm:$0xff] %v15330_v39  ;;  %v6582_v39 = vld [vmem:[#allocation3 + $0x34] sm:$0xf] }
 0x386   : > { %11582 = vmatmul.mubr.msk.bf16.gmra.mrb[4].mxu1 %vm1697_vm8, %v16626_v10  ;;  %v16630_v10 = vld [vmem:[#allocation37_spill] sm:$0xff] }
 0x387   : > { %11585 = vmatprep.mubr.msk.bf16.mxu1 %vm1697_vm8, %v14976_v55 }
 0x38a   : > { %v15334_v51 = vpop.f32.mrb[128].mxu0 }
 0x38b   : > { %v15336_v34 = vpop.f32.mrb[129].mxu0 }
 0x38c   : > { %v15338_v9 = vpop.f32.mrb[130].mxu0 }
 0x38d   : > { %v15342_v0 = vpop.f32.mrb[131].mxu0 }
 0x38e   : > { %11586 = vmatmul.mubr.msk.bf16.gmra.mrb[8].mxu1 %vm1697_vm8, %v15047_v20  ;;  %v16628_v20 = vld [vmem:[#allocation92_spill] sm:$0xff] }
 0x38f   : > { %11589 = vmatprep.mubr.msk.bf16.mxu1 %vm1697_vm8, %v15084_v46  ;;  %v6605_v62 = vmul.bf16 %v6573_v61, %v16628_v20  ;;  %v6606_v46 = vmul.bf16 %v6574_v40, %v16629_v43  ;;  %v12357_v20 = vld [vmem:[#allocation11 + $0x78] sm:$0xff]  }
 0x390   : > { %v6579_v43 = vld [vmem:[#allocation3 + $0x28] sm:$0xf] }
 0x391   : > { %v10660_v12 = vcombine.low %v6605_v62, %v6606_v46  ;;  %v6580_v46 = vld [vmem:[#allocation3 + $0x2c] sm:$0xf] }
 0x392   : > { %v15346_v8 = vpop.f32.mrb[132].mxu0 }
 0x393   : > { %v15348_v18 = vpop.f32.mrb[133].mxu0 }
 0x394   : > { %v15350_v25 = vpop.f32.mrb[134].mxu0 }
 0x395   : > { %v15354_v55 = vpop.f32.mrb[135].mxu0 }
 0x396   : > { %11590 = vmatmul.mubr.msk.bf16.gmra.mrb[12].mxu1 %vm1697_vm8, %v15127_v27  ;;  %v6576_v27 = vld [vmem:[#allocation3 + $0x1c] sm:$0xf] }
 0x397   : > { %11593 = vmatprep.mubr.msk.bf16.mxu1 %vm1697_vm8, %v15161_v15  ;;  %v6578_v15 = vld [vmem:[#allocation3 + $0x24] sm:$0xf]  ;;  %v6608_v26 = vmul.bf16 %v6576_v27, %v16540_v58  ;;  %v6612_v58 = vmul.bf16 %v6580_v46, %v16632_v63  ;;  %v16636_v46 = vld [vmem:[#allocation52_spill] sm:$0xff] }
 0x398   : > { %v6610_v61 = vmul.bf16 %v6578_v15, %v16630_v10  ;;  %v16633_v27 = vld [vmem:[#allocation46_spill] sm:$0xff]  ;;  %v16634_v15 = vld [vmem:[#allocation47_spill] sm:$0xff]  ;;  %v6583_v10 = vld [vmem:[#allocation3 + $0x38] sm:$0xf] }
 0x399   : > { %v10661_v40 = vcombine.low %v6607_v60, %v6608_v26  ;;  %v6614_v60 = vmul.bf16 %v6582_v39, %v16634_v15  ;;  %v16638_v39 = vld [vmem:[#allocation54_spill] sm:$0xff]  ;;  %v6589_v15 = vld [vmem:[#allocation3 + $0x50] sm:$0xf] }
 0x39a   : > { %v15360_v17 = vpop.f32.mrb[136].mxu0  ;;  %v10662_v62 = vcombine.low %v6609_v29, %v6610_v61  ;;  %v6585_v61 = vld [vmem:[#allocation3 + $0x40] sm:$0xf] }
 0x39b   : > { %v15362_v52 = vpop.f32.mrb[137].mxu0 }
 0x39c   : > { %v15364_v44 = vpop.f32.mrb[138].mxu0 }
 0x39d   : > { %v15368_v49 = vpop.f32.mrb[139].mxu0 }
 0x39e   : > { %11594 = vmatmul.mubr.msk.bf16.gmra.mrb[16].mxu1 %vm1697_vm8, %v15173_v11  ;;  %v6581_v11 = vld [vmem:[#allocation3 + $0x30] sm:$0xf] }
 0x39f   : > { %11601 = vmatprep.mubr.msk.bf16.mxu1 %vm1697_vm8, %v10660_v12  ;;  %v16631_v12 = vld [vmem:[#allocation40_spill] sm:$0xff]  ;;  %v6613_v50 = vmul.bf16 %v6581_v11, %v16633_v27  ;;  %v16637_v11 = vld [vmem:[#allocation53_spill] sm:$0xff]  ;;  %v6587_v27 = vld [vmem:[#allocation3 + $0x48] sm:$0xf] }
 0x3a0   : > { %v6611_v5 = vmul.bf16 %v6579_v43, %v16631_v12  ;;  %v6617_v63 = vmul.bf16 %v6585_v61, %v16637_v11 }
 0x3a1   : > { %v10664_v29 = vcombine.low %v6613_v50, %v6614_v60  ;;  %v6588_v50 = vld [vmem:[#allocation3 + $0x4c] sm:$0xf]  ;;  %v6590_v60 = vld [vmem:[#allocation3 + $0x54] sm:$0xf] }
 0x3a2   : > { %v10663_v26 = vcombine.low %v6611_v5, %v6612_v58 }
 0x3a6   : > { %11602 = vmatmul.mubr.msk.bf16.vlgmr.msra.gmra.mrb[20].mxu1 %vm1697_vm8, %v10661_v40  ;;  %v6586_v40 = vld [vmem:[#allocation3 + $0x44] sm:$0xf] }
 0x3a7   : > { %11634 = vmatpush3.bf16.msra.mxu1 %v12356_v32  ;;  %11605 = vmatprep.mubr.msk.bf16.mxu1 %vm1697_vm8, %v10662_v62  ;;  %v6584_v32 = vld [vmem:[#allocation3 + $0x3c] sm:$0xf]  ;;  %v16635_v62 = vld [vmem:[#allocation50_spill] sm:$0xff] }
 0x3a8   : > { %11635 = vmatprep.subr.bf16.mxu1 %v12357_v20  ;;  %v6615_v43 = vmul.bf16 %v6583_v10, %v16635_v62  ;;  %v6616_v12 = vmul.bf16 %v6584_v32, %v16636_v46  ;;  %v6620_v10 = vmul.bf16 %v6588_v50, %v16640_v13  ;;  %v16641_v62 = vld [vmem:[#allocation60_spill] sm:$0xff]  ;;  %v16642_v46 = vld [vmem:[#allocation61_spill] sm:$0xff] }
 0x3a9   : > { %v6621_v32 = vmul.bf16 %v6589_v15, %v16641_v62  ;;  %v6622_v61 = vmul.bf16 %v6590_v60, %v16642_v46  ;;  %v16646_v50 = vld [vmem:[#allocation68_spill] sm:$0xff] }
 0x3aa   : > { %v10665_v5 = vcombine.low %v6615_v43, %v6616_v12  ;;  %v6591_v43 = vld [vmem:[#allocation3 + $0x58] sm:$0xf]  ;;  %v6592_v12 = vld [vmem:[#allocation3 + $0x5c] sm:$0xf]  ;;  %v6598_v46 = vld [vmem:[#allocation3 + $0x74] sm:$0xf] }
 0x3ab   : > { %11636 = vmatpush3.bf16.msra.mxu1 %v12357_v20  ;;  %v6618_v20 = vmul.bf16 %v6586_v40, %v16638_v39  ;;  %v10668_v40 = vcombine.low %v6621_v32, %v6622_v61  ;;  %v6594_v39 = vld [vmem:[#allocation3 + $0x64] sm:$0xf]  ;;  %v6597_v32 = vld [vmem:[#allocation3 + $0x70] sm:$0xf] }
 0x3ac   : > { %11669 = vmatprep.subr.bf16.mxu1 %v15379_v38  ;;  %v6626_v15 = vmul.bf16 %v6594_v39, %v16646_v50  ;;  %v16647_v61 = vld [vmem:[#allocation69_spill] sm:$0xff] }
 0x3ad   : > { %v10666_v58 = vcombine.low %v6617_v63, %v6618_v20  ;;  %v6593_v63 = vld [vmem:[#allocation3 + $0x60] sm:$0xf]  ;;  %v16643_v20 = vld [vmem:[#allocation64_spill] sm:$0xff] }
 0x3ae   : > { %11606 = vmatmul.mubr.msk.bf16.gmra.mrb[24].mxu1 %vm1697_vm8, %v10663_v26  ;;  %v16639_v26 = vld [vmem:[#allocation56_spill] sm:$0xff]  ;;  %v6601_v50 = vld [vmem:[#allocation3 + $0x80] sm:$0xf] }
 0x3af   : > { %11609 = vmatprep.mubr.msk.bf16.mxu1 %vm1697_vm8, %v10664_v29  ;;  %v6619_v29 = vmul.bf16 %v6587_v27, %v16639_v26  ;;  %v16645_v26 = vld [vmem:[#allocation67_spill] sm:$0xff] }
 0x3b0   : > { %v6625_v13 = vmul.bf16 %v6593_v63, %v16645_v26 }
 0x3b1   : > { %v10667_v11 = vcombine.low %v6619_v29, %v6620_v10  ;;  %v6595_v29 = vld [vmem:[#allocation3 + $0x68] sm:$0xf]  ;;  %v6596_v10 = vld [vmem:[#allocation3 + $0x6c] sm:$0xf] }
 0x3b2   : > { %v10670_v60 = vcombine.low %v6625_v13, %v6626_v15  ;;  %v6975_v13 = vld [vmem:[#allocation3 + $0x10] sm:$0xf]  ;;  %v6602_v15 = vld [vmem:[#allocation3 + $0x84] sm:$0xf] }
 0x3b6   : > { %11610 = vmatmul.mubr.msk.bf16.gmra.mrb[28].mxu1 %vm1697_vm8, %v10665_v5  ;;  %v6623_v5 = vmul.bf16 %v6591_v43, %v16643_v20  ;;  %v16649_v20 = vld [vmem:[#allocation72_spill] sm:$0xff] }
 0x3b7   : > { %11613 = vmatprep.mubr.msk.bf16.mxu1 %vm1697_vm8, %v10666_v58  ;;  %v16644_v58 = vld [vmem:[#allocation65_spill] sm:$0xff] }
 0x3b8   : > { %v6624_v27 = vmul.bf16 %v6592_v12, %v16644_v58  ;;  %v6629_v12 = vmul.bf16 %v6597_v32, %v16649_v20  ;;  %v16650_v58 = vld [vmem:[#allocation73_spill] sm:$0xff] }
 0x3b9   : > { %v6630_v63 = vmul.bf16 %v6598_v46, %v16650_v58  ;;  %v16653_v32 = vld [vmem:[#allocation85_spill] sm:$0xff]  ;;  %v16654_v46 = vld [vmem:[#allocation86_spill] sm:$0xff] }
 0x3ba   : > { %v10669_v62 = vcombine.low %v6623_v5, %v6624_v27  ;;  %v6599_v5 = vld [vmem:[#allocation3 + $0x78] sm:$0xf]  ;;  %v6600_v27 = vld [vmem:[#allocation3 + $0x7c] sm:$0xf]  ;;  %v6633_v20 = vmul.bf16 %v6601_v50, %v16653_v32  ;;  %v12436_v50 = vld [vmem:[#allocation3 + $0x20] sm:$0xf] }
 0x3bb   : > { %v10672_v39 = vcombine.low %v6629_v12, %v6630_v63  ;;  %v12435_v12 = vld [vmem:[#allocation3 + $0x1c] sm:$0xf] }
 0x3be   : > { %11614 = vmatmul.mubr.msk.bf16.gmra.mrb[0].mxu1 %vm1697_vm8, %v10667_v11  ;;  %v6627_v11 = vmul.bf16 %v6595_v29, %v16647_v61  ;;  %v16652_v29 = vld [vmem:[#allocation82_spill] sm:$0xff] }
 0x3bf   : > { %11617 = vmatprep.mubr.msk.bf16.mxu1 %vm1697_vm8, %v10668_v40  ;;  %v16648_v40 = vld [vmem:[#allocation71_spill] sm:$0xff]  ;;  %v6632_v61 = vmul.bf16 %v6600_v27, %v16652_v29  ;;  %v6636_v27 = vmul.bf16 %v6604_v53, %v16604_v28 }
 0x3c0   : > { %v6628_v43 = vmul.bf16 %v6596_v10, %v16648_v40  ;;  %v12433_v10 = vld [vmem:[#allocation3 + $0x14] sm:$0xf]  ;;  %v12440_v28 = vld [vmem:[#allocation3 + $0x30] sm:$0xf] }
 0x3c1   : > { %v10694_v40 = vcombine.low %v6975_v13, %v12433_v10  ;;  %v12441_v53 = vld [vmem:[#allocation3 + $0x34] sm:$0xf] }
 0x3c2   : > { %v10671_v26 = vcombine.low %v6627_v11, %v6628_v43  ;;  %v6634_v11 = vmul.bf16 %v6602_v15, %v16654_v46  ;;  %v12434_v43 = vld [vmem:[#allocation3 + $0x18] sm:$0xf]  ;;  %v12437_v15 = vld [vmem:[#allocation3 + $0x24] sm:$0xf] }
 0x3c3   : > { %v10695_v58 = vcombine.low %v12434_v43, %v12435_v12  ;;  %v7099_v59 = vshll.u32 %v10694_v40, 16  ;;  %v7097_v29 = vshrl.u32 %v10694_v40, 16 }
 0x3c5   : > { %v7101_v13 = vrot.slane %v7099_v59, 1  ;;  %v7108_v59 = vshrl.u32 %v10695_v58, 16 }
 0x3c6   : > { %11618 = vmatmul.mubr.msk.bf16.gmra.mrb[4].mxu1 %vm1697_vm8, %v10669_v62  ;;  %v16651_v62 = vld [vmem:[#allocation81_spill] sm:$0xff] }
 0x3c7   : > { %11621 = vmatprep.mubr.msk.bf16.mxu1 %vm1697_vm8, %v10670_v60  ;;  %v6631_v60 = vmul.bf16 %v6599_v5, %v16651_v62  ;;  %v6635_v5 = vmul.bf16 %v6603_v19, %v16603_v7  ;;  %v10696_v62 = vcombine.low %v12436_v50, %v12437_v15  ;;  %v7102_v46 = vor.u32 %v7101_v13, %v7097_v29  ;;  %v12369_v15 = vld [vmem:[#allocation11 + $0x88] sm:$0xff]  }
 0x3c8   : > { %v10698_v19 = vcombine.low %v12440_v28, %v12441_v53  ;;  %v12447_v28 = vld [vmem:[#allocation3 + $0x4c] sm:$0xf] }
 0x3c9   : > { %v10673_v63 = vcombine.low %v6631_v60, %v6632_v61  ;;  %v12438_v60 = vld [vmem:[#allocation3 + $0x28] sm:$0xf]  ;;  %v12439_v61 = vld [vmem:[#allocation3 + $0x2c] sm:$0xf]  ;;  %v7116_v40 = vshrl.u32 %v10696_v62, 16 }
 0x3ca   : > { %v10697_v32 = vcombine.low %v12438_v60, %v12439_v61  ;;  %v7128_v13 = vshll.u32 %v10698_v19, 16 }
 0x3cc   : > { %v7120_v12 = vshll.u32 %v10697_v32, 16 }
 0x3ce   : > { %11622 = vmatmul.mubr.msk.bf16.gmra.mrb[8].mxu1 %vm1697_vm8, %v10671_v26  ;;  %v10674_v26 = vcombine.low %v6633_v20, %v6634_v11  ;;  %v10675_v20 = vcombine.low %v6635_v5, %v6636_v27  ;;  %v7112_v11 = vshll.u32 %v10696_v62, 16  ;;  %v12444_v62 = vld [vmem:[#allocation3 + $0x40] sm:$0xf] }
 0x3cf   : > { %11625 = vmatprep.mubr.msk.bf16.mxu1 %vm1697_vm8, %v10672_v39  ;;  %v7104_v39 = vshll.u32 %v10695_v58, 16  ;;  %v7130_v58 = vrot.slane %v7128_v13, 1 }
 0x3d0   : > { %v7114_v7 = vrot.slane %v7112_v11, 1  ;;  %v7132_v11 = vshrl.u32 %v10698_v19, 16  ;;  %v16655_v19 = vld [vmem:[#allocation74_spill] sm:$0xff] }
 0x3d1   : > { %v7106_v10 = vrot.slane %v7104_v39, 1  ;;  %v12443_v39 = vld [vmem:[#allocation3 + $0x3c] sm:$0xf] }
 0x3d2   : > { %v7118_v27 = vor.u32 %v7116_v40, %v7114_v7 }
 0x3d3   : > { %v7107_v43 = vsel %vm3822_vm2, %v7102_v46, %v7106_v10  ;;  %v7110_v5 = vor.u32 %v7108_v59, %v7106_v10  ;;  %v7124_v10 = vshrl.u32 %v10697_v32, 16  ;;  %v7134_v59 = vor.u32 %v7132_v11, %v7130_v58  ;;  %v12448_v32 = vld [vmem:[#allocation3 + $0x50] sm:$0xf] }
 0x3d5   : > { %v7115_v29 = vsel %vm3822_vm2, %v7110_v5, %v7114_v7 }
 0x3d6   : > { %11626 = vmatmul.mubr.msk.bf16.gmra.mrb[12].mxu1 %vm1697_vm8, %v10673_v63  ;;  %v7122_v63 = vrot.slane %v7120_v12, 1  ;;  %v12446_v12 = vld [vmem:[#allocation3 + $0x48] sm:$0xf] }
 0x3d7   : > { %11629 = vmatprep.mubr.msk.bf16.mxu1 %vm1697_vm8, %v10674_v26  ;;  %v12442_v26 = vld [vmem:[#allocation3 + $0x38] sm:$0xf]  ;;  %v10701_v7 = vcombine.low %v12446_v12, %v12447_v28 }
 0x3d8   : > { %v10699_v50 = vcombine.low %v12442_v26, %v12443_v39  ;;  %v7123_v60 = vsel %vm3822_vm2, %v7118_v27, %v7122_v63  ;;  %v7126_v53 = vor.u32 %v7124_v10, %v7122_v63  ;;  %v10702_v27 = vcombine.low %v12448_v32, %v16655_v19  ;;  %v16656_v63 = vld [vmem:[#allocation36_spill] sm:$0xff] }
 0x3d9   : > { %v7152_v39 = vshll.u32 %v10701_v7, 16 }
 0x3da   : > { %v7136_v61 = vshll.u32 %v10699_v50, 16  ;;  %v7131_v26 = vsel %vm3822_vm2, %v7126_v53, %v7130_v58  ;;  %v7140_v13 = vshrl.u32 %v10699_v50, 16  ;;  %v7160_v58 = vshll.u32 %v10702_v27, 16  ;;  %v16658_v53 = vld [vmem:[#allocation101_spill] sm:$0xff]  ;;  %v16659_v50 = vld [vmem:[#allocation100_spill] sm:$0xff] }
 0x3dc   : > { %v7162_v28 = vrot.slane %v7160_v58, 1 }
 0x3de   : > { %11630 = vmatmul.mubr.msk.bf16.gmra.mrb[16].mxu1 %vm1697_vm8, %v10675_v20  ;;  %v12445_v20 = vld [vmem:[#allocation3 + $0x44] sm:$0xf] }
 0x3df   : > { %11637 = vmatprep.mubr.msk.bf16.mxu1 %vm1697_vm8, %v7107_v43  ;;  %v10700_v46 = vcombine.low %v12444_v62, %v12445_v20  ;;  %v7138_v43 = vrot.slane %v7136_v61, 1 }
 0x3e1   : > { %v7144_v40 = vshll.u32 %v10700_v46, 16  ;;  %v7142_v62 = vor.u32 %v7140_v13, %v7138_v43 }
 0x3e3   : > { %v7146_v5 = vrot.slane %v7144_v40, 1  ;;  %v7164_v40 = vshrl.u32 %v10702_v27, 16 }
 0x3e5   : > { %v7147_v10 = vsel %vm3822_vm2, %v7142_v62, %v7146_v5  ;;  %v7166_v19 = vor.u32 %v7164_v40, %v7162_v28 }
 0x3e6   : > { %11638 = vmatmul.mubr.msk.bf16.vlgmr.msra.gmra.mrb[20].mxu1 %vm1697_vm8, %v7115_v29  ;;  %v7148_v29 = vshrl.u32 %v10700_v46, 16  ;;  %v10704_v46 = vcombine.low %v16659_v50, %v16658_v53  ;;  %v10708_v50 = vcombine.low %v15225_v30, %v15227_v41 }
 0x3e7   : > { %11670 = vmatpush3.bf16.msra.mxu1 %v15379_v38  ;;  %11641 = vmatprep.mubr.msk.bf16.mxu1 %vm1697_vm8, %v7123_v60  ;;  %v7139_v38 = vsel %vm3822_vm2, %v7134_v59, %v7138_v43  ;;  %v7154_v60 = vrot.slane %v7152_v39, 1  ;;  %v7156_v59 = vshrl.u32 %v10701_v7, 16  ;;  %v16661_v43 = vld [vmem:[#allocation104_spill] sm:$0xff]  ;;  %v10706_v7 = vcombine.low %v15152_v24, %v15158_v4 }
 0x3e8   : > { %11671 = vmatprep.subr.bf16.mxu1 %v12369_v15  ;;  %v7150_v20 = vor.u32 %v7148_v29, %v7146_v5  ;;  %v7176_v5 = vshll.u32 %v10704_v46, 16  ;;  %v7180_v62 = vshrl.u32 %v10704_v46, 16  ;;  %v7212_v41 = vshrl.u32 %v10708_v50, 16 }
 0x3e9   : > { %v7158_v32 = vor.u32 %v7156_v59, %v7154_v60 }
 0x3ea   : > { %v7155_v11 = vsel %vm3822_vm2, %v7150_v20, %v7154_v60  ;;  %v10707_v60 = vcombine.low %v15197_v14, %v15199_v16  ;;  %v7208_v14 = vshll.u32 %v10708_v50, 16  ;;  %v10709_v16 = vcombine.low %v15231_v48, %v15233_v31  ;;  %v16672_v50 = vld [vmem:[#allocation87_spill] sm:$0xff] }
 0x3eb   : > { %11672 = vmatpush3.bf16.msra.mxu1 %v12369_v15  ;;  %v16657_v15 = vld [vmem:[#allocation32_spill] sm:$0xff]  ;;  %v7163_v13 = vsel %vm3822_vm2, %v7158_v32, %v7162_v28  ;;  %v10710_v32 = vcombine.low %v15286_v3, %v15286_v3  ;;  %v16662_v3 = vld [vmem:[#allocation78_spill] sm:$0xff] }
 0x3ec   : > { %v10703_v61 = vcombine.low %v16657_v15, %v16656_v63  ;;  %v7178_v15 = vrot.slane %v7176_v5, 1  ;;  %v7200_v53 = vshll.u32 %v10707_v60, 16  ;;  %v7216_v30 = vshll.u32 %v10709_v16, 16 }
 0x3ee   : > { %11642 = vmatmul.mubr.msk.bf16.gmra.mrb[24].mxu1 %vm1697_vm8, %v7131_v26  ;;  %v7168_v12 = vshll.u32 %v10703_v61, 16  ;;  %v7172_v27 = vshrl.u32 %v10703_v61, 16  ;;  %v7196_v61 = vshrl.u32 %v10706_v7, 16  ;;  %v7202_v46 = vrot.slane %v7200_v53, 1  ;;  %v16671_v53 = vld [vmem:[#allocation83_spill] sm:$0xff] }
 0x3ef   : > { %11645 = vmatprep.mubr.msk.bf16.mxu1 %vm1697_vm8, %v7139_v38  ;;  %v16660_v38 = vld [vmem:[#allocation105_spill] sm:$0xff]  ;;  %v7218_v5 = vrot.slane %v7216_v30, 1 }
 0x3f0   : > { %v7170_v26 = vrot.slane %v7168_v12, 1  ;;  %v10705_v39 = vcombine.low %v16661_v43, %v16660_v38  ;;  %v7210_v43 = vrot.slane %v7208_v14, 1 }
 0x3f2   : > { %v7171_v29 = vsel %vm3822_vm2, %v7166_v19, %v7170_v26  ;;  %v7184_v63 = vshll.u32 %v10705_v39, 16  ;;  %v7174_v58 = vor.u32 %v7172_v27, %v7170_v26  ;;  %v7188_v4 = vshrl.u32 %v10705_v39, 16 }
 0x3f3   : > { %v7204_v39 = vshrl.u32 %v10707_v60, 16  ;;  %v7214_v19 = vor.u32 %v7212_v41, %v7210_v43  ;;  %v16665_v60 = vld [vmem:[#allocation77_spill] sm:$0xff] }
 0x3f4   : > { %v7186_v20 = vrot.slane %v7184_v63, 1  ;;  %v7179_v12 = vsel %vm3822_vm2, %v7174_v58, %v7178_v15  ;;  %v16666_v58 = vld [vmem:[#allocation29_spill] sm:$0xff] }
 0x3f5   : > { %v7206_v48 = vor.u32 %v7204_v39, %v7202_v46  ;;  %v7219_v63 = vsel %vm3822_vm2, %v7214_v19, %v7218_v5 }
 0x3f6   : > { %11646 = vmatmul.mubr.msk.bf16.gmra.mrb[28].mxu1 %vm1697_vm8, %v7147_v10  ;;  %v7182_v10 = vor.u32 %v7180_v62, %v7178_v15  ;;  %v7190_v59 = vor.u32 %v7188_v4, %v7186_v20  ;;  %v16663_v62 = vld [vmem:[#allocation66_spill] sm:$0xff] }
 0x3f7   : > { %11649 = vmatprep.mubr.msk.bf16.mxu1 %vm1697_vm8, %v7155_v11  ;;  %v7192_v11 = vshll.u32 %v10706_v7, 16  ;;  %v7211_v31 = vsel %vm3822_vm2, %v7206_v48, %v7210_v43 }
 0x3f8   : > { %v7187_v28 = vsel %vm3822_vm2, %v7182_v10, %v7186_v20  ;;  %v16664_v20 = vld [vmem:[#allocation75_spill] sm:$0xff]  ;;  %v16667_v10 = vld [vmem:[#allocation45_spill] sm:$0xff] }
 0x3f9   : > { %v7194_v24 = vrot.slane %v7192_v11, 1  ;;  %v16668_v11 = vld [vmem:[#allocation95_spill] sm:$0xff] }
 0x3fb   : > { %v7198_v40 = vor.u32 %v7196_v61, %v7194_v24  ;;  %v7195_v26 = vsel %vm3822_vm2, %v7190_v59, %v7194_v24  ;;  %v16673_v24 = vmov 0   ;;  %v15526_v61 = vld [vmem:[#allocation12] ss:$0 sm:$0xff] }
 0x3fc   : > { %7995 = vst.msk [vmem:[#allocation5 + $0x4] sm:$0xf] %vm7993_vm10, %v16673_v24  ;;  %7996 = vst.msk [vmem:[#allocation5 + $0x8] sm:$0xf] %vm7993_vm10, %v16673_v24 }
 0x3fd   : > { %v7203_v38 = vsel %vm3822_vm2, %v7198_v40, %v7202_v46  ;;  %7994 = vst.msk [vmem:[#allocation5] sm:$0xf] %vm7993_vm10, %v16673_v24  ;;  %7997 = vst.msk [vmem:[#allocation5 + $0xc] sm:$0xf] %vm7993_vm10, %v16673_v24 }
 0x3fe   : > { %11650 = vmatmul.mubr.msk.bf16.gmra.mrb[0].mxu1 %vm1697_vm8, %v7163_v13  ;;  %v7220_v13 = vshrl.u32 %v10709_v16, 16  ;;  %7998 = vst.msk [vmem:[#allocation5 + $0x10] sm:$0xf] %vm7993_vm10, %v16673_v24  ;;  %7999 = vst.msk [vmem:[#allocation5 + $0x14] sm:$0xf] %vm7993_vm10, %v16673_v24 }
 0x3ff   : > { %11653 = vmatprep.mubr.msk.bf16.mxu1 %vm1697_vm8, %v7171_v29  ;;  %v7224_v29 = vshll.u32 %v10710_v32, 16  ;;  %8000 = vst.msk [vmem:[#allocation5 + $0x18] sm:$0xf] %vm7993_vm10, %v16673_v24  ;;  %8001 = vst.msk [vmem:[#allocation5 + $0x1c] sm:$0xf] %vm7993_vm10, %v16673_v24 }
 0x400   : > { %v7222_v15 = vor.u32 %v7220_v13, %v7218_v5  ;;  %8002 = vst.msk [vmem:[#allocation5 + $0x20] sm:$0xf] %vm7993_vm10, %v16673_v24  ;;  %8003 = vst.msk [vmem:[#allocation5 + $0x24] sm:$0xf] %vm7993_vm10, %v16673_v24 }
 0x401   : > { %v7226_v7 = vrot.slane %v7224_v29, 1  ;;  %8005 = vst.msk [vmem:[#allocation5 + $0x28] sm:$0x1] %vm8004_vm11, %v16673_v24 }
 0x403   : > { %v7227_v27 = vsel %vm3822_vm2, %v7222_v15, %v7226_v7 }
 0x406   : > { %11654 = vmatmul.mubr.msk.bf16.gmra.mrb[4].mxu1 %vm1697_vm8, %v7179_v12  ;;  %v16669_v12 = vld [vmem:[#allocation79_spill] sm:$0xff] }
 0x407   : > { %11657 = vmatprep.mubr.msk.bf16.mxu1 %vm1697_vm8, %v7187_v28  ;;  %v16670_v28 = vld [vmem:[#allocation80_spill] sm:$0xff] }
 0x40e   : > { %11658 = vmatmul.mubr.msk.bf16.gmra.mrb[8].mxu1 %vm1697_vm8, %v7195_v26 }
 0x40f   : > { %11661 = vmatprep.mubr.msk.bf16.mxu1 %vm1697_vm8, %v7203_v38 }
 0x416   : > { %11662 = vmatmul.mubr.msk.bf16.gmra.mrb[12].mxu1 %vm1697_vm8, %v7211_v31 }
 0x417   : > { %11665 = vmatprep.mubr.msk.bf16.mxu1 %vm1697_vm8, %v7219_v63 }
 0x41e   : > { %11666 = vmatmul.mubr.msk.bf16.gmra.mrb[16].mxu1 %vm1697_vm8, %v7227_v27 }
 0x41f   : > { %11673 = vmatprep.mubr.msk.bf16.mxu1 %vm1697_vm8, %v16662_v3 }
 0x426   : > { %11674 = vmatmul.mubr.msk.bf16.vlgmr.msra.gmra.mrb[20].mxu1 %vm1697_vm8, %v16663_v62 }
 0x427   : > { %11677 = vmatprep.mubr.msk.bf16.mxu1 %vm1697_vm8, %v16664_v20 }
 0x42e   : > { %11678 = vmatmul.mubr.msk.bf16.gmra.mrb[24].mxu1 %vm1697_vm8, %v16665_v60 }
 0x42f   : > { %11681 = vmatprep.mubr.msk.bf16.mxu1 %vm1697_vm8, %v16666_v58 }
 0x436   : > { %11682 = vmatmul.mubr.msk.bf16.gmra.mrb[28].mxu1 %vm1697_vm8, %v16667_v10 }
 0x437   : > { %11685 = vmatprep.mubr.msk.bf16.mxu1 %vm1697_vm8, %v16668_v11 }
 0x43e   : > { %11686 = vmatmul.mubr.msk.bf16.gmra.mrb[0].mxu1 %vm1697_vm8, %v16669_v12 }
 0x43f   : > { %11689 = vmatprep.mubr.msk.bf16.mxu1 %vm1697_vm8, %v16670_v28 }
 0x446   : > { %11690 = vmatmul.mubr.msk.bf16.gmra.mrb[4].mxu1 %vm1697_vm8, %v16671_v53 }
 0x447   : > { %11693 = vmatprep.mubr.msk.bf16.mxu1 %vm1697_vm8, %v16672_v50 }
 0x44e   : > { %11694 = vmatmul.mubr.msk.bf16.gmra.mrb[8].mxu1 %vm1697_vm8, %v15178_v54  ;;  %v12377_v54 = vld [vmem:[#allocation14 + $0x20] sm:$0xff]  }
 0x44f   : > { %11697 = vmatprep.mubr.msk.bf16.mxu1 %vm1697_vm8, %v15217_v2  ;;  %v12380_v2 = vld [vmem:[#allocation14 + $0x28] sm:$0xff]   ;;  %11705 = vmatprep.subr.bf16.mxu0 %v12377_v54 }
 0x450   : > { %11706 = vmatpush3.bf16.msra.mxu0 %v12377_v54 }
 0x451   : > { %11707 = vmatprep.subr.bf16.mxu0 %v12380_v2 }
 0x454   : > { %11708 = vmatpush3.bf16.msra.mxu0 %v12380_v2 }
 0x456   : > { %11698 = vmatmul.mubr.msk.bf16.gmra.mrb[12].mxu1 %vm1697_vm8, %v15255_v42  ;;  %v12381_v42 = vld [vmem:[#allocation14 + $0x30] sm:$0xff]  }
 0x457   : > { %11701 = vmatprep.mubr.msk.bf16.mxu1 %vm1697_vm8, %v15258_v1  ;;  %11709 = vmatprep.subr.bf16.mxu0 %v12381_v42  ;;  %v12382_v1 = vld [vmem:[#allocation14 + $0x38] sm:$0xff]  }
 0x458   : > { %11710 = vmatpush3.bf16.msra.mxu0 %v12381_v42 }
 0x459   : > { %11711 = vmatprep.subr.bf16.mxu0 %v12382_v1 }
 0x45c   : > { %11712 = vmatpush3.bf16.msra.mxu0 %v12382_v1 }
 0x45e   : > { %11702 = vmatmul.mubr.msk.bf16.gmra.mrb[16].mxu1 %vm1697_vm8, %v15297_v23  ;;  %v15523_v23 = vld [vmem:[#allocation14] sm:$0xff]   ;;  %vm7960_vm8 = vcmask 523264  }
 0x45f   : > { %11721 = vmatprep.subr.bf16.mxu0 %v15523_v23 }
 0x4f9   : > { %v11675_v4 = vpop.f32.mrb[20].mxu1 }
 0x4fa   : > { %v11853_v46 = vadd.f32 %v11675_v4, %v15334_v51  ;;  %v7730_v14 = vpop.f32.mrb[21].mxu1 }
 0x4fb   : > { %v11854_v16 = vadd.f32 %v7730_v14, %v15336_v34  ;;  %v11676_v59 = vpop.f32.mrb[22].mxu1 }
 0x4fc   : > { %v7898_v40 = vadd.f32 %v11853_v46, %v15526_v61  ;;  %v11855_v26 = vadd.f32 %v11676_v59, %v15338_v9  ;;  %v7733_v38 = vpop.f32.mrb[23].mxu1 }
 0x4fd   : > { %v7896_v43 = vadd.f32 %v11854_v16, %v15526_v61  ;;  %v11856_v30 = vadd.f32 %v7733_v38, %v15342_v0 }
 0x4fe   : > { %v7930_v41 = vmax.f32 %v7898_v40, 0.0  ;;  %v7899_v39 = vadd.f32 %v11855_v26, %v15526_v61  ;;  %v16674_v26 = vld [vmem:[#allocation22_spill] sm:$0xff] }
 0x4ff   : > { %v7928_v32 = vmax.f32 %v7896_v43, 0.0  ;;  %v7897_v51 = vadd.f32 %v11856_v30, %v15526_v61  ;;  %v16675_v43 = vld [vmem:[#allocation24_spill] sm:$0xff] }
 0x500   : > { %7963 = vst.msk [vmem:[#allocation4 + $0x10] sm:$0xff] %vm7960_vm8, %v7930_v41  ;;  %v7931_v34 = vmax.f32 %v7899_v39, 0.0 }
 0x501   : > { %7961 = vst.msk [vmem:[#allocation4] sm:$0xff] %vm7960_vm8, %v7928_v32  ;;  %v7929_v19 = vmax.f32 %v7897_v51, 0.0  ;;  %v11679_v5 = vpop.f32.mrb[24].mxu1 }
 0x502   : > { %7964 = vst.msk [vmem:[#allocation4 + $0x18] sm:$0xff] %vm7960_vm8, %v7931_v34  ;;  %v11857_v9 = vadd.f32 %v11679_v5, %v15346_v8  ;;  %v7746_v48 = vpop.f32.mrb[25].mxu1 }
 0x503   : > { %7962 = vst.msk [vmem:[#allocation4 + $0x8] sm:$0xff] %vm7960_vm8, %v7929_v19  ;;  %v11858_v0 = vadd.f32 %v7746_v48, %v15348_v18  ;;  %v11680_v31 = vpop.f32.mrb[26].mxu1 }
 0x504   : > { %v7902_v13 = vadd.f32 %v11857_v9, %v15526_v61  ;;  %v11859_v29 = vadd.f32 %v11680_v31, %v15350_v25  ;;  %v7749_v63 = vpop.f32.mrb[27].mxu1  ;;  %v16678_v31 = vld [vmem:[#allocation84_spill] sm:$0xff] }
 0x505   : > { %v7900_v15 = vadd.f32 %v11858_v0, %v15526_v61  ;;  %v11860_v7 = vadd.f32 %v7749_v63, %v15354_v55  ;;  %v8032_v63 = vld [vmem:[#allocation5 + $0x4] sm:$0xf] }
 0x506   : > { %v7934_v27 = vmax.f32 %v7902_v13, 0.0  ;;  %v7903_v3 = vadd.f32 %v11859_v29, %v15526_v61 }
 0x507   : > { %v7932_v62 = vmax.f32 %v7900_v15, 0.0  ;;  %v7901_v8 = vadd.f32 %v11860_v7, %v15526_v61  ;;  %v8037_v7 = vld [vmem:[#allocation5 + $0x8] sm:$0x1] }
 0x508   : > { %7967 = vst.msk [vmem:[#allocation4 + $0x30] sm:$0xff] %vm7960_vm8, %v7934_v27  ;;  %v7935_v20 = vmax.f32 %v7903_v3, 0.0  ;;  %v16681_v27 = vld [vmem:[#allocation102_spill] sm:$0xff] }
 0x509   : > { %v8010_v18 = vld [vmem:[#allocation4 + $0x10] ss:$2 sm:$0xff]  ;;  %v8012_v60 = vld [vmem:[#allocation4 + $0x11] ss:$2 sm:$0xff]  ;;  %7965 = vst.msk [vmem:[#allocation4 + $0x20] sm:$0xff] %vm7960_vm8, %v7932_v62  ;;  %v7933_v58 = vmax.f32 %v7901_v8, 0.0 }
 0x50a   : > { %v11683_v25 = vpop.f32.mrb[28].mxu1  ;;  %v8014_v10 = vmax.f32 %v8010_v18, %v8012_v60  ;;  %v8006_v11 = vld [vmem:[#allocation4] ss:$2 sm:$0xff]  ;;  %v8008_v12 = vld [vmem:[#allocation4 + $0x1] ss:$2 sm:$0xff]  ;;  %7968 = vst.msk [vmem:[#allocation4 + $0x38] sm:$0xff] %vm7960_vm8, %v7935_v20 }
 0x50b   : > { %v11861_v55 = vadd.f32 %v11683_v25, %v15360_v17  ;;  %v7762_v28 = vpop.f32.mrb[29].mxu1  ;;  %v8013_v53 = vmax.f32 %v8006_v11, %v8008_v12  ;;  %7966 = vst.msk [vmem:[#allocation4 + $0x28] sm:$0xff] %vm7960_vm8, %v7933_v58  ;;  %v16682_v8 = vld [vmem:[#allocation21_spill] sm:$0xff]  ;;  %v16683_v12 = vld [vmem:[#allocation103_spill] sm:$0xff] }
 0x50c   : > { %v11862_v50 = vadd.f32 %v7762_v28, %v15362_v52  ;;  %v11684_v24 = vpop.f32.mrb[30].mxu1  ;;  %v8275_v52 = vand.u32 7, %v16674_v26  ;;  %v8261_v20 = vand.u32 7, %v16682_v8  ;;  %v16684_v28 = vld [vmem:[#allocation106_spill] sm:$0xff] }
 0x50d   : > { %v7906_v54 = vadd.f32 %v11861_v55, %v15526_v61  ;;  %v11863_v2 = vadd.f32 %v11684_v24, %v15364_v44  ;;  %v7765_v42 = vpop.f32.mrb[31].mxu1  ;;  %v8015_v1 = vmax.f32 %v8013_v53, %v8014_v10  ;;  %v8282_v44 = vand.u32 7, %v16675_v43  ;;  %v12387_v8 = vld [vmem:[#allocation14 + $0x10] sm:$0xff]  }
 0x50e   : > { %v7904_v4 = vadd.f32 %v11862_v50, %v15526_v61  ;;  %v11864_v46 = vadd.f32 %v7765_v42, %v15368_v49  ;;  %v16685_v50 = vld [vmem:[#allocation23_spill] sm:$0xff]  ;;  %vm15594_vm5 = vcmp.ge.s32.totalorder %v8261_v20, 1  ;;  %vm15612_vm1 = vcmp.ge.s32.totalorder %v8275_v52, 1 }
 0x50f   : > { %v7938_v14 = vmax.f32 %v7906_v54, 0.0  ;;  %v7907_v17 = vadd.f32 %v11863_v2, %v15526_v61  ;;  %v10942_v16 = vpack.c.bf16 %v8015_v1, %v8015_v1  ;;  %v8268_v24 = vand.u32 7, %v16685_v50 }
 0x510   : > { %v7936_v59 = vmax.f32 %v7904_v4, 0.0  ;;  %v7905_v40 = vadd.f32 %v11864_v46, %v15526_v61  ;;  %vm15631_vm9 = vcmp.ge.s32.totalorder %v8282_v44, 1  ;;  %vm8381_vm14 = vcmp.le.s32.totalorder %v8261_v20, 6 }
 0x511   : > { %7971 = vst.msk [vmem:[#allocation4 + $0x50] sm:$0xff] %vm7960_vm8, %v7938_v14  ;;  %v7939_v38 = vmax.f32 %v7907_v17, 0.0  ;;  %v8021_v30 = vshrl.u32 %v10942_v16, 16  ;;  %v8045_v41 = vld [vmem:[#allocation4 + $0x30] ss:$2 sm:$0xff]  ;;  %v11687_v19 = vpop.f32.mrb[0].mxu1 }
 0x512   : > { %v8047_v39 = vld [vmem:[#allocation4 + $0x31] ss:$2 sm:$0xff]  ;;  %7969 = vst.msk [vmem:[#allocation4 + $0x40] sm:$0xff] %vm7960_vm8, %v7936_v59  ;;  %v8041_v32 = vld [vmem:[#allocation4 + $0x20] ss:$2 sm:$0xff]  ;;  %v7937_v34 = vmax.f32 %v7905_v40, 0.0  ;;  %v11865_v13 = vadd.f32 %v11687_v19, %v16678_v31 }
 0x513   : > { %v8049_v49 = vmax.f32 %v8045_v41, %v8047_v39  ;;  %v8043_v51 = vld [vmem:[#allocation4 + $0x21] ss:$2 sm:$0xff]  ;;  %7972 = vst.msk [vmem:[#allocation4 + $0x58] sm:$0xff] %vm7960_vm8, %v7939_v38  ;;  %v8023_v5 = vrot.slane %v8021_v30, 7  ;;  %v8024_v9 = vshll.u32 %v10942_v16, 16  ;;  %v7778_v29 = vpop.f32.mrb[1].mxu1 }
 0x514   : > { %v8048_v0 = vmax.f32 %v8041_v32, %v8043_v51  ;;  %7970 = vst.msk [vmem:[#allocation4 + $0x48] sm:$0xff] %vm7960_vm8, %v7937_v34  ;;  %v11866_v3 = vadd.f32 %v7778_v29, %v16681_v27  ;;  %v11688_v62 = vpop.f32.mrb[2].mxu1  ;;  %v7910_v25 = vadd.f32 %v11865_v13, %v15526_v61  ;;  %vm15601_vm7 = vcmp.ge.s32.totalorder %v8268_v24, 1  ;;  %v8099_v38 = vld [vmem:[#allocation5 + $0x10] sm:$0x1] }
 0x515   : > { %v8026_v18 = vor.u32 %v8024_v9, %v8023_v5  ;;  %v8027_v60 = vrot.slane %v8023_v5, 4  ;;  %v7781_v10 = vpop.f32.mrb[3].mxu1  ;;  %v11867_v55 = vadd.f32 %v11688_v62, %v16683_v12  ;;  %vm15766_vm3 = vcmp.le.s32.totalorder %v8268_v24, 6 }
 0x516   : > { %v8050_v58 = vmax.f32 %v8048_v0, %v8049_v49  ;;  %v7908_v11 = vadd.f32 %v11866_v3, %v15526_v61  ;;  %v11868_v53 = vadd.f32 %v7781_v10, %v16684_v28  ;;  %v7942_v1 = vmax.f32 %v7910_v25, 0.0  ;;  %v8068_v0 = vld [vmem:[#allocation5 + $0xc] sm:$0x1] }
 0x517   : > { %v8033_v54 = vsel %vm15567_vm12, %v8026_v18, %v8032_v63  ;;  %v8038_v2 = vsel %vm15574_vm0, %v8027_v60, %v8037_v7  ;;  %v7911_v46 = vadd.f32 %v11867_v55, %v15526_v61  ;;  %v16692_v7 = vmov 0.0  }
 0x518   : > { %v10943_v42 = vpack.c.bf16 %v8050_v58, %v8050_v58  ;;  %8039 = vst [vmem:[#allocation5 + $0x8] sm:$0x1] %v8038_v2  ;;  %8034 = vst [vmem:[#allocation5 + $0x4] sm:$0xf] %v8033_v54  ;;  %v7940_v4 = vmax.f32 %v7908_v11, 0.0  ;;  %v7909_v14 = vadd.f32 %v11868_v53, %v15526_v61  ;;  %v10774_v10 = vsel %vm15601_vm7, 1.0, %v16692_v7 }
 0x519   : > { %7975 = vst.msk [vmem:[#allocation4 + $0x70] sm:$0xff] %vm7960_vm8, %v7942_v1  ;;  %v7943_v39 = vmax.f32 %v7911_v46, 0.0  ;;  %v11691_v32 = vpop.f32.mrb[4].mxu1  ;;  %vm15774_vm10 = vcmp.le.s32.totalorder %v8275_v52, 6  ;;  %vm15780_vm11 = vcmp.le.s32.totalorder %v8282_v44, 6  ;;  %v10781_v52 = vsel %vm8381_vm14, 1.0, %v16692_v7 }
 0x51a   : > { %v8056_v16 = vshrl.u32 %v10943_v42, 16  ;;  %v8076_v59 = vld [vmem:[#allocation4 + $0x50] ss:$2 sm:$0xff]  ;;  %v8078_v40 = vld [vmem:[#allocation4 + $0x51] ss:$2 sm:$0xff]  ;;  %v8059_v30 = vshll.u32 %v10943_v42, 16  ;;  %v11869_v5 = vadd.f32 %v11691_v32, %v15180_v47 }
 0x51b   : > { %v8080_v41 = vmax.f32 %v8076_v59, %v8078_v40  ;;  %7973 = vst.msk [vmem:[#allocation4 + $0x60] sm:$0xff] %vm7960_vm8, %v7940_v4  ;;  %v7941_v49 = vmax.f32 %v7909_v14, 0.0  ;;  %v8072_v34 = vld [vmem:[#allocation4 + $0x40] ss:$2 sm:$0xff]  ;;  %v8074_v19 = vld [vmem:[#allocation4 + $0x41] ss:$2 sm:$0xff] }
 0x51c   : > { %v8058_v51 = vrot.slane %v8056_v16, 7  ;;  %v7794_v9 = vpop.f32.mrb[5].mxu1  ;;  %v8079_v31 = vmax.f32 %v8072_v34, %v8074_v19  ;;  %7976 = vst.msk [vmem:[#allocation4 + $0x78] sm:$0xff] %vm7960_vm8, %v7943_v39  ;;  %v10773_v47 = vsel %vm15594_vm5, 1.0, %v16692_v7  ;;  %v7914_v62 = vadd.f32 %v11869_v5, %v15526_v61 }
 0x51d   : > { %7974 = vst.msk [vmem:[#allocation4 + $0x68] sm:$0xff] %vm7960_vm8, %v7941_v49  ;;  %v11870_v13 = vadd.f32 %v7794_v9, %v15182_v57  ;;  %v11692_v29 = vpop.f32.mrb[6].mxu1  ;;  %v10775_v4 = vsel %vm15612_vm1, 1.0, %v16692_v7  ;;  %v8377_v46 = vpack.c.bf16 %v10774_v10, %v10773_v47  ;;  %v10776_v40 = vsel %vm15631_vm9, 1.0, %v16692_v7  ;;  %v16696_v10 = vld [vmem:[#allocation28_spill] sm:$0xff] }
 0x51e   : > { %v8061_v27 = vor.u32 %v8059_v30, %v8058_v51  ;;  %v8062_v3 = vrot.slane %v8058_v51, 4  ;;  %v11871_v18 = vadd.f32 %v11692_v29, %v15185_v37  ;;  %v7797_v60 = vpop.f32.mrb[7].mxu1  ;;  %v8081_v58 = vmax.f32 %v8079_v31, %v8080_v41  ;;  %v15653_v29 = vld [vmem:[#allocation5] sm:$0xf] }
 0x51f   : > { %v7912_v57 = vadd.f32 %v11870_v13, %v15526_v61  ;;  %v11872_v25 = vadd.f32 %v7797_v60, %v15190_v22  ;;  %v8065_v11 = vld [vmem:[#allocation5 + $0x8] sm:$0xf]  ;;  %v7946_v55 = vmax.f32 %v7914_v62, 0.0  ;;  %v15655_v63 = vld [vmem:[#allocation5 + $0x4] sm:$0xf] }
 0x520   : > { %v8069_v12 = vsel %vm15574_vm0, %v8062_v3, %v8068_v0  ;;  %v7915_v28 = vadd.f32 %v11871_v18, %v15526_v61  ;;  %v8066_v22 = vsel %vm15567_vm12, %v8061_v27, %v8065_v11  ;;  %v10944_v53 = vpack.c.bf16 %v8081_v58, %v8081_v58 }
 0x521   : > { %8070 = vst [vmem:[#allocation5 + $0xc] sm:$0x1] %v8069_v12  ;;  %v7944_v54 = vmax.f32 %v7912_v57, 0.0  ;;  %v7913_v2 = vadd.f32 %v11872_v25, %v15526_v61  ;;  %8067 = vst [vmem:[#allocation5 + $0x8] sm:$0xf] %v8066_v22  ;;  %v11695_v1 = vpop.f32.mrb[8].mxu1 }
 0x522   : > { %7979 = vst.msk [vmem:[#allocation4 + $0x90] sm:$0xff] %vm7960_vm8, %v7946_v55  ;;  %v7947_v42 = vmax.f32 %v7915_v28, 0.0  ;;  %v8087_v14 = vshrl.u32 %v10944_v53, 16  ;;  %v11873_v16 = vadd.f32 %v11695_v1, %v15260_v21  ;;  %v7810_v59 = vpop.f32.mrb[9].mxu1  ;;  %v8090_v51 = vshll.u32 %v10944_v53, 16 }
 0x523   : > { %7977 = vst.msk [vmem:[#allocation4 + $0x80] sm:$0xff] %vm7960_vm8, %v7944_v54  ;;  %v7945_v17 = vmax.f32 %v7913_v2, 0.0  ;;  %v8107_v30 = vld [vmem:[#allocation4 + $0x70] ss:$2 sm:$0xff]  ;;  %v8109_v41 = vld [vmem:[#allocation4 + $0x71] ss:$2 sm:$0xff]  ;;  %v11874_v49 = vadd.f32 %v7810_v59, %v15262_v6 }
 0x524   : > { %v8103_v39 = vld [vmem:[#allocation4 + $0x60] ss:$2 sm:$0xff]  ;;  %7980 = vst.msk [vmem:[#allocation4 + $0x98] sm:$0xff] %vm7960_vm8, %v7947_v42  ;;  %v8089_v32 = vrot.slane %v8087_v14, 7  ;;  %v8111_v34 = vmax.f32 %v8107_v30, %v8109_v41  ;;  %v8105_v19 = vld [vmem:[#allocation4 + $0x61] ss:$2 sm:$0xff]  ;;  %v7918_v21 = vadd.f32 %v11873_v16, %v15526_v61 }
 0x525   : > { %7978 = vst.msk [vmem:[#allocation4 + $0x88] sm:$0xff] %vm7960_vm8, %v7945_v17  ;;  %v11696_v5 = vpop.f32.mrb[10].mxu1  ;;  %v8110_v9 = vmax.f32 %v8103_v39, %v8105_v19  ;;  %v7916_v0 = vadd.f32 %v11874_v49, %v15526_v61  ;;  %v16695_v6 = vld [vmem:[#allocation27_spill] sm:$0xff]  ;;  %v15685_v39 = vpack.c.bf16 %v10776_v40, %v10775_v4 }
 0x526   : > { %v11875_v31 = vadd.f32 %v11696_v5, %v15265_v36  ;;  %v7813_v13 = vpop.f32.mrb[11].mxu1  ;;  %v15658_v47 = vrot.slane %v8377_v46, %v16695_v6  ;;  %v8092_v27 = vor.u32 %v8090_v51, %v8089_v32  ;;  %v8093_v3 = vrot.slane %v8089_v32, 4 }
 0x527   : > { %v7950_v62 = vmax.f32 %v7918_v21, 0.0  ;;  %v11876_v18 = vadd.f32 %v7813_v13, %v15269_v56  ;;  %v8112_v58 = vmax.f32 %v8110_v9, %v8111_v34  ;;  %v7948_v57 = vmax.f32 %v7916_v0, 0.0 }
 0x528   : > { %v8096_v60 = vld [vmem:[#allocation5 + $0xc] sm:$0xf]  ;;  %v7919_v25 = vadd.f32 %v11875_v31, %v15526_v61  ;;  %v15663_v36 = vrot.slane %v8377_v46, %v16696_v10  ;;  %v8100_v12 = vsel %vm15574_vm0, %v8093_v3, %v8099_v38  ;;  %v15671_v28 = vld [vmem:[#allocation5 + $0x8] sm:$0xf]  ;;  %v15675_v56 = vcombine.low %v15653_v29, %v15655_v63 }
 0x529   : > { %v8097_v11 = vsel %vm15567_vm12, %v8092_v27, %v8096_v60  ;;  %7983 = vst.msk [vmem:[#allocation4 + $0xb0] sm:$0xff] %vm7960_vm8, %v7950_v62  ;;  %v7917_v55 = vadd.f32 %v11876_v18, %v15526_v61  ;;  %8101 = vst [vmem:[#allocation5 + $0x10] sm:$0x1] %v8100_v12  ;;  %v10945_v37 = vpack.c.bf16 %v8112_v58, %v8112_v58  ;;  %v11699_v53 = vpop.f32.mrb[12].mxu1  ;;  %v16697_v31 = vld [vmem:[#allocation88_spill] sm:$0xff] }
 0x52a   : > { %8098 = vst [vmem:[#allocation5 + $0xc] sm:$0xf] %v8097_v11  ;;  %7981 = vst.msk [vmem:[#allocation4 + $0xa0] sm:$0xff] %vm7960_vm8, %v7948_v57  ;;  %v7951_v22 = vmax.f32 %v7919_v25, 0.0  ;;  %v11877_v1 = vadd.f32 %v11699_v53, %v15294_v35  ;;  %v7826_v46 = vpop.f32.mrb[13].mxu1  ;;  %v9045_v14 = vmul.bf16 %v15658_v47, %v15655_v63  ;;  %v9046_v17 = vmul.bf16 %v15663_v36, %v15671_v28 }
 0x52b   : > { %v8138_v54 = vld [vmem:[#allocation4 + $0x90] ss:$2 sm:$0xff]  ;;  %v8140_v2 = vld [vmem:[#allocation4 + $0x91] ss:$2 sm:$0xff]  ;;  %v7949_v42 = vmax.f32 %v7917_v55, 0.0  ;;  %v8118_v16 = vshrl.u32 %v10945_v37, 16  ;;  %v11878_v41 = vadd.f32 %v7826_v46, %v15299_v45 }
 0x52c   : > { %v8142_v59 = vmax.f32 %v8138_v54, %v8140_v2  ;;  %v8134_v38 = vld [vmem:[#allocation4 + $0x80] ss:$2 sm:$0xff]  ;;  %v8136_v30 = vld [vmem:[#allocation4 + $0x81] ss:$2 sm:$0xff]  ;;  %7984 = vst.msk [vmem:[#allocation4 + $0xb8] sm:$0xff] %vm7960_vm8, %v7951_v22  ;;  %v7922_v35 = vadd.f32 %v11877_v1, %v15526_v61  ;;  %v11700_v32 = vpop.f32.mrb[14].mxu1  ;;  %v15690_v34 = vcombine.low %v9045_v14, %v9046_v17 }
 0x52d   : > { %v8141_v49 = vmax.f32 %v8134_v38, %v8136_v30  ;;  %7982 = vst.msk [vmem:[#allocation4 + $0xa8] sm:$0xff] %vm7960_vm8, %v7949_v42  ;;  %v8537_v51 = vshll.u32 %v15675_v56, 16  ;;  %v8120_v19 = vrot.slane %v8118_v16, 7  ;;  %v8121_v21 = vshll.u32 %v10945_v37, 16  ;;  %v7829_v0 = vpop.f32.mrb[15].mxu1  ;;  %v16698_v46 = vld [vmem:[#allocation91_spill] sm:$0xff] }
 0x52e   : > { %v7920_v5 = vadd.f32 %v11878_v41, %v15526_v61  ;;  %v11879_v9 = vadd.f32 %v11700_v32, %v15301_v33  ;;  %v8130_v45 = vld [vmem:[#allocation5 + $0x14] sm:$0x1]  ;;  %v7954_v40 = vmax.f32 %v7922_v35, 0.0  ;;  %v11880_v13 = vadd.f32 %v7829_v0, %v16697_v31 }
 0x52f   : > { %v8143_v4 = vmax.f32 %v8141_v49, %v8142_v59  ;;  %v8123_v27 = vor.u32 %v8121_v21, %v8120_v19  ;;  %v8124_v3 = vrot.slane %v8120_v19, 4  ;;  %v15702_v33 = vrot.slane %v15685_v39, %v16695_v6 }
 0x530   : > { %v7952_v62 = vmax.f32 %v7920_v5, 0.0  ;;  %v7923_v18 = vadd.f32 %v11879_v9, %v15526_v61  ;;  %v8127_v60 = vld [vmem:[#allocation5 + $0x10] sm:$0xf]  ;;  %7987 = vst.msk [vmem:[#allocation4 + $0xd0] sm:$0xff] %vm7960_vm8, %v7954_v40  ;;  %v7921_v57 = vadd.f32 %v11880_v13, %v15526_v61  ;;  %v8535_v11 = vshrl.u32 %v15675_v56, 16 }
 0x531   : > { %v10946_v58 = vpack.c.bf16 %v8143_v4, %v8143_v4  ;;  %v15698_v25 = vld [vmem:[#allocation5 + $0xc] sm:$0xf]  ;;  %v8128_v12 = vsel %vm15567_vm12, %v8123_v27, %v8127_v60  ;;  %v8131_v55 = vsel %vm15574_vm0, %v8124_v3, %v8130_v45  ;;  %v11703_v22 = vpop.f32.mrb[16].mxu1  ;;  %v8539_v53 = vrot.slane %v8537_v51, 1  ;;  %v16699_v51 = vld [vmem:[#allocation94_spill] sm:$0xff]  ;;  %v16701_v60 = vld [vmem:[#allocation35_spill] sm:$0xff] }
 0x532   : > { %7985 = vst.msk [vmem:[#allocation4 + $0xc0] sm:$0xff] %vm7960_vm8, %v7952_v62  ;;  %v7955_v37 = vmax.f32 %v7923_v18, 0.0  ;;  %8132 = vst [vmem:[#allocation5 + $0x14] sm:$0x1] %v8131_v55  ;;  %v11881_v14 = vadd.f32 %v11703_v22, %v16698_v46  ;;  %v15713_v56 = vcombine.low %v15671_v28, %v15698_v25  ;;  %v7953_v38 = vmax.f32 %v7921_v57, 0.0  ;;  %v7842_v30 = vpop.f32.mrb[17].mxu1 }
 0x533   : > { %8129 = vst [vmem:[#allocation5 + $0x10] sm:$0xf] %v8128_v12  ;;  %v8149_v54 = vshrl.u32 %v10946_v58, 16  ;;  %v8152_v2 = vshll.u32 %v10946_v58, 16  ;;  %v8169_v42 = vld [vmem:[#allocation4 + $0xb0] ss:$2 sm:$0xff]  ;;  %v9047_v41 = vmul.bf16 %v15702_v33, %v15698_v25  ;;  %v11882_v19 = vadd.f32 %v7842_v30, %v16699_v51 }
 0x534   : > { %v8171_v1 = vld [vmem:[#allocation4 + $0xb1] ss:$2 sm:$0xff]  ;;  %v8165_v16 = vld [vmem:[#allocation4 + $0xa0] ss:$2 sm:$0xff]  ;;  %v8167_v59 = vld [vmem:[#allocation4 + $0xa1] ss:$2 sm:$0xff]  ;;  %v7926_v32 = vadd.f32 %v11881_v14, %v15526_v61  ;;  %v8540_v4 = vor.u32 %v8539_v53, %v8535_v11 }
 0x535   : > { %v8173_v17 = vmax.f32 %v8169_v42, %v8171_v1  ;;  %7988 = vst.msk [vmem:[#allocation4 + $0xd8] sm:$0xff] %vm7960_vm8, %v7955_v37  ;;  %v8151_v49 = vrot.slane %v8149_v54, 7  ;;  %v8172_v35 = vmax.f32 %v8165_v16, %v8167_v59  ;;  %v11704_v21 = vpop.f32.mrb[18].mxu1  ;;  %v8161_v5 = vld [vmem:[#allocation5 + $0x18] sm:$0x1]  ;;  %7986 = vst.msk [vmem:[#allocation4 + $0xc8] sm:$0xff] %vm7960_vm8, %v7953_v38  ;;  %v7924_v62 = vadd.f32 %v11882_v19, %v15526_v61 }
 0x536   : > { %v16700_v9 = vld [vmem:[#allocation93_spill] sm:$0xff]  ;;  %v7845_v45 = vpop.f32.mrb[19].mxu1  ;;  %v8542_v40 = vshll.u32 %v15713_v56, 16  ;;  %v7958_v3 = vmax.f32 %v7926_v32, 0.0  ;;  %v8192_v32 = vld [vmem:[#allocation5 + $0x1c] sm:$0x1] }
 0x537   : > { %v11883_v0 = vadd.f32 %v11704_v21, %v16700_v9  ;;  %v8154_v31 = vor.u32 %v8152_v2, %v8151_v49  ;;  %v8155_v13 = vrot.slane %v8151_v49, 4  ;;  %v8174_v27 = vmax.f32 %v8172_v35, %v8173_v17  ;;  %v16703_v9 = vld [vmem:[#allocation25_spill] sm:$0xff] }
 0x538   : > { %v11884_v58 = vadd.f32 %v7845_v45, %v16701_v60  ;;  %v15726_v57 = vrot.slane %v8542_v40, 1  ;;  %7991 = vst.msk [vmem:[#allocation4 + $0xf0] sm:$0xff] %vm7960_vm8, %v7958_v3  ;;  %v7956_v37 = vmax.f32 %v7924_v62, 0.0  ;;  %v15740_v17 = vrot.slane %v15685_v39, %v16696_v10  ;;  %v16702_v39 = vld [vmem:[#allocation30_spill] sm:$0xff] }
 0x539   : > { %v7927_v18 = vadd.f32 %v11883_v0, %v15526_v61  ;;  %v8162_v12 = vsel %vm15574_vm0, %v8155_v13, %v8161_v5  ;;  %v10947_v55 = vpack.c.bf16 %v8174_v27, %v8174_v27  ;;  %v8158_v11 = vld [vmem:[#allocation5 + $0x14] sm:$0xf]  ;;  %v8289_v19 = vand.u32 7, %v16702_v39 }
 0x53a   : > { %8163 = vst [vmem:[#allocation5 + $0x18] sm:$0x1] %v8162_v12  ;;  %v7925_v53 = vadd.f32 %v11884_v58, %v15526_v61  ;;  %v8545_v54 = vsel %vm3822_vm2, %v8540_v4, %v15726_v57  ;;  %v15734_v2 = vld [vmem:[#allocation5 + $0x10] sm:$0xf]  ;;  %v8159_v42 = vsel %vm15567_vm12, %v8154_v31, %v8158_v11  ;;  %7989 = vst.msk [vmem:[#allocation4 + $0xe0] sm:$0xff] %vm7960_vm8, %v7956_v37  ;;  %v8296_v0 = vand.u32 7, %v16703_v9 }
 0x53b   : > { %v7959_v22 = vmax.f32 %v7927_v18, 0.0  ;;  %v8180_v1 = vshrl.u32 %v10947_v55, 16  ;;  %11713 = vmatprep.mubr.msk.bf16.mxu0 %vm7960_vm8, %v8545_v54  ;;  %8160 = vst [vmem:[#allocation5 + $0x14] sm:$0xf] %v8159_v42  ;;  %v8183_v38 = vshll.u32 %v10947_v55, 16  ;;  %v9048_v35 = vmul.bf16 %v15740_v17, %v15734_v2  ;;  %v16717_v27 = vld [vmem:[#allocation26_spill] sm:$0xff] }
 0x53c   : > { %v8200_v46 = vld [vmem:[#allocation4 + $0xd0] ss:$2 sm:$0xff]  ;;  %v8202_v14 = vld [vmem:[#allocation4 + $0xd1] ss:$2 sm:$0xff]  ;;  %v7957_v61 = vmax.f32 %v7925_v53, 0.0  ;;  %vm15752_vm4 = vcmp.ge.s32.totalorder %v8289_v19, 1 }
 0x53d   : > { %v8204_v16 = vmax.f32 %v8200_v46, %v8202_v14  ;;  %7992 = vst.msk [vmem:[#allocation4 + $0xf8] sm:$0xff] %vm7960_vm8, %v7959_v22  ;;  %v8182_v59 = vrot.slane %v8180_v1, 7  ;;  %v8196_v30 = vld [vmem:[#allocation4 + $0xc0] ss:$2 sm:$0xff]  ;;  %v8198_v49 = vld [vmem:[#allocation4 + $0xc1] ss:$2 sm:$0xff]  ;;  %v15750_v45 = vcombine.low %v9047_v41, %v9048_v35 }
 0x53e   : > { %v8203_v51 = vmax.f32 %v8196_v30, %v8198_v49  ;;  %7990 = vst.msk [vmem:[#allocation4 + $0xe8] sm:$0xff] %vm7960_vm8, %v7957_v61  ;;  %vm15758_vm13 = vcmp.ge.s32.totalorder %v8296_v0, 1  ;;  %v15784_v20 = vld [vmem:[#allocation5 + $0x10] sm:$0xf]  ;;  %v8546_v11 = vshrl.u32 %v15713_v56, 16  ;;  %v10782_v37 = vsel %vm15766_vm3, 1.0, %v16692_v7 }
 0x53f   : > { %v8185_v21 = vor.u32 %v8183_v38, %v8182_v59  ;;  %v8186_v5 = vrot.slane %v8182_v59, 4  ;;  %v9540_v22 = vmul.bf16 %v15784_v20, %v15702_v33  ;;  %v10783_v56 = vsel %vm15774_vm10, 1.0, %v16692_v7  ;;  %v8223_v35 = vld [vmem:[#allocation5 + $0x20] sm:$0x1] }
 0x540   : > { %v8205_v4 = vmax.f32 %v8203_v51, %v8204_v16  ;;  %v8548_v14 = vor.u32 %v8546_v11, %v15726_v57  ;;  %v10784_v16 = vsel %vm15780_vm11, 1.0, %v16692_v7  ;;  %v12386_v51 = vld [vmem:[#allocation14 + $0x8] sm:$0xff]   ;;  %v10777_v57 = vsel %vm15752_vm4, 1.0, %v16692_v7 }
 0x541   : > { %v8189_v31 = vld [vmem:[#allocation5 + $0x18] sm:$0xf]  ;;  %v8193_v13 = vsel %vm15574_vm0, %v8186_v5, %v8192_v32  ;;  %v8405_v39 = vpack.c.bf16 %v10782_v37, %v10781_v52  ;;  %vm15828_vm5 = vcmp.le.s32.totalorder %v8289_v19, 6  ;;  %vm8386_vm7 = vcmp.le.s32.totalorder %v8296_v0, 6 }
 0x542   : > { %v8190_v3 = vsel %vm15567_vm12, %v8185_v21, %v8189_v31  ;;  %8194 = vst [vmem:[#allocation5 + $0x1c] sm:$0x1] %v8193_v13  ;;  %v10948_v62 = vpack.c.bf16 %v8205_v4, %v8205_v4  ;;  %v15786_v60 = vld [vmem:[#allocation5 + $0x14] sm:$0xf]  ;;  %v10778_v4 = vsel %vm15758_vm13, 1.0, %v16692_v7  ;;  %v8406_v13 = vpack.c.bf16 %v10784_v16, %v10783_v56 }
 0x543   : > { %8191 = vst [vmem:[#allocation5 + $0x18] sm:$0xf] %v8190_v3  ;;  %v15790_v26 = vcombine.low %v15734_v2, %v15786_v60  ;;  %v15793_v43 = vld [vmem:[#allocation5 + $0x14] sm:$0xf]  ;;  %v16716_v3 = vld [vmem:[#allocation31_spill] sm:$0xff]  ;;  %v8310_v18 = vand.u32 7, %v16717_v27  ;;  %v8810_v19 = vrot.slane %v8405_v39, %v16696_v10 }
 0x544   : > { %v8231_v50 = vld [vmem:[#allocation4 + $0xf0] ss:$2 sm:$0xff]  ;;  %v8233_v24 = vld [vmem:[#allocation4 + $0xf1] ss:$2 sm:$0xff]  ;;  %v8211_v58 = vshrl.u32 %v10948_v62, 16  ;;  %v9541_v53 = vmul.bf16 %v15793_v43, %v15740_v17  ;;  %v8214_v42 = vshll.u32 %v10948_v62, 16  ;;  %v8817_v52 = vrot.slane %v8406_v13, %v16695_v6 }
 0x545   : > { %v8235_v12 = vmax.f32 %v8231_v50, %v8233_v24  ;;  %v8227_v44 = vld [vmem:[#allocation4 + $0xe0] ss:$2 sm:$0xff]  ;;  %v8229_v55 = vld [vmem:[#allocation4 + $0xe1] ss:$2 sm:$0xff]  ;;  %v8550_v46 = vshll.u32 %v15790_v26, 16  ;;  %v8303_v62 = vand.u32 7, %v16716_v3  ;;  %v8379_v50 = vpack.c.bf16 %v10778_v4, %v10777_v57 }
 0x546   : > { %v8213_v54 = vrot.slane %v8211_v58, 7  ;;  %v8234_v1 = vmax.f32 %v8227_v44, %v8229_v55  ;;  %v15811_v61 = vcombine.low %v9540_v22, %v9541_v53  ;;  %v8803_v24 = vrot.slane %v8405_v39, %v16695_v6  ;;  %v8254_v55 = vld [vmem:[#allocation5 + $0x24] sm:$0x1] }
 0x547   : > { %v15813_v49 = vrot.slane %v8550_v46, 1  ;;  %vm8359_vm1 = vcmp.ge.s32.totalorder %v8303_v62, 1  ;;  %vm8360_vm9 = vcmp.ge.s32.totalorder %v8310_v18, 1  ;;  %v10786_v0 = vsel %vm8386_vm7, 1.0, %v16692_v7  ;;  %v12389_v22 = vld [vmem:[#allocation14 + $0x18] sm:$0xff]  }
 0x548   : > { %v8216_v59 = vor.u32 %v8214_v42, %v8213_v54  ;;  %v8217_v38 = vrot.slane %v8213_v54, 4  ;;  %v8236_v30 = vmax.f32 %v8234_v1, %v8235_v12  ;;  %v8824_v44 = vrot.slane %v8406_v13, %v16696_v10 }
 0x549   : > { %v8220_v32 = vld [vmem:[#allocation5 + $0x1c] sm:$0xf]  ;;  %v8553_v9 = vsel %vm3822_vm2, %v8548_v14, %v15813_v49  ;;  %vm15843_vm4 = vcmp.le.s32.totalorder %v8303_v62, 6  ;;  %vm15847_vm13 = vcmp.le.s32.totalorder %v8310_v18, 6  ;;  %v10779_v42 = vsel %vm8359_vm1, 1.0, %v16692_v7 }
 0x54a   : > { %v8221_v21 = vsel %vm15567_vm12, %v8216_v59, %v8220_v32  ;;  %v10949_v5 = vpack.c.bf16 %v8236_v30, %v8236_v30  ;;  %11714 = vmatmul.mubr.msk.bf16.vlgmr.msra.gmra.mrb[160].mxu0 %vm7960_vm8, %v8553_v9  ;;  %v8224_v31 = vsel %vm15574_vm0, %v8217_v38, %v8223_v35  ;;  %v10780_v1 = vsel %vm8360_vm9, 1.0, %v16692_v7  ;;  %v15855_v56 = vld [vmem:[#allocation5 + $0x18] sm:$0xf] }
 0x54b   : > { %8222 = vst [vmem:[#allocation5 + $0x1c] sm:$0xf] %v8221_v21  ;;  %11722 = vmatpush3.bf16.msra.mxu0 %v15523_v23  ;;  %8225 = vst [vmem:[#allocation5 + $0x20] sm:$0x1] %v8224_v31  ;;  %v10785_v23 = vsel %vm15828_vm5, 1.0, %v16692_v7  ;;  %v15853_v46 = vrot.slane %v8803_v24, 7  ;;  %v15862_v30 = vrot.slane %v8379_v50, %v16695_v6  ;;  %v15865_v35 = vrot.slane %v8379_v50, %v16696_v10 }
 0x54c   : > { %v8242_v41 = vshrl.u32 %v10949_v5, 16  ;;  %11723 = vmatprep.subr.bf16.mxu0 %v12386_v51  ;;  %v8245_v12 = vshll.u32 %v10949_v5, 16  ;;  %v8855_v14 = vrot.slane %v8810_v19, 7  ;;  %v15857_v16 = vld [vmem:[#allocation5 + $0x18] sm:$0xf]  ;;  %v8407_v38 = vpack.c.bf16 %v10786_v0, %v10785_v23 }
 0x54d   : > { %v8858_v21 = vrot.slane %v8817_v52, 7  ;;  %v10787_v5 = vsel %vm15843_vm4, 1.0, %v16692_v7  ;;  %v10788_v9 = vsel %vm15847_vm13, 1.0, %v16692_v7  ;;  %v15883_v15 = vrot.slane %v8824_v44, 7  ;;  %v15891_v7 = vld [vmem:[#allocation14 + $0x40] sm:$0xff]  }
 0x54e   : > { %v8244_v58 = vrot.slane %v8242_v41, 7  ;;  %v9542_v31 = vmul.bf16 %v15855_v56, %v15862_v30  ;;  %v8554_v13 = vshrl.u32 %v15790_v26, 16  ;;  %v8857_v3 = vrot.slane %v8855_v14, 4  ;;  %v15897_v24 = vld [vmem:[#allocation5 + $0x10] sm:$0xf] }
 0x54f   : > { %11724 = vmatpush3.bf16.msra.mxu0 %v12386_v51  ;;  %v8860_v48 = vrot.slane %v8858_v21, 4  ;;  %v8854_v62 = vrot.slane %v15853_v46, 4  ;;  %v8408_v27 = vpack.c.bf16 %v10788_v9, %v10787_v5  ;;  %v15899_v19 = vld [vmem:[#allocation5 + $0x14] sm:$0xf]  ;;  %v8380_v26 = vpack.c.bf16 %v10780_v1, %v10779_v42 }
 0x550   : > { %v8247_v11 = vor.u32 %v8245_v12, %v8244_v58  ;;  %v8248_v37 = vrot.slane %v8244_v58, 4  ;;  %11725 = vmatprep.subr.bf16.mxu0 %v12387_v8  ;;  %v8831_v58 = vrot.slane %v8407_v38, %v16695_v6  ;;  %v15902_v12 = vld [vmem:[#allocation5 + $0xc] sm:$0xf]  ;;  %v15908_v52 = vsel %vm13192_vm15, %v8857_v3, %v8858_v21 }
 0x551   : > { %v8838_v44 = vrot.slane %v8407_v38, %v16696_v10  ;;  %v9873_v53 = vmul.bf16 %v15897_v24, %v15908_v52  ;;  %v15927_v42 = vrot.slane %v8380_v26, %v16696_v10  ;;  %v8485_v9 = vmul.bf16 %v15658_v47, %v15653_v29 }
 0x552   : > { %v15859_v59 = vld [vmem:[#allocation5 + $0x1c] sm:$0xf]  ;;  %v8255_v51 = vsel %vm15574_vm0, %v8248_v37, %v8254_v55  ;;  %v8251_v39 = vld [vmem:[#allocation5 + $0x20] sm:$0xf]  ;;  %v15919_v55 = vsel %vm13192_vm15, %v8854_v62, %v8855_v14  ;;  %v15934_v14 = vrot.slane %v8380_v26, %v16695_v6 }
 0x553   : > { %v15867_v32 = vld [vmem:[#allocation5 + $0x1c] sm:$0xf]  ;;  %v15873_v57 = vcombine.low %v15857_v16, %v15859_v59  ;;  %8256 = vst [vmem:[#allocation5 + $0x24] sm:$0x1] %v8255_v51  ;;  %v8252_v4 = vsel %vm15567_vm12, %v8247_v11, %v8251_v39  ;;  %11726 = vmatpush3.bf16.msra.mxu0 %v12387_v8  ;;  %v8556_v8 = vor.u32 %v8554_v13, %v15813_v49  ;;  %v8867_v13 = vrot.slane %v8838_v44, 7 }
 0x554   : > { %v9543_v40 = vmul.bf16 %v15867_v32, %v15865_v35  ;;  %8253 = vst [vmem:[#allocation5 + $0x20] sm:$0xf] %v8252_v4  ;;  %11727 = vmatprep.subr.bf16.mxu0 %v12389_v22  ;;  %v15913_v49 = vsel %vm13192_vm15, %v8860_v48, %v15883_v15  ;;  %v8845_v11 = vrot.slane %v8408_v27, %v16695_v6 }
 0x555   : > { %v8558_v41 = vshll.u32 %v15873_v57, 16  ;;  %v9874_v54 = vmul.bf16 %v15899_v19, %v15913_v49  ;;  %v9872_v1 = vmul.bf16 %v15902_v12, %v15919_v55  ;;  %v8852_v51 = vrot.slane %v8408_v27, %v16696_v10 }
 0x556   : > { %v15894_v18 = vcombine.low %v9542_v31, %v9543_v40  ;;  %v8864_v40 = vrot.slane %v8831_v58, 7  ;;  %v8870_v6 = vrot.slane %v8845_v11, 7  ;;  %v8486_v48 = vmul.bf16 %v15663_v36, %v15655_v63  ;;  %v15955_v11 = vld [vmem:[#allocation5 + $0x18] sm:$0xf] }
 0x557   : > { %v8560_v50 = vrot.slane %v8558_v41, 1  ;;  %11728 = vmatpush3.bf16.msra.mxu0 %v12389_v22  ;;  %v9870_v22 = vld [vmem:[#allocation5 + $0x8] sm:$0xe]  ;;  %v15939_v21 = vcombine.low %v9873_v53, %v9874_v54  ;;  %v8562_v41 = vshrl.u32 %v15873_v57, 16  ;;  %v8863_v27 = vrot.slane %v15883_v15, 4 }
 0x558   : > { %11737 = vmatprep.subr.bf16.mxu0 %v15891_v7  ;;  %v9871_v31 = vmul.bf16 %v9870_v22, %v15853_v46  ;;  %v8866_v29 = vrot.slane %v8864_v40, 4  ;;  %v8873_v26 = vrot.slane %v8852_v51, 7  ;;  %v8872_v58 = vrot.slane %v8870_v6, 4  ;;  %v15959_v57 = vld [vmem:[#allocation5 + $0x1c] sm:$0xf] }
 0x559   : > { %v8561_v23 = vsel %vm3822_vm2, %v8556_v8, %v8560_v50  ;;  %v8869_v8 = vrot.slane %v8867_v13, 4  ;;  %v15961_v53 = vld [vmem:[#allocation5 + $0x28] sm:$0x1]  ;;  %v9913_v54 = vrot.slane %v15939_v21, 1 }
 0x55a   : > { %11717 = vmatprep.mubr.msk.bf16.mxu0 %vm7960_vm8, %v8561_v23  ;;  %v9537_v37 = vld [vmem:[#allocation5 + $0x24] sm:$0xf]  ;;  %v10890_v62 = vcombine.low %v9871_v31, %v9872_v1  ;;  %v8564_v23 = vor.u32 %v8562_v41, %v8560_v50  ;;  %v15957_v22 = vrot.slane %v8873_v26, 4  ;;  %v10802_v1 = vcombine.low %v8485_v9, %v8486_v48 }
 0x55b   : > { %v15931_v38 = vld [vmem:[#allocation5 + $0x20] sm:$0x1]  ;;  %v9545_v4 = vmul.bf16 %v9537_v37, %v15927_v42  ;;  %v15967_v50 = vld [vmem:[#allocation5 + $0x24] sm:$0xf]  ;;  %v15976_v31 = vsel %vm13192_vm15, %v8866_v29, %v8867_v13  ;;  %v15980_v21 = vsel %vm13192_vm15, %v8869_v8, %v8870_v6  ;;  %v15985_v9 = vsel %vm13192_vm15, %v8872_v58, %v8873_v26  ;;  %v8792_v6 = vld [vmem:[#allocation5] sm:$0xe] }
 0x55c   : > { %v15937_v39 = vld [vmem:[#allocation5 + $0x20] sm:$0xf]  ;;  %v10793_v5 = vcombine.low %v15931_v38, %v15931_v38  ;;  %v9912_v51 = vrot.slane %v10890_v62, 1  ;;  %v9876_v13 = vmul.bf16 %v15959_v57, %v15976_v31  ;;  %v8488_v41 = vmul.bf16 %v15740_v17, %v15698_v25 }
 0x55d   : > { %v9544_v10 = vmul.bf16 %v15937_v39, %v15934_v14  ;;  %v9878_v0 = vmul.bf16 %v15967_v50, %v15985_v9  ;;  %v9879_v48 = vmul.bf16 %v15961_v53, %v15957_v22  ;;  %v8490_v62 = vmul.bf16 %v15865_v35, %v15786_v60 }
 0x55e   : > { %v8566_v3 = vshll.u32 %v10793_v5, 16  ;;  %v15965_v5 = vld [vmem:[#allocation5 + $0x20] sm:$0xf]  ;;  %v8487_v29 = vmul.bf16 %v15702_v33, %v15671_v28  ;;  %v8888_v17 = vmul.bf16 %v15913_v49, %v15698_v25  ;;  %v8886_v58 = vmul.bf16 %v15919_v55, %v15655_v63 }
 0x55f   : > { %v15953_v44 = vcombine.low %v9544_v10, %v9545_v4  ;;  %v15972_v4 = vsel %vm13192_vm15, %v8863_v27, %v8864_v40  ;;  %v15988_v10 = vsel %vm4970_vm6, %v9912_v51, %v9913_v54  ;;  %v10894_v26 = vcombine.low %v9879_v48, %v9879_v48  ;;  %v12391_v51 = vld [vmem:[#allocation14 + $0x48] sm:$0xff]  }
 0x560   : > { %v8568_v37 = vrot.slane %v8566_v3, 1  ;;  %16723 = vst [vmem:[#allocation34_spill] sm:$0xff] %v15988_v10  ;;  %v9875_v40 = vmul.bf16 %v15955_v11, %v15972_v4  ;;  %v9877_v3 = vmul.bf16 %v15965_v5, %v15980_v21  ;;  %v8491_v48 = vmul.bf16 %v15934_v14, %v15857_v16 }
 0x562   : > { %v8569_v15 = vsel %vm3822_vm2, %v8564_v23, %v8568_v37  ;;  %v10892_v27 = vcombine.low %v9875_v40, %v9876_v13  ;;  %v10893_v8 = vcombine.low %v9877_v3, %v9878_v0  ;;  %v8489_v23 = vmul.bf16 %v15862_v30, %v15734_v2 }
 0x563   : > { %11718 = vmatmul.mubr.msk.bf16.gmra.mrb[164].mxu0 %vm7960_vm8, %v8569_v15  ;;  %v8885_v37 = vmul.bf16 %v15853_v46, %v8792_v6  ;;  %v8887_v40 = vmul.bf16 %v15908_v52, %v15671_v28  ;;  %v9919_v13 = vrot.slane %v10894_v26, 1  ;;  %v12392_v28 = vld [vmem:[#allocation14 + $0x50] sm:$0xff]   ;;  %v8890_v0 = vmul.bf16 %v15976_v31, %v15786_v60 }
 0x564   : > { %11729 = vmatprep.mubr.msk.bf16.mxu0 %vm7960_vm8, %v10802_v1  ;;  %v9915_v15 = vrot.slane %v10892_v27, 1  ;;  %v10803_v1 = vcombine.low %v8487_v29, %v8488_v41  ;;  %v9917_v33 = vrot.slane %v10893_v8, 1  ;;  %v10804_v10 = vcombine.low %v8489_v23, %v8490_v62 }
 0x565   : > { %v10815_v3 = vcombine.low %v8887_v40, %v8888_v17  ;;  %v8492_v41 = vmul.bf16 %v15927_v42, %v15859_v59  ;;  %v8892_v27 = vmul.bf16 %v15985_v9, %v15859_v59  ;;  %v12393_v17 = vld [vmem:[#allocation14 + $0x58] sm:$0xff]   ;;  %v8891_v8 = vmul.bf16 %v15980_v21, %v15857_v16 }
 0x566   : > { %v16016_v25 = vsel %vm4970_vm6, %v9913_v54, %v9915_v15  ;;  %v16020_v6 = vsel %vm4970_vm6, %v9915_v15, %v9917_v33  ;;  %v16023_v63 = vsel %vm4970_vm6, %v9917_v33, %v9919_v13  ;;  %v10814_v54 = vcombine.low %v8885_v37, %v8886_v58  ;;  %v12394_v58 = vld [vmem:[#allocation14 + $0x60] sm:$0xff]  }
 0x567   : > { %v8927_v62 = vrot.slane %v10815_v3, 1  ;;  %v10817_v37 = vcombine.low %v8891_v8, %v8892_v27  ;;  %v12396_v3 = vld [vmem:[#allocation14 + $0x70] sm:$0xff]   ;;  %v9050_v27 = vmul.bf16 %v15865_v35, %v15857_v16 }
 0x568   : > { %v8926_v29 = vrot.slane %v10814_v54, 1  ;;  %v16049_v54 = vld [vmem:[#allocation5 + $0x8] sm:$0xf]  ;;  %v12400_v16 = vld [vmem:[#allocation14 + $0x90] sm:$0xff]  }
 0x56a   : > { %v8928_v23 = vsel %vm4970_vm6, %v8926_v29, %v8927_v62  ;;  %v9049_v29 = vmul.bf16 %v15862_v30, %v15786_v60  ;;  %v10841_v60 = vcombine.low %v15793_v43, %v15855_v56  ;;  %v9051_v30 = vmul.bf16 %v15934_v14, %v15859_v59  ;;  %v12404_v59 = vld [vmem:[#allocation14 + $0xa0] sm:$0xff]  }
 0x56b   : > { %11730 = vmatmul.mubr.msk.bf16.vlgmr.msra.gmra.mrb[160].mxu0 %vm7960_vm8, %v10803_v1  ;;  %v8931_v1 = vrot.slane %v10817_v37, 1 }
 0x56c   : > { %11738 = vmatpush3.bf16.msra.mxu0 %v15891_v7  ;;  %11733 = vmatprep.mubr.msk.bf16.mxu0 %vm7960_vm8, %v10804_v10  ;;  %v8889_v7 = vmul.bf16 %v15972_v4, %v15734_v2  ;;  %v10805_v10 = vcombine.low %v8491_v48, %v8492_v41  ;;  %v8893_v2 = vmul.bf16 %v15957_v22, %v15931_v38  ;;  %v12397_v38 = vld [vmem:[#allocation14 + $0x78] sm:$0xff]   ;;  %v12398_v48 = vld [vmem:[#allocation14 + $0x80] sm:$0xff]  }
 0x56d   : > { %11739 = vmatprep.subr.bf16.mxu0 %v12391_v51  ;;  %v10829_v8 = vcombine.low %v9049_v29, %v9050_v27  ;;  %v12407_v29 = vld [vmem:[#allocation14 + $0xa8] sm:$0xff]  }
 0x56e   : > { %v10816_v26 = vcombine.low %v8889_v7, %v8890_v0  ;;  %v10818_v33 = vcombine.low %v8893_v2, %v8893_v2  ;;  %v9191_v0 = vld [vmem:[#allocation5 + $0x4] sm:$0xf]  ;;  %v16057_v7 = vld [vmem:[#allocation5 + $0xc] sm:$0xf] }
 0x570   : > { %11740 = vmatpush3.bf16.msra.mxu0 %v12391_v51  ;;  %v8929_v15 = vrot.slane %v10816_v26, 1  ;;  %v12395_v51 = vld [vmem:[#allocation14 + $0x68] sm:$0xff]   ;;  %v9044_v26 = vld [vmem:[#allocation5 + $0x20] sm:$0xf] }
 0x571   : > { %11741 = vmatprep.subr.bf16.mxu0 %v12392_v28  ;;  %v9052_v35 = vmul.bf16 %v9044_v26, %v15927_v42 }
 0x572   : > { %v8930_v40 = vsel %vm4970_vm6, %v8927_v62, %v8929_v15  ;;  %v8932_v13 = vsel %vm4970_vm6, %v8929_v15, %v8931_v1  ;;  %v10839_v62 = vcombine.low %v9191_v0, %v16049_v54 }
 0x573   : > { %11734 = vmatmul.mubr.msk.bf16.gmra.mrb[164].mxu0 %vm7960_vm8, %v10805_v10  ;;  %v10840_v10 = vcombine.low %v16057_v7, %v15784_v20  ;;  %v10830_v2 = vcombine.low %v9051_v30, %v9052_v35 }
 0x574   : > { %11742 = vmatpush3.bf16.msra.mxu0 %v12392_v28  ;;  %11745 = vmatprep.mubr.msk.bf16.mxu0 %vm7960_vm8, %v8928_v23  ;;  %v8933_v28 = vrot.slane %v10818_v33, 1 }
 0x575   : > { %11743 = vmatprep.subr.bf16.mxu0 %v12393_v17  ;;  %v9240_v23 = vshll.u32 %v10840_v10, 16 }
 0x576   : > { %v8934_v41 = vsel %vm4970_vm6, %v8931_v1, %v8933_v28  ;;  %v9252_v28 = vshrl.u32 %v10841_v60, 16 }
 0x577   : > { %v9242_v15 = vrot.slane %v9240_v23, 1 }
 0x578   : > { %11744 = vmatpush3.bf16.msra.mxu0 %v12393_v17  ;;  %v12399_v17 = vld [vmem:[#allocation14 + $0x88] sm:$0xff]  }
 0x579   : > { %11753 = vmatprep.subr.bf16.mxu0 %v12394_v58 }
 0x57b   : > { %11746 = vmatmul.mubr.msk.bf16.vlgmr.msra.gmra.mrb[160].mxu0 %vm7960_vm8, %v8930_v40  ;;  %v9248_v40 = vshll.u32 %v10841_v60, 16  ;;  %v9385_v60 = vmul.bf16 %v15937_v39, %v15985_v9 }
 0x57c   : > { %11754 = vmatpush3.bf16.msra.mxu0 %v12394_v58  ;;  %11749 = vmatprep.mubr.msk.bf16.mxu0 %vm7960_vm8, %v8932_v13  ;;  %v9233_v58 = vshrl.u32 %v10839_v62, 16  ;;  %v9199_v13 = vld [vmem:[#allocation5 + $0x24] sm:$0x1] }
 0x57d   : > { %11755 = vmatprep.subr.bf16.mxu0 %v12395_v51  ;;  %v9250_v14 = vrot.slane %v9248_v40, 1 }
 0x57f   : > { %v9254_v27 = vor.u32 %v9252_v28, %v9250_v14  ;;  %v9684_v28 = vld [vmem:[#allocation5 + $0x8] sm:$0xf] }
 0x580   : > { %11756 = vmatpush3.bf16.msra.mxu0 %v12395_v51  ;;  %v12403_v51 = vld [vmem:[#allocation14 + $0x98] sm:$0xff]  }
 0x581   : > { %11757 = vmatprep.subr.bf16.mxu0 %v12396_v3 }
 0x583   : > { %11750 = vmatmul.mubr.msk.bf16.gmra.mrb[164].mxu0 %vm7960_vm8, %v8934_v41  ;;  %v9381_v41 = vmul.bf16 %v15784_v20, %v15913_v49 }
 0x584   : > { %11758 = vmatpush3.bf16.msra.mxu0 %v12396_v3  ;;  %11761 = vmatprep.mubr.msk.bf16.mxu0 %vm7960_vm8, %v15690_v34  ;;  %v9235_v34 = vshll.u32 %v10839_v62, 16  ;;  %v9244_v3 = vshrl.u32 %v10840_v10, 16  ;;  %v9377_v62 = vld [vmem:[#allocation5 + $0x4] sm:$0xe] }
 0x585   : > { %11759 = vmatprep.subr.bf16.mxu0 %v12397_v38  ;;  %v9378_v20 = vmul.bf16 %v9377_v62, %v15853_v46  ;;  %v9382_v46 = vmul.bf16 %v15793_v43, %v15972_v4  ;;  %v9386_v4 = vmul.bf16 %v9199_v13, %v15957_v22  ;;  %v9539_v22 = vmul.bf16 %v16057_v7, %v15663_v36 }
 0x586   : > { %v9237_v37 = vrot.slane %v9235_v34, 1  ;;  %v9246_v0 = vor.u32 %v9244_v3, %v9242_v15  ;;  %v9380_v34 = vmul.bf16 %v16057_v7, %v15908_v52  ;;  %v9383_v52 = vmul.bf16 %v15855_v56, %v15976_v31 }
 0x587   : > { %v10878_v36 = vcombine.low %v15897_v24, %v15899_v19  ;;  %v10880_v19 = vcombine.low %v15965_v5, %v15967_v50  ;;  %v10881_v5 = vcombine.low %v15961_v53, %v15961_v53  ;;  %v12425_v53 = vld [vmem:[#allocation14 + $0x110] sm:$0xff]  }
 0x588   : > { %11760 = vmatpush3.bf16.msra.mxu0 %v12397_v38  ;;  %v9238_v1 = vor.u32 %v9237_v37, %v9233_v58  ;;  %v9251_v10 = vsel %vm3822_vm2, %v9246_v0, %v9250_v14  ;;  %v10853_v49 = vcombine.low %v9380_v34, %v9381_v41  ;;  %v12414_v14 = vld [vmem:[#allocation14 + $0xd8] sm:$0xff]   ;;  %v10877_v41 = vcombine.low %v9684_v28, %v15902_v12  ;;  %v12417_v0 = vld [vmem:[#allocation14 + $0xf0] sm:$0xff]  }
 0x589   : > { %11769 = vmatprep.subr.bf16.mxu0 %v12398_v48  ;;  %v9733_v7 = vshll.u32 %v10878_v36, 16  ;;  %v10879_v12 = vcombine.low %v15955_v11, %v15959_v57  ;;  %v12421_v11 = vld [vmem:[#allocation14 + $0x100] sm:$0xff]   ;;  %v9737_v34 = vshrl.u32 %v10878_v36, 16 }
 0x58a   : > { %v9243_v42 = vsel %vm3822_vm2, %v9238_v1, %v9242_v15  ;;  %v9420_v37 = vrot.slane %v10853_v49, 1  ;;  %v12410_v15 = vld [vmem:[#allocation14 + $0xb8] sm:$0xff]   ;;  %v10854_v1 = vcombine.low %v9382_v46, %v9383_v52  ;;  %v9726_v62 = vshrl.u32 %v10877_v41, 16 }
 0x58b   : > { %11762 = vmatmul.mubr.msk.bf16.vlgmr.msra.gmra.mrb[160].mxu0 %vm7960_vm8, %v15750_v45  ;;  %v10842_v45 = vcombine.low %v15867_v32, %v15937_v39  ;;  %v12411_v39 = vld [vmem:[#allocation14 + $0xc0] sm:$0xff]   ;;  %v9735_v24 = vrot.slane %v9733_v7, 1  ;;  %v9745_v50 = vshrl.u32 %v10879_v12, 16  ;;  %v12427_v52 = vld [vmem:[#allocation14 + $0x118] sm:$0xff]  }
 0x58c   : > { %11770 = vmatpush3.bf16.msra.mxu0 %v12398_v48  ;;  %11765 = vmatprep.mubr.msk.bf16.mxu0 %vm7960_vm8, %v10829_v8  ;;  %v10843_v48 = vcombine.low %v9199_v13, %v9199_v13  ;;  %v9422_v43 = vrot.slane %v10854_v1, 1 }
 0x58d   : > { %11771 = vmatprep.subr.bf16.mxu0 %v12399_v17  ;;  %v9256_v33 = vshll.u32 %v10842_v45, 16  ;;  %v9260_v26 = vshrl.u32 %v10842_v45, 16  ;;  %v9384_v45 = vmul.bf16 %v15867_v32, %v15980_v21  ;;  %v12412_v32 = vld [vmem:[#allocation14 + $0xc8] sm:$0xff]  }
 0x58e   : > { %v9264_v23 = vshll.u32 %v10843_v48, 16  ;;  %v9423_v21 = vsel %vm4970_vm6, %v9420_v37, %v9422_v43 }
 0x58f   : > { %v9258_v38 = vrot.slane %v9256_v33, 1  ;;  %v10855_v31 = vcombine.low %v9384_v45, %v9385_v60  ;;  %v16724_v60 = vld [vmem:[#allocation34_spill] sm:$0xff] }
 0x590   : > { %11772 = vmatpush3.bf16.msra.mxu0 %v12399_v17  ;;  %v9379_v17 = vmul.bf16 %v16049_v54, %v15919_v55  ;;  %v9266_v30 = vrot.slane %v9264_v23, 1 }
 0x591   : > { %11773 = vmatprep.subr.bf16.mxu0 %v12400_v16  ;;  %v9259_v8 = vsel %vm3822_vm2, %v9254_v27, %v9258_v38  ;;  %v9262_v35 = vor.u32 %v9260_v26, %v9258_v38  ;;  %v9424_v9 = vrot.slane %v10855_v31, 1  ;;  %v12415_v38 = vld [vmem:[#allocation14 + $0xe0] sm:$0xff]   ;;  %v9757_v26 = vshll.u32 %v10881_v5, 16 }
 0x592   : > { %v10852_v55 = vcombine.low %v9378_v20, %v9379_v17  ;;  %v9749_v17 = vshll.u32 %v10880_v19, 16 }
 0x593   : > { %11766 = vmatmul.mubr.msk.bf16.gmra.mrb[164].mxu0 %vm7960_vm8, %v10830_v2  ;;  %v9267_v2 = vsel %vm3822_vm2, %v9262_v35, %v9266_v30  ;;  %v9425_v40 = vsel %vm4970_vm6, %v9422_v43, %v9424_v9  ;;  %v9759_v35 = vrot.slane %v9757_v26, 1  ;;  %v10903_v30 = vld [vmem:[#allocation15] ss:$0 sm:$0xff] }
 0x594   : > { %11774 = vmatpush3.bf16.msra.mxu0 %v12400_v16  ;;  %11777 = vmatprep.mubr.msk.bf16.mxu0 %vm7960_vm8, %v9243_v42  ;;  %v12408_v16 = vld [vmem:[#allocation14 + $0xb0] sm:$0xff]   ;;  %v9419_v58 = vrot.slane %v10852_v55, 1 }
 0x595   : > { %11775 = vmatprep.subr.bf16.mxu0 %v12403_v51  ;;  %v12413_v42 = vld [vmem:[#allocation14 + $0xd0] sm:$0xff]  }
 0x596   : > { %v9421_v56 = vsel %vm4970_vm6, %v9419_v58, %v9420_v37 }
 0x598   : > { %11776 = vmatpush3.bf16.msra.mxu0 %v12403_v51  ;;  %v10856_v51 = vcombine.low %v9386_v4, %v9386_v4 }
 0x599   : > { %11785 = vmatprep.subr.bf16.mxu0 %v12404_v59 }
 0x59a   : > { %v9426_v33 = vrot.slane %v10856_v51, 1 }
 0x59b   : > { %11778 = vmatmul.mubr.msk.bf16.vlgmr.msra.gmra.mrb[160].mxu0 %vm7960_vm8, %v9251_v10  ;;  %v9751_v10 = vrot.slane %v9749_v17, 1 }
 0x59c   : > { %11786 = vmatpush3.bf16.msra.mxu0 %v12404_v59  ;;  %11781 = vmatprep.mubr.msk.bf16.mxu0 %vm7960_vm8, %v9259_v8  ;;  %v9538_v59 = vmul.bf16 %v16049_v54, %v15658_v47  ;;  %v9427_v13 = vsel %vm4970_vm6, %v9424_v9, %v9426_v33  ;;  %v12416_v47 = vld [vmem:[#allocation14 + $0xe8] sm:$0xff]   ;;  %v9728_v54 = vshll.u32 %v10877_v41, 16  ;;  %v9739_v8 = vor.u32 %v9737_v34, %v9735_v24 }
 0x59d   : > { %11787 = vmatprep.subr.bf16.mxu0 %v12407_v29 }
 0x59e   : > { %v10865_v3 = vcombine.low %v9538_v59, %v9539_v22  ;;  %v9730_v48 = vrot.slane %v9728_v54, 1 }
 0x5a0   : > { %11788 = vmatpush3.bf16.msra.mxu0 %v12407_v29  ;;  %v9731_v27 = vor.u32 %v9730_v48, %v9726_v62  ;;  %v9741_v29 = vshll.u32 %v10879_v12, 16 }
 0x5a1   : > { %11789 = vmatprep.subr.bf16.mxu0 %v12408_v16 }
 0x5a2   : > { %v9743_v57 = vrot.slane %v9741_v29, 1 }
 0x5a3   : > { %11782 = vmatmul.mubr.msk.bf16.gmra.mrb[164].mxu0 %vm7960_vm8, %v9267_v2 }
 0x5a4   : > { %11790 = vmatpush3.bf16.msra.mxu0 %v12408_v16  ;;  %11793 = vmatprep.mubr.msk.bf16.mxu0 %vm7960_vm8, %v9421_v56  ;;  %v9747_v20 = vor.u32 %v9745_v50, %v9743_v57  ;;  %v9744_v49 = vsel %vm3822_vm2, %v9739_v8, %v9743_v57  ;;  %v9753_v16 = vshrl.u32 %v10880_v19, 16 }
 0x5a5   : > { %11791 = vmatprep.subr.bf16.mxu0 %v12410_v15 }
 0x5a6   : > { %v9752_v23 = vsel %vm3822_vm2, %v9747_v20, %v9751_v10  ;;  %v9755_v55 = vor.u32 %v9753_v16, %v9751_v10 }
 0x5a8   : > { %11792 = vmatpush3.bf16.msra.mxu0 %v12410_v15  ;;  %v9760_v37 = vsel %vm3822_vm2, %v9755_v55, %v9759_v35 }
 0x5a9   : > { %11801 = vmatprep.subr.bf16.mxu0 %v12411_v39 }
 0x5ab   : > { %11794 = vmatmul.mubr.msk.bf16.vlgmr.msra.gmra.mrb[160].mxu0 %vm7960_vm8, %v9423_v21 }
 0x5ac   : > { %11802 = vmatpush3.bf16.msra.mxu0 %v12411_v39  ;;  %11797 = vmatprep.mubr.msk.bf16.mxu0 %vm7960_vm8, %v9425_v40 }
 0x5ad   : > { %11803 = vmatprep.subr.bf16.mxu0 %v12412_v32 }
 0x5b0   : > { %11804 = vmatpush3.bf16.msra.mxu0 %v12412_v32 }
 0x5b1   : > { %11805 = vmatprep.subr.bf16.mxu0 %v12413_v42 }
 0x5b3   : > { %11798 = vmatmul.mubr.msk.bf16.gmra.mrb[164].mxu0 %vm7960_vm8, %v9427_v13 }
 0x5b4   : > { %11806 = vmatpush3.bf16.msra.mxu0 %v12413_v42  ;;  %11809 = vmatprep.mubr.msk.bf16.mxu0 %vm7960_vm8, %v10865_v3 }
 0x5b5   : > { %11807 = vmatprep.subr.bf16.mxu0 %v12414_v14 }
 0x5b8   : > { %11808 = vmatpush3.bf16.msra.mxu0 %v12414_v14 }
 0x5b9   : > { %11817 = vmatprep.subr.bf16.mxu0 %v12415_v38 }
 0x5bb   : > { %11810 = vmatmul.mubr.msk.bf16.vlgmr.msra.gmra.mrb[160].mxu0 %vm7960_vm8, %v15811_v61  ;;  %v12420_v61 = vld [vmem:[#allocation14 + $0xf8] sm:$0xff]  }
 0x5bc   : > { %11818 = vmatpush3.bf16.msra.mxu0 %v12415_v38  ;;  %11813 = vmatprep.mubr.msk.bf16.mxu0 %vm7960_vm8, %v15894_v18  ;;  %v9736_v18 = vsel %vm3822_vm2, %v9731_v27, %v9735_v24 }
 0x5bd   : > { %11819 = vmatprep.subr.bf16.mxu0 %v12416_v47 }
 0x5c0   : > { %11820 = vmatpush3.bf16.msra.mxu0 %v12416_v47 }
 0x5c1   : > { %11821 = vmatprep.subr.bf16.mxu0 %v12417_v0 }
 0x5c3   : > { %11814 = vmatmul.mubr.msk.bf16.gmra.mrb[164].mxu0 %vm7960_vm8, %v15953_v44  ;;  %v12424_v44 = vld [vmem:[#allocation14 + $0x108] sm:$0xff]  }
 0x5c4   : > { %11822 = vmatpush3.bf16.msra.mxu0 %v12417_v0  ;;  %11825 = vmatprep.mubr.msk.bf16.mxu0 %vm7960_vm8, %v9736_v18 }
 0x5c5   : > { %11823 = vmatprep.subr.bf16.mxu0 %v12420_v61 }
 0x5c8   : > { %11824 = vmatpush3.bf16.msra.mxu0 %v12420_v61 }
 0x5c9   : > { %11833 = vmatprep.subr.bf16.mxu0 %v12421_v11 }
 0x5cb   : > { %11826 = vmatmul.mubr.msk.bf16.vlgmr.msra.gmra.mrb[160].mxu0 %vm7960_vm8, %v9744_v49 }
 0x5cc   : > { %11834 = vmatpush3.bf16.msra.mxu0 %v12421_v11  ;;  %11829 = vmatprep.mubr.msk.bf16.mxu0 %vm7960_vm8, %v9752_v23 }
 0x5cd   : > { %11835 = vmatprep.subr.bf16.mxu0 %v12424_v44 }
 0x5d0   : > { %11836 = vmatpush3.bf16.msra.mxu0 %v12424_v44 }
 0x5d1   : > { %11837 = vmatprep.subr.bf16.mxu0 %v12425_v53 }
 0x5d3   : > { %11830 = vmatmul.mubr.msk.bf16.gmra.mrb[164].mxu0 %vm7960_vm8, %v9760_v37 }
 0x5d4   : > { %11838 = vmatpush3.bf16.msra.mxu0 %v12425_v53  ;;  %11841 = vmatprep.mubr.msk.bf16.mxu0 %vm7960_vm8, %v16724_v60 }
 0x5d5   : > { %11839 = vmatprep.subr.bf16.mxu0 %v12427_v52 }
 0x5d8   : > { %11840 = vmatpush3.bf16.msra.mxu0 %v12427_v52 }
 0x5db   : > { %11842 = vmatmul.mubr.msk.bf16.vlgmr.msra.gmra.mrb[160].mxu0 %vm7960_vm8, %v16016_v25 }
 0x5dc   : > { %11845 = vmatprep.mubr.msk.bf16.mxu0 %vm7960_vm8, %v16020_v6 }
 0x5e3   : > { %11846 = vmatmul.mubr.msk.bf16.gmra.mrb[164].mxu0 %vm7960_vm8, %v16023_v63 }
 0x6ae   : > { %v11843_v46 = vpop.f32.mrb[160].mxu0 }
 0x6af   : > { %v10039_v58 = vadd.f32 %v11843_v46, %v10903_v30  ;;  %v9991_v15 = vpop.f32.mrb[161].mxu0 }
 0x6b0   : > { %v10037_v45 = vadd.f32 %v10903_v30, %v9991_v15  ;;  %v11844_v2 = vpop.f32.mrb[162].mxu0 }
 0x6b1   : > { %v10047_v1 = vmax.f32 %v10039_v58, 0.0  ;;  %v10040_v56 = vadd.f32 %v11844_v2, %v10903_v30  ;;  %v9994_v31 = vpop.f32.mrb[163].mxu0 }
 0x6b2   : > { %v10045_v39 = vmax.f32 %v10037_v45, 0.0  ;;  %v10038_v43 = vadd.f32 %v10903_v30, %v9994_v31 }
 0x6b3   : > { %10055 = vst [vmem:[#allocation6 + $0x10] sm:$0xff] %v10047_v1  ;;  %v10048_v4 = vmax.f32 %v10040_v56, 0.0 }
 0x6b4   : > { %10053 = vst [vmem:[#allocation6] sm:$0xff] %v10045_v39  ;;  %v10046_v25 = vmax.f32 %v10038_v43, 0.0 }
 0x6b5   : > { %10056 = vst [vmem:[#allocation6 + $0x18] sm:$0xff] %v10048_v4 }
 0x6b6   : > { %10054 = vst [vmem:[#allocation6 + $0x8] sm:$0xff] %v10046_v25  ;;  %v11847_v6 = vpop.f32.mrb[164].mxu0 }
 0x6b7   : > { %v10043_v9 = vadd.f32 %v11847_v6, %v10903_v30  ;;  %v10007_v63 = vpop.f32.mrb[165].mxu0 }
 0x6b8   : > { %v11848_v32 = vpop.f32.mrb[166].mxu0  ;;  %v10041_v33 = vadd.f32 %v10903_v30, %v10007_v63 }
 0x6b9   : > { %v10051_v21 = vmax.f32 %v10043_v9, 0.0  ;;  %v10010_v51 = vpop.f32.mrb[167].mxu0  ;;  %v10044_v22 = vadd.f32 %v11848_v32, %v10903_v30 }
 0x6ba   : > { %v10074_v40 = vld [vmem:[#allocation6 + $0x10] ss:$2 sm:$0xf]  ;;  %v10076_v42 = vld [vmem:[#allocation6 + $0x11] ss:$2 sm:$0xf]  ;;  %v10042_v59 = vadd.f32 %v10903_v30, %v10010_v51 }
 0x6bb   : > { %v10061_v14 = vld [vmem:[#allocation6] ss:$2 sm:$0xf]  ;;  %v10063_v13 = vld [vmem:[#allocation6 + $0x1] ss:$2 sm:$0xf]  ;;  %v10081_v38 = vmax.f32 %v10074_v40, %v10076_v42 }
 0x6bc   : > { %10059 = vst [vmem:[#allocation6 + $0x30] sm:$0xff] %v10051_v21  ;;  %v10078_v3 = vld [vmem:[#allocation6 + $0x18] ss:$2 sm:$0xf]  ;;  %v10068_v41 = vmax.f32 %v10061_v14, %v10063_v13  ;;  %v10049_v0 = vmax.f32 %v10041_v33, 0.0  ;;  %v10052_v48 = vmax.f32 %v10044_v22, 0.0 }
 0x6bd   : > { %v10080_v28 = vld [vmem:[#allocation6 + $0x19] ss:$2 sm:$0xf]  ;;  %v10065_v47 = vld [vmem:[#allocation6 + $0x8] ss:$2 sm:$0xf] }
 0x6be   : > { %v10082_v36 = vmax.f32 %v10078_v3, %v10080_v28  ;;  %v10067_v54 = vld [vmem:[#allocation6 + $0x9] ss:$2 sm:$0xf]  ;;  %v10050_v12 = vmax.f32 %v10042_v59, 0.0  ;;  %10057 = vst [vmem:[#allocation6 + $0x20] sm:$0xff] %v10049_v0  ;;  %10060 = vst [vmem:[#allocation6 + $0x38] sm:$0xff] %v10052_v48 }
 0x6bf   : > { %v10069_v7 = vmax.f32 %v10065_v47, %v10067_v54 }
 0x6c0   : > { %v10083_v62 = vmax.f32 %v10081_v38, %v10082_v36  ;;  %10058 = vst [vmem:[#allocation6 + $0x28] sm:$0xff] %v10050_v12 }
 0x6c1   : > { %v10070_v24 = vmax.f32 %v10068_v41, %v10069_v7 }
 0x6c2   : > { %v10950_v19 = vpack.c.bf16 %v10083_v62, %v10083_v62 }
 0x6c3   : > { %v10071_v27 = vpack.c.bf16 %v10070_v24, %v10070_v24  ;;  %v10105_v29 = vld [vmem:[#allocation6 + $0x30] ss:$2 sm:$0xf]  ;;  %v10107_v18 = vld [vmem:[#allocation6 + $0x31] ss:$2 sm:$0xf] }
 0x6c4   : > { %v10088_v61 = vrot.slane %v10950_v19, 6  ;;  %v10112_v5 = vmax.f32 %v10105_v29, %v10107_v18 }
 0x6c5   : > { %10072 = vst [vmem:[%s360_s12] sm:$0x3] %v10071_v27  ;;  %v10092_v17 = vld [vmem:[#allocation6 + $0x20] ss:$2 sm:$0xf] }
 0x6c6   : > { %10090 = vst [vmem:[%s360_s12] sm:$0xc] %v10088_v61  ;;  %v10094_v11 = vld [vmem:[#allocation6 + $0x21] ss:$2 sm:$0xf] }
 0x6c7   : > { %v10109_v57 = vld [vmem:[#allocation6 + $0x38] ss:$2 sm:$0xf]  ;;  %v10111_v34 = vld [vmem:[#allocation6 + $0x39] ss:$2 sm:$0xf]  ;;  %v10099_v20 = vmax.f32 %v10092_v17, %v10094_v11 }
 0x6c8   : > { %v10113_v50 = vmax.f32 %v10109_v57, %v10111_v34  ;;  %v10096_v10 = vld [vmem:[#allocation6 + $0x28] ss:$2 sm:$0xf]  ;;  %v10098_v8 = vld [vmem:[#allocation6 + $0x29] ss:$2 sm:$0xf] }
 0x6c9   : > { %v10100_v44 = vmax.f32 %v10096_v10, %v10098_v8 }
 0x6ca   : > { %v10114_v49 = vmax.f32 %v10112_v5, %v10113_v50 }
 0x6cb   : > { %v10101_v26 = vmax.f32 %v10099_v20, %v10100_v44 }
 0x6cc   : > { %v10951_v23 = vpack.c.bf16 %v10114_v49, %v10114_v49 }
 0x6cd   : > { %v10102_v16 = vpack.c.bf16 %v10101_v26, %v10101_v26 }
 0x6ce   : > { %v10119_v53 = vrot.slane %v10951_v23, 6 }
 0x6cf   : > { %10103 = vst [vmem:[%s360_s12 + $0x4] sm:$0x3] %v10102_v16 }
 0x6d0   : > { %10121 = vst [vmem:[%s360_s12 + $0x4] sm:$0xc] %v10119_v53 }
 0x6d1 PF: > { %s21_s24 = sadd.s32 1, %s12639_s24  }
 0x6d2   : > { %p18_p9 = scmp.ge.s32.totalorder %s21_s24, 4  }
 0x6d4   :  { %20 = sbr.rel (!%p18_p9) target bundleno = 4 (0x4), region = 292 }
 0x6db   :  { %10143 = vsyncpa [#allocation8], 1 }
 0x6dc   :  { %10145 = vsyncpa [#allocation8 + $0x1], 1 }
 0x6dd   :  { %10146 = vsyncpa [#allocation10], 1 }
 0x6de   :  { %10147 = vsyncpa [#allocation13], 1 }
 0x6df   :  { %10148 = vsyncpa [#allocation16], 1 }

</bundles_post_ra>
